<compile_context>
chip_gen: v5e
topology: v5e:2x2
jax: 0.10.0
libtpu: 0.0.40
codegen_flags: <defaults>
</compile_context>

<pallas_src>
import jax
import jax.numpy as jnp
import numpy as np
from jax.experimental import pallas as pl
from jax.experimental.pallas import tpu as pltpu

EPS = 1e-5


# ----------------------------------------------------------------------------
# Fused Pallas kernel: ConvTranspose2d(2,2) + concat + DoubleConv
# ----------------------------------------------------------------------------

def _up_fused_kernel(x1_ref, x2_ref, sc_ref, upw_ref, upb_ref,
                     w1_ref, s1_ref, t1_ref, w2_ref, s2_ref, t2_ref,
                     o_ref, cat_ref, mid_ref):
    # o_ref:   (1, H2, W2, Cout)        final output (f32)
    # x1_ref:  (1, H*W, Cin)            low-res input, rows flattened (bf16)
    # x2_ref:  (1, H2, W2, C2)          skip connection (bf16)
    # sc_ref:  (2, 2*H*W, H*W)          one-hot scatter matrices (bf16, resident)
    # upw_ref: (Cin, 4*Cout)            upconv weights, taps packed on lanes as
    #                                   [dj0/di0 | dj0/di1 | dj1/di0 | dj1/di1] (bf16)
    # upb_ref: (1, 4*Cout)              upconv bias, tiled 4x (f32)
    # w1_ref:  (3, 3, C2+Cout, Cmid)    conv1 weights HWIO (bf16)
    # w2_ref:  (3, 3, Cmid, Cout)       conv2 weights HWIO (bf16)
    # s*_ref/t*_ref: (1, C)             folded BatchNorm scale / shift (f32)
    # cat_ref: (H2+2, W2+2, C2+Cout)    zero-padded concat image (bf16 scratch)
    # mid_ref: (H2+2, W2+2, Cmid)       zero-padded conv1 output (bf16 scratch)
    H2, W2, Cout = o_ref.shape[1], o_ref.shape[2], o_ref.shape[3]
    HW = x1_ref.shape[1]
    C2 = x2_ref.shape[3]
    H = H2 // 2
    Ccat = cat_ref.shape[2]
    Cmid = mid_ref.shape[2]

    # --- zero the padded scratch images (this *is* the conv "padding=1") -----
    # Zeroed every step on purpose: a zero-once-at-step-0 trick would be unsafe
    # when the "parallel" batch axis is split across megacore TensorCores.
    cat_ref[...] = jnp.zeros_like(cat_ref)
    mid_ref[...] = jnp.zeros_like(mid_ref)

    # --- skip connection x2 -> channels [0, C2) of the concat buffer --------
    cat_ref[pl.ds(1, H2), pl.ds(1, W2), pl.ds(0, C2)] = x2_ref[0]

    # --- ConvTranspose2d(k=2, s=2), written interleaved into [C2, C2+Cout) --
    # out[2h+di, 2j+dj, :] = x1[h*W + j, :] @ up_w[di, dj] + b
    x1 = x1_ref[0]                                        # (H*W, Cin) bf16
    # Single matmul for all 4 taps (packed on lanes), bias added in f32.
    y = jnp.dot(x1, upw_ref[...],
                preferred_element_type=jnp.float32) + upb_ref[...]   # (HW, 4*Cout)
    y_dj0 = y[:, :2 * Cout].astype(jnp.bfloat16)          # dj = 0 taps, [di0 | di1]
    y_dj1 = y[:, 2 * Cout:].astype(jnp.bfloat16)          # dj = 1 taps, [di0 | di1]
    # Column (W) interleave for all rows + both row phases at once:
    #   row o = 2i + dj of V takes y_dj{dj}[i];  i = h*W + j  ->  o = h*W2 + 2j + dj
    v = (jnp.dot(sc_ref[0], y_dj0, preferred_element_type=jnp.float32)
         + jnp.dot(sc_ref[1], y_dj1, preferred_element_type=jnp.float32))
    # Row (H) interleave: lane-split the two di phases, stack on a leading dim
    # (free), then one contiguous store into the concat buffer.
    up = jnp.stack([v[:, :Cout].reshape(H, W2, Cout),       # di = 0 rows
                    v[:, Cout:].reshape(H, W2, Cout)],      # di = 1 rows
                   axis=1).reshape(H2, W2, Cout)
    cat_ref[pl.ds(1, H2), pl.ds(1, W2), pl.ds(C2, Cout)] = up.astype(cat_ref.dtype)

    # --- conv3x3(pad=1, no bias) + folded BN + ReLU, 9 whole-image matmuls ---
    def conv3x3_bn_relu(src_ref, w_ref, scale, shift, cin, cout):
        acc = jnp.zeros((H2 * W2, cout), jnp.float32)
        for kh in range(3):                               # unrolled (static)
            for kw in range(3):
                tap = src_ref[pl.ds(kh, H2), pl.ds(kw, W2), :]     # (H2, W2, cin) bf16
                acc = acc + jnp.dot(tap.reshape(H2 * W2, cin), w_ref[kh, kw],
                                    preferred_element_type=jnp.float32)
        return jnp.maximum(acc * scale + shift, 0.0)      # f32 epilogue

    h1 = conv3x3_bn_relu(cat_ref, w1_ref, s1_ref[...], t1_ref[...], Ccat, Cmid)
    mid_ref[pl.ds(1, H2), pl.ds(1, W2), pl.ds(0, Cmid)] = (
        h1.reshape(H2, W2, Cmid).astype(mid_ref.dtype))

    h2 = conv3x3_bn_relu(mid_ref, w2_ref, s2_ref[...], t2_ref[...], Cmid, Cout)
    o_ref[0] = h2.reshape(H2, W2, Cout).astype(o_ref.dtype)


# ----------------------------------------------------------------------------
# Wrapper: NCHW in / NCHW out, one fused pallas_call
# ----------------------------------------------------------------------------

def up_forward(params, x1_nchw, x2_nchw):
    N, Cin, H, W = x1_nchw.shape
    N2, C2, H2, W2 = x2_nchw.shape
    assert N2 == N
    Cout = params["up_b"].shape[0]
    Cmid = params["scale1"].shape[0]
    Ccat = C2 + Cout
    assert params["w1"].shape[2] == Ccat
    # The reference F.pad([dx, dx//2, dy, dy//2]) is only shape-consistent when
    # dx == dy == 0 (ConvTranspose2d(2,2) exactly doubles the spatial size).
    # TODO(synk): diff != 0 padding not implemented (reference cat() would fail anyway).
    assert H2 == 2 * H and W2 == 2 * W
    HW = H * W

    # NCHW -> NHWC; matmul inputs fed to the MXU as bf16 (f32 accumulation in-kernel).
    x1 = jnp.transpose(x1_nchw, (0, 2, 3, 1)).reshape(N, HW, Cin).astype(jnp.bfloat16)
    x2 = jnp.transpose(x2_nchw, (0, 2, 3, 1)).astype(jnp.bfloat16)

    # One-hot scatter matrices for the column interleave (constant, resident in VMEM).
    oi = np.arange(2 * HW, dtype=np.int64)[:, None]
    ii = np.arange(HW, dtype=np.int64)[None, :]
    sc = jnp.asarray(np.stack([oi == 2 * ii, oi == 2 * ii + 1]), dtype=jnp.bfloat16)

    # Upconv weights (di=kH, dj=kW, Cin, Cout) packed on lanes as
    # [dj0/di0 | dj0/di1 | dj1/di0 | dj1/di1]; bias tiled 4x to match.
    upw = params["up_w"]
    upw_packed = jnp.concatenate(
        [upw[0, 0], upw[1, 0], upw[0, 1], upw[1, 1]], axis=-1).astype(jnp.bfloat16)
    upb_packed = jnp.tile(params["up_b"], 4).reshape(1, 4 * Cout).astype(jnp.float32)
    w1 = params["w1"].astype(jnp.bfloat16)                 # (3, 3, Ccat, Cmid) HWIO
    w2 = params["w2"].astype(jnp.bfloat16)                 # (3, 3, Cmid, Cout) HWIO
    s1 = params["scale1"].reshape(1, Cmid)
    t1 = params["shift1"].reshape(1, Cmid)
    s2 = params["scale2"].reshape(1, Cout)
    t2 = params["shift2"].reshape(1, Cout)

    out = pl.pallas_call(
        _up_fused_kernel,
        out_shape=jax.ShapeDtypeStruct((N, H2, W2, Cout), jnp.float32),
        grid=(N,),
        in_specs=[
            pl.BlockSpec((1, HW, Cin), lambda n: (n, 0, 0)),
            pl.BlockSpec((1, H2, W2, C2), lambda n: (n, 0, 0, 0)),
            pl.BlockSpec((2, 2 * HW, HW), lambda n: (0, 0, 0)),
            pl.BlockSpec((Cin, 4 * Cout), lambda n: (0, 0)),
            pl.BlockSpec((1, 4 * Cout), lambda n: (0, 0)),
            pl.BlockSpec((3, 3, Ccat, Cmid), lambda n: (0, 0, 0, 0)),
            pl.BlockSpec((1, Cmid), lambda n: (0, 0)),
            pl.BlockSpec((1, Cmid), lambda n: (0, 0)),
            pl.BlockSpec((3, 3, Cmid, Cout), lambda n: (0, 0, 0, 0)),
            pl.BlockSpec((1, Cout), lambda n: (0, 0)),
            pl.BlockSpec((1, Cout), lambda n: (0, 0)),
        ],
        out_specs=pl.BlockSpec((1, H2, W2, Cout), lambda n: (n, 0, 0, 0)),
        scratch_shapes=[
            pltpu.VMEM((H2 + 2, W2 + 2, Ccat), jnp.bfloat16),   # padded concat image
            pltpu.VMEM((H2 + 2, W2 + 2, Cmid), jnp.bfloat16),   # padded conv1 output
        ],
        compiler_params=pltpu.CompilerParams(
            dimension_semantics=("parallel",)),
    )(x1, x2, sc, upw_packed, upb_packed, w1, s1, t1, w2, s2, t2)

    return jnp.transpose(out, (0, 3, 1, 2))                # NHWC -> NCHW


# ----------------------------------------------------------------------------
# Deterministic synthetic parameters (layouts chosen for the kernel;
# PyTorch Conv2d weight (Cout,Cin,3,3) maps via permute(2,3,1,0) -> HWIO,
# ConvTranspose2d weight (Cin,Cout,2,2) maps via permute(2,3,0,1) -> (kH,kW,Cin,Cout)).
# ----------------------------------------------------------------------------

def _fold_bn(gamma, beta, mean, var):
    scale = gamma / jnp.sqrt(var + EPS)
    return scale, beta - mean * scale


def init_up_params(key, in_channels, out_channels):
    cmid = out_channels                                   # DoubleConv(in, out, mid=out)
    k = jax.random.split(key, 12)
    up_w = jax.random.normal(k[0], (2, 2, in_channels, out_channels), jnp.float32) \
        * (1.0 / (4 * in_channels)) ** 0.5
    up_b = jax.random.normal(k[1], (out_channels,), jnp.float32) * 0.05
    w1 = jax.random.normal(k[2], (3, 3, in_channels, cmid), jnp.float32) \
        * (2.0 / (9 * in_channels)) ** 0.5
    w2 = jax.random.normal(k[3], (3, 3, cmid, out_channels), jnp.float32) \
        * (2.0 / (9 * cmid)) ** 0.5
    g1 = jax.random.uniform(k[4], (cmid,), jnp.float32, 0.5, 1.5)
    b1 = jax.random.normal(k[5], (cmid,), jnp.float32) * 0.1
    m1 = jax.random.normal(k[6], (cmid,), jnp.float32) * 0.1
    v1 = jax.random.uniform(k[7], (cmid,), jnp.float32, 0.5, 1.5)
    g2 = jax.random.uniform(k[8], (out_channels,), jnp.float32, 0.5, 1.5)
    b2 = jax.random.normal(k[9], (out_channels,), jnp.float32) * 0.1
    m2 = jax.random.normal(k[10], (out_channels,), jnp.float32) * 0.1
    v2 = jax.random.uniform(k[11], (out_channels,), jnp.float32, 0.5, 1.5)
    s1, t1 = _fold_bn(g1, b1, m1, v1)
    s2, t2 = _fold_bn(g2, b2, m2, v2)
    return {"up_w": up_w, "up_b": up_b,
            "w1": w1, "scale1": s1, "shift1": t1,
            "w2": w2, "scale2": s2, "shift2": t2}


# ----------------------------------------------------------------------------
# Pure-JAX reference (f32) for a correctness sanity check
# ----------------------------------------------------------------------------

def up_reference(params, x1_nchw, x2_nchw):
    x1 = jnp.transpose(x1_nchw, (0, 2, 3, 1))
    x2 = jnp.transpose(x2_nchw, (0, 2, 3, 1))
    N, H, W, _ = x1.shape
    Cout = params["up_b"].shape[0]
    up = jnp.einsum("nijc,uvcd->niujvd", x1, params["up_w"])
    up = up.reshape(N, 2 * H, 2 * W, Cout) + params["up_b"]
    x = jnp.concatenate([x2, up], axis=-1)

    def conv_bn_relu(x, w, scale, shift):
        y = jax.lax.conv_general_dilated(
            x, w, window_strides=(1, 1), padding="SAME",
            dimension_numbers=("NHWC", "HWIO", "NHWC"))
        return jnp.maximum(y * scale + shift, 0.0)

    x = conv_bn_relu(x, params["w1"], params["scale1"], params["shift1"])
    x = conv_bn_relu(x, params["w2"], params["scale2"], params["shift2"])
    return jnp.transpose(x, (0, 3, 1, 2))


if __name__ == "__main__":
    key = jax.random.PRNGKey(0)
    kp, k1, k2 = jax.random.split(key, 3)
    in_channels, out_channels = 32, 16
    params = init_up_params(kp, in_channels, out_channels)
    # Up(32, 16): x1 is the deeper (low-res) feature map, x2 the skip connection.
    x1 = jax.random.normal(k1, (2, in_channels, 8, 8), jnp.float32)                     # NCHW
    x2 = jax.random.normal(k2, (2, in_channels - out_channels, 16, 16), jnp.float32)    # NCHW

    fwd = jax.jit(up_forward)
    out = fwd(params, x1, x2)
    jax.block_until_ready(out)

    assert out.shape == (2, out_channels, 16, 16), out.shape
    assert bool(jnp.all(jnp.isfinite(out)))
    ref = up_reference(params, x1, x2)
    np.testing.assert_allclose(np.asarray(out), np.asarray(ref), rtol=0.15, atol=0.15)
    print("KERNEL_OK")
</pallas_src>

<mosaic_0001>
module attributes {stable_mosaic.version = 11 : i64} {
  func.func @_up_fused_kernel(%arg0: i32, %arg1: memref<1x64x32xbf16, #tpu.memory_space<vmem>>, %arg2: memref<1x16x16x16xbf16, #tpu.memory_space<vmem>>, %arg3: memref<2x128x64xbf16, #tpu.memory_space<vmem>>, %arg4: memref<32x64xbf16, #tpu.memory_space<vmem>>, %arg5: memref<1x64xf32, #tpu.memory_space<vmem>>, %arg6: memref<3x3x32x16xbf16, #tpu.memory_space<vmem>>, %arg7: memref<1x16xf32, #tpu.memory_space<vmem>>, %arg8: memref<1x16xf32, #tpu.memory_space<vmem>>, %arg9: memref<3x3x16x16xbf16, #tpu.memory_space<vmem>>, %arg10: memref<1x16xf32, #tpu.memory_space<vmem>>, %arg11: memref<1x16xf32, #tpu.memory_space<vmem>>, %arg12: memref<1x16x16x16xf32, #tpu.memory_space<vmem>>, %arg13: memref<18x18x32xbf16, #tpu.memory_space<vmem>>, %arg14: memref<18x18x16xbf16, #tpu.memory_space<vmem>>) attributes {dimension_semantics = [#tpu.dimension_semantics<parallel>], iteration_bounds = array<i64: 2>, scalar_prefetch = 0 : i64, scratch_operands = 2 : i64, tpu.core_type = #tpu.core_type<tc>, window_params = [{transform_indices = @transform_0, window_bounds = array<i64: 1, 64, 32>}, {transform_indices = @transform_1, window_bounds = array<i64: 1, 16, 16, 16>}, {pipeline_mode = #tpu.pipeline_mode<synchronous>, transform_indices = @transform_2, window_bounds = array<i64: 2, 128, 64>}, {pipeline_mode = #tpu.pipeline_mode<synchronous>, transform_indices = @transform_3, window_bounds = array<i64: 32, 64>}, {pipeline_mode = #tpu.pipeline_mode<synchronous>, transform_indices = @transform_4, window_bounds = array<i64: 1, 64>}, {pipeline_mode = #tpu.pipeline_mode<synchronous>, transform_indices = @transform_5, window_bounds = array<i64: 3, 3, 32, 16>}, {pipeline_mode = #tpu.pipeline_mode<synchronous>, transform_indices = @transform_6, window_bounds = array<i64: 1, 16>}, {pipeline_mode = #tpu.pipeline_mode<synchronous>, transform_indices = @transform_7, window_bounds = array<i64: 1, 16>}, {pipeline_mode = #tpu.pipeline_mode<synchronous>, transform_indices = @transform_8, window_bounds = array<i64: 3, 3, 16, 16>}, {pipeline_mode = #tpu.pipeline_mode<synchronous>, transform_indices = @transform_9, window_bounds = array<i64: 1, 16>}, {pipeline_mode = #tpu.pipeline_mode<synchronous>, transform_indices = @transform_10, window_bounds = array<i64: 1, 16>}, {transform_indices = @transform_11, window_bounds = array<i64: 1, 16, 16, 16>}]} {
    %cst = arith.constant 0.000000e+00 : bf16
    %0 = vector.broadcast %cst : bf16 to vector<18x18x32xbf16>
    %c0 = arith.constant 0 : index
    %c0_0 = arith.constant 0 : index
    %c0_1 = arith.constant 0 : index
    %1 = vector.load %arg13[%c0, %c0_0, %c0_1] : memref<18x18x32xbf16, #tpu.memory_space<vmem>>, vector<18x18x32xbf16>
    tpu.vector_store %arg13[%c0, %c0_0, %c0_1], %0 {strides = array<i32>} : memref<18x18x32xbf16, #tpu.memory_space<vmem>>, vector<18x18x32xbf16>,
    %cst_2 = arith.constant 0.000000e+00 : bf16
    %2 = vector.broadcast %cst_2 : bf16 to vector<18x18x16xbf16>
    %c0_3 = arith.constant 0 : index
    %c0_4 = arith.constant 0 : index
    %c0_5 = arith.constant 0 : index
    %3 = vector.load %arg14[%c0_3, %c0_4, %c0_5] : memref<18x18x16xbf16, #tpu.memory_space<vmem>>, vector<18x18x16xbf16>
    tpu.vector_store %arg14[%c0_3, %c0_4, %c0_5], %2 {strides = array<i32>} : memref<18x18x16xbf16, #tpu.memory_space<vmem>>, vector<18x18x16xbf16>,
    %c0_6 = arith.constant 0 : index
    %c0_7 = arith.constant 0 : index
    %c0_8 = arith.constant 0 : index
    %c0_9 = arith.constant 0 : index
    %4 = vector.load %arg2[%c0_6, %c0_7, %c0_8, %c0_9] : memref<1x16x16x16xbf16, #tpu.memory_space<vmem>>, vector<1x16x16x16xbf16>
    %5 = vector.shape_cast %4 : vector<1x16x16x16xbf16> to vector<16x16x16xbf16>
    %c1 = arith.constant 1 : index
    %c1_10 = arith.constant 1 : index
    %c0_11 = arith.constant 0 : index
    %6 = vector.load %arg13[%c1, %c1_10, %c0_11] : memref<18x18x32xbf16, #tpu.memory_space<vmem>>, vector<16x16x16xbf16>
    tpu.vector_store %arg13[%c1, %c1_10, %c0_11], %5 {strides = array<i32>} : memref<18x18x32xbf16, #tpu.memory_space<vmem>>, vector<16x16x16xbf16>,
    %c0_12 = arith.constant 0 : index
    %c0_13 = arith.constant 0 : index
    %c0_14 = arith.constant 0 : index
    %7 = vector.load %arg1[%c0_12, %c0_13, %c0_14] : memref<1x64x32xbf16, #tpu.memory_space<vmem>>, vector<1x64x32xbf16>
    %8 = vector.shape_cast %7 : vector<1x64x32xbf16> to vector<64x32xbf16>
    %c0_15 = arith.constant 0 : index
    %c0_16 = arith.constant 0 : index
    %9 = vector.load %arg4[%c0_15, %c0_16] : memref<32x64xbf16, #tpu.memory_space<vmem>>, vector<32x64xbf16>
    %cst_17 = arith.constant dense<0.000000e+00> : vector<64x64xf32>
    %10 = tpu.matmul %8, %9, %cst_17 {dimension_numbers = #tpu.dot_dimension_numbers<[1], [0], [0], [1], [0, 0, 1, 1], [], []>} : vector<64x32xbf16>, vector<32x64xbf16>, vector<64x64xf32> -> vector<64x64xf32>
    %c0_18 = arith.constant 0 : index
    %c0_19 = arith.constant 0 : index
    %11 = vector.load %arg5[%c0_18, %c0_19] : memref<1x64xf32, #tpu.memory_space<vmem>>, vector<1x64xf32>
    %12 = vector.broadcast %11 : vector<1x64xf32> to vector<64x64xf32>
    %13 = arith.addf %10, %12 : vector<64x64xf32>
    %14 = vector.extract_strided_slice %13 {offsets = [0, 0], sizes = [64, 32], strides = [1, 1]} : vector<64x64xf32> to vector<64x32xf32>
    %15 = arith.truncf %14 : vector<64x32xf32> to vector<64x32xbf16>
    %16 = vector.extract_strided_slice %13 {offsets = [0, 32], sizes = [64, 32], strides = [1, 1]} : vector<64x64xf32> to vector<64x32xf32>
    %17 = arith.truncf %16 : vector<64x32xf32> to vector<64x32xbf16>
    %c0_20 = arith.constant 0 : index
    %c0_21 = arith.constant 0 : index
    %c0_22 = arith.constant 0 : index
    %18 = vector.load %arg3[%c0_20, %c0_21, %c0_22] : memref<2x128x64xbf16, #tpu.memory_space<vmem>>, vector<1x128x64xbf16>
    %19 = vector.shape_cast %18 : vector<1x128x64xbf16> to vector<128x64xbf16>
    %cst_23 = arith.constant dense<0.000000e+00> : vector<128x32xf32>
    %20 = tpu.matmul %19, %15, %cst_23 {dimension_numbers = #tpu.dot_dimension_numbers<[1], [0], [0], [1], [0, 0, 1, 1], [], []>} : vector<128x64xbf16>, vector<64x32xbf16>, vector<128x32xf32> -> vector<128x32xf32>
    %c1_24 = arith.constant 1 : index
    %c0_25 = arith.constant 0 : index
    %c0_26 = arith.constant 0 : index
    %21 = vector.load %arg3[%c1_24, %c0_25, %c0_26] : memref<2x128x64xbf16, #tpu.memory_space<vmem>>, vector<1x128x64xbf16>
    %22 = vector.shape_cast %21 : vector<1x128x64xbf16> to vector<128x64xbf16>
    %cst_27 = arith.constant dense<0.000000e+00> : vector<128x32xf32>
    %23 = tpu.matmul %22, %17, %cst_27 {dimension_numbers = #tpu.dot_dimension_numbers<[1], [0], [0], [1], [0, 0, 1, 1], [], []>} : vector<128x64xbf16>, vector<64x32xbf16>, vector<128x32xf32> -> vector<128x32xf32>
    %24 = arith.addf %20, %23 : vector<128x32xf32>
    %25 = vector.extract_strided_slice %24 {offsets = [0, 0], sizes = [128, 16], strides = [1, 1]} : vector<128x32xf32> to vector<128x16xf32>
    %26 = vector.shape_cast %25 : vector<128x16xf32> to vector<8x16x16xf32>
    %27 = vector.extract_strided_slice %24 {offsets = [0, 16], sizes = [128, 16], strides = [1, 1]} : vector<128x32xf32> to vector<128x16xf32>
    %28 = vector.shape_cast %27 : vector<128x16xf32> to vector<8x16x16xf32>
    %29 = vector.shape_cast %26 : vector<8x16x16xf32> to vector<8x1x16x16xf32>
    %30 = vector.shape_cast %28 : vector<8x16x16xf32> to vector<8x1x16x16xf32>
    %31 = tpu.concatenate %29, %30 in 1 : vector<8x1x16x16xf32>, vector<8x1x16x16xf32> -> vector<8x2x16x16xf32>
    %32 = vector.shape_cast %31 : vector<8x2x16x16xf32> to vector<16x16x16xf32>
    %33 = arith.truncf %32 : vector<16x16x16xf32> to vector<16x16x16xbf16>
    %c1_28 = arith.constant 1 : index
    %c1_29 = arith.constant 1 : index
    %c16 = arith.constant 16 : index
    %34 = vector.load %arg13[%c1_28, %c1_29, %c16] : memref<18x18x32xbf16, #tpu.memory_space<vmem>>, vector<16x16x16xbf16>
    tpu.vector_store %arg13[%c1_28, %c1_29, %c16], %33 {strides = array<i32>} : memref<18x18x32xbf16, #tpu.memory_space<vmem>>, vector<16x16x16xbf16>,
    %c0_30 = arith.constant 0 : index
    %c0_31 = arith.constant 0 : index
    %35 = vector.load %arg7[%c0_30, %c0_31] : memref<1x16xf32, #tpu.memory_space<vmem>>, vector<1x16xf32>
    %c0_32 = arith.constant 0 : index
    %c0_33 = arith.constant 0 : index
    %36 = vector.load %arg8[%c0_32, %c0_33] : memref<1x16xf32, #tpu.memory_space<vmem>>, vector<1x16xf32>
    %cst_34 = arith.constant 0.000000e+00 : f32
    %37 = vector.broadcast %cst_34 : f32 to vector<256x16xf32>
    %c0_35 = arith.constant 0 : index
    %c0_36 = arith.constant 0 : index
    %c0_37 = arith.constant 0 : index
    %38 = vector.load %arg13[%c0_35, %c0_36, %c0_37] : memref<18x18x32xbf16, #tpu.memory_space<vmem>>, vector<16x16x32xbf16>
    %39 = vector.shape_cast %38 : vector<16x16x32xbf16> to vector<256x32xbf16>
    %c0_38 = arith.constant 0 : index
    %c0_39 = arith.constant 0 : index
    %c0_40 = arith.constant 0 : index
    %c0_41 = arith.constant 0 : index
    %40 = vector.load %arg6[%c0_38, %c0_39, %c0_40, %c0_41] : memref<3x3x32x16xbf16, #tpu.memory_space<vmem>>, vector<1x1x32x16xbf16>
    %41 = vector.shape_cast %40 : vector<1x1x32x16xbf16> to vector<32x16xbf16>
    %cst_42 = arith.constant dense<0.000000e+00> : vector<256x16xf32>
    %42 = tpu.matmul %39, %41, %cst_42 {dimension_numbers = #tpu.dot_dimension_numbers<[1], [0], [0], [1], [0, 0, 1, 1], [], []>} : vector<256x32xbf16>, vector<32x16xbf16>, vector<256x16xf32> -> vector<256x16xf32>
    %43 = arith.addf %37, %42 : vector<256x16xf32>
    %c0_43 = arith.constant 0 : index
    %c1_44 = arith.constant 1 : index
    %c0_45 = arith.constant 0 : index
    %44 = vector.load %arg13[%c0_43, %c1_44, %c0_45] : memref<18x18x32xbf16, #tpu.memory_space<vmem>>, vector<16x16x32xbf16>
    %45 = vector.shape_cast %44 : vector<16x16x32xbf16> to vector<256x32xbf16>
    %c0_46 = arith.constant 0 : index
    %c1_47 = arith.constant 1 : index
    %c0_48 = arith.constant 0 : index
    %c0_49 = arith.constant 0 : index
    %46 = vector.load %arg6[%c0_46, %c1_47, %c0_48, %c0_49] : memref<3x3x32x16xbf16, #tpu.memory_space<vmem>>, vector<1x1x32x16xbf16>
    %47 = vector.shape_cast %46 : vector<1x1x32x16xbf16> to vector<32x16xbf16>
    %cst_50 = arith.constant dense<0.000000e+00> : vector<256x16xf32>
    %48 = tpu.matmul %45, %47, %cst_50 {dimension_numbers = #tpu.dot_dimension_numbers<[1], [0], [0], [1], [0, 0, 1, 1], [], []>} : vector<256x32xbf16>, vector<32x16xbf16>, vector<256x16xf32> -> vector<256x16xf32>
    %49 = arith.addf %43, %48 : vector<256x16xf32>
    %c0_51 = arith.constant 0 : index
    %c2 = arith.constant 2 : index
    %c0_52 = arith.constant 0 : index
    %50 = vector.load %arg13[%c0_51, %c2, %c0_52] : memref<18x18x32xbf16, #tpu.memory_space<vmem>>, vector<16x16x32xbf16>
    %51 = vector.shape_cast %50 : vector<16x16x32xbf16> to vector<256x32xbf16>
    %c0_53 = arith.constant 0 : index
    %c2_54 = arith.constant 2 : index
    %c0_55 = arith.constant 0 : index
    %c0_56 = arith.constant 0 : index
    %52 = vector.load %arg6[%c0_53, %c2_54, %c0_55, %c0_56] : memref<3x3x32x16xbf16, #tpu.memory_space<vmem>>, vector<1x1x32x16xbf16>
    %53 = vector.shape_cast %52 : vector<1x1x32x16xbf16> to vector<32x16xbf16>
    %cst_57 = arith.constant dense<0.000000e+00> : vector<256x16xf32>
    %54 = tpu.matmul %51, %53, %cst_57 {dimension_numbers = #tpu.dot_dimension_numbers<[1], [0], [0], [1], [0, 0, 1, 1], [], []>} : vector<256x32xbf16>, vector<32x16xbf16>, vector<256x16xf32> -> vector<256x16xf32>
    %55 = arith.addf %49, %54 : vector<256x16xf32>
    %c1_58 = arith.constant 1 : index
    %c0_59 = arith.constant 0 : index
    %c0_60 = arith.constant 0 : index
    %56 = vector.load %arg13[%c1_58, %c0_59, %c0_60] : memref<18x18x32xbf16, #tpu.memory_space<vmem>>, vector<16x16x32xbf16>
    %57 = vector.shape_cast %56 : vector<16x16x32xbf16> to vector<256x32xbf16>
    %c1_61 = arith.constant 1 : index
    %c0_62 = arith.constant 0 : index
    %c0_63 = arith.constant 0 : index
    %c0_64 = arith.constant 0 : index
    %58 = vector.load %arg6[%c1_61, %c0_62, %c0_63, %c0_64] : memref<3x3x32x16xbf16, #tpu.memory_space<vmem>>, vector<1x1x32x16xbf16>
    %59 = vector.shape_cast %58 : vector<1x1x32x16xbf16> to vector<32x16xbf16>
    %cst_65 = arith.constant dense<0.000000e+00> : vector<256x16xf32>
    %60 = tpu.matmul %57, %59, %cst_65 {dimension_numbers = #tpu.dot_dimension_numbers<[1], [0], [0], [1], [0, 0, 1, 1], [], []>} : vector<256x32xbf16>, vector<32x16xbf16>, vector<256x16xf32> -> vector<256x16xf32>
    %61 = arith.addf %55, %60 : vector<256x16xf32>
    %c1_66 = arith.constant 1 : index
    %c1_67 = arith.constant 1 : index
    %c0_68 = arith.constant 0 : index
    %62 = vector.load %arg13[%c1_66, %c1_67, %c0_68] : memref<18x18x32xbf16, #tpu.memory_space<vmem>>, vector<16x16x32xbf16>
    %63 = vector.shape_cast %62 : vector<16x16x32xbf16> to vector<256x32xbf16>
    %c1_69 = arith.constant 1 : index
    %c1_70 = arith.constant 1 : index
    %c0_71 = arith.constant 0 : index
    %c0_72 = arith.constant 0 : index
    %64 = vector.load %arg6[%c1_69, %c1_70, %c0_71, %c0_72] : memref<3x3x32x16xbf16, #tpu.memory_space<vmem>>, vector<1x1x32x16xbf16>
    %65 = vector.shape_cast %64 : vector<1x1x32x16xbf16> to vector<32x16xbf16>
    %cst_73 = arith.constant dense<0.000000e+00> : vector<256x16xf32>
    %66 = tpu.matmul %63, %65, %cst_73 {dimension_numbers = #tpu.dot_dimension_numbers<[1], [0], [0], [1], [0, 0, 1, 1], [], []>} : vector<256x32xbf16>, vector<32x16xbf16>, vector<256x16xf32> -> vector<256x16xf32>
    %67 = arith.addf %61, %66 : vector<256x16xf32>
    %c1_74 = arith.constant 1 : index
    %c2_75 = arith.constant 2 : index
    %c0_76 = arith.constant 0 : index
    %68 = vector.load %arg13[%c1_74, %c2_75, %c0_76] : memref<18x18x32xbf16, #tpu.memory_space<vmem>>, vector<16x16x32xbf16>
    %69 = vector.shape_cast %68 : vector<16x16x32xbf16> to vector<256x32xbf16>
    %c1_77 = arith.constant 1 : index
    %c2_78 = arith.constant 2 : index
    %c0_79 = arith.constant 0 : index
    %c0_80 = arith.constant 0 : index
    %70 = vector.load %arg6[%c1_77, %c2_78, %c0_79, %c0_80] : memref<3x3x32x16xbf16, #tpu.memory_space<vmem>>, vector<1x1x32x16xbf16>
    %71 = vector.shape_cast %70 : vector<1x1x32x16xbf16> to vector<32x16xbf16>
    %cst_81 = arith.constant dense<0.000000e+00> : vector<256x16xf32>
    %72 = tpu.matmul %69, %71, %cst_81 {dimension_numbers = #tpu.dot_dimension_numbers<[1], [0], [0], [1], [0, 0, 1, 1], [], []>} : vector<256x32xbf16>, vector<32x16xbf16>, vector<256x16xf32> -> vector<256x16xf32>
    %73 = arith.addf %67, %72 : vector<256x16xf32>
    %c2_82 = arith.constant 2 : index
    %c0_83 = arith.constant 0 : index
    %c0_84 = arith.constant 0 : index
    %74 = vector.load %arg13[%c2_82, %c0_83, %c0_84] : memref<18x18x32xbf16, #tpu.memory_space<vmem>>, vector<16x16x32xbf16>
    %75 = vector.shape_cast %74 : vector<16x16x32xbf16> to vector<256x32xbf16>
    %c2_85 = arith.constant 2 : index
    %c0_86 = arith.constant 0 : index
    %c0_87 = arith.constant 0 : index
    %c0_88 = arith.constant 0 : index
    %76 = vector.load %arg6[%c2_85, %c0_86, %c0_87, %c0_88] : memref<3x3x32x16xbf16, #tpu.memory_space<vmem>>, vector<1x1x32x16xbf16>
    %77 = vector.shape_cast %76 : vector<1x1x32x16xbf16> to vector<32x16xbf16>
    %cst_89 = arith.constant dense<0.000000e+00> : vector<256x16xf32>
    %78 = tpu.matmul %75, %77, %cst_89 {dimension_numbers = #tpu.dot_dimension_numbers<[1], [0], [0], [1], [0, 0, 1, 1], [], []>} : vector<256x32xbf16>, vector<32x16xbf16>, vector<256x16xf32> -> vector<256x16xf32>
    %79 = arith.addf %73, %78 : vector<256x16xf32>
    %c2_90 = arith.constant 2 : index
    %c1_91 = arith.constant 1 : index
    %c0_92 = arith.constant 0 : index
    %80 = vector.load %arg13[%c2_90, %c1_91, %c0_92] : memref<18x18x32xbf16, #tpu.memory_space<vmem>>, vector<16x16x32xbf16>
    %81 = vector.shape_cast %80 : vector<16x16x32xbf16> to vector<256x32xbf16>
    %c2_93 = arith.constant 2 : index
    %c1_94 = arith.constant 1 : index
    %c0_95 = arith.constant 0 : index
    %c0_96 = arith.constant 0 : index
    %82 = vector.load %arg6[%c2_93, %c1_94, %c0_95, %c0_96] : memref<3x3x32x16xbf16, #tpu.memory_space<vmem>>, vector<1x1x32x16xbf16>
    %83 = vector.shape_cast %82 : vector<1x1x32x16xbf16> to vector<32x16xbf16>
    %cst_97 = arith.constant dense<0.000000e+00> : vector<256x16xf32>
    %84 = tpu.matmul %81, %83, %cst_97 {dimension_numbers = #tpu.dot_dimension_numbers<[1], [0], [0], [1], [0, 0, 1, 1], [], []>} : vector<256x32xbf16>, vector<32x16xbf16>, vector<256x16xf32> -> vector<256x16xf32>
    %85 = arith.addf %79, %84 : vector<256x16xf32>
    %c2_98 = arith.constant 2 : index
    %c2_99 = arith.constant 2 : index
    %c0_100 = arith.constant 0 : index
    %86 = vector.load %arg13[%c2_98, %c2_99, %c0_100] : memref<18x18x32xbf16, #tpu.memory_space<vmem>>, vector<16x16x32xbf16>
    %87 = vector.shape_cast %86 : vector<16x16x32xbf16> to vector<256x32xbf16>
    %c2_101 = arith.constant 2 : index
    %c2_102 = arith.constant 2 : index
    %c0_103 = arith.constant 0 : index
    %c0_104 = arith.constant 0 : index
    %88 = vector.load %arg6[%c2_101, %c2_102, %c0_103, %c0_104] : memref<3x3x32x16xbf16, #tpu.memory_space<vmem>>, vector<1x1x32x16xbf16>
    %89 = vector.shape_cast %88 : vector<1x1x32x16xbf16> to vector<32x16xbf16>
    %cst_105 = arith.constant dense<0.000000e+00> : vector<256x16xf32>
    %90 = tpu.matmul %87, %89, %cst_105 {dimension_numbers = #tpu.dot_dimension_numbers<[1], [0], [0], [1], [0, 0, 1, 1], [], []>} : vector<256x32xbf16>, vector<32x16xbf16>, vector<256x16xf32> -> vector<256x16xf32>
    %91 = arith.addf %85, %90 : vector<256x16xf32>
    %92 = vector.broadcast %35 : vector<1x16xf32> to vector<256x16xf32>
    %93 = arith.mulf %91, %92 : vector<256x16xf32>
    %94 = vector.broadcast %36 : vector<1x16xf32> to vector<256x16xf32>
    %95 = arith.addf %93, %94 : vector<256x16xf32>
    %cst_106 = arith.constant 0.000000e+00 : f32
    %96 = vector.broadcast %cst_106 : f32 to vector<256x16xf32>
    %97 = arith.maximumf %95, %96 : vector<256x16xf32>
    %98 = vector.shape_cast %97 : vector<256x16xf32> to vector<16x16x16xf32>
    %99 = arith.truncf %98 : vector<16x16x16xf32> to vector<16x16x16xbf16>
    %c1_107 = arith.constant 1 : index
    %c1_108 = arith.constant 1 : index
    %c0_109 = arith.constant 0 : index
    %100 = vector.load %arg14[%c1_107, %c1_108, %c0_109] : memref<18x18x16xbf16, #tpu.memory_space<vmem>>, vector<16x16x16xbf16>
    tpu.vector_store %arg14[%c1_107, %c1_108, %c0_109], %99 {strides = array<i32>} : memref<18x18x16xbf16, #tpu.memory_space<vmem>>, vector<16x16x16xbf16>,
    %c0_110 = arith.constant 0 : index
    %c0_111 = arith.constant 0 : index
    %101 = vector.load %arg10[%c0_110, %c0_111] : memref<1x16xf32, #tpu.memory_space<vmem>>, vector<1x16xf32>
    %c0_112 = arith.constant 0 : index
    %c0_113 = arith.constant 0 : index
    %102 = vector.load %arg11[%c0_112, %c0_113] : memref<1x16xf32, #tpu.memory_space<vmem>>, vector<1x16xf32>
    %cst_114 = arith.constant 0.000000e+00 : f32
    %103 = vector.broadcast %cst_114 : f32 to vector<256x16xf32>
    %c0_115 = arith.constant 0 : index
    %c0_116 = arith.constant 0 : index
    %c0_117 = arith.constant 0 : index
    %104 = vector.load %arg14[%c0_115, %c0_116, %c0_117] : memref<18x18x16xbf16, #tpu.memory_space<vmem>>, vector<16x16x16xbf16>
    %105 = vector.shape_cast %104 : vector<16x16x16xbf16> to vector<256x16xbf16>
    %c0_118 = arith.constant 0 : index
    %c0_119 = arith.constant 0 : index
    %c0_120 = arith.constant 0 : index
    %c0_121 = arith.constant 0 : index
    %106 = vector.load %arg9[%c0_118, %c0_119, %c0_120, %c0_121] : memref<3x3x16x16xbf16, #tpu.memory_space<vmem>>, vector<1x1x16x16xbf16>
    %107 = vector.shape_cast %106 : vector<1x1x16x16xbf16> to vector<16x16xbf16>
    %cst_122 = arith.constant dense<0.000000e+00> : vector<256x16xf32>
    %108 = tpu.matmul %105, %107, %cst_122 {dimension_numbers = #tpu.dot_dimension_numbers<[1], [0], [0], [1], [0, 0, 1, 1], [], []>} : vector<256x16xbf16>, vector<16x16xbf16>, vector<256x16xf32> -> vector<256x16xf32>
    %109 = arith.addf %103, %108 : vector<256x16xf32>
    %c0_123 = arith.constant 0 : index
    %c1_124 = arith.constant 1 : index
    %c0_125 = arith.constant 0 : index
    %110 = vector.load %arg14[%c0_123, %c1_124, %c0_125] : memref<18x18x16xbf16, #tpu.memory_space<vmem>>, vector<16x16x16xbf16>
    %111 = vector.shape_cast %110 : vector<16x16x16xbf16> to vector<256x16xbf16>
    %c0_126 = arith.constant 0 : index
    %c1_127 = arith.constant 1 : index
    %c0_128 = arith.constant 0 : index
    %c0_129 = arith.constant 0 : index
    %112 = vector.load %arg9[%c0_126, %c1_127, %c0_128, %c0_129] : memref<3x3x16x16xbf16, #tpu.memory_space<vmem>>, vector<1x1x16x16xbf16>
    %113 = vector.shape_cast %112 : vector<1x1x16x16xbf16> to vector<16x16xbf16>
    %cst_130 = arith.constant dense<0.000000e+00> : vector<256x16xf32>
    %114 = tpu.matmul %111, %113, %cst_130 {dimension_numbers = #tpu.dot_dimension_numbers<[1], [0], [0], [1], [0, 0, 1, 1], [], []>} : vector<256x16xbf16>, vector<16x16xbf16>, vector<256x16xf32> -> vector<256x16xf32>
    %115 = arith.addf %109, %114 : vector<256x16xf32>
    %c0_131 = arith.constant 0 : index
    %c2_132 = arith.constant 2 : index
    %c0_133 = arith.constant 0 : index
    %116 = vector.load %arg14[%c0_131, %c2_132, %c0_133] : memref<18x18x16xbf16, #tpu.memory_space<vmem>>, vector<16x16x16xbf16>
    %117 = vector.shape_cast %116 : vector<16x16x16xbf16> to vector<256x16xbf16>
    %c0_134 = arith.constant 0 : index
    %c2_135 = arith.constant 2 : index
    %c0_136 = arith.constant 0 : index
    %c0_137 = arith.constant 0 : index
    %118 = vector.load %arg9[%c0_134, %c2_135, %c0_136, %c0_137] : memref<3x3x16x16xbf16, #tpu.memory_space<vmem>>, vector<1x1x16x16xbf16>
    %119 = vector.shape_cast %118 : vector<1x1x16x16xbf16> to vector<16x16xbf16>
    %cst_138 = arith.constant dense<0.000000e+00> : vector<256x16xf32>
    %120 = tpu.matmul %117, %119, %cst_138 {dimension_numbers = #tpu.dot_dimension_numbers<[1], [0], [0], [1], [0, 0, 1, 1], [], []>} : vector<256x16xbf16>, vector<16x16xbf16>, vector<256x16xf32> -> vector<256x16xf32>
    %121 = arith.addf %115, %120 : vector<256x16xf32>
    %c1_139 = arith.constant 1 : index
    %c0_140 = arith.constant 0 : index
    %c0_141 = arith.constant 0 : index
    %122 = vector.load %arg14[%c1_139, %c0_140, %c0_141] : memref<18x18x16xbf16, #tpu.memory_space<vmem>>, vector<16x16x16xbf16>
    %123 = vector.shape_cast %122 : vector<16x16x16xbf16> to vector<256x16xbf16>
    %c1_142 = arith.constant 1 : index
    %c0_143 = arith.constant 0 : index
    %c0_144 = arith.constant 0 : index
    %c0_145 = arith.constant 0 : index
    %124 = vector.load %arg9[%c1_142, %c0_143, %c0_144, %c0_145] : memref<3x3x16x16xbf16, #tpu.memory_space<vmem>>, vector<1x1x16x16xbf16>
    %125 = vector.shape_cast %124 : vector<1x1x16x16xbf16> to vector<16x16xbf16>
    %cst_146 = arith.constant dense<0.000000e+00> : vector<256x16xf32>
    %126 = tpu.matmul %123, %125, %cst_146 {dimension_numbers = #tpu.dot_dimension_numbers<[1], [0], [0], [1], [0, 0, 1, 1], [], []>} : vector<256x16xbf16>, vector<16x16xbf16>, vector<256x16xf32> -> vector<256x16xf32>
    %127 = arith.addf %121, %126 : vector<256x16xf32>
    %c1_147 = arith.constant 1 : index
    %c1_148 = arith.constant 1 : index
    %c0_149 = arith.constant 0 : index
    %128 = vector.load %arg14[%c1_147, %c1_148, %c0_149] : memref<18x18x16xbf16, #tpu.memory_space<vmem>>, vector<16x16x16xbf16>
    %129 = vector.shape_cast %128 : vector<16x16x16xbf16> to vector<256x16xbf16>
    %c1_150 = arith.constant 1 : index
    %c1_151 = arith.constant 1 : index
    %c0_152 = arith.constant 0 : index
    %c0_153 = arith.constant 0 : index
    %130 = vector.load %arg9[%c1_150, %c1_151, %c0_152, %c0_153] : memref<3x3x16x16xbf16, #tpu.memory_space<vmem>>, vector<1x1x16x16xbf16>
    %131 = vector.shape_cast %130 : vector<1x1x16x16xbf16> to vector<16x16xbf16>
    %cst_154 = arith.constant dense<0.000000e+00> : vector<256x16xf32>
    %132 = tpu.matmul %129, %131, %cst_154 {dimension_numbers = #tpu.dot_dimension_numbers<[1], [0], [0], [1], [0, 0, 1, 1], [], []>} : vector<256x16xbf16>, vector<16x16xbf16>, vector<256x16xf32> -> vector<256x16xf32>
    %133 = arith.addf %127, %132 : vector<256x16xf32>
    %c1_155 = arith.constant 1 : index
    %c2_156 = arith.constant 2 : index
    %c0_157 = arith.constant 0 : index
    %134 = vector.load %arg14[%c1_155, %c2_156, %c0_157] : memref<18x18x16xbf16, #tpu.memory_space<vmem>>, vector<16x16x16xbf16>
    %135 = vector.shape_cast %134 : vector<16x16x16xbf16> to vector<256x16xbf16>
    %c1_158 = arith.constant 1 : index
    %c2_159 = arith.constant 2 : index
    %c0_160 = arith.constant 0 : index
    %c0_161 = arith.constant 0 : index
    %136 = vector.load %arg9[%c1_158, %c2_159, %c0_160, %c0_161] : memref<3x3x16x16xbf16, #tpu.memory_space<vmem>>, vector<1x1x16x16xbf16>
    %137 = vector.shape_cast %136 : vector<1x1x16x16xbf16> to vector<16x16xbf16>
    %cst_162 = arith.constant dense<0.000000e+00> : vector<256x16xf32>
    %138 = tpu.matmul %135, %137, %cst_162 {dimension_numbers = #tpu.dot_dimension_numbers<[1], [0], [0], [1], [0, 0, 1, 1], [], []>} : vector<256x16xbf16>, vector<16x16xbf16>, vector<256x16xf32> -> vector<256x16xf32>
    %139 = arith.addf %133, %138 : vector<256x16xf32>
    %c2_163 = arith.constant 2 : index
    %c0_164 = arith.constant 0 : index
    %c0_165 = arith.constant 0 : index
    %140 = vector.load %arg14[%c2_163, %c0_164, %c0_165] : memref<18x18x16xbf16, #tpu.memory_space<vmem>>, vector<16x16x16xbf16>
    %141 = vector.shape_cast %140 : vector<16x16x16xbf16> to vector<256x16xbf16>
    %c2_166 = arith.constant 2 : index
    %c0_167 = arith.constant 0 : index
    %c0_168 = arith.constant 0 : index
    %c0_169 = arith.constant 0 : index
    %142 = vector.load %arg9[%c2_166, %c0_167, %c0_168, %c0_169] : memref<3x3x16x16xbf16, #tpu.memory_space<vmem>>, vector<1x1x16x16xbf16>
    %143 = vector.shape_cast %142 : vector<1x1x16x16xbf16> to vector<16x16xbf16>
    %cst_170 = arith.constant dense<0.000000e+00> : vector<256x16xf32>
    %144 = tpu.matmul %141, %143, %cst_170 {dimension_numbers = #tpu.dot_dimension_numbers<[1], [0], [0], [1], [0, 0, 1, 1], [], []>} : vector<256x16xbf16>, vector<16x16xbf16>, vector<256x16xf32> -> vector<256x16xf32>
    %145 = arith.addf %139, %144 : vector<256x16xf32>
    %c2_171 = arith.constant 2 : index
    %c1_172 = arith.constant 1 : index
    %c0_173 = arith.constant 0 : index
    %146 = vector.load %arg14[%c2_171, %c1_172, %c0_173] : memref<18x18x16xbf16, #tpu.memory_space<vmem>>, vector<16x16x16xbf16>
    %147 = vector.shape_cast %146 : vector<16x16x16xbf16> to vector<256x16xbf16>
    %c2_174 = arith.constant 2 : index
    %c1_175 = arith.constant 1 : index
    %c0_176 = arith.constant 0 : index
    %c0_177 = arith.constant 0 : index
    %148 = vector.load %arg9[%c2_174, %c1_175, %c0_176, %c0_177] : memref<3x3x16x16xbf16, #tpu.memory_space<vmem>>, vector<1x1x16x16xbf16>
    %149 = vector.shape_cast %148 : vector<1x1x16x16xbf16> to vector<16x16xbf16>
    %cst_178 = arith.constant dense<0.000000e+00> : vector<256x16xf32>
    %150 = tpu.matmul %147, %149, %cst_178 {dimension_numbers = #tpu.dot_dimension_numbers<[1], [0], [0], [1], [0, 0, 1, 1], [], []>} : vector<256x16xbf16>, vector<16x16xbf16>, vector<256x16xf32> -> vector<256x16xf32>
    %151 = arith.addf %145, %150 : vector<256x16xf32>
    %c2_179 = arith.constant 2 : index
    %c2_180 = arith.constant 2 : index
    %c0_181 = arith.constant 0 : index
    %152 = vector.load %arg14[%c2_179, %c2_180, %c0_181] : memref<18x18x16xbf16, #tpu.memory_space<vmem>>, vector<16x16x16xbf16>
    %153 = vector.shape_cast %152 : vector<16x16x16xbf16> to vector<256x16xbf16>
    %c2_182 = arith.constant 2 : index
    %c2_183 = arith.constant 2 : index
    %c0_184 = arith.constant 0 : index
    %c0_185 = arith.constant 0 : index
    %154 = vector.load %arg9[%c2_182, %c2_183, %c0_184, %c0_185] : memref<3x3x16x16xbf16, #tpu.memory_space<vmem>>, vector<1x1x16x16xbf16>
    %155 = vector.shape_cast %154 : vector<1x1x16x16xbf16> to vector<16x16xbf16>
    %cst_186 = arith.constant dense<0.000000e+00> : vector<256x16xf32>
    %156 = tpu.matmul %153, %155, %cst_186 {dimension_numbers = #tpu.dot_dimension_numbers<[1], [0], [0], [1], [0, 0, 1, 1], [], []>} : vector<256x16xbf16>, vector<16x16xbf16>, vector<256x16xf32> -> vector<256x16xf32>
    %157 = arith.addf %151, %156 : vector<256x16xf32>
    %158 = vector.broadcast %101 : vector<1x16xf32> to vector<256x16xf32>
    %159 = arith.mulf %157, %158 : vector<256x16xf32>
    %160 = vector.broadcast %102 : vector<1x16xf32> to vector<256x16xf32>
    %161 = arith.addf %159, %160 : vector<256x16xf32>
    %cst_187 = arith.constant 0.000000e+00 : f32
    %162 = vector.broadcast %cst_187 : f32 to vector<256x16xf32>
    %163 = arith.maximumf %161, %162 : vector<256x16xf32>
    %164 = vector.shape_cast %163 : vector<256x16xf32> to vector<16x16x16xf32>
    %c0_188 = arith.constant 0 : index
    %c0_189 = arith.constant 0 : index
    %c0_190 = arith.constant 0 : index
    %c0_191 = arith.constant 0 : index
    %165 = vector.load %arg12[%c0_188, %c0_189, %c0_190, %c0_191] : memref<1x16x16x16xf32, #tpu.memory_space<vmem>>, vector<1x16x16x16xf32>
    %166 = vector.shape_cast %165 : vector<1x16x16x16xf32> to vector<16x16x16xf32>
    %167 = vector.shape_cast %164 : vector<16x16x16xf32> to vector<1x16x16x16xf32>
    tpu.vector_store %arg12[%c0_188, %c0_189, %c0_190, %c0_191], %167 {strides = array<i32>} : memref<1x16x16x16xf32, #tpu.memory_space<vmem>>, vector<1x16x16x16xf32>,
    return
  }
  func.func @transform_0(%arg0: i32) -> (i32, i32, i32) {
    %c0_i32 = arith.constant 0 : i32
    %c0_i32_0 = arith.constant 0 : i32
    %c0_i32_1 = arith.constant 0 : i32
    return %arg0, %c0_i32, %c0_i32_0 : i32, i32, i32
  }
  func.func @transform_1(%arg0: i32) -> (i32, i32, i32, i32) {
    %c0_i32 = arith.constant 0 : i32
    %c0_i32_0 = arith.constant 0 : i32
    %c0_i32_1 = arith.constant 0 : i32
    %c0_i32_2 = arith.constant 0 : i32
    return %arg0, %c0_i32, %c0_i32_0, %c0_i32_1 : i32, i32, i32, i32
  }
  func.func @transform_2(%arg0: i32) -> (i32, i32, i32) {
    %c0_i32 = arith.constant 0 : i32
    %c0_i32_0 = arith.constant 0 : i32
    %c0_i32_1 = arith.constant 0 : i32
    %c0_i32_2 = arith.constant 0 : i32
    return %c0_i32, %c0_i32_0, %c0_i32_1 : i32, i32, i32
  }
  func.func @transform_3(%arg0: i32) -> (i32, i32) {
    %c0_i32 = arith.constant 0 : i32
    %c0_i32_0 = arith.constant 0 : i32
    %c0_i32_1 = arith.constant 0 : i32
    return %c0_i32, %c0_i32_0 : i32, i32
  }
  func.func @transform_4(%arg0: i32) -> (i32, i32) {
    %c0_i32 = arith.constant 0 : i32
    %c0_i32_0 = arith.constant 0 : i32
    %c0_i32_1 = arith.constant 0 : i32
    return %c0_i32, %c0_i32_0 : i32, i32
  }
  func.func @transform_5(%arg0: i32) -> (i32, i32, i32, i32) {
    %c0_i32 = arith.constant 0 : i32
    %c0_i32_0 = arith.constant 0 : i32
    %c0_i32_1 = arith.constant 0 : i32
    %c0_i32_2 = arith.constant 0 : i32
    %c0_i32_3 = arith.constant 0 : i32
    return %c0_i32, %c0_i32_0, %c0_i32_1, %c0_i32_2 : i32, i32, i32, i32
  }
  func.func @transform_6(%arg0: i32) -> (i32, i32) {
    %c0_i32 = arith.constant 0 : i32
    %c0_i32_0 = arith.constant 0 : i32
    %c0_i32_1 = arith.constant 0 : i32
    return %c0_i32, %c0_i32_0 : i32, i32
  }
  func.func @transform_7(%arg0: i32) -> (i32, i32) {
    %c0_i32 = arith.constant 0 : i32
    %c0_i32_0 = arith.constant 0 : i32
    %c0_i32_1 = arith.constant 0 : i32
    return %c0_i32, %c0_i32_0 : i32, i32
  }
  func.func @transform_8(%arg0: i32) -> (i32, i32, i32, i32) {
    %c0_i32 = arith.constant 0 : i32
    %c0_i32_0 = arith.constant 0 : i32
    %c0_i32_1 = arith.constant 0 : i32
    %c0_i32_2 = arith.constant 0 : i32
    %c0_i32_3 = arith.constant 0 : i32
    return %c0_i32, %c0_i32_0, %c0_i32_1, %c0_i32_2 : i32, i32, i32, i32
  }
  func.func @transform_9(%arg0: i32) -> (i32, i32) {
    %c0_i32 = arith.constant 0 : i32
    %c0_i32_0 = arith.constant 0 : i32
    %c0_i32_1 = arith.constant 0 : i32
    return %c0_i32, %c0_i32_0 : i32, i32
  }
  func.func @transform_10(%arg0: i32) -> (i32, i32) {
    %c0_i32 = arith.constant 0 : i32
    %c0_i32_0 = arith.constant 0 : i32
    %c0_i32_1 = arith.constant 0 : i32
    return %c0_i32, %c0_i32_0 : i32, i32
  }
  func.func @transform_11(%arg0: i32) -> (i32, i32, i32, i32) {
    %c0_i32 = arith.constant 0 : i32
    %c0_i32_0 = arith.constant 0 : i32
    %c0_i32_1 = arith.constant 0 : i32
    %c0_i32_2 = arith.constant 0 : i32
    return %arg0, %c0_i32, %c0_i32_0, %c0_i32_1 : i32, i32, i32, i32
  }
}

</mosaic_0001>

<bundles_post_ra>
// kernel: tile.9
= control target key start
LH: loop header
LB: loop body
LE: loop exit
PB: predicated region body
PF: predicated region fallthrough
CT: control target
= control target key end

     0   :  { %s37_s8 = smov 16   ;;  %s38_s9 = smov 32   ;;  %vm7_vm0 = vcmask 130048   ;;  %vm13_vm1 = vcmask 523648   ;;  %vm19_vm2 = vcmask 392448   ;;  %vm25_vm3 = vcmask 261248   ;;  %s55_s0 = inlined_call_operand.vmem [shape: f32[4,16], index: 0, kind: input, shape index: {}]   ;;  %s56_s1 = inlined_call_operand.vmem [shape: f32[1,64], index: 1, kind: output, shape index: {}]  }
   0x1   :  { %v4_v0 = vld [vmem:[%s55_s0] sm:$0xf]  ;;  %s36_s0 = smov 48  }
   0x2   :  { %5 = vst [vmem:[#allocation1] sm:$0xf] %v4_v0 }
   0x9   :  { %v10_v1 = vld [vmem:[#allocation1 + $0x3] sm:$0x1]   ;;  %v22_v2 = vld [vmem:[#allocation1 + $0x1] sm:$0x1]   ;;  %v16_v3 = vld [vmem:[#allocation1 + $0x2] sm:$0x1]  }
   0xa   :  { %11 = vrot.lane.b32.xlu0 %v10_v1, %s36_s0  ;;  %23 = vrot.lane.b32.xlu1 %v22_v2, %s37_s8  ;;  %v6_v4 = vld [vmem:[#allocation1] sm:$0x1]  }
   0xb   :  { %8 = vst.msk [vmem:[#allocation0] sm:$0x1] %vm7_vm0, %v6_v4  }
  0x12   :  { %17 = vrot.lane.b32.xlu0 %v16_v3, %s38_s9 }
  0x7c   :  { %v12_v5 = vpop.permute.xlu0 %11   ;;  %v24_v6 = vpop.permute.xlu1 %23  }
  0x7d   :  { %14 = vst.msk [vmem:[#allocation0] sm:$0x1] %vm13_vm1, %v12_v5  }
  0x84   :  { %v18_v7 = vpop.permute.xlu0 %17  }
  0x85   :  { %20 = vst.msk [vmem:[#allocation0] sm:$0x1] %vm19_vm2, %v18_v7  }
  0x86   :  { %26 = vst.msk [vmem:[#allocation0] sm:$0x1] %vm25_vm3, %v24_v6  }
  0x8d   :  { %v29_v8 = vld [vmem:[#allocation0] sm:$0x1] }
  0x8e   :  { %32 = vst [vmem:[%s56_s1] sm:$0x1] %v29_v8 }

// kernel: tile.8
= control target key start
LH: loop header
LB: loop body
LE: loop exit
PB: predicated region body
PF: predicated region fallthrough
CT: control target
= control target key end

     0   :  { %s22_s0 = inlined_call_operand.vmem [shape: f32[16], index: 0, kind: input, shape index: {}]   ;;  %s23_s1 = inlined_call_operand.vmem [shape: f32[4,16], index: 1, kind: output, shape index: {}]  }
   0x1   :  { %v4_v0 = vld [vmem:[%s22_s0] ss:$0 sm:$0xff] }
   0x2   :  { %5 = vst [vmem:[%s23_s1] sm:$0xf] %v4_v0 }

// kernel: up_forward.1
= control target key start
LH: loop header
LB: loop body
LE: loop exit
PB: predicated region body
PF: predicated region fallthrough
CT: control target
= control target key end

     0   :  { %s12091_s17 = smov 0   ;;  %s16578_s0 = inlined_call_operand.vmem [shape: bf16[2,64,32], index: 0, kind: input, shape index: {}]   ;;  %s16579_s1 = inlined_call_operand.vmem [shape: bf16[2,16,16,16], index: 1, kind: input, shape index: {}]   ;;  %s16580_s2 = inlined_call_operand.vmem [shape: bf16[2,128,64], index: 2, kind: input, shape index: {}]   ;;  %s16581_s3 = inlined_call_operand.vmem [shape: bf16[32,64], index: 3, kind: input, shape index: {}]   ;;  %s16582_s4 = inlined_call_operand.vmem [shape: f32[1,64], index: 4, kind: input, shape index: {}]   ;;  %s16583_s5 = inlined_call_operand.vmem [shape: bf16[3,3,32,16], index: 5, kind: input, shape index: {}]   ;;  %s16584_s6 = inlined_call_operand.vmem [shape: f32[1,16], index: 6, kind: input, shape index: {}]   ;;  %s16585_s7 = inlined_call_operand.vmem [shape: f32[1,16], index: 7, kind: input, shape index: {}]   ;;  %s16586_s8 = inlined_call_operand.vmem [shape: bf16[3,3,16,16], index: 8, kind: input, shape index: {}]   ;;  %s16587_s9 = inlined_call_operand.vmem [shape: f32[1,16], index: 9, kind: input, shape index: {}]   ;;  %s16588_s10 = inlined_call_operand.vmem [shape: f32[1,16], index: 10, kind: input, shape index: {}]   ;;  %s16589_s11 = inlined_call_operand.vmem [shape: f32[2,16,16,16], index: 11, kind: output, shape index: {}]  }
   0x1 LB: > { %s10719_s18 = sadd.s32 4294967295, %s12025_s17   ;;  %p10723_p0 = scmp.ge.s32.totalorder %s12025_s17, 1  ;;  %s12025_s17 = sphi %s12091_s17, %s21_s17  }
   0x2   : > { %p347_p1 = scmp.lt.s32.totalorder %s12025_s17, 3 }
   0x4   : > { %p348_p2 = pnand %p10723_p0, %p347_p1 }
   0x6   : > { %351 = sbr.rel (%p348_p2) target bundleno = 2471 (0x9a7), region = 64 }
   0xb   : > { %v11788_v0 = vld [vmem:[%s16581_s3 + $0x8] sm:$0xff]  ;;  %p392_p3 = scmp.lt.s32.totalorder %s10719_s18, 1  ;;  %v11787_v1 = vld [vmem:[%s16581_s3] sm:$0xff]  ;;  %vm1041_vm0 = vcmask 261120   ;;  %s12027_s29 = smov 96   ;;  %v11804_v31 = vld [vmem:[%s16580_s2 + $0x78] sm:$0xff] }
   0xc   : > { %1060 = vmatpush.bf16.msra.mxu0 %v11788_v0  ;;  %v11988_v9 = vld [vmem:[%s16582_s4] ss:$0 sm:$0xff]  ;;  %vm1176_vm1 = vcmask 523264   ;;  %v11798_v34 = vld [vmem:[%s16580_s2 + $0x48] sm:$0xff]  ;;  %v11791_v36 = vld [vmem:[%s16580_s2 + $0x10] sm:$0xff]  ;;  %s12028_s22 = smov 112  }
   0xd   : > { %s16803_s18 = smov (!%p392_p3, %s10719_s18), 1  ;;  %v11797_v32 = vld [vmem:[%s16580_s2 + $0x40] sm:$0xff]  ;;  %v11790_v35 = vld [vmem:[%s16580_s2 + $0x8] sm:$0xff]  ;;  %v11792_v37 = vld [vmem:[%s16580_s2 + $0x18] sm:$0xff]  ;;  %vm552_vm2 = vsmask.f32 256 }
   0xe   : > { %s11780_s23 = sshll.u32 %s16803_s18, 5  ;;  %v11789_v33 = vld [vmem:[%s16580_s2] sm:$0xff]  ;;  %v11799_v39 = vld [vmem:[%s16580_s2 + $0x50] sm:$0xff]  ;;  %v11794_v40 = vld [vmem:[%s16580_s2 + $0x28] sm:$0xff]  ;;  %vm553_vm3 = vsmask.f32 4368 }
   0xf   : > { %s396_s26 = scalar_lea.vmem %s16578_s0, %s11780_s23  ;;  %v11793_v38 = vld [vmem:[%s16580_s2 + $0x20] sm:$0xff]  ;;  %v11795_v41 = vld [vmem:[%s16580_s2 + $0x30] sm:$0xff]  ;;  %v11796_v42 = vld [vmem:[%s16580_s2 + $0x38] sm:$0xff]  ;;  %v16598_v62 = vmov 0  ;;  %s11781_s27 = sshll.u32 %s16803_s18, 7  ;;  %vm411_vm5 = vcmask 253952  }
  0x10   : > { %1061 = vmatpush.bf16.msra.mxu0 %v11787_v1  ;;  %v11783_v2 = vld [vmem:[%s396_s26] sm:$0xff]  ;;  %v11784_v3 = vld [vmem:[%s396_s26 + $0x8] sm:$0xff]  ;;  %v11785_v4 = vld [vmem:[%s396_s26 + $0x10] sm:$0xff]  ;;  %s12211_s30 = scalar_lea.vmem %s16579_s1, %s11781_s27  ;;  %s12029_s12 = smov 16   ;;  %vm467_vm6 = vcmask 122880   ;;  %vm408_vm8 = vcmask 257024  }
  0x11   : > { %v11786_v5 = vld [vmem:[%s396_s26 + $0x18] sm:$0xff]  ;;  %vm12183_vm4 = vmor %vm552_vm2, %vm553_vm3  ;;  %vm464_vm9 = vcmask 125952   ;;  %vm1882_vm10 = vcmask 254080   ;;  %vm1875_vm12 = vcmask 257152   ;;  %vm877_vm13 = vsmask.f32 7938 }
  0x12   : > { %v11800_v44 = vld [vmem:[%s16580_s2 + $0x58] sm:$0xff]  ;;  %v16599_v62 = vsel %vm12183_vm4, 4294967295, %v16598_v62  ;;  %vm12241_vm7 = vmand %vm467_vm6, %vm552_vm2  ;;  %s11782_s21 = sshll.u32 %s16803_s18, 8 }
  0x13   : > { %10754 = vmatmul.msk.bf16.vlgmr.msra.gmra.mxu0 %vm1041_vm0, %v11783_v2  ;;  %16600 = vst [vmem:[#allocation4_spill] sm:$0xff] %v16599_v62  ;;  %vm12390_vm11 = vmand %vm1882_vm10, %vm552_vm2  ;;  %vm2047_vm2 = vsmask.f32 7440  ;;  %vm7070_vm10 = vcmask 130048   ;;  %s16391_s24 = scalar_lea.vmem %s16589_s11, %s11782_s21 }
  0x14   : > { %vm12535_vm14 = vmand %vm464_vm9, %vm877_vm13 }
  0x15   : > { %vm12598_vm15 = vmand %vm1875_vm12, %vm877_vm13 }
  0x23   : > { %10755 = vmatmul.msk.bf16.gmra.mxu0 %vm1041_vm0, %v11784_v3 }
  0x33   : > { %10756 = vmatmul.msk.bf16.gmra.mxu0 %vm1041_vm0, %v11785_v4 }
  0x43   : > { %10757 = vmatmul.msk.bf16.gmra.mxu0 %vm1041_vm0, %v11786_v5 }
  0x90   : > { %v1063_v6 = vpop.f32.mrf.mxu0 }
  0x91   : > { %v1064_v16 = vadd.f32 %v11988_v9, %v1063_v6 }
  0x98   : > { %v1065_v7 = vpop.f32.mrf.mxu0 }
  0x99   : > { %v1066_v14 = vadd.f32 %v11988_v9, %v1065_v7 }
  0x9b   : > { %v1083_v17 = vpack.c.bf16 %v1066_v14, %v1064_v16 }
  0xa0   : > { %v1068_v8 = vpop.f32.mrf.mxu0 }
  0xa1   : > { %v1069_v11 = vadd.f32 %v11988_v9, %v1068_v8 }
  0xa8   : > { %v1070_v10 = vpop.f32.mrf.mxu0 }
  0xa9   : > { %v1071_v12 = vadd.f32 %v11988_v9, %v1070_v10 }
  0xab   : > { %v1084_v13 = vpack.c.bf16 %v1071_v12, %v1069_v11 }
  0xad   : > { %1166 = vrot.lane.b32.xlu1 %v1084_v13, %s12027_s29 }
  0xb0   : > { %v1073_v15 = vpop.f32.mrf.mxu0 }
  0xb1   : > { %v1074_v25 = vadd.f32 %v11988_v9, %v1073_v15 }
  0xb5   : > { %1164 = vrot.lane.b32.xlu1 %v1083_v17, %s12027_s29 }
  0xb8   : > { %v1075_v18 = vpop.f32.mrf.mxu0 }
  0xb9   : > { %v1076_v24 = vadd.f32 %v11988_v9, %v1075_v18  ;;  %v11802_v18 = vld [vmem:[%s16580_s2 + $0x68] sm:$0xff] }
  0xbb   : > { %v1085_v26 = vpack.c.bf16 %v1076_v24, %v1074_v25 }
  0xc0   : > { %v1078_v19 = vpop.f32.mrf.mxu0 }
  0xc1   : > { %v1079_v21 = vadd.f32 %v11988_v9, %v1078_v19 }
  0xc8   : > { %v1080_v20 = vpop.f32.mrf.mxu0 }
  0xc9   : > { %v1081_v22 = vadd.f32 %v11988_v9, %v1080_v20 }
  0xcb   : > { %v1086_v23 = vpack.c.bf16 %v1081_v22, %v1079_v21 }
  0xcd   : > { %1170 = vrot.lane.b32.xlu0 %v1086_v23, %s12027_s29 }
  0xd5   : > { %1168 = vrot.lane.b32.xlu0 %v1085_v26, %s12027_s29 }
 0x11f   : > { %v1167_v28 = vpop.permute.xlu1 %1166 }
 0x127   : > { %v1165_v30 = vpop.permute.xlu1 %1164 }
 0x13f   : > { %v1171_v27 = vpop.permute.xlu0 %1170 }
 0x140   : > { %1205 = vmatpush.bf16.msra.mxu1 %v1171_v27  ;;  %11928 = vmatpush.bf16.msra.mxu2 %v1171_v27 }
 0x147   : > { %v1169_v29 = vpop.permute.xlu0 %1168 }
 0x148   : > { %1206 = vmatpush.bf16.msra.mxu1 %v1169_v29  ;;  %11929 = vmatpush.bf16.msra.mxu2 %v1169_v29 }
 0x14c   : > { %1207 = vmatpush.bf16.msra.mxu1 %v1167_v28  ;;  %11930 = vmatpush.bf16.msra.mxu2 %v1167_v28 }
 0x150   : > { %1208 = vmatpush.bf16.msra.mxu1 %v1165_v30  ;;  %11931 = vmatpush.bf16.msra.mxu2 %v1165_v30 }
 0x153   : > { %10813 = vmatmul.msk.bf16.vlgmr.msra.gmra.mxu2 %vm1176_vm1, %v11804_v31  ;;  %10806 = vmatmul.msk.bf16.vlgmr.msra.gmra.mxu1 %vm1176_vm1, %v11797_v32 }
 0x154   : > { %1318 = vmatpush.bf16.msrb.mxu2 %v1086_v23 }
 0x158   : > { %1319 = vmatpush.bf16.msrb.mxu2 %v1085_v26 }
 0x15c   : > { %1320 = vmatpush.bf16.msrb.mxu2 %v1084_v13 }
 0x160   : > { %1321 = vmatpush.bf16.msrb.mxu2 %v1083_v17  ;;  %v11801_v17 = vld [vmem:[%s16580_s2 + $0x60] sm:$0xff] }
 0x163   : > { %10846 = vmatmul.msk.bf16.vlgmr.msrb.gmra.mxu2 %vm1176_vm1, %v11789_v33  ;;  %10807 = vmatmul.msk.bf16.gmra.mxu1 %vm1176_vm1, %v11798_v34 }
 0x173   : > { %10847 = vmatmul.msk.bf16.gmra.mxu2 %vm1176_vm1, %v11790_v35  ;;  %10808 = vmatmul.msk.bf16.gmra.mxu1 %vm1176_vm1, %v11799_v39  ;;  %v12219_v39 = vld [vmem:[%s12211_s30 + $0xc] sm:$0xf] }
 0x183   : > { %10848 = vmatmul.msk.bf16.gmra.mxu2 %vm1176_vm1, %v11791_v36  ;;  %10809 = vmatmul.msk.bf16.gmra.mxu1 %vm1176_vm1, %v11800_v44 }
 0x193   : > { %10849 = vmatmul.msk.bf16.gmra.mxu2 %vm1176_vm1, %v11792_v37  ;;  %10810 = vmatmul.msk.bf16.gmra.mxu1 %vm1176_vm1, %v11801_v17 }
 0x1a3   : > { %10850 = vmatmul.msk.bf16.gmra.mxu2 %vm1176_vm1, %v11793_v38  ;;  %10811 = vmatmul.msk.bf16.gmra.mxu1 %vm1176_vm1, %v11802_v18 }
 0x1b3   : > { %10851 = vmatmul.msk.bf16.gmra.mxu2 %vm1176_vm1, %v11794_v40 }
 0x1c3   : > { %10852 = vmatmul.msk.bf16.gmra.mxu2 %vm1176_vm1, %v11795_v41  ;;  %v12030_v41 = vmov 0  }
 0x1c4   : > { %418 = vst.msk [vmem:[#allocation2 + $0x20] sm:$0x1] %vm411_vm5, %v12030_v41 }
 0x1c5   : > { %412 = vst.msk [vmem:[#allocation2 + $0x8] sm:$0x1] %vm411_vm5, %v12030_v41 }
 0x1c6   : > { %415 = vst.msk [vmem:[#allocation2 + $0x14] sm:$0x1] %vm411_vm5, %v12030_v41 }
 0x1c7   : > { %421 = vst.msk [vmem:[#allocation2 + $0x2c] sm:$0x1] %vm411_vm5, %v12030_v41 }
 0x1c8   : > { %424 = vst.msk [vmem:[#allocation2 + $0x38] sm:$0x1] %vm411_vm5, %v12030_v41 }
 0x1c9   : > { %427 = vst.msk [vmem:[#allocation2 + $0x44] sm:$0x1] %vm411_vm5, %v12030_v41 }
 0x1ca   : > { %430 = vst.msk [vmem:[#allocation2 + $0x50] sm:$0x1] %vm411_vm5, %v12030_v41 }
 0x1cb   : > { %433 = vst.msk [vmem:[#allocation2 + $0x5c] sm:$0x1] %vm411_vm5, %v12030_v41 }
 0x1cc   : > { %436 = vst.msk [vmem:[#allocation2 + $0x68] sm:$0x1] %vm411_vm5, %v12030_v41 }
 0x1cd   : > { %439 = vst.msk [vmem:[#allocation2 + $0x74] sm:$0x1] %vm411_vm5, %v12030_v41 }
 0x1ce   : > { %442 = vst.msk [vmem:[#allocation2 + $0x80] sm:$0x1] %vm411_vm5, %v12030_v41 }
 0x1cf   : > { %445 = vst.msk [vmem:[#allocation2 + $0x8c] sm:$0x1] %vm411_vm5, %v12030_v41 }
 0x1d0   : > { %v1210_v46 = vpop.f32.mrf.mxu1  ;;  %448 = vst.msk [vmem:[#allocation2 + $0x98] sm:$0x1] %vm411_vm5, %v12030_v41 }
 0x1d1   : > { %451 = vst.msk [vmem:[#allocation2 + $0xa4] sm:$0x1] %vm411_vm5, %v12030_v41 }
 0x1d2   : > { %454 = vst.msk [vmem:[#allocation2 + $0xb0] sm:$0x1] %vm411_vm5, %v12030_v41 }
 0x1d3   : > { %10853 = vmatmul.msk.bf16.gmra.mxu2 %vm1176_vm1, %v11796_v42  ;;  %v581_v42 = vshrl.u32 %v12219_v39, 16  ;;  %457 = vst.msk [vmem:[#allocation2 + $0xbc] sm:$0x1] %vm411_vm5, %v12030_v41 }
 0x1d4   : > { %460 = vst.msk [vmem:[#allocation2 + $0xc8] sm:$0x1] %vm411_vm5, %v12030_v41 }
 0x1d5   : > { %463 = vst.msk [vmem:[#allocation2 + $0xd4] sm:$0x1] %vm411_vm5, %v12030_v41  ;;  %vm2912_vm5 = vcmask 1042432  }
 0x1d6   : > { %v12166_v43 = vpop.f32.mrf.mxu2  ;;  %468 = vst.msk [vmem:[#allocation3 + $0x8] sm:$0x1] %vm467_vm6, %v12030_v41 }
 0x1d7   : > { %471 = vst.msk [vmem:[#allocation3 + $0x14] sm:$0x1] %vm467_vm6, %v12030_v41 }
 0x1d8   : > { %v1212_v49 = vpop.f32.mrf.mxu1  ;;  %474 = vst.msk [vmem:[#allocation3 + $0x20] sm:$0x1] %vm467_vm6, %v12030_v41 }
 0x1d9   : > { %477 = vst.msk [vmem:[#allocation3 + $0x2c] sm:$0x1] %vm467_vm6, %v12030_v41 }
 0x1da   : > { %480 = vst.msk [vmem:[#allocation3 + $0x38] sm:$0x1] %vm467_vm6, %v12030_v41 }
 0x1db   : > { %483 = vst.msk [vmem:[#allocation3 + $0x44] sm:$0x1] %vm467_vm6, %v12030_v41 }
 0x1dc   : > { %486 = vst.msk [vmem:[#allocation3 + $0x50] sm:$0x1] %vm467_vm6, %v12030_v41 }
 0x1dd   : > { %489 = vst.msk [vmem:[#allocation3 + $0x5c] sm:$0x1] %vm467_vm6, %v12030_v41 }
 0x1de   : > { %v12171_v45 = vpop.f32.mrf.mxu2  ;;  %492 = vst.msk [vmem:[#allocation3 + $0x68] sm:$0x1] %vm467_vm6, %v12030_v41 }
 0x1df   : > { %495 = vst.msk [vmem:[#allocation3 + $0x74] sm:$0x1] %vm467_vm6, %v12030_v41 }
 0x1e0   : > { %v1215_v56 = vpop.f32.mrf.mxu1  ;;  %498 = vst.msk [vmem:[#allocation3 + $0x80] sm:$0x1] %vm467_vm6, %v12030_v41 }
 0x1e1   : > { %501 = vst.msk [vmem:[#allocation3 + $0x8c] sm:$0x1] %vm467_vm6, %v12030_v41 }
 0x1e2   : > { %504 = vst.msk [vmem:[#allocation3 + $0x98] sm:$0x1] %vm467_vm6, %v12030_v41 }
 0x1e3   : > { %507 = vst.msk [vmem:[#allocation3 + $0xa4] sm:$0x1] %vm467_vm6, %v12030_v41 }
 0x1e4   : > { %510 = vst.msk [vmem:[#allocation3 + $0xb0] sm:$0x1] %vm467_vm6, %v12030_v41 }
 0x1e5   : > { %513 = vst.msk [vmem:[#allocation3 + $0xbc] sm:$0x1] %vm467_vm6, %v12030_v41 }
 0x1e6   : > { %v1323_v47 = vpop.f32.mrf.mxu2  ;;  %516 = vst.msk [vmem:[#allocation3 + $0xc8] sm:$0x1] %vm467_vm6, %v12030_v41 }
 0x1e7   : > { %v1324_v48 = vadd.f32 %v1323_v47, %v1210_v46  ;;  %v12226_v46 = vrot.slane %v581_v42, 7  ;;  %519 = vst.msk [vmem:[#allocation3 + $0xd4] sm:$0x1] %vm467_vm6, %v12030_v41  ;;  %vm2913_vm6 = vcmask 1046532  }
 0x1e8   : > { %v1217_v2 = vpop.f32.mrf.mxu1  ;;  %420 = vst.msk [vmem:[#allocation2 + $0x28] sm:$0xf] %vm408_vm8, %v12030_v41 }
 0x1e9   : > { %v12174_v50 = vpack.c.bf16 %v1324_v48, %v1324_v48  ;;  %409 = vst.msk [vmem:[#allocation2] sm:$0xf] %vm408_vm8, %v12030_v41 }
 0x1ea   : > { %410 = vst.msk [vmem:[#allocation2 + $0x4] sm:$0xf] %vm408_vm8, %v12030_v41 }
 0x1eb   : > { %v1460_v52 = vshrl.u32 %v12174_v50, 16  ;;  %413 = vst.msk [vmem:[#allocation2 + $0xc] sm:$0xf] %vm408_vm8, %v12030_v41 }
 0x1ec   : > { %414 = vst.msk [vmem:[#allocation2 + $0x10] sm:$0xf] %vm408_vm8, %v12030_v41 }
 0x1ed   : > { %v12177_v57 = vrot.slane %v1460_v52, 7  ;;  %416 = vst.msk [vmem:[#allocation2 + $0x18] sm:$0xf] %vm408_vm8, %v12030_v41 }
 0x1ee   : > { %v1325_v51 = vpop.f32.mrf.mxu2  ;;  %417 = vst.msk [vmem:[#allocation2 + $0x1c] sm:$0xf] %vm408_vm8, %v12030_v41 }
 0x1ef   : > { %v1326_v53 = vadd.f32 %v1325_v51, %v1212_v49  ;;  %v1466_v63 = vrot.slane %v12177_v57, 4  ;;  %419 = vst.msk [vmem:[#allocation2 + $0x24] sm:$0xf] %vm408_vm8, %v12030_v41 }
 0x1f0   : > { %v1220_v20 = vpop.f32.mrf.mxu1  ;;  %422 = vst.msk [vmem:[#allocation2 + $0x30] sm:$0xf] %vm408_vm8, %v12030_v41 }
 0x1f1   : > { %v1428_v54 = vpack.c.bf16 %v1326_v53, %v1326_v53  ;;  %v11948_v55 = vpack.i.bf16 %v1326_v53, %v1324_v48  ;;  %423 = vst.msk [vmem:[#allocation2 + $0x34] sm:$0xf] %vm408_vm8, %v12030_v41 }
 0x1f2   : > { %425 = vst.msk [vmem:[#allocation2 + $0x3c] sm:$0xf] %vm408_vm8, %v12030_v41 }
 0x1f3   : > { %v1468_v58 = vshrl.u32 %v1428_v54, 16  ;;  %11949 = vrot.lane.b32.xlu2 %v11948_v55, %s12028_s22  ;;  %v1471_v60 = vshll.u32 %v1428_v54, 16  ;;  %426 = vst.msk [vmem:[#allocation2 + $0x40] sm:$0xf] %vm408_vm8, %v12030_v41 }
 0x1f4   : > { %428 = vst.msk [vmem:[#allocation2 + $0x48] sm:$0xf] %vm408_vm8, %v12030_v41 }
 0x1f5   : > { %v12180_v59 = vrot.slane %v1468_v58, 7  ;;  %429 = vst.msk [vmem:[#allocation2 + $0x4c] sm:$0xf] %vm408_vm8, %v12030_v41 }
 0x1f6   : > { %v1328_v61 = vpop.f32.mrf.mxu2  ;;  %431 = vst.msk [vmem:[#allocation2 + $0x54] sm:$0xf] %vm408_vm8, %v12030_v41 }
 0x1f7   : > { %v1473_v0 = vor.u32 %v1471_v60, %v12180_v59  ;;  %v1329_v3 = vadd.f32 %v1328_v61, %v1215_v56  ;;  %v588_v56 = vrot.slane %v12226_v46, 4  ;;  %v16601_v61 = vmov 0  ;;  %432 = vst.msk [vmem:[#allocation2 + $0x58] sm:$0xf] %vm408_vm8, %v12030_v41 }
 0x1f8   : > { %v1222_v33 = vpop.f32.mrf.mxu1  ;;  %v16602_v61 = vsel %vm12241_vm7, 4294967295, %v16601_v61  ;;  %434 = vst.msk [vmem:[#allocation2 + $0x60] sm:$0xf] %vm408_vm8, %v12030_v41 }
 0x1f9   : > { %v12191_v1 = vsel %vm12183_vm4, %v1466_v63, %v1473_v0  ;;  %v1431_v7 = vpack.c.bf16 %v1329_v3, %v1329_v3  ;;  %16603 = vst [vmem:[#allocation5_spill] sm:$0xff] %v16602_v61  ;;  %v892_v63 = vld [vmem:[#allocation2 + $0x20] sm:$0x1] }
 0x1fa   : > { %435 = vst.msk [vmem:[#allocation2 + $0x64] sm:$0xf] %vm408_vm8, %v12030_v41 }
 0x1fb   : > { %v1494_v9 = vshrl.u32 %v1431_v7, 16  ;;  %v1497_v40 = vshll.u32 %v1431_v7, 16  ;;  %437 = vst.msk [vmem:[#allocation2 + $0x6c] sm:$0xf] %vm408_vm8, %v12030_v41 }
 0x1fc   : > { %438 = vst.msk [vmem:[#allocation2 + $0x70] sm:$0xf] %vm408_vm8, %v12030_v41 }
 0x1fd   : > { %v1496_v11 = vrot.slane %v1494_v9, 7  ;;  %440 = vst.msk [vmem:[#allocation2 + $0x78] sm:$0xf] %vm408_vm8, %v12030_v41 }
 0x1fe   : > { %v1330_v4 = vpop.f32.mrf.mxu2  ;;  %441 = vst.msk [vmem:[#allocation2 + $0x7c] sm:$0xf] %vm408_vm8, %v12030_v41 }
 0x1ff   : > { %v1331_v5 = vadd.f32 %v1330_v4, %v1217_v2  ;;  %v1500_v14 = vrot.slane %v1496_v11, 4  ;;  %v1499_v54 = vor.u32 %v1497_v40, %v1496_v11  ;;  %443 = vst.msk [vmem:[#allocation2 + $0x84] sm:$0xf] %vm408_vm8, %v12030_v41 }
 0x200   : > { %v1225_v44 = vpop.f32.mrf.mxu1  ;;  %444 = vst.msk [vmem:[#allocation2 + $0x88] sm:$0xf] %vm408_vm8, %v12030_v41 }
 0x201   : > { %v11953_v6 = vpack.i.bf16 %v1331_v5, %v1329_v3  ;;  %v1432_v8 = vpack.c.bf16 %v1331_v5, %v1331_v5  ;;  %446 = vst.msk [vmem:[#allocation2 + $0x90] sm:$0xf] %vm408_vm8, %v12030_v41 }
 0x202   : > { %447 = vst.msk [vmem:[#allocation2 + $0x94] sm:$0xf] %vm408_vm8, %v12030_v41 }
 0x203   : > { %11954 = vrot.lane.b32.xlu2 %v11953_v6, %s12028_s22  ;;  %v1502_v10 = vshrl.u32 %v1432_v8, 16  ;;  %v1505_v13 = vshll.u32 %v1432_v8, 16  ;;  %v893_v6 = vsel %vm12241_vm7, %v588_v56, %v892_v63  ;;  %449 = vst.msk [vmem:[#allocation2 + $0x9c] sm:$0xf] %vm408_vm8, %v12030_v41 }
 0x204   : > { %894 = vst [vmem:[#allocation2 + $0x20] sm:$0x1] %v893_v6 }
 0x205   : > { %v12194_v12 = vrot.slane %v1502_v10, 7  ;;  %450 = vst.msk [vmem:[#allocation2 + $0xa0] sm:$0xf] %vm408_vm8, %v12030_v41 }
 0x206   : > { %v1333_v19 = vpop.f32.mrf.mxu2  ;;  %452 = vst.msk [vmem:[#allocation2 + $0xa8] sm:$0xf] %vm408_vm8, %v12030_v41 }
 0x207   : > { %v1507_v15 = vor.u32 %v1505_v13, %v12194_v12  ;;  %v1334_v47 = vadd.f32 %v1333_v19, %v1220_v20  ;;  %v1509_v9 = vrot.slane %v12194_v12, 4  ;;  %453 = vst.msk [vmem:[#allocation2 + $0xac] sm:$0xf] %vm408_vm8, %v12030_v41 }
 0x208   : > { %455 = vst.msk [vmem:[#allocation2 + $0xb4] sm:$0xf] %vm408_vm8, %v12030_v41 }
 0x209   : > { %v1508_v16 = vsel %vm12183_vm4, %v1500_v14, %v1507_v15  ;;  %v1435_v5 = vpack.c.bf16 %v1334_v47, %v1334_v47  ;;  %v1227_v14 = vpop.f32.mrf.mxu1  ;;  %456 = vst.msk [vmem:[#allocation2 + $0xb8] sm:$0xf] %vm408_vm8, %v12030_v41 }
 0x20a   : > { %458 = vst.msk [vmem:[#allocation2 + $0xc0] sm:$0xf] %vm408_vm8, %v12030_v41 }
 0x20b   : > { %v1528_v15 = vshrl.u32 %v1435_v5, 16  ;;  %459 = vst.msk [vmem:[#allocation2 + $0xc4] sm:$0xf] %vm408_vm8, %v12030_v41 }
 0x20c   : > { %461 = vst.msk [vmem:[#allocation2 + $0xcc] sm:$0xf] %vm408_vm8, %v12030_v41 }
 0x20d   : > { %v1530_v20 = vrot.slane %v1528_v15, 7  ;;  %462 = vst.msk [vmem:[#allocation2 + $0xd0] sm:$0xf] %vm408_vm8, %v12030_v41  ;;  %v11823_v15 = vld [vmem:[%s16583_s5 + $0x10] sm:$0xff]  ;;  %vm12694_vm8 = vmor %vm2912_vm5, %vm2913_vm6 }
 0x20e   : > { %v1335_v28 = vpop.f32.mrf.mxu2  ;;  %465 = vst.msk [vmem:[#allocation3] sm:$0xf] %vm464_vm9, %v12030_v41 }
 0x20f   : > { %v1336_v48 = vadd.f32 %v1335_v28, %v1222_v33  ;;  %v1534_v28 = vrot.slane %v1530_v20, 4  ;;  %v525_v33 = vld [vmem:[%s12211_s30 + $0x14] sm:$0xf]  ;;  %466 = vst.msk [vmem:[#allocation3 + $0x4] sm:$0xf] %vm464_vm9, %v12030_v41 }
 0x210   : > { %469 = vst.msk [vmem:[#allocation3 + $0xc] sm:$0xf] %vm464_vm9, %v12030_v41 }
 0x211   : > { %v11958_v55 = vpack.i.bf16 %v1336_v48, %v1334_v47  ;;  %470 = vst.msk [vmem:[#allocation3 + $0x10] sm:$0xf] %vm464_vm9, %v12030_v41 }
 0x212   : > { %472 = vst.msk [vmem:[#allocation3 + $0x18] sm:$0xf] %vm464_vm9, %v12030_v41 }
 0x213   : > { %473 = vst.msk [vmem:[#allocation3 + $0x1c] sm:$0xf] %vm464_vm9, %v12030_v41 }
 0x214   : > { %475 = vst.msk [vmem:[#allocation3 + $0x24] sm:$0xf] %vm464_vm9, %v12030_v41 }
 0x215   : > { %476 = vst.msk [vmem:[#allocation3 + $0x28] sm:$0xf] %vm464_vm9, %v12030_v41 }
 0x216   : > { %v1338_v51 = vpop.f32.mrf.mxu2  ;;  %478 = vst.msk [vmem:[#allocation3 + $0x30] sm:$0xf] %vm464_vm9, %v12030_v41 }
 0x217   : > { %v12269_v12 = vadd.f32 %v1338_v51, %v1225_v44  ;;  %v1891_v51 = vld [vmem:[#allocation2 + $0x20] sm:$0x1]  ;;  %479 = vst.msk [vmem:[#allocation3 + $0x34] sm:$0xf] %vm464_vm9, %v12030_v41 }
 0x218   : > { %481 = vst.msk [vmem:[#allocation3 + $0x3c] sm:$0xf] %vm464_vm9, %v12030_v41 }
 0x219   : > { %482 = vst.msk [vmem:[#allocation3 + $0x40] sm:$0xf] %vm464_vm9, %v12030_v41 }
 0x21a   : > { %484 = vst.msk [vmem:[#allocation3 + $0x48] sm:$0xf] %vm464_vm9, %v12030_v41 }
 0x21b   : > { %485 = vst.msk [vmem:[#allocation3 + $0x4c] sm:$0xf] %vm464_vm9, %v12030_v41 }
 0x21c   : > { %487 = vst.msk [vmem:[#allocation3 + $0x54] sm:$0xf] %vm464_vm9, %v12030_v41 }
 0x21d   : > { %488 = vst.msk [vmem:[#allocation3 + $0x58] sm:$0xf] %vm464_vm9, %v12030_v41 }
 0x21e   : > { %v1340_v17 = vpop.f32.mrf.mxu2  ;;  %490 = vst.msk [vmem:[#allocation3 + $0x60] sm:$0xf] %vm464_vm9, %v12030_v41 }
 0x21f   : > { %v12272_v19 = vadd.f32 %v1340_v17, %v1227_v14  ;;  %491 = vst.msk [vmem:[#allocation3 + $0x64] sm:$0xf] %vm464_vm9, %v12030_v41  ;;  %v12502_v17 = vld [vmem:[%s12211_s30 + $0x18] sm:$0xf] }
 0x220   : > { %493 = vst.msk [vmem:[#allocation3 + $0x6c] sm:$0xf] %vm464_vm9, %v12030_v41 }
 0x221   : > { %494 = vst.msk [vmem:[#allocation3 + $0x70] sm:$0xf] %vm464_vm9, %v12030_v41 }
 0x222   : > { %496 = vst.msk [vmem:[#allocation3 + $0x78] sm:$0xf] %vm464_vm9, %v12030_v41 }
 0x223   : > { %497 = vst.msk [vmem:[#allocation3 + $0x7c] sm:$0xf] %vm464_vm9, %v12030_v41 }
 0x224   : > { %499 = vst.msk [vmem:[#allocation3 + $0x84] sm:$0xf] %vm464_vm9, %v12030_v41 }
 0x225   : > { %500 = vst.msk [vmem:[#allocation3 + $0x88] sm:$0xf] %vm464_vm9, %v12030_v41 }
 0x226   : > { %502 = vst.msk [vmem:[#allocation3 + $0x90] sm:$0xf] %vm464_vm9, %v12030_v41 }
 0x227   : > { %503 = vst.msk [vmem:[#allocation3 + $0x94] sm:$0xf] %vm464_vm9, %v12030_v41 }
 0x228   : > { %505 = vst.msk [vmem:[#allocation3 + $0x9c] sm:$0xf] %vm464_vm9, %v12030_v41 }
 0x229   : > { %506 = vst.msk [vmem:[#allocation3 + $0xa0] sm:$0xf] %vm464_vm9, %v12030_v41 }
 0x22a   : > { %508 = vst.msk [vmem:[#allocation3 + $0xa8] sm:$0xf] %vm464_vm9, %v12030_v41 }
 0x22b   : > { %509 = vst.msk [vmem:[#allocation3 + $0xac] sm:$0xf] %vm464_vm9, %v12030_v41 }
 0x22c   : > { %511 = vst.msk [vmem:[#allocation3 + $0xb4] sm:$0xf] %vm464_vm9, %v12030_v41 }
 0x22d   : > { %512 = vst.msk [vmem:[#allocation3 + $0xb8] sm:$0xf] %vm464_vm9, %v12030_v41 }
 0x22e   : > { %514 = vst.msk [vmem:[#allocation3 + $0xc0] sm:$0xf] %vm464_vm9, %v12030_v41 }
 0x22f   : > { %515 = vst.msk [vmem:[#allocation3 + $0xc4] sm:$0xf] %vm464_vm9, %v12030_v41 }
 0x230   : > { %517 = vst.msk [vmem:[#allocation3 + $0xcc] sm:$0xf] %vm464_vm9, %v12030_v41 }
 0x231   : > { %518 = vst.msk [vmem:[#allocation3 + $0xd0] sm:$0xf] %vm464_vm9, %v12030_v41 }
 0x24d   : > { %v11950_v21 = vpop.permute.xlu2 %11949 }
 0x24e   : > { %v11952_v22 = vunpack.i.h.bf16 %v11950_v21  ;;  %v11951_v23 = vunpack.i.l.bf16 %v11950_v21  ;;  %v1531_v21 = vshll.u32 %v1435_v5, 16 }
 0x250   : > { %v1430_v24 = vpack.c.bf16 %v11952_v22, %v11952_v22  ;;  %v1429_v25 = vpack.c.bf16 %v11951_v23, %v11951_v23 }
 0x252   : > { %v1485_v26 = vshrl.u32 %v1430_v24, 16  ;;  %v1477_v27 = vshrl.u32 %v1429_v25, 16  ;;  %v1488_v30 = vshll.u32 %v1430_v24, 16  ;;  %v1480_v32 = vshll.u32 %v1429_v25, 16 }
 0x253   : > { %v11963_v24 = vpack.i.bf16 %v12272_v19, %v12269_v12 }
 0x254   : > { %v1487_v29 = vrot.slane %v1485_v26, 7  ;;  %v1479_v31 = vrot.slane %v1477_v27, 7  ;;  %v1533_v27 = vor.u32 %v1531_v21, %v1530_v20 }
 0x256   : > { %v1482_v34 = vor.u32 %v1480_v32, %v1479_v31  ;;  %v1492_v35 = vrot.slane %v1487_v29, 4  ;;  %v1483_v36 = vrot.slane %v1479_v31, 4  ;;  %v1490_v37 = vor.u32 %v1488_v30, %v1487_v29  ;;  %v524_v32 = vld [vmem:[%s12211_s30 + $0x10] sm:$0xf] }
 0x258   : > { %1737 = vrot.lane.b32.xlu0 %v1482_v34, %s12029_s12  ;;  %1741 = vrot.lane.b32.xlu2 %v1492_v35, %s12029_s12  ;;  %v1491_v38 = vsel %vm12183_vm4, %v1483_v36, %v1490_v37  ;;  %v590_v34 = vshrl.u32 %v524_v32, 16  ;;  %v598_v35 = vshrl.u32 %v525_v33, 16  ;;  %v593_v36 = vshll.u32 %v524_v32, 16 }
 0x259   : > { %1739 = vrot.lane.b32.xlu1 %v1491_v38, %s12029_s12  ;;  %v601_v37 = vshll.u32 %v525_v33, 16 }
 0x25a   : > { %v592_v38 = vrot.slane %v590_v34, 7  ;;  %v12331_v40 = vrot.slane %v598_v35, 7  ;;  %v12525_v35 = vld [vmem:[%s12211_s30 + $0x20] sm:$0xf] }
 0x25c   : > { %v12335_v42 = vor.u32 %v593_v36, %v592_v38  ;;  %v596_v44 = vrot.slane %v592_v38, 4  ;;  %v603_v47 = vor.u32 %v601_v37, %v12331_v40 }
 0x25d   : > { %v11955_v49 = vpop.permute.xlu2 %11954 }
 0x25e   : > { %v11957_v52 = vunpack.i.h.bf16 %v11955_v49  ;;  %v11956_v53 = vunpack.i.l.bf16 %v11955_v49 }
 0x260   : > { %v1434_v58 = vpack.c.bf16 %v11957_v52, %v11957_v52  ;;  %v1433_v60 = vpack.c.bf16 %v11956_v53, %v11956_v53  ;;  %1743 = vrot.lane.b32.xlu0 %v1499_v54, %s12029_s12  ;;  %1745 = vrot.lane.b32.xlu2 %v1508_v16, %s12029_s12  ;;  %v1436_v16 = vpack.c.bf16 %v1336_v48, %v1336_v48 }
 0x261   : > { %11959 = vrot.lane.b32.xlu1 %v11958_v55, %s12028_s22  ;;  %v604_v48 = vsel %vm12183_vm4, %v596_v44, %v603_v47  ;;  %v12400_v52 = vpack.c.bf16 %v12269_v12, %v12269_v12  ;;  %v1440_v53 = vpack.c.bf16 %v12272_v19, %v12272_v19  ;;  %v610_v47 = vshll.u32 %v12502_v17, 16 }
 0x262   : > { %v1519_v0 = vshrl.u32 %v1434_v58, 16  ;;  %v1522_v2 = vshll.u32 %v1434_v58, 16  ;;  %v1511_v3 = vshrl.u32 %v1433_v60, 16  ;;  %v1514_v4 = vshll.u32 %v1433_v60, 16  ;;  %898 = vst.msk [vmem:[#allocation2 + $0x28] sm:$0xf] %vm464_vm9, %v604_v48 }
 0x263   : > { %v1536_v22 = vshrl.u32 %v1436_v16, 16  ;;  %v1539_v26 = vshll.u32 %v1436_v16, 16  ;;  %v1562_v56 = vshrl.u32 %v12400_v52, 16  ;;  %v1570_v58 = vshrl.u32 %v1440_v53, 16 }
 0x264   : > { %v1521_v7 = vrot.slane %v1519_v0, 7  ;;  %v1513_v8 = vrot.slane %v1511_v3, 7  ;;  %v1573_v0 = vshll.u32 %v1440_v53, 16 }
 0x265   : > { %v1538_v25 = vrot.slane %v1536_v22, 7  ;;  %v12421_v60 = vrot.slane %v1562_v56, 7  ;;  %v12423_v63 = vrot.slane %v1570_v58, 7  ;;  %v527_v22 = vld [vmem:[%s12211_s30 + $0x1c] sm:$0xf] }
 0x266   : > { %v1516_v10 = vor.u32 %v1514_v4, %v1513_v8  ;;  %v1517_v11 = vrot.slane %v1513_v8, 4  ;;  %v1524_v13 = vor.u32 %v1522_v2, %v1521_v7  ;;  %v1526_v23 = vrot.slane %v1521_v7, 4  ;;  %v11803_v8 = vld [vmem:[%s16580_s2 + $0x70] sm:$0xff] }
 0x267   : > { %v1541_v29 = vor.u32 %v1539_v26, %v1538_v25  ;;  %v1543_v31 = vrot.slane %v1538_v25, 4  ;;  %v1568_v3 = vrot.slane %v12421_v60, 4  ;;  %v1575_v4 = vor.u32 %v1573_v0, %v12423_v63  ;;  %10812 = vmatmul.msk.bf16.gmra.mxu1 %vm1176_vm1, %v11803_v8 }
 0x268   : > { %1747 = vrot.lane.b32.xlu0 %v1509_v9, %s12029_s12  ;;  %v1525_v18 = vsel %vm12183_vm4, %v1517_v11, %v1524_v13  ;;  %v11824_v9 = vld [vmem:[%s16583_s5 + $0x18] sm:$0xff]  ;;  %v12484_v11 = vpop.f32.mrf.mxu2  ;;  %v12488_v13 = vpop.f32.mrf.mxu1  ;;  %v607_v25 = vshrl.u32 %v12502_v17, 16  ;;  %v1565_v26 = vshll.u32 %v12400_v52, 16  ;;  %v618_v48 = vshll.u32 %v527_v22, 16  ;;  %v895_v17 = vld [vmem:[#allocation2 + $0x24] sm:$0xf] }
 0x269   : > { %1749 = vrot.lane.b32.xlu1 %v1516_v10, %s12029_s12  ;;  %1751 = vrot.lane.b32.xlu2 %v1525_v18, %s12029_s12  ;;  %v1542_v30 = vsel %vm12183_vm4, %v1534_v28, %v1541_v29  ;;  %v12442_v5 = vsel %vm12183_vm4, %v1568_v3, %v1575_v4  ;;  %v522_v10 = vld [vmem:[%s12211_s30 + $0x8] sm:$0xf]  ;;  %v624_v0 = vshrl.u32 %v12525_v35, 16  ;;  %vm2046_vm1 = vsmask.f32 3328 }
 0x26a   : > { %11932 = vmatpush.bf16.msra.mxu3 %v11824_v9  ;;  %2552 = vmatpush.bf16.msra.mxu2 %v11824_v9  ;;  %v573_v14 = vshrl.u32 %v522_v10, 16  ;;  %v576_v19 = vshll.u32 %v522_v10, 16  ;;  %v609_v44 = vrot.slane %v607_v25, 7  ;;  %v605_v10 = vrot.slane %v12331_v40, 4  ;;  %vm12668_vm3 = vmor %vm2046_vm1, %vm2047_vm2 }
 0x26c   : > { %v575_v12 = vrot.slane %v573_v14, 7 }
 0x26e   : > { %11933 = vmatpush.bf16.msra.mxu3 %v11823_v15  ;;  %2553 = vmatpush.bf16.msra.mxu2 %v11823_v15  ;;  %v579_v29 = vrot.slane %v575_v12, 4 }
 0x270   : > { %1753 = vrot.lane.b32.xlu0 %v1526_v23, %s12029_s12  ;;  %v1345_v36 = vpop.f32.mrf.mxu2  ;;  %v1232_v38 = vpop.f32.mrf.mxu1 }
 0x271   : > { %1755 = vrot.lane.b32.xlu1 %v1533_v27, %s12029_s12  ;;  %11964 = vrot.lane.b32.xlu2 %v11963_v24, %s12028_s22  ;;  %v584_v24 = vshll.u32 %v12219_v39, 16  ;;  %v578_v39 = vor.u32 %v576_v19, %v575_v12  ;;  %v899_v12 = vld [vmem:[#allocation2 + $0x2c] sm:$0x1]  ;;  %v613_v19 = vrot.slane %v609_v44, 4 }
 0x272   : > { %v900_v41 = vsel %vm12241_vm7, %v605_v10, %v899_v12 }
 0x273   : > { %v586_v37 = vor.u32 %v584_v24, %v12226_v46  ;;  %901 = vst [vmem:[#allocation2 + $0x2c] sm:$0x1] %v900_v41 }
 0x275   : > { %v587_v15 = vsel %vm12183_vm4, %v579_v29, %v586_v37  ;;  %v1344_v29 = vadd.f32 %v12484_v11, %v12488_v13  ;;  %v906_v13 = vld [vmem:[#allocation2 + $0x38] sm:$0x1] }
 0x276   : > { %891 = vst.msk [vmem:[#allocation2 + $0x1c] sm:$0xf] %vm464_vm9, %v587_v15 }
 0x278   : > { %1757 = vrot.lane.b32.xlu0 %v1542_v30, %s12029_s12  ;;  %v615_v30 = vshrl.u32 %v527_v22, 16 }
 0x279   : > { %1759 = vrot.lane.b32.xlu1 %v1543_v31, %s12029_s12  ;;  %v888_v31 = vld [vmem:[#allocation2 + $0x18] sm:$0xf] }
 0x27a   : > { %v12543_v46 = vrot.slane %v615_v30, 7  ;;  %v889_v14 = vsel %vm12535_vm14, %v578_v39, %v888_v31  ;;  %v896_v30 = vsel %vm12535_vm14, %v12335_v42, %v895_v17  ;;  %v612_v39 = vor.u32 %v610_v47, %v609_v44 }
 0x27b   : > { %890 = vst [vmem:[#allocation2 + $0x18] sm:$0xf] %v889_v14  ;;  %v1346_v42 = vadd.f32 %v1345_v36, %v1232_v38  ;;  %v1567_v47 = vor.u32 %v1565_v26, %v12421_v60  ;;  %v909_v38 = vld [vmem:[#allocation2 + $0x3c] sm:$0xf]  ;;  %v1577_v14 = vrot.slane %v12423_v63, 4 }
 0x27c   : > { %897 = vst [vmem:[#allocation2 + $0x24] sm:$0xf] %v896_v30 }
 0x27d   : > { %v11968_v60 = vpack.i.bf16 %v1346_v42, %v1344_v29 }
 0x282   : > { %v1887_v15 = vld [vmem:[#allocation2 + $0x18] sm:$0xf] }
 0x2b2   : > { %v1742_v54 = vpop.permute.xlu2 %1741 }
 0x2b3   : > { %v1892_v55 = vsel %vm12390_vm11, %v1742_v54, %v1891_v51  ;;  %v16606_v51 = vmov 0 }
 0x2b4   : > { %1893 = vst [vmem:[#allocation2 + $0x20] sm:$0x1] %v1892_v55  ;;  %v16607_v51 = vsel %vm12535_vm14, 4294967295, %v16606_v51 }
 0x2b5   : > { %16608 = vst [vmem:[#allocation6_spill] sm:$0xff] %v16607_v51 }
 0x2ba   : > { %v1746_v2 = vpop.permute.xlu2 %1745 }
 0x2bb   : > { %1897 = vst.msk [vmem:[#allocation2 + $0x28] sm:$0xf] %vm1875_vm12, %v1746_v2  ;;  %v12522_v34 = vld [vmem:[#allocation2 + $0x20] sm:$0x1]  ;;  %v529_v2 = vld [vmem:[%s12211_s30 + $0x24] sm:$0xf] }
 0x2bc   : > { %v632_v22 = vshrl.u32 %v529_v2, 16 }
 0x2c3   : > { %v12509_v23 = vpop.permute.xlu2 %1751 }
 0x2ca   : > { %v12464_v6 = vpop.permute.xlu0 %1737 }
 0x2cb   : > { %v12468_v7 = vpop.permute.xlu1 %1739 }
 0x2cc   : > { %1890 = vst.msk [vmem:[#allocation2 + $0x1c] sm:$0xf] %vm1875_vm12, %v12468_v7  ;;  %v12592_v7 = vpack.c.bf16 %v1344_v29, %v1344_v29  ;;  %v1898_v29 = vld [vmem:[#allocation2 + $0x2c] sm:$0x1] }
 0x2d2   : > { %v12499_v16 = vpop.permute.xlu0 %1743 }
 0x2d3   : > { %v11960_v18 = vpop.permute.xlu1 %11959 }
 0x2d4   : > { %v11962_v20 = vunpack.i.h.bf16 %v11960_v18  ;;  %v11961_v21 = vunpack.i.l.bf16 %v11960_v18  ;;  %v2117_v18 = vshll.u32 %v12522_v34, 16 }
 0x2d6   : > { %v1438_v27 = vpack.c.bf16 %v11962_v20, %v11962_v20  ;;  %v1437_v28 = vpack.c.bf16 %v11961_v21, %v11961_v21  ;;  %v620_v20 = vor.u32 %v618_v48, %v12543_v46  ;;  %v11965_v21 = vpop.permute.xlu2 %11964  ;;  %v12609_v10 = vrot.slane %v2117_v18, 5 }
 0x2d7   : > { %v11967_v24 = vunpack.i.h.bf16 %v11965_v21  ;;  %v11966_v25 = vunpack.i.l.bf16 %v11965_v21  ;;  %v1888_v18 = vsel %vm12598_vm15, %v12464_v6, %v1887_v15  ;;  %v913_v21 = vld [vmem:[#allocation2 + $0x44] sm:$0x1] }
 0x2d8   : > { %v1553_v32 = vshrl.u32 %v1438_v27, 16  ;;  %v1545_v33 = vshrl.u32 %v1437_v28, 16  ;;  %v1556_v54 = vshll.u32 %v1438_v27, 16  ;;  %v1548_v56 = vshll.u32 %v1437_v28, 16  ;;  %1889 = vst [vmem:[#allocation2 + $0x18] sm:$0xf] %v1888_v18 }
 0x2d9   : > { %v626_v27 = vrot.slane %v624_v0, 7  ;;  %v627_v28 = vshll.u32 %v12525_v35, 16  ;;  %v902_v35 = vld [vmem:[#allocation2 + $0x30] sm:$0xf]  ;;  %v1442_v37 = vpack.c.bf16 %v11967_v24, %v11967_v24  ;;  %v1441_v48 = vpack.c.bf16 %v11966_v25, %v11966_v25 }
 0x2da   : > { %v1555_v53 = vrot.slane %v1553_v32, 7  ;;  %v1547_v55 = vrot.slane %v1545_v33, 7  ;;  %v12539_v58 = vpop.permute.xlu0 %1747  ;;  %v635_v32 = vshll.u32 %v529_v2, 16  ;;  %v622_v33 = vrot.slane %v12543_v46, 4 }
 0x2db   : > { %v12573_v31 = vpop.permute.xlu1 %1749  ;;  %v621_v11 = vsel %vm12183_vm4, %v613_v19, %v620_v20  ;;  %v1590_v46 = vshll.u32 %v1442_v37, 16  ;;  %v1579_v0 = vshrl.u32 %v1441_v48, 16  ;;  %v629_v2 = vor.u32 %v627_v28, %v626_v27 }
 0x2dc   : > { %v1560_v3 = vrot.slane %v1555_v53, 4  ;;  %v1550_v4 = vor.u32 %v1548_v56, %v1547_v55  ;;  %v1551_v8 = vrot.slane %v1547_v55, 4  ;;  %v1558_v9 = vor.u32 %v1556_v54, %v1555_v53  ;;  %v12579_v53 = vpop.f32.mrf.mxu1  ;;  %v12590_v55 = vpop.f32.mrf.mxu2  ;;  %905 = vst.msk [vmem:[#allocation2 + $0x34] sm:$0xf] %vm464_vm9, %v621_v11 }
 0x2dd   : > { %v634_v54 = vrot.slane %v632_v22, 7  ;;  %v1587_v56 = vshrl.u32 %v1442_v37, 16  ;;  %v903_v36 = vsel %vm12535_vm14, %v612_v39, %v902_v35  ;;  %v907_v26 = vsel %vm12241_vm7, %v622_v33, %v906_v13  ;;  %1904 = vst.msk [vmem:[#allocation2 + $0x34] sm:$0xf] %vm1875_vm12, %v12509_v23  ;;  %v1894_v22 = vld [vmem:[#allocation2 + $0x24] sm:$0xf] }
 0x2de   : > { %1765 = vrot.lane.b32.xlu1 %v1560_v3, %s12029_s12  ;;  %1761 = vrot.lane.b32.xlu2 %v1550_v4, %s12029_s12  ;;  %v1559_v40 = vsel %vm12183_vm4, %v1551_v8, %v1558_v9  ;;  %v630_v3 = vrot.slane %v626_v27, 4  ;;  %v1581_v9 = vrot.slane %v1579_v0, 7  ;;  %904 = vst [vmem:[#allocation2 + $0x30] sm:$0xf] %v903_v36  ;;  %v1582_v17 = vshll.u32 %v1441_v48, 16 }
 0x2df   : > { %1763 = vrot.lane.b32.xlu0 %v1559_v40, %s12029_s12  ;;  %v637_v4 = vor.u32 %v635_v32, %v634_v54  ;;  %v12605_v8 = vrot.slane %v1587_v56, 7  ;;  %v910_v12 = vsel %vm12535_vm14, %v629_v2, %v909_v38  ;;  %v1596_v20 = vshrl.u32 %v12592_v7, 16  ;;  %908 = vst [vmem:[#allocation2 + $0x38] sm:$0x1] %v907_v26  ;;  %v12625_v40 = vld [vmem:[#allocation2 + $0x1c] sm:$0xf] }
 0x2e0   : > { %v1585_v19 = vrot.slane %v1581_v9, 4  ;;  %v2107_v24 = vshll.u32 %v12625_v40, 16  ;;  %v2111_v25 = vshrl.u32 %v12625_v40, 16  ;;  %911 = vst [vmem:[#allocation2 + $0x3c] sm:$0xf] %v910_v12  ;;  %v1895_v6 = vsel %vm12598_vm15, %v12499_v16, %v1894_v22 }
 0x2e1   : > { %v1592_v23 = vor.u32 %v1590_v46, %v12605_v8  ;;  %v638_v63 = vsel %vm12183_vm4, %v630_v3, %v637_v4  ;;  %v12632_v28 = vpack.c.bf16 %v1346_v42, %v1346_v42  ;;  %v1584_v32 = vor.u32 %v1582_v17, %v1581_v9  ;;  %1896 = vst [vmem:[#allocation2 + $0x24] sm:$0xf] %v1895_v6  ;;  %v12647_v13 = vld [vmem:[#allocation2 + $0x28] sm:$0xf] }
 0x2e2   : > { %v12585_v44 = vpop.permute.xlu0 %1753  ;;  %912 = vst.msk [vmem:[#allocation2 + $0x40] sm:$0xf] %vm464_vm9, %v638_v63  ;;  %v1899_v33 = vsel %vm12390_vm11, %v12539_v58, %v1898_v29  ;;  %v12640_v35 = vrot.slane %v2107_v24, 5  ;;  %v2113_v37 = vrot.slane %v2111_v25, 4  ;;  %v12644_v42 = vrot.slane %v1596_v20, 7 }
 0x2e3   : > { %v1756_v27 = vpop.permute.xlu1 %1755  ;;  %v1593_v39 = vsel %vm12183_vm4, %v1585_v19, %v1592_v23  ;;  %v1599_v11 = vshll.u32 %v12592_v7, 16  ;;  %1900 = vst [vmem:[#allocation2 + $0x2c] sm:$0x1] %v1899_v33  ;;  %v12652_v58 = vadd.f32 %v12590_v55, %v12579_v53  ;;  %v1604_v53 = vshrl.u32 %v12632_v28, 16  ;;  %v1998_v55 = vld [vmem:[#allocation2 + $0x18] sm:$0xf] }
 0x2e4   : > { %v1237_v41 = vpop.f32.mrf.mxu1  ;;  %v1350_v48 = vpop.f32.mrf.mxu2  ;;  %v2098_v36 = vshrl.u32 %v1998_v55, 16  ;;  %v2101_v38 = vshll.u32 %v1998_v55, 16  ;;  %v1594_v26 = vrot.slane %v12605_v8, 4  ;;  %v2938_v9 = vrot.slane %v12647_v13, 5 }
 0x2e5   : > { %v12657_v56 = vadd.f32 %v1350_v48, %v1237_v41  ;;  %v1606_v17 = vrot.slane %v1604_v53, 7  ;;  %v1601_v8 = vor.u32 %v1599_v11, %v12644_v42  ;;  %v2135_v22 = vshrl.u32 %v12647_v13, 16 }
 0x2e6   : > { %1767 = vrot.lane.b32.xlu2 %v1567_v47, %s12029_s12  ;;  %1769 = vrot.lane.b32.xlu1 %v12442_v5, %s12029_s12  ;;  %v639_v5 = vrot.slane %v634_v54, 4  ;;  %v1901_v47 = vld [vmem:[#allocation2 + $0x30] sm:$0xf]  ;;  %v2114_v54 = vor.u32 %v2113_v37, %v12640_v35  ;;  %v1905_v0 = vld [vmem:[#allocation2 + $0x38] sm:$0x1]  ;;  %v2103_v15 = vrot.slane %v2101_v38, 5 }
 0x2e7   : > { %11969 = vrot.lane.b32.xlu0 %v11968_v60, %s12028_s22  ;;  %v1902_v46 = vsel %vm12598_vm15, %v12573_v31, %v1901_v47  ;;  %v1906_v7 = vsel %vm12390_vm11, %v12585_v44, %v1905_v0  ;;  %v1908_v3 = vld [vmem:[#allocation2 + $0x3c] sm:$0xf]  ;;  %v11973_v60 = vpack.i.bf16 %v12657_v56, %v12652_v58  ;;  %v1607_v44 = vshll.u32 %v12632_v28, 16 }
 0x2e8   : > { %v914_v16 = vsel %vm12241_vm7, %v639_v5, %v913_v21  ;;  %1903 = vst [vmem:[#allocation2 + $0x30] sm:$0xf] %v1902_v46  ;;  %v2115_v2 = vrot.slane %v2114_v54, 4  ;;  %v1909_v4 = vsel %vm12598_vm15, %v1756_v27, %v1908_v3  ;;  %v2000_v19 = vld [vmem:[#allocation2 + $0x24] sm:$0xf]  ;;  %v2131_v21 = vshll.u32 %v12647_v13, 16 }
 0x2e9   : > { %915 = vst [vmem:[#allocation2 + $0x44] sm:$0x1] %v914_v16  ;;  %v2940_v24 = vrot.slane %v2938_v9, 4  ;;  %v2125_v6 = vshll.u32 %v2000_v19, 16  ;;  %v1609_v41 = vor.u32 %v1607_v44, %v1606_v17  ;;  %v2137_v16 = vrot.slane %v2135_v22, 4 }
 0x2ea   : > { %v1758_v30 = vpop.permute.xlu0 %1757  ;;  %1907 = vst [vmem:[#allocation2 + $0x38] sm:$0x1] %v1906_v7  ;;  %v2033_v23 = vld [vmem:[#allocation2 + $0x2c] sm:$0x1]  ;;  %v2120_v20 = vsel %vm12668_vm3, %v2115_v2, %v12609_v10  ;;  %v2122_v10 = vshrl.u32 %v2000_v19, 16  ;;  %v2133_v37 = vrot.slane %v2131_v21, 5 }
 0x2eb   : > { %1911 = vst.msk [vmem:[#allocation2 + $0x40] sm:$0xf] %vm1875_vm12, %v1758_v30  ;;  %v1760_v12 = vpop.permute.xlu1 %1759  ;;  %v2941_v63 = vrot.slane %v2033_v23, 5  ;;  %v2443_v29 = vunpack.c.l.b16 %v2120_v20  ;;  %v2127_v11 = vrot.slane %v2125_v6, 5  ;;  %v2141_v54 = vshll.u32 %v2033_v23, 16 }
 0x2ec   : > { %1910 = vst [vmem:[#allocation2 + $0x3c] sm:$0xf] %v1909_v4  ;;  %v2124_v48 = vrot.slane %v2122_v10, 4  ;;  %v1611_v0 = vrot.slane %v1606_v17, 4  ;;  %v2138_v53 = vor.u32 %v2137_v16, %v2133_v37  ;;  %v2931_v55 = vrot.slane %v12625_v40, 5 }
 0x2ed   : > { %v12700_v30 = vsel %vm12694_vm8, %v2940_v24, %v2941_v63  ;;  %v3566_v6 = vld [vmem:[#allocation2 + $0x28] sm:$0xf] }
 0x2ee   : > { %1771 = vrot.lane.b32.xlu2 %v1577_v14, %s12029_s12  ;;  %1775 = vrot.lane.b32.xlu1 %v1593_v39, %s12029_s12  ;;  %v2100_v14 = vrot.slane %v2098_v36, 4  ;;  %v2128_v2 = vor.u32 %v2127_v11, %v2124_v48  ;;  %v2143_v36 = vrot.slane %v2141_v54, 5  ;;  %v2933_v44 = vrot.slane %v2931_v55, 4 }
 0x2ef   : > { %1773 = vrot.lane.b32.xlu0 %v1584_v32, %s12029_s12  ;;  %v1602_v32 = vrot.slane %v12644_v42, 4  ;;  %v2866_v42 = vld [vmem:[#allocation2 + $0x18] sm:$0xe]  ;;  %v2002_v7 = vld [vmem:[#allocation2 + $0x30] sm:$0xf] }
 0x2f0   : > { %v2104_v18 = vor.u32 %v2103_v15, %v2100_v14  ;;  %v1912_v5 = vld [vmem:[#allocation2 + $0x44] sm:$0x1]  ;;  %v10972_v4 = vrot.slane %v2866_v42, 9  ;;  %v2129_v14 = vrot.slane %v2128_v2, 4  ;;  %v2146_v15 = vshrl.u32 %v2002_v7, 16 }
 0x2f1   : > { %v1913_v27 = vsel %vm12390_vm11, %v1760_v12, %v1912_v5  ;;  %v1610_v46 = vsel %vm12183_vm4, %v1602_v32, %v1609_v41  ;;  %v2149_v17 = vshll.u32 %v2002_v7, 16  ;;  %v12725_v20 = vld [vmem:[#allocation2 + $0x38] sm:$0x1]  ;;  %v3039_v32 = vunpack.c.l.b16 %v12700_v30  ;;  %v3563_v42 = vld [vmem:[#allocation2 + $0x1c] sm:$0xf] }
 0x2f2   : > { %v2105_v25 = vrot.slane %v2104_v18, 4  ;;  %1914 = vst [vmem:[#allocation2 + $0x44] sm:$0x1] %v1913_v27  ;;  %v2932_v40 = vsel %vm12694_vm8, %v10972_v4, %v2931_v55  ;;  %v2134_v5 = vsel %vm12668_vm3, %v2129_v14, %v2133_v37  ;;  %v2148_v21 = vrot.slane %v2146_v15, 4  ;;  %v530_v55 = vld [vmem:[%s12211_s30 + $0x28] sm:$0xf] }
 0x2f3   : > { %v2151_v22 = vrot.slane %v2149_v17, 5  ;;  %v2165_v10 = vshll.u32 %v12725_v20, 16  ;;  %v2869_v48 = vld [vmem:[#allocation2 + $0x3c] sm:$0xe] }
 0x2f4   : > { %v2110_v39 = vsel %vm12668_vm3, %v2105_v25, %v12640_v35  ;;  %v12710_v35 = vld [vmem:[#allocation2 + $0x34] sm:$0xf]  ;;  %v10975_v7 = vrot.slane %v2869_v48, 9  ;;  %v2004_v15 = vld [vmem:[#allocation2 + $0x3c] sm:$0xf] }
 0x2f5   : > { %v2442_v33 = vunpack.c.l.b16 %v2110_v39  ;;  %v2155_v38 = vshll.u32 %v12710_v35, 16  ;;  %v2159_v3 = vshrl.u32 %v12710_v35, 16  ;;  %v2444_v39 = vunpack.c.l.b16 %v2134_v5 }
 0x2f6   : > { %1777 = vrot.lane.b32.xlu2 %v1594_v26, %s12029_s12  ;;  %11974 = vrot.lane.b32.xlu1 %v11973_v60, %s12028_s22  ;;  %v2934_v60 = vrot.slane %v12522_v34, 5  ;;  %v2139_v26 = vrot.slane %v2138_v53, 4  ;;  %v3036_v34 = vunpack.c.l.b16 %v2932_v40  ;;  %v2152_v41 = vor.u32 %v2151_v22, %v2148_v21 }
 0x2f7   : > { %1779 = vrot.lane.b32.xlu0 %v1601_v8, %s12029_s12  ;;  %v2472_v47 = vpack.c.b16 %v2443_v29, %v2442_v33  ;;  %v12723_v23 = vrot.slane %v2155_v38, 5  ;;  %v2161_v18 = vrot.slane %v2159_v3, 4  ;;  %v2867_v8 = vld [vmem:[#allocation2 + $0x24] sm:$0xe]  ;;  %v12734_v33 = vld [vmem:[#allocation2 + $0x40] sm:$0xf] }
 0x2f8   : > { %v2935_v12 = vsel %vm12694_vm8, %v2933_v44, %v2934_v60  ;;  %v2144_v19 = vsel %vm12668_vm3, %v2139_v26, %v2143_v36  ;;  %v10973_v29 = vrot.slane %v2867_v8, 9  ;;  %v2167_v53 = vrot.slane %v2165_v10, 5  ;;  %v4226_v3 = vld [vmem:[#allocation2 + $0x18] sm:$0xe] }
 0x2f9   : > { %10868 = vmatmul.msk.bf16.vlgmr.msra.gmra.mxu3 %vm1041_vm0, %v2472_v47  ;;  %v3037_v63 = vunpack.c.l.b16 %v2935_v12  ;;  %v2445_v24 = vunpack.c.l.b16 %v2144_v19  ;;  %v2162_v27 = vor.u32 %v2161_v18, %v12723_v23  ;;  %v12736_v16 = vld [vmem:[#allocation2 + $0x44] sm:$0x1]  ;;  %v3564_v47 = vld [vmem:[#allocation2 + $0x20] sm:$0x1]  ;;  %v2952_v13 = vrot.slane %v12734_v33, 5 }
 0x2fa   : > { %v2939_v37 = vsel %vm12694_vm8, %v10973_v29, %v2938_v9  ;;  %v2955_v30 = vrot.slane %v12736_v16, 5  ;;  %v2153_v36 = vrot.slane %v2152_v41, 4  ;;  %v641_v9 = vshrl.u32 %v530_v55, 16  ;;  %v4227_v12 = vld [vmem:[#allocation2 + $0x24] sm:$0xe] }
 0x2fb   : > { %v12729_v25 = vpack.c.b16 %v3037_v63, %v3036_v34  ;;  %v2473_v11 = vpack.c.b16 %v2445_v24, %v2444_v39  ;;  %v3038_v54 = vunpack.c.l.b16 %v2939_v37  ;;  %v644_v38 = vshll.u32 %v530_v55, 16  ;;  %v916_v18 = vld [vmem:[#allocation2 + $0x48] sm:$0xf]  ;;  %v3567_v34 = vld [vmem:[#allocation2 + $0x2c] sm:$0x1] }
 0x2fc   : > { %v4301_v4 = vrot.slane %v3564_v47, 5  ;;  %v2179_v60 = vshll.u32 %v12734_v33, 16  ;;  %v2953_v26 = vsel %vm12694_vm8, %v10975_v7, %v2952_v13  ;;  %v2954_v44 = vrot.slane %v2952_v13, 4  ;;  %v3573_v37 = vld [vmem:[#allocation2 + $0x44] sm:$0x1] }
 0x2fd   : > { %v12745_v2 = vpack.c.b16 %v3039_v32, %v3038_v54  ;;  %v2183_v17 = vshrl.u32 %v12734_v33, 16  ;;  %v12752_v40 = vrot.slane %v641_v9, 7  ;;  %v11135_v8 = vrot.slane %v4226_v3, 9 }
 0x2fe   : > { %1781 = vrot.lane.b32.xlu2 %v1610_v46, %s12029_s12  ;;  %v4305_v46 = vrot.slane %v3566_v6, 5  ;;  %v2956_v63 = vsel %vm12694_vm8, %v2954_v44, %v2955_v30  ;;  %v4298_v5 = vrot.slane %v3563_v42, 5  ;;  %v2158_v21 = vsel %vm12668_vm3, %v2153_v36, %v12723_v23  ;;  %v3572_v6 = vld [vmem:[#allocation2 + $0x40] sm:$0xf] }
 0x2ff   : > { %1783 = vrot.lane.b32.xlu0 %v1611_v0, %s12029_s12  ;;  %v2163_v0 = vrot.slane %v2162_v27, 4  ;;  %v646_v22 = vor.u32 %v644_v38, %v12752_v40  ;;  %v3042_v24 = vunpack.c.l.b16 %v2953_v26  ;;  %v3043_v27 = vunpack.c.l.b16 %v2956_v63 }
 0x300   : > { %v4307_v14 = vrot.slane %v4305_v46, 4  ;;  %v2170_v10 = vshrl.u32 %v2004_v15, 16  ;;  %v4299_v29 = vsel %vm12694_vm8, %v11135_v8, %v4298_v5  ;;  %v4300_v39 = vrot.slane %v4298_v5, 4 }
 0x301   : > { %v2168_v19 = vsel %vm12668_vm3, %v2163_v0, %v2167_v53  ;;  %v11136_v32 = vrot.slane %v4227_v12, 9  ;;  %v2173_v41 = vshll.u32 %v2004_v15, 16  ;;  %v917_v33 = vsel %vm12535_vm14, %v646_v22, %v916_v18  ;;  %v4229_v53 = vld [vmem:[#allocation2 + $0x3c] sm:$0xe]  ;;  %v532_v12 = vld [vmem:[%s12211_s30 + $0x30] sm:$0xf] }
 0x302   : > { %v12766_v48 = vpack.c.b16 %v3043_v27, %v3042_v24  ;;  %v2446_v23 = vunpack.c.l.b16 %v2158_v21  ;;  %v2447_v47 = vunpack.c.l.b16 %v2168_v19  ;;  %918 = vst [vmem:[#allocation2 + $0x48] sm:$0xf] %v917_v33  ;;  %v4302_v54 = vsel %vm12694_vm8, %v4300_v39, %v4301_v4  ;;  %v923_v22 = vld [vmem:[#allocation2 + $0x54] sm:$0xf] }
 0x303   : > { %v4306_v0 = vsel %vm12694_vm8, %v11136_v32, %v4305_v46  ;;  %v4408_v42 = vunpack.c.l.b16 %v4299_v29  ;;  %v4409_v30 = vunpack.c.l.b16 %v4302_v54  ;;  %v4319_v7 = vrot.slane %v3572_v6, 5 }
 0x304   : > { %v2181_v13 = vrot.slane %v2179_v60, 5  ;;  %v4410_v36 = vunpack.c.l.b16 %v4306_v0  ;;  %v4322_v38 = vrot.slane %v3573_v37, 5  ;;  %v2185_v3 = vrot.slane %v2183_v17, 4 }
 0x305   : > { %v12774_v26 = vpack.c.b16 %v4409_v30, %v4408_v42  ;;  %v11138_v44 = vrot.slane %v4229_v53, 9  ;;  %v4321_v4 = vrot.slane %v4319_v7, 4  ;;  %v2474_v15 = vpack.c.b16 %v2447_v47, %v2446_v23  ;;  %v533_v23 = vld [vmem:[%s12211_s30 + $0x34] sm:$0xf] }
 0x306   : > { %v658_v46 = vshrl.u32 %v532_v12, 16  ;;  %v661_v18 = vshll.u32 %v532_v12, 16  ;;  %v2172_v60 = vrot.slane %v2170_v10, 4  ;;  %v2175_v17 = vrot.slane %v2173_v41, 5  ;;  %v2868_v10 = vld [vmem:[#allocation2 + $0x30] sm:$0xe] }
 0x307   : > { %v4323_v63 = vsel %vm12694_vm8, %v4321_v4, %v4322_v38  ;;  %v2186_v8 = vor.u32 %v2185_v3, %v2181_v13  ;;  %v2945_v21 = vrot.slane %v12710_v35, 5  ;;  %v2189_v6 = vshll.u32 %v12736_v16, 16 }
 0x308   : > { %v12784_v5 = vrot.slane %v658_v46, 7  ;;  %v4415_v27 = vunpack.c.l.b16 %v4323_v63  ;;  %v12792_v39 = vpack.c.bf16 %v12652_v58, %v12652_v58  ;;  %v1448_v32 = vpack.c.bf16 %v12657_v56, %v12657_v56 }
 0x309   : > { %10869 = vmatmul.msk.bf16.gmra.mxu3 %vm1041_vm0, %v2473_v11  ;;  %v4308_v11 = vrot.slane %v3567_v34, 5  ;;  %v4320_v34 = vsel %vm12694_vm8, %v11138_v44, %v4319_v7  ;;  %v2947_v29 = vrot.slane %v2945_v21, 4  ;;  %v10974_v35 = vrot.slane %v2868_v10, 9 }
 0x30a   : > { %v4414_v24 = vunpack.c.l.b16 %v4320_v34  ;;  %v2176_v33 = vor.u32 %v2175_v17, %v2172_v60  ;;  %v2187_v37 = vrot.slane %v2186_v8, 4  ;;  %v2191_v54 = vrot.slane %v2189_v6, 5  ;;  %v531_v34 = vld [vmem:[%s12211_s30 + $0x2c] sm:$0xf]  ;;  %v3569_v60 = vld [vmem:[#allocation2 + $0x34] sm:$0xf] }
 0x30b   : > { %v4309_v55 = vsel %vm12694_vm8, %v4307_v14, %v4308_v11  ;;  %v2948_v14 = vrot.slane %v12725_v20, 5  ;;  %v663_v20 = vor.u32 %v661_v18, %v12784_v5  ;;  %v2946_v58 = vsel %vm12694_vm8, %v10974_v35, %v2945_v21  ;;  %v3570_v8 = vld [vmem:[#allocation2 + $0x38] sm:$0x1] }
 0x30c   : > { %v4411_v9 = vunpack.c.l.b16 %v4309_v55  ;;  %v12796_v41 = vpack.c.b16 %v4415_v27, %v4414_v24  ;;  %v666_v0 = vshrl.u32 %v533_v23, 16  ;;  %v3040_v56 = vunpack.c.l.b16 %v2946_v58  ;;  %v4228_v24 = vld [vmem:[#allocation2 + $0x30] sm:$0xe]  ;;  %v920_v27 = vld [vmem:[#allocation2 + $0x50] sm:$0x1] }
 0x30d   : > { %v924_v11 = vsel %vm12535_vm14, %v663_v20, %v923_v22  ;;  %v2949_v16 = vsel %vm12694_vm8, %v2947_v29, %v2948_v14  ;;  %v1630_v53 = vshrl.u32 %v12792_v39, 16  ;;  %v1638_v42 = vshrl.u32 %v1448_v32, 16 }
 0x30e   : > { %v12777_v19 = vpack.c.b16 %v4411_v9, %v4410_v36  ;;  %925 = vst [vmem:[#allocation2 + $0x54] sm:$0xf] %v924_v11  ;;  %v3041_v47 = vunpack.c.l.b16 %v2949_v16  ;;  %v2177_v30 = vrot.slane %v2176_v33, 4  ;;  %v2192_v55 = vsel %vm12668_vm3, %v2187_v37, %v2191_v54  ;;  %v927_v9 = vld [vmem:[#allocation2 + $0x5c] sm:$0x1] }
 0x30f   : > { %v668_v7 = vrot.slane %v666_v0, 7  ;;  %v12812_v44 = vrot.slane %v1630_v53, 7  ;;  %v12814_v4 = vrot.slane %v1638_v42, 7  ;;  %v2449_v12 = vunpack.c.l.b16 %v2192_v55  ;;  %v535_v16 = vld [vmem:[%s12211_s30 + $0x3c] sm:$0xf] }
 0x310   : > { %v12808_v36 = vpack.c.b16 %v3041_v47, %v3040_v56  ;;  %v2182_v38 = vsel %vm12668_vm3, %v2177_v30, %v2181_v13  ;;  %v649_v14 = vshrl.u32 %v531_v34, 16  ;;  %v4312_v21 = vrot.slane %v3569_v60, 5 }
 0x311   : > { %v673_v3 = vrot.slane %v668_v7, 4  ;;  %v2448_v18 = vunpack.c.l.b16 %v2182_v38  ;;  %v1636_v17 = vrot.slane %v12812_v44, 4  ;;  %v11137_v20 = vrot.slane %v4228_v24, 9  ;;  %v934_v38 = vld [vmem:[#allocation2 + $0x68] sm:$0x1] }
 0x312   : > { %v651_v22 = vrot.slane %v649_v14, 7  ;;  %v4314_v10 = vrot.slane %v4312_v21, 4  ;;  %v683_v47 = vshrl.u32 %v535_v16, 16  ;;  %v647_v54 = vrot.slane %v12752_v40, 4  ;;  %v534_v24 = vld [vmem:[%s12211_s30 + $0x38] sm:$0xf] }
 0x313   : > { %v928_v46 = vsel %vm12241_vm7, %v673_v3, %v927_v9  ;;  %v2475_v63 = vpack.c.b16 %v2449_v12, %v2448_v18  ;;  %v4313_v35 = vsel %vm12694_vm8, %v11137_v20, %v4312_v21  ;;  %v652_v0 = vshll.u32 %v531_v34, 16  ;;  %v1915_v9 = vld [vmem:[#allocation2 + $0x48] sm:$0xf]  ;;  %v537_v18 = vld [vmem:[%s12211_s30 + $0x44] sm:$0xf] }
 0x314   : > { %929 = vst [vmem:[#allocation2 + $0x5c] sm:$0x1] %v928_v46  ;;  %v656_v29 = vrot.slane %v651_v22, 4  ;;  %v4412_v11 = vunpack.c.l.b16 %v4313_v35  ;;  %v664_v56 = vrot.slane %v12784_v5, 4  ;;  %v669_v53 = vshll.u32 %v533_v23, 16 }
 0x315   : > { %v685_v30 = vrot.slane %v683_v47, 7  ;;  %v654_v55 = vor.u32 %v652_v0, %v651_v22  ;;  %v700_v14 = vshrl.u32 %v537_v18, 16  ;;  %v703_v60 = vshll.u32 %v537_v18, 16 }
 0x316   : > { %v921_v33 = vsel %vm12241_vm7, %v656_v29, %v920_v27  ;;  %v671_v3 = vor.u32 %v669_v53, %v668_v7  ;;  %v536_v7 = vld [vmem:[%s12211_s30 + $0x40] sm:$0xf]  ;;  %v686_v27 = vshll.u32 %v535_v16, 16  ;;  %v675_v29 = vshrl.u32 %v534_v24, 16 }
 0x317   : > { %922 = vst [vmem:[#allocation2 + $0x50] sm:$0x1] %v921_v33  ;;  %v655_v12 = vsel %vm12183_vm4, %v647_v54, %v654_v55  ;;  %v692_v34 = vshrl.u32 %v536_v7, 16  ;;  %v695_v18 = vshll.u32 %v536_v7, 16 }
 0x318   : > { %919 = vst.msk [vmem:[#allocation2 + $0x4c] sm:$0xf] %vm464_vm9, %v655_v12  ;;  %v672_v40 = vsel %vm12183_vm4, %v664_v56, %v671_v3  ;;  %v677_v35 = vrot.slane %v675_v29, 7  ;;  %v688_v33 = vor.u32 %v686_v27, %v685_v30 }
 0x319   : > { %10870 = vmatmul.msk.bf16.gmra.mxu3 %vm1041_vm0, %v2474_v15  ;;  %v1641_v15 = vshll.u32 %v1448_v32, 16  ;;  %v4315_v32 = vrot.slane %v3570_v8, 5  ;;  %926 = vst.msk [vmem:[#allocation2 + $0x58] sm:$0xf] %vm464_vm9, %v672_v40 }
 0x31b   : > { %v1643_v13 = vor.u32 %v1641_v15, %v12814_v4  ;;  %v4316_v37 = vsel %vm12694_vm8, %v4314_v10, %v4315_v32  ;;  %v690_v15 = vrot.slane %v685_v30, 4  ;;  %v678_v32 = vshll.u32 %v534_v24, 16  ;;  %v1926_v47 = vld [vmem:[#allocation2 + $0x5c] sm:$0x1] }
 0x31c   : > { %v4413_v58 = vunpack.c.l.b16 %v4316_v37  ;;  %v930_v37 = vld [vmem:[#allocation2 + $0x60] sm:$0xf] }
 0x31d   : > { %v12824_v6 = vsel %vm12183_vm4, %v1636_v17, %v1643_v13  ;;  %v935_v23 = vsel %vm12241_vm7, %v690_v15, %v934_v38  ;;  %v12849_v17 = vrot.slane %v700_v14, 7  ;;  %v1922_v13 = vld [vmem:[#allocation2 + $0x54] sm:$0xf] }
 0x31e   : > { %v12835_v42 = vpack.c.b16 %v4413_v58, %v4412_v11  ;;  %936 = vst [vmem:[#allocation2 + $0x68] sm:$0x1] %v935_v23  ;;  %v680_v11 = vor.u32 %v678_v32, %v677_v35  ;;  %v681_v58 = vrot.slane %v677_v35, 4  ;;  %v1919_v53 = vld [vmem:[#allocation2 + $0x50] sm:$0x1] }
 0x31f   : > { %v705_v21 = vor.u32 %v703_v60, %v12849_v17 }
 0x320   : > { %v689_v16 = vsel %vm12183_vm4, %v681_v58, %v688_v33  ;;  %v931_v54 = vsel %vm12535_vm14, %v680_v11, %v930_v37  ;;  %v707_v33 = vrot.slane %v12849_v17, 4  ;;  %v937_v37 = vld [vmem:[#allocation2 + $0x6c] sm:$0xf] }
 0x321   : > { %933 = vst.msk [vmem:[#allocation2 + $0x64] sm:$0xf] %vm464_vm9, %v689_v16 }
 0x322   : > { %932 = vst [vmem:[#allocation2 + $0x60] sm:$0xf] %v931_v54 }
 0x325   : > { %v1933_v30 = vld [vmem:[#allocation2 + $0x68] sm:$0x1] }
 0x329   : > { %10871 = vmatmul.msk.bf16.gmra.mxu3 %vm1041_vm0, %v2475_v63  ;;  %v694_v63 = vrot.slane %v692_v34, 7  ;;  %v1929_v54 = vld [vmem:[#allocation2 + $0x60] sm:$0xf] }
 0x32b   : > { %v698_v8 = vrot.slane %v694_v63, 4  ;;  %v697_v24 = vor.u32 %v695_v18, %v694_v63 }
 0x32d   : > { %v706_v10 = vsel %vm12183_vm4, %v698_v8, %v705_v21 }
 0x32e   : > { %940 = vst.msk [vmem:[#allocation2 + $0x70] sm:$0xf] %vm464_vm9, %v706_v10  ;;  %v1353_v10 = vpop.f32.mrf.mxu2 }
 0x338   : > { %v1762_v46 = vpop.permute.xlu2 %1761 }
 0x339   : > { %v1916_v5 = vsel %vm12598_vm15, %v1762_v46, %v1915_v9 }
 0x33a   : > { %1917 = vst [vmem:[#allocation2 + $0x48] sm:$0xf] %v1916_v5 }
 0x340   : > { %v1768_v22 = vpop.permute.xlu2 %1767 }
 0x341   : > { %v1923_v20 = vsel %vm12598_vm15, %v1768_v22, %v1922_v13  ;;  %v2006_v55 = vld [vmem:[#allocation2 + $0x48] sm:$0xf]  ;;  %v1240_v13 = vpop.f32.mrf.mxu1 }
 0x342   : > { %1924 = vst [vmem:[#allocation2 + $0x54] sm:$0xf] %v1923_v20  ;;  %v2194_v46 = vshrl.u32 %v2006_v55, 16  ;;  %v2197_v40 = vshll.u32 %v2006_v55, 16 }
 0x344   : > { %v2196_v5 = vrot.slane %v2194_v46, 4  ;;  %v2199_v23 = vrot.slane %v2197_v40, 5 }
 0x346   : > { %v2200_v22 = vor.u32 %v2199_v23, %v2196_v5 }
 0x348   : > { %v1772_v0 = vpop.permute.xlu2 %1771 }
 0x349   : > { %v1927_v56 = vsel %vm12390_vm11, %v1772_v0, %v1926_v47  ;;  %v2201_v47 = vrot.slane %v2200_v22, 4  ;;  %v1633_v22 = vshll.u32 %v12792_v39, 16 }
 0x34a   : > { %1928 = vst [vmem:[#allocation2 + $0x5c] sm:$0x1] %v1927_v56 }
 0x350   : > { %v1766_v9 = vpop.permute.xlu1 %1765  ;;  %v1778_v38 = vpop.permute.xlu2 %1777 }
 0x351   : > { %v1920_v3 = vsel %vm12390_vm11, %v1766_v9, %v1919_v53  ;;  %v1934_v15 = vsel %vm12390_vm11, %v1778_v38, %v1933_v30  ;;  %v1764_v12 = vpop.permute.xlu0 %1763  ;;  %v938_v53 = vsel %vm12535_vm14, %v697_v24, %v937_v37  ;;  %v2008_v30 = vld [vmem:[#allocation2 + $0x54] sm:$0xf]  ;;  %v1242_v24 = vpop.f32.mrf.mxu1 }
 0x352   : > { %1921 = vst [vmem:[#allocation2 + $0x50] sm:$0x1] %v1920_v3  ;;  %v941_v37 = vld [vmem:[#allocation2 + $0x74] sm:$0x1] }
 0x353   : > { %1935 = vst [vmem:[#allocation2 + $0x68] sm:$0x1] %v1934_v15 }
 0x354   : > { %1918 = vst.msk [vmem:[#allocation2 + $0x4c] sm:$0xf] %vm1875_vm12, %v1764_v12 }
 0x355   : > { %939 = vst [vmem:[#allocation2 + $0x6c] sm:$0xf] %v938_v53 }
 0x358   : > { %v1770_v34 = vpop.permute.xlu1 %1769  ;;  %v1782_v14 = vpop.permute.xlu2 %1781 }
 0x359   : > { %1925 = vst.msk [vmem:[#allocation2 + $0x58] sm:$0xf] %vm1875_vm12, %v1770_v34  ;;  %v11970_v60 = vpop.permute.xlu0 %11969  ;;  %v12874_v20 = vld [vmem:[#allocation2 + $0x50] sm:$0x1] }
 0x35a   : > { %1939 = vst.msk [vmem:[#allocation2 + $0x70] sm:$0xf] %vm1875_vm12, %v1782_v14  ;;  %v11972_v8 = vunpack.i.h.bf16 %v11970_v60  ;;  %v11971_v21 = vunpack.i.l.bf16 %v11970_v60  ;;  %v2213_v16 = vshll.u32 %v12874_v20, 16 }
 0x35b   : > { %v12872_v27 = vld [vmem:[#allocation2 + $0x4c] sm:$0xf] }
 0x35c   : > { %v1446_v29 = vpack.c.bf16 %v11972_v8, %v11972_v8  ;;  %v1445_v32 = vpack.c.bf16 %v11971_v21, %v11971_v21  ;;  %v2203_v7 = vshll.u32 %v12872_v27, 16  ;;  %v2207_v35 = vshrl.u32 %v12872_v27, 16 }
 0x35d   : > { %v2215_v21 = vrot.slane %v2213_v16, 5  ;;  %v1354_v16 = vadd.f32 %v1353_v10, %v1240_v13 }
 0x35e   : > { %v1621_v11 = vshrl.u32 %v1446_v29, 16  ;;  %v1613_v58 = vshrl.u32 %v1445_v32, 16  ;;  %v1616_v63 = vshll.u32 %v1445_v32, 16  ;;  %v2205_v0 = vrot.slane %v2203_v7, 5 }
 0x35f   : > { %v2209_v56 = vrot.slane %v2207_v35, 4  ;;  %v1624_v17 = vshll.u32 %v1446_v29, 16  ;;  %v2218_v29 = vshrl.u32 %v2008_v30, 16  ;;  %v2221_v32 = vshll.u32 %v2008_v30, 16 }
 0x360   : > { %v1623_v55 = vrot.slane %v1621_v11, 7  ;;  %v1615_v9 = vrot.slane %v1613_v58, 7  ;;  %v1776_v38 = vpop.permute.xlu1 %1775  ;;  %v12882_v3 = vld [vmem:[#allocation2 + $0x58] sm:$0xf]  ;;  %v2206_v60 = vsel %vm12668_vm3, %v2201_v47, %v2205_v0  ;;  %v1355_v47 = vpop.f32.mrf.mxu2  ;;  %v12906_v10 = vpack.c.bf16 %v1354_v16, %v1354_v16 }
 0x361   : > { %1932 = vst.msk [vmem:[#allocation2 + $0x64] sm:$0xf] %vm1875_vm12, %v1776_v38  ;;  %v1774_v15 = vpop.permute.xlu0 %1773  ;;  %v2210_v12 = vor.u32 %v2209_v56, %v2205_v0  ;;  %v2227_v46 = vshll.u32 %v12882_v3, 16  ;;  %v2231_v40 = vshrl.u32 %v12882_v3, 16  ;;  %v2450_v39 = vunpack.c.l.b16 %v2206_v60  ;;  %v1936_v56 = vld [vmem:[#allocation2 + $0x6c] sm:$0xf] }
 0x362   : > { %v1930_v5 = vsel %vm12598_vm15, %v1774_v15, %v1929_v54  ;;  %v1628_v23 = vrot.slane %v1623_v55, 4  ;;  %v1618_v18 = vor.u32 %v1616_v63, %v1615_v9  ;;  %v1619_v34 = vrot.slane %v1615_v9, 4 }
 0x363   : > { %1931 = vst [vmem:[#allocation2 + $0x60] sm:$0xf] %v1930_v5  ;;  %v1626_v14 = vor.u32 %v1624_v17, %v1623_v55  ;;  %v2211_v8 = vrot.slane %v2210_v12, 4  ;;  %v12898_v11 = vrot.slane %v2227_v46, 5  ;;  %v2233_v58 = vrot.slane %v2231_v40, 4 }
 0x364   : > { %1789 = vrot.lane.b32.xlu0 %v1628_v23, %s12029_s12  ;;  %1785 = vrot.lane.b32.xlu1 %v1618_v18, %s12029_s12  ;;  %v942_v54 = vsel %vm12241_vm7, %v707_v33, %v941_v37  ;;  %v1356_v0 = vadd.f32 %v1355_v47, %v1242_v24  ;;  %v12903_v55 = vld [vmem:[#allocation2 + $0x5c] sm:$0x1]  ;;  %v2220_v9 = vrot.slane %v2218_v29, 4  ;;  %v2223_v38 = vrot.slane %v2221_v32, 5 }
 0x365   : > { %v1627_v7 = vsel %vm12183_vm4, %v1619_v34, %v1626_v14  ;;  %v2216_v35 = vsel %vm12668_vm3, %v2211_v8, %v2215_v21  ;;  %943 = vst [vmem:[#allocation2 + $0x74] sm:$0x1] %v942_v54  ;;  %v2234_v13 = vor.u32 %v2233_v58, %v12898_v11  ;;  %v1635_v46 = vor.u32 %v1633_v22, %v12812_v44  ;;  %v2870_v34 = vld [vmem:[#allocation2 + $0x48] sm:$0xe] }
 0x366   : > { %1787 = vrot.lane.b32.xlu2 %v1627_v7, %s12029_s12  ;;  %v2451_v63 = vunpack.c.l.b16 %v2216_v35  ;;  %v1452_v40 = vpack.c.bf16 %v1356_v0, %v1356_v0  ;;  %v2237_v18 = vshll.u32 %v12903_v55, 16  ;;  %v11978_v14 = vpack.i.bf16 %v1356_v0, %v1354_v16 }
 0x367   : > { %v2224_v60 = vor.u32 %v2223_v38, %v2220_v9  ;;  %v2959_v8 = vrot.slane %v12872_v27, 5  ;;  %v2235_v44 = vrot.slane %v2234_v13, 4  ;;  %v1664_v22 = vshrl.u32 %v12906_v10, 16 }
 0x368   : > { %v2476_v53 = vpack.c.b16 %v2451_v63, %v2450_v39  ;;  %v11975_v30 = vpop.permute.xlu1 %11974  ;;  %v10976_v7 = vrot.slane %v2870_v34, 9  ;;  %v1672_v35 = vshrl.u32 %v1452_v40, 16  ;;  %v2239_v16 = vrot.slane %v2237_v18, 5 }
 0x369   : > { %v11977_v17 = vunpack.i.h.bf16 %v11975_v30  ;;  %v11976_v15 = vunpack.i.l.bf16 %v11975_v30  ;;  %v1780_v12 = vpop.permute.xlu0 %1779  ;;  %v1645_v39 = vrot.slane %v12814_v4, 4  ;;  %v2225_v27 = vrot.slane %v2224_v60, 4 }
 0x36a   : > { %10872 = vmatmul.msk.bf16.gmra.mxu3 %vm1041_vm0, %v2476_v53  ;;  %v1937_v33 = vsel %vm12598_vm15, %v1780_v12, %v1936_v56  ;;  %v2961_v63 = vrot.slane %v2959_v8, 4  ;;  %v2240_v53 = vsel %vm12668_vm3, %v2235_v44, %v2239_v16  ;;  %v2960_v30 = vsel %vm12694_vm8, %v10976_v7, %v2959_v8  ;;  %v2010_v34 = vld [vmem:[#allocation2 + $0x60] sm:$0xf] }
 0x36b   : > { %v1450_v5 = vpack.c.bf16 %v11977_v17, %v11977_v17  ;;  %v1449_v23 = vpack.c.bf16 %v11976_v15, %v11976_v15  ;;  %1938 = vst [vmem:[#allocation2 + $0x6c] sm:$0xf] %v1937_v33  ;;  %v1666_v9 = vrot.slane %v1664_v22, 7  ;;  %v12929_v4 = vrot.slane %v1672_v35, 7 }
 0x36c   : > { %1791 = vrot.lane.b32.xlu1 %v1635_v46, %s12029_s12  ;;  %1793 = vrot.lane.b32.xlu0 %v12824_v6, %s12029_s12  ;;  %v1940_v47 = vld [vmem:[#allocation2 + $0x74] sm:$0x1]  ;;  %v2962_v6 = vrot.slane %v12874_v20, 5  ;;  %v1675_v15 = vshll.u32 %v1452_v40, 16  ;;  %v2230_v13 = vsel %vm12668_vm3, %v2225_v27, %v12898_v11  ;;  %v2453_v33 = vunpack.c.l.b16 %v2240_v53 }
 0x36d   : > { %v1655_v21 = vshrl.u32 %v1450_v5, 16  ;;  %v1658_v24 = vshll.u32 %v1450_v5, 16  ;;  %v1647_v29 = vshrl.u32 %v1449_v23, 16  ;;  %v1650_v32 = vshll.u32 %v1449_v23, 16 }
 0x36e   : > { %11979 = vrot.lane.b32.xlu2 %v11978_v14, %s12028_s22  ;;  %v2963_v20 = vsel %vm12694_vm8, %v2961_v63, %v2962_v6  ;;  %v3044_v46 = vunpack.c.l.b16 %v2960_v30  ;;  %v1667_v23 = vshll.u32 %v12906_v10, 16  ;;  %v2452_v40 = vunpack.c.l.b16 %v2230_v13  ;;  %v12940_v14 = vld [vmem:[#allocation2 + $0x64] sm:$0xf] }
 0x36f   : > { %v1657_v37 = vrot.slane %v1655_v21, 7  ;;  %v1649_v58 = vrot.slane %v1647_v29, 7  ;;  %v3045_v5 = vunpack.c.l.b16 %v2963_v20  ;;  %v1670_v18 = vrot.slane %v1666_v9, 4  ;;  %v2871_v29 = vld [vmem:[#allocation2 + $0x54] sm:$0xe] }
 0x370   : > { %v1677_v11 = vor.u32 %v1675_v15, %v12929_v4  ;;  %v2242_v8 = vshrl.u32 %v2010_v34, 16  ;;  %v2245_v21 = vshll.u32 %v2010_v34, 16  ;;  %v2477_v44 = vpack.c.b16 %v2453_v33, %v2452_v40  ;;  %v4230_v33 = vld [vmem:[#allocation2 + $0x48] sm:$0xe]  ;;  %v4231_v40 = vld [vmem:[#allocation2 + $0x54] sm:$0xe] }
 0x371   : > { %v1784_v54 = vpop.permute.xlu0 %1783  ;;  %v1653_v0 = vrot.slane %v1649_v58, 4  ;;  %v1660_v56 = vor.u32 %v1658_v24, %v1657_v37  ;;  %v1652_v17 = vor.u32 %v1650_v32, %v1649_v58  ;;  %v12942_v60 = vpack.c.b16 %v3045_v5, %v3044_v46 }
 0x372   : > { %v1941_v38 = vsel %vm12390_vm11, %v1784_v54, %v1940_v47  ;;  %v2251_v24 = vshll.u32 %v12940_v14, 16  ;;  %v1662_v22 = vrot.slane %v1657_v37, 4  ;;  %v2255_v10 = vshrl.u32 %v12940_v14, 16  ;;  %v12949_v47 = vld [vmem:[#allocation2 + $0x68] sm:$0x1] }
 0x373   : > { %1942 = vst [vmem:[#allocation2 + $0x74] sm:$0x1] %v1941_v38  ;;  %v1661_v12 = vsel %vm12183_vm4, %v1653_v0, %v1660_v56  ;;  %v2966_v32 = vrot.slane %v12882_v3, 5  ;;  %v2244_v7 = vrot.slane %v2242_v8, 4  ;;  %v2247_v35 = vrot.slane %v2245_v21, 5 }
 0x374   : > { %1795 = vrot.lane.b32.xlu1 %v1645_v39, %s12029_s12  ;;  %1799 = vrot.lane.b32.xlu0 %v1661_v12, %s12029_s12  ;;  %v2253_v58 = vrot.slane %v2251_v24, 5  ;;  %v2257_v16 = vrot.slane %v2255_v10, 4  ;;  %v10977_v6 = vrot.slane %v2871_v29, 9  ;;  %v2969_v39 = vrot.slane %v12903_v55, 5  ;;  %v12959_v38 = vld [vmem:[#allocation2 + $0x70] sm:$0xf] }
 0x375   : > { %v1678_v27 = vsel %vm12183_vm4, %v1670_v18, %v1677_v11  ;;  %v2248_v63 = vor.u32 %v2247_v35, %v2244_v7  ;;  %v2261_v37 = vshll.u32 %v12949_v47, 16  ;;  %v1669_v3 = vor.u32 %v1667_v23, %v1666_v9  ;;  %v3575_v9 = vld [vmem:[#allocation2 + $0x4c] sm:$0xf]  ;;  %v3578_v23 = vld [vmem:[#allocation2 + $0x58] sm:$0xf] }
 0x376   : > { %1797 = vrot.lane.b32.xlu2 %v1652_v17, %s12029_s12  ;;  %v2258_v54 = vor.u32 %v2257_v16, %v2253_v58  ;;  %v2967_v0 = vsel %vm12694_vm8, %v10977_v6, %v2966_v32  ;;  %v2968_v56 = vrot.slane %v2966_v32, 4  ;;  %v2012_v17 = vld [vmem:[#allocation2 + $0x6c] sm:$0xf]  ;;  %v2275_v5 = vshll.u32 %v12959_v38, 16  ;;  %v3576_v8 = vld [vmem:[#allocation2 + $0x50] sm:$0x1] }
 0x377   : > { %v2249_v53 = vrot.slane %v2248_v63, 4  ;;  %v2263_v30 = vrot.slane %v2261_v37, 5  ;;  %v3046_v12 = vunpack.c.l.b16 %v2967_v0  ;;  %v1679_v18 = vrot.slane %v12929_v4, 4 }
 0x378   : > { %v2259_v55 = vrot.slane %v2258_v54, 4  ;;  %v2970_v20 = vsel %vm12694_vm8, %v2968_v56, %v2969_v39  ;;  %v2266_v34 = vshrl.u32 %v2012_v17, 16  ;;  %v2279_v11 = vshrl.u32 %v12959_v38, 16 }
 0x379   : > { %v2254_v15 = vsel %vm12668_vm3, %v2249_v53, %v2253_v58  ;;  %v3047_v13 = vunpack.c.l.b16 %v2970_v20  ;;  %v4326_v10 = vrot.slane %v3575_v9, 5  ;;  %v2269_v32 = vshll.u32 %v2012_v17, 16 }
 0x37a   : > { %10873 = vmatmul.msk.bf16.gmra.mxu3 %vm1041_vm0, %v2477_v44  ;;  %v2264_v46 = vsel %vm12668_vm3, %v2259_v55, %v2263_v30  ;;  %v2454_v24 = vunpack.c.l.b16 %v2254_v15  ;;  %v3579_v44 = vld [vmem:[#allocation2 + $0x5c] sm:$0x1]  ;;  %v11140_v7 = vrot.slane %v4231_v40, 9  ;;  %v4333_v35 = vrot.slane %v3578_v23, 5 }
 0x37b   : > { %v12971_v21 = vpack.c.b16 %v3047_v13, %v3046_v12  ;;  %v2455_v29 = vunpack.c.l.b16 %v2264_v46  ;;  %v4328_v4 = vrot.slane %v4326_v10, 4  ;;  %v4329_v16 = vrot.slane %v3576_v8, 5 }
 0x37c   : > { %1801 = vrot.lane.b32.xlu1 %v1662_v22, %s12029_s12  ;;  %1805 = vrot.lane.b32.xlu0 %v1678_v27, %s12029_s12  ;;  %v11139_v22 = vrot.slane %v4230_v33, 9  ;;  %v2277_v6 = vrot.slane %v2275_v5, 5  ;;  %v4334_v39 = vsel %vm12694_vm8, %v11140_v7, %v4333_v35  ;;  %v4335_v27 = vrot.slane %v4333_v35, 4 }
 0x37d   : > { %v4336_v63 = vrot.slane %v3579_v44, 5  ;;  %v2478_v37 = vpack.c.b16 %v2455_v29, %v2454_v24  ;;  %v2268_v54 = vrot.slane %v2266_v34, 4  ;;  %v2281_v0 = vrot.slane %v2279_v11, 4  ;;  %v11846_v34 = vld [vmem:[%s16583_s5 + $0x48] sm:$0xff]  ;;  %v2872_v29 = vld [vmem:[#allocation2 + $0x60] sm:$0xe] }
 0x37e   : > { %1803 = vrot.lane.b32.xlu2 %v1669_v3, %s12029_s12  ;;  %v4327_v58 = vsel %vm12694_vm8, %v11139_v22, %v4326_v10  ;;  %v12978_v3 = vld [vmem:[#allocation2 + $0x74] sm:$0x1]  ;;  %v4330_v56 = vsel %vm12694_vm8, %v4328_v4, %v4329_v16  ;;  %v2271_v53 = vrot.slane %v2269_v32, 5  ;;  %v4418_v20 = vunpack.c.l.b16 %v4334_v39  ;;  %4110 = vmatpush.bf16.msrb.mxu3 %v11846_v34  ;;  %v2873_v32 = vld [vmem:[#allocation2 + $0x6c] sm:$0xe] }
 0x37f   : > { %v4416_v30 = vunpack.c.l.b16 %v4327_v58  ;;  %v4417_v55 = vunpack.c.l.b16 %v4330_v56  ;;  %v4337_v17 = vsel %vm12694_vm8, %v4335_v27, %v4336_v63  ;;  %v2285_v9 = vshll.u32 %v12978_v3, 16  ;;  %v3584_v58 = vld [vmem:[#allocation2 + $0x70] sm:$0xf]  ;;  %v4233_v4 = vld [vmem:[#allocation2 + $0x6c] sm:$0xe] }
 0x380   : > { %v4419_v15 = vunpack.c.l.b16 %v4337_v17  ;;  %v2272_v33 = vor.u32 %v2271_v53, %v2268_v54  ;;  %v2282_v46 = vor.u32 %v2281_v0, %v2277_v6  ;;  %v2973_v44 = vrot.slane %v12940_v14, 5  ;;  %v11822_v16 = vld [vmem:[%s16583_s5 + $0x8] sm:$0xff] }
 0x381   : > { %v12985_v12 = vpack.c.b16 %v4417_v55, %v4416_v30  ;;  %v2287_v5 = vrot.slane %v2285_v9, 5  ;;  %v2976_v22 = vrot.slane %v12949_v47, 5  ;;  %v10978_v10 = vrot.slane %v2872_v29, 9  ;;  %v538_v39 = vld [vmem:[%s12211_s30 + $0x48] sm:$0xf]  ;;  %11934 = vmatpush.bf16.msrb.mxu1 %v11822_v16  ;;  %2781 = vmatpush.bf16.msrb.mxu0 %v11822_v16 }
 0x382   : > { %v12988_v13 = vpack.c.b16 %v4419_v15, %v4418_v20  ;;  %v2273_v23 = vrot.slane %v2272_v33, 4  ;;  %v2283_v40 = vrot.slane %v2282_v46, 4  ;;  %v2975_v35 = vrot.slane %v2973_v44, 4 }
 0x383   : > { %16615 = vst [vmem:[#allocation7_spill] sm:$0xff] %v12985_v12  ;;  %v2974_v27 = vsel %vm12694_vm8, %v10978_v10, %v2973_v44  ;;  %v2980_v63 = vrot.slane %v12959_v38, 5  ;;  %v709_v14 = vshrl.u32 %v538_v39, 16  ;;  %v10979_v54 = vrot.slane %v2873_v32, 9  ;;  %v3585_v38 = vld [vmem:[#allocation2 + $0x74] sm:$0x1] }
 0x384   : > { %1807 = vrot.lane.b32.xlu1 %v1679_v18, %s12029_s12  ;;  %16616 = vst [vmem:[#allocation8_spill] sm:$0xff] %v12988_v13  ;;  %v2288_v18 = vsel %vm12668_vm3, %v2283_v40, %v2287_v5  ;;  %v2278_v11 = vsel %vm12668_vm3, %v2273_v23, %v2277_v6  ;;  %v539_v6 = vld [vmem:[%s12211_s30 + $0x4c] sm:$0xf]  ;;  %v2983_v0 = vrot.slane %v12978_v3, 5  ;;  %v2977_v56 = vsel %vm12694_vm8, %v2975_v35, %v2976_v22  ;;  %v3581_v44 = vld [vmem:[#allocation2 + $0x64] sm:$0xf] }
 0x385   : > { %v2457_v8 = vunpack.c.l.b16 %v2288_v18  ;;  %v2456_v24 = vunpack.c.l.b16 %v2278_v11  ;;  %v717_v47 = vshrl.u32 %v539_v6, 16  ;;  %v4347_v53 = vrot.slane %v3584_v58, 5  ;;  %v3582_v22 = vld [vmem:[#allocation2 + $0x68] sm:$0x1]  ;;  %v4232_v58 = vld [vmem:[#allocation2 + $0x60] sm:$0xe] }
 0x386   : > { %v711_v30 = vrot.slane %v709_v14, 7  ;;  %v3048_v17 = vunpack.c.l.b16 %v2974_v27  ;;  %v11142_v20 = vrot.slane %v4233_v4, 9  ;;  %v3049_v15 = vunpack.c.l.b16 %v2977_v56 }
 0x387   : > { %v2479_v7 = vpack.c.b16 %v2457_v8, %v2456_v24  ;;  %v719_v55 = vrot.slane %v717_v47, 7  ;;  %v2981_v46 = vsel %vm12694_vm8, %v10979_v54, %v2980_v63  ;;  %v2982_v5 = vrot.slane %v2980_v63, 4 }
 0x388   : > { %v715_v9 = vrot.slane %v711_v30, 4  ;;  %v13013_v23 = vpack.c.b16 %v3049_v15, %v3048_v17  ;;  %v4349_v3 = vrot.slane %v4347_v53, 4  ;;  %v4348_v34 = vsel %vm12694_vm8, %v11142_v20, %v4347_v53 }
 0x389   : > { %v2984_v18 = vsel %vm12694_vm8, %v2982_v5, %v2983_v0  ;;  %v4350_v11 = vrot.slane %v3585_v38, 5  ;;  %v3050_v8 = vunpack.c.l.b16 %v2981_v46  ;;  %v4422_v32 = vunpack.c.l.b16 %v4348_v34  ;;  %v542_v0 = vld [vmem:[%s12211_s30 + $0x58] sm:$0xf]  ;;  %v958_v38 = vld [vmem:[#allocation2 + $0x90] sm:$0xf] }
 0x38a   : > { %10874 = vmatmul.msk.bf16.gmra.mxu3 %vm1041_vm0, %v2478_v37  ;;  %v720_v37 = vshll.u32 %v539_v6, 16  ;;  %v3051_v24 = vunpack.c.l.b16 %v2984_v18  ;;  %v4340_v35 = vrot.slane %v3581_v44, 5  ;;  %v11141_v16 = vrot.slane %v4232_v58, 9  ;;  %v948_v46 = vld [vmem:[#allocation2 + $0x80] sm:$0x1] }
 0x38b   : > { %v4351_v29 = vsel %vm12694_vm8, %v4349_v3, %v4350_v11  ;;  %v4343_v27 = vrot.slane %v3582_v22, 5  ;;  %v743_v56 = vshrl.u32 %v542_v0, 16  ;;  %v746_v53 = vshll.u32 %v542_v0, 16  ;;  %v11821_v58 = vld [vmem:[%s16583_s5] sm:$0xff] }
 0x38c   : > { %v722_v33 = vor.u32 %v720_v37, %v719_v55  ;;  %v13024_v10 = vpack.c.b16 %v3051_v24, %v3050_v8  ;;  %v4342_v6 = vrot.slane %v4340_v35, 4  ;;  %v4341_v63 = vsel %vm12694_vm8, %v11141_v16, %v4340_v35  ;;  %v540_v8 = vld [vmem:[%s12211_s30 + $0x50] sm:$0xf]  ;;  %v541_v35 = vld [vmem:[%s12211_s30 + $0x54] sm:$0xf]  ;;  %v1358_v16 = vpop.f32.mrf.mxu2  ;;  %11935 = vmatpush.bf16.msrb.mxu1 %v11821_v58  ;;  %2782 = vmatpush.bf16.msrb.mxu0 %v11821_v58 }
 0x38d   : > { %v4420_v47 = vunpack.c.l.b16 %v4341_v63  ;;  %v712_v17 = vshll.u32 %v538_v39, 16  ;;  %v724_v20 = vrot.slane %v719_v55, 4  ;;  %v13035_v15 = vrot.slane %v743_v56, 7  ;;  %v544_v55 = vld [vmem:[%s12211_s30 + $0x60] sm:$0xf] }
 0x38e   : > { %v723_v40 = vsel %vm12183_vm4, %v715_v9, %v722_v33  ;;  %v4344_v14 = vsel %vm12694_vm8, %v4342_v6, %v4343_v27  ;;  %v760_v18 = vshrl.u32 %v544_v55, 16  ;;  %v763_v34 = vshll.u32 %v544_v55, 16  ;;  %v951_v6 = vld [vmem:[#allocation2 + $0x84] sm:$0xf] }
 0x38f   : > { %947 = vst.msk [vmem:[#allocation2 + $0x7c] sm:$0xf] %vm464_vm9, %v723_v40  ;;  %v4421_v37 = vunpack.c.l.b16 %v4344_v14  ;;  %v748_v9 = vor.u32 %v746_v53, %v13035_v15  ;;  %v714_v33 = vor.u32 %v712_v17, %v711_v30  ;;  %v949_v3 = vsel %vm12241_vm7, %v724_v20, %v948_v46  ;;  %v944_v40 = vld [vmem:[#allocation2 + $0x78] sm:$0xf]  ;;  %v965_v30 = vld [vmem:[#allocation2 + $0x9c] sm:$0xf] }
 0x390   : > { %950 = vst [vmem:[#allocation2 + $0x80] sm:$0x1] %v949_v3  ;;  %v13045_v11 = vrot.slane %v760_v18, 7  ;;  %v729_v44 = vshll.u32 %v540_v8, 16  ;;  %v734_v27 = vshrl.u32 %v541_v35, 16  ;;  %v737_v63 = vshll.u32 %v541_v35, 16 }
 0x391   : > { %v13032_v54 = vpack.c.b16 %v4421_v37, %v4420_v47  ;;  %v959_v5 = vsel %vm12535_vm14, %v748_v9, %v958_v38  ;;  %v945_v39 = vsel %vm12535_vm14, %v714_v33, %v944_v40  ;;  %v955_v17 = vld [vmem:[#allocation2 + $0x8c] sm:$0x1]  ;;  %v13059_v20 = vadd.f32 %v1358_v16, %v12166_v43  ;;  %v543_v46 = vld [vmem:[%s12211_s30 + $0x5c] sm:$0xf]  ;;  %v962_v35 = vld [vmem:[#allocation2 + $0x98] sm:$0x1] }
 0x392   : > { %960 = vst [vmem:[#allocation2 + $0x90] sm:$0xf] %v959_v5  ;;  %v765_v24 = vor.u32 %v763_v34, %v13045_v11  ;;  %v736_v37 = vrot.slane %v734_v27, 7  ;;  %v751_v40 = vshrl.u32 %v543_v46, 16 }
 0x393   : > { %16618 = vst [vmem:[#allocation10_spill] sm:$0xff] %v13032_v54  ;;  %v1455_v55 = vpack.c.bf16 %v13059_v20, %v13059_v20 }
 0x394   : > { %946 = vst [vmem:[#allocation2 + $0x78] sm:$0xf] %v945_v39  ;;  %v739_v56 = vor.u32 %v737_v63, %v736_v37  ;;  %v741_v53 = vrot.slane %v736_v37, 4  ;;  %v754_v39 = vshll.u32 %v543_v46, 16  ;;  %v1360_v43 = vpop.f32.mrf.mxu2  ;;  %v545_v37 = vld [vmem:[%s12211_s30 + $0x64] sm:$0xf] }
 0x395   : > { %v1698_v58 = vshrl.u32 %v1455_v55, 16 }
 0x396   : > { %v956_v9 = vsel %vm12241_vm7, %v741_v53, %v955_v17 }
 0x397   : > { %957 = vst [vmem:[#allocation2 + $0x8c] sm:$0x1] %v956_v9  ;;  %v768_v9 = vshrl.u32 %v545_v37, 16  ;;  %v13083_v46 = vrot.slane %v1698_v58, 7  ;;  %v969_v58 = vld [vmem:[#allocation2 + $0xa4] sm:$0x1] }
 0x39a   : > { %10875 = vmatmul.msk.bf16.gmra.mxu3 %vm1041_vm0, %v2479_v7  ;;  %v4423_v7 = vunpack.c.l.b16 %v4351_v29  ;;  %v726_v29 = vshrl.u32 %v540_v8, 16  ;;  %v749_v8 = vrot.slane %v13035_v15, 4 }
 0x39c   : > { %v13026_v4 = vpack.c.b16 %v4423_v7, %v4422_v32  ;;  %v966_v32 = vsel %vm12535_vm14, %v765_v24, %v965_v30  ;;  %v728_v7 = vrot.slane %v726_v29, 7  ;;  %v753_v30 = vrot.slane %v751_v40, 7  ;;  %v1943_v40 = vld [vmem:[#allocation2 + $0x78] sm:$0xf] }
 0x39d   : > { %967 = vst [vmem:[#allocation2 + $0x9c] sm:$0xf] %v966_v32 }
 0x39e   : > { %16617 = vst [vmem:[#allocation9_spill] sm:$0xff] %v13026_v4  ;;  %v731_v14 = vor.u32 %v729_v44, %v728_v7  ;;  %v732_v47 = vrot.slane %v728_v7, 4  ;;  %v13071_v44 = vadd.f32 %v1360_v43, %v12171_v45  ;;  %v756_v32 = vor.u32 %v754_v39, %v753_v30 }
 0x39f   : > { %v758_v7 = vrot.slane %v753_v30, 4  ;;  %v766_v39 = vrot.slane %v13045_v11, 4  ;;  %v770_v43 = vrot.slane %v768_v9, 7  ;;  %v13091_v30 = vpop.f32.mrf.mxu3 }
 0x3a0   : > { %v952_v0 = vsel %vm12535_vm14, %v731_v14, %v951_v6  ;;  %v740_v38 = vsel %vm12183_vm4, %v732_v47, %v739_v56  ;;  %v757_v47 = vsel %vm12183_vm4, %v749_v8, %v756_v32  ;;  %v1456_v17 = vpack.c.bf16 %v13071_v44, %v13071_v44 }
 0x3a1   : > { %953 = vst [vmem:[#allocation2 + $0x84] sm:$0xf] %v952_v0  ;;  %v963_v15 = vsel %vm12241_vm7, %v758_v7, %v962_v35  ;;  %v775_v35 = vrot.slane %v770_v43, 4 }
 0x3a2   : > { %954 = vst.msk [vmem:[#allocation2 + $0x88] sm:$0xf] %vm464_vm9, %v740_v38 }
 0x3a3   : > { %961 = vst.msk [vmem:[#allocation2 + $0x94] sm:$0xf] %vm464_vm9, %v757_v47 }
 0x3a4   : > { %964 = vst [vmem:[#allocation2 + $0x98] sm:$0x1] %v963_v15  ;;  %v1964_v8 = vld [vmem:[#allocation2 + $0x9c] sm:$0xf]  ;;  %v970_v15 = vsel %vm12241_vm7, %v775_v35, %v969_v58  ;;  %v1954_v35 = vld [vmem:[#allocation2 + $0x8c] sm:$0x1] }
 0x3a5   : > { %971 = vst [vmem:[#allocation2 + $0xa4] sm:$0x1] %v970_v15 }
 0x3c0   : > { %v1788_v22 = vpop.permute.xlu2 %1787 }
 0x3c1   : > { %1946 = vst.msk [vmem:[#allocation2 + $0x7c] sm:$0xf] %vm1875_vm12, %v1788_v22  ;;  %v1957_v22 = vld [vmem:[#allocation2 + $0x90] sm:$0xf] }
 0x3c8   : > { %v11980_v33 = vpop.permute.xlu2 %11979  ;;  %v13094_v32 = vld [vmem:[#allocation2 + $0x7c] sm:$0xf] }
 0x3c9   : > { %v11982_v5 = vunpack.i.h.bf16 %v11980_v33  ;;  %v11981_v3 = vunpack.i.l.bf16 %v11980_v33  ;;  %v771_v33 = vshll.u32 %v545_v37, 16  ;;  %v2303_v47 = vshrl.u32 %v13094_v32, 16 }
 0x3cb   : > { %v1454_v18 = vpack.c.bf16 %v11982_v5, %v11982_v5  ;;  %v1453_v34 = vpack.c.bf16 %v11981_v3, %v11981_v3  ;;  %v1947_v3 = vld [vmem:[#allocation2 + $0x80] sm:$0x1]  ;;  %v773_v7 = vor.u32 %v771_v33, %v770_v43  ;;  %v13115_v33 = vpop.f32.mrf.mxu3 }
 0x3cd   : > { %v1689_v24 = vshrl.u32 %v1454_v18, 16  ;;  %v1681_v29 = vshrl.u32 %v1453_v34, 16  ;;  %v1684_v27 = vshll.u32 %v1453_v34, 16  ;;  %v1692_v63 = vshll.u32 %v1454_v18, 16 }
 0x3ce   : > { %v1463_v18 = vshll.u32 %v12174_v50, 16  ;;  %v1701_v34 = vshll.u32 %v1455_v55, 16 }
 0x3cf   : > { %v1691_v16 = vrot.slane %v1689_v24, 7  ;;  %v1683_v6 = vrot.slane %v1681_v29, 7  ;;  %v1706_v24 = vshrl.u32 %v1456_v17, 16 }
 0x3d0   : > { %v1798_v14 = vpop.permute.xlu2 %1797 }
 0x3d1   : > { %v1958_v45 = vsel %vm12598_vm15, %v1798_v14, %v1957_v22  ;;  %v1686_v0 = vor.u32 %v1684_v27, %v1683_v6  ;;  %v1696_v56 = vrot.slane %v1691_v16, 4  ;;  %v1687_v53 = vrot.slane %v1683_v6, 4 }
 0x3d2   : > { %1959 = vst [vmem:[#allocation2 + $0x90] sm:$0xf] %v1958_v45  ;;  %v1694_v38 = vor.u32 %v1692_v63, %v1691_v16  ;;  %v1465_v16 = vor.u32 %v1463_v18, %v12177_v57  ;;  %v1703_v6 = vor.u32 %v1701_v34, %v13083_v46  ;;  %v774_v27 = vsel %vm12183_vm4, %v766_v39, %v773_v7  ;;  %v1950_v45 = vld [vmem:[#allocation2 + $0x84] sm:$0xf] }
 0x3d3   : > { %1809 = vrot.lane.b32.xlu2 %v1686_v0, %s12029_s12  ;;  %1813 = vrot.lane.b32.xlu1 %v1696_v56, %s12029_s12  ;;  %v2299_v14 = vshll.u32 %v13094_v32, 16  ;;  %v1708_v37 = vrot.slane %v1706_v24, 7  ;;  %968 = vst.msk [vmem:[#allocation2 + $0xa0] sm:$0xf] %vm464_vm9, %v774_v27  ;;  %v1709_v57 = vshll.u32 %v1456_v17, 16  ;;  %v2305_v56 = vrot.slane %v2303_v47, 4 }
 0x3d4   : > { %v1695_v5 = vsel %vm12183_vm4, %v1687_v53, %v1694_v38 }
 0x3d5   : > { %1811 = vrot.lane.b32.xlu0 %v1695_v5, %s12029_s12  ;;  %v2301_v0 = vrot.slane %v2299_v14, 5  ;;  %v1711_v9 = vor.u32 %v1709_v57, %v1708_v37  ;;  %v1713_v43 = vrot.slane %v1708_v37, 4  ;;  %v11983_v57 = vpack.i.bf16 %v13071_v44, %v13059_v20 }
 0x3d6   : > { %v1790_v29 = vpop.permute.xlu0 %1789  ;;  %v1786_v22 = vpop.permute.xlu1 %1785 }
 0x3d7   : > { %v1948_v11 = vsel %vm12390_vm11, %v1790_v29, %v1947_v3  ;;  %v1944_v50 = vsel %vm12598_vm15, %v1786_v22, %v1943_v40  ;;  %v1704_v3 = vrot.slane %v13083_v46, 4  ;;  %v1475_v46 = vrot.slane %v12180_v59, 4 }
 0x3d8   : > { %1949 = vst [vmem:[#allocation2 + $0x80] sm:$0x1] %v1948_v11  ;;  %v1804_v55 = vpop.permute.xlu2 %1803 }
 0x3d9   : > { %1945 = vst [vmem:[#allocation2 + $0x78] sm:$0xf] %v1944_v50  ;;  %v1965_v63 = vsel %vm12598_vm15, %v1804_v55, %v1964_v8  ;;  %v2306_v8 = vor.u32 %v2305_v56, %v2301_v0  ;;  %v1712_v24 = vsel %vm12183_vm4, %v1704_v3, %v1711_v9 }
 0x3da   : > { %1966 = vst [vmem:[#allocation2 + $0x9c] sm:$0xf] %v1965_v63 }
 0x3db   : > { %1731 = vrot.lane.b32.xlu2 %v1465_v16, %s12029_s12  ;;  %1815 = vrot.lane.b32.xlu1 %v1703_v6, %s12029_s12  ;;  %v2307_v11 = vrot.slane %v2306_v8, 4 }
 0x3dd   : > { %1733 = vrot.lane.b32.xlu0 %v12191_v1, %s12029_s12 }
 0x3de   : > { %v1792_v53 = vpop.permute.xlu1 %1791  ;;  %v1794_v38 = vpop.permute.xlu0 %1793 }
 0x3df   : > { %v1951_v5 = vsel %vm12598_vm15, %v1792_v53, %v1950_v45  ;;  %1953 = vst.msk [vmem:[#allocation2 + $0x88] sm:$0xf] %vm1875_vm12, %v1794_v38  ;;  %v13121_v17 = vld [vmem:[#allocation2 + $0x80] sm:$0x1]  ;;  %v13142_v45 = vpop.f32.mrf.mxu3 }
 0x3e0   : > { %1952 = vst [vmem:[#allocation2 + $0x84] sm:$0xf] %v1951_v5  ;;  %v11815_v40 = vld [vmem:[#allocation2 + $0x78] sm:$0xff]  ;;  %v2309_v1 = vshll.u32 %v13121_v17, 16 }
 0x3e1   : > { %v2014_v39 = vld [vmem:[#allocation2 + $0x78] sm:$0xf]  ;;  %10964 = vmatmul.msk.bf16.vlgmr.msrb.gmra.mxu1 %vm1041_vm0, %v11815_v40 }
 0x3e2   : > { %v2290_v18 = vshrl.u32 %v2014_v39, 16  ;;  %v2293_v34 = vshll.u32 %v2014_v39, 16  ;;  %v2311_v7 = vrot.slane %v2309_v1, 5  ;;  %v1961_v1 = vld [vmem:[#allocation2 + $0x98] sm:$0x1] }
 0x3e3   : > { %1817 = vrot.lane.b32.xlu2 %v1712_v24, %s12029_s12  ;;  %1819 = vrot.lane.b32.xlu1 %v1713_v43, %s12029_s12  ;;  %v11845_v43 = vld [vmem:[%s16583_s5 + $0x40] sm:$0xff]  ;;  %v2018_v24 = vld [vmem:[#allocation2 + $0x90] sm:$0xf] }
 0x3e4   : > { %v2292_v29 = vrot.slane %v2290_v18, 4  ;;  %v2295_v22 = vrot.slane %v2293_v34, 5  ;;  %v2312_v59 = vsel %vm12668_vm3, %v2307_v11, %v2311_v7  ;;  %4111 = vmatpush.bf16.msrb.mxu3 %v11845_v43  ;;  %v2987_v43 = vrot.slane %v13094_v32, 5 }
 0x3e5   : > { %1735 = vrot.lane.b32.xlu0 %v1475_v46, %s12029_s12  ;;  %v2459_v38 = vunpack.c.l.b16 %v2312_v59  ;;  %v1968_v59 = vld [vmem:[#allocation2 + $0xa4] sm:$0x1] }
 0x3e6   : > { %v2296_v58 = vor.u32 %v2295_v22, %v2292_v29  ;;  %v1796_v50 = vpop.permute.xlu1 %1795  ;;  %v1800_v55 = vpop.permute.xlu0 %1799  ;;  %v13131_v16 = vld [vmem:[#allocation2 + $0x88] sm:$0xf] }
 0x3e7   : > { %v1955_v6 = vsel %vm12390_vm11, %v1796_v50, %v1954_v35  ;;  %1960 = vst.msk [vmem:[#allocation2 + $0x94] sm:$0xf] %vm1875_vm12, %v1800_v55  ;;  %v2016_v63 = vld [vmem:[#allocation2 + $0x84] sm:$0xf]  ;;  %v2323_v15 = vshll.u32 %v13131_v16, 16  ;;  %v2327_v37 = vshrl.u32 %v13131_v16, 16  ;;  %v13160_v11 = vpop.f32.mrf.mxu3 }
 0x3e8   : > { %v2297_v27 = vrot.slane %v2296_v58, 4  ;;  %1956 = vst [vmem:[#allocation2 + $0x8c] sm:$0x1] %v1955_v6  ;;  %v2314_v14 = vshrl.u32 %v2016_v63, 16  ;;  %v2317_v47 = vshll.u32 %v2016_v63, 16  ;;  %v11816_v46 = vld [vmem:[#allocation2 + $0x84] sm:$0xff] }
 0x3e9   : > { %v2325_v3 = vrot.slane %v2323_v15, 5  ;;  %v2329_v40 = vrot.slane %v2327_v37, 4  ;;  %v2338_v35 = vshrl.u32 %v2018_v24, 16  ;;  %v2341_v58 = vshll.u32 %v2018_v24, 16  ;;  %v2874_v24 = vld [vmem:[#allocation2 + $0x78] sm:$0xe] }
 0x3ea   : > { %v2302_v56 = vsel %vm12668_vm3, %v2297_v27, %v2301_v0  ;;  %v2316_v9 = vrot.slane %v2314_v14, 4  ;;  %v2319_v5 = vrot.slane %v2317_v47, 5 }
 0x3eb   : > { %v2458_v53 = vunpack.c.l.b16 %v2302_v56  ;;  %11984 = vrot.lane.b32.xlu2 %v11983_v57, %s12028_s22  ;;  %v2330_v8 = vor.u32 %v2329_v40, %v2325_v3  ;;  %v2340_v47 = vrot.slane %v2338_v35, 4  ;;  %v2343_v15 = vrot.slane %v2341_v58, 5 }
 0x3ec   : > { %v2320_v34 = vor.u32 %v2319_v5, %v2316_v9  ;;  %v2989_v35 = vrot.slane %v2987_v43, 4 }
 0x3ed   : > { %v2480_v39 = vpack.c.b16 %v2459_v38, %v2458_v53  ;;  %v2331_v55 = vrot.slane %v2330_v8, 4  ;;  %v2344_v40 = vor.u32 %v2343_v15, %v2340_v47  ;;  %v11826_v8 = vld [vmem:[%s16583_s5 + $0x28] sm:$0xff] }
 0x3ee   : > { %v1802_v20 = vpop.permute.xlu1 %1801  ;;  %v1806_v44 = vpop.permute.xlu0 %1805  ;;  %v13157_v22 = vld [vmem:[#allocation2 + $0x94] sm:$0xf]  ;;  %v2321_v50 = vrot.slane %v2320_v34, 4  ;;  %3146 = vmatpush.bf16.msra.mxu1 %v11826_v8  ;;  %v546_v15 = vld [vmem:[%s12211_s30 + $0x68] sm:$0xf] }
 0x3ef   : > { %10876 = vmatmul.msk.bf16.gmra.mxu3 %vm1041_vm0, %v2480_v39  ;;  %v1962_v0 = vsel %vm12390_vm11, %v1802_v20, %v1961_v1  ;;  %1967 = vst.msk [vmem:[#allocation2 + $0xa0] sm:$0xf] %vm1875_vm12, %v1806_v44  ;;  %v13154_v18 = vld [vmem:[#allocation2 + $0x8c] sm:$0x1]  ;;  %v2347_v6 = vshll.u32 %v13157_v22, 16  ;;  %v2351_v27 = vshrl.u32 %v13157_v22, 16  ;;  %v13174_v44 = vpop.f32.mrf.mxu3 }
 0x3f0   : > { %1963 = vst [vmem:[#allocation2 + $0x98] sm:$0x1] %v1962_v0  ;;  %v2333_v29 = vshll.u32 %v13154_v18, 16  ;;  %v2326_v57 = vsel %vm12668_vm3, %v2321_v50, %v2325_v3  ;;  %v2990_v0 = vrot.slane %v13121_v17, 5  ;;  %v11817_v3 = vld [vmem:[#allocation2 + $0x90] sm:$0xff]  ;;  %v2345_v34 = vrot.slane %v2344_v40, 4 }
 0x3f1   : > { %10965 = vmatmul.msk.bf16.gmra.mxu1 %vm1041_vm0, %v11816_v46  ;;  %v2349_v56 = vrot.slane %v2347_v6, 5  ;;  %v2353_v53 = vrot.slane %v2351_v27, 4  ;;  %v2460_v5 = vunpack.c.l.b16 %v2326_v57  ;;  %v3587_v50 = vld [vmem:[#allocation2 + $0x7c] sm:$0xf] }
 0x3f2   : > { %v2335_v7 = vrot.slane %v2333_v29, 5  ;;  %v2991_v17 = vsel %vm12694_vm8, %v2989_v35, %v2990_v0  ;;  %v3588_v0 = vld [vmem:[#allocation2 + $0x80] sm:$0x1] }
 0x3f3   : > { %v2354_v39 = vor.u32 %v2353_v53, %v2349_v56  ;;  %v2350_v58 = vsel %vm12668_vm3, %v2345_v34, %v2349_v56  ;;  %v3053_v6 = vunpack.c.l.b16 %v2991_v17  ;;  %v972_v34 = vld [vmem:[#allocation2 + $0xa8] sm:$0xf] }
 0x3f4   : > { %v2336_v63 = vsel %vm12668_vm3, %v2331_v55, %v2335_v7  ;;  %v10980_v7 = vrot.slane %v2874_v24, 9  ;;  %v2462_v47 = vunpack.c.l.b16 %v2350_v58  ;;  %v2994_v58 = vrot.slane %v13131_v16, 5 }
 0x3f5   : > { %v2461_v38 = vunpack.c.l.b16 %v2336_v63  ;;  %v2355_v46 = vrot.slane %v2354_v39, 4  ;;  %v2020_v63 = vld [vmem:[#allocation2 + $0x9c] sm:$0xf] }
 0x3f6   : > { %v1808_v14 = vpop.permute.xlu1 %1807  ;;  %v2988_v32 = vsel %vm12694_vm8, %v10980_v7, %v2987_v43  ;;  %v2362_v40 = vshrl.u32 %v2020_v63, 16  ;;  %v2365_v43 = vshll.u32 %v2020_v63, 16  ;;  %v2997_v63 = vrot.slane %v13154_v18, 5  ;;  %v11818_v18 = vld [vmem:[#allocation2 + $0x9c] sm:$0xff] }
 0x3f7   : > { %v1969_v37 = vsel %vm12390_vm11, %v1808_v14, %v1968_v59  ;;  %v13170_v9 = vld [vmem:[#allocation2 + $0x98] sm:$0x1]  ;;  %v2481_v20 = vpack.c.b16 %v2461_v38, %v2460_v5  ;;  %v3052_v55 = vunpack.c.l.b16 %v2988_v32  ;;  %v13190_v59 = vld [vmem:[#allocation2 + $0xa0] sm:$0xf]  ;;  %v777_v38 = vshrl.u32 %v546_v15, 16  ;;  %v13196_v56 = vpop.f32.mrf.mxu3 }
 0x3f8   : > { %1970 = vst [vmem:[#allocation2 + $0xa4] sm:$0x1] %v1969_v37  ;;  %v2357_v1 = vshll.u32 %v13170_v9, 16  ;;  %v4354_v37 = vrot.slane %v3587_v50, 5  ;;  %v2371_v53 = vshll.u32 %v13190_v59, 16  ;;  %v780_v5 = vshll.u32 %v546_v15, 16 }
 0x3f9   : > { %v13192_v14 = vpack.c.b16 %v3053_v6, %v3052_v55  ;;  %16619 = vst [vmem:[#allocation11_spill] sm:$0xff] %v13196_v56  ;;  %v2375_v39 = vshrl.u32 %v13190_v59, 16  ;;  %v4357_v50 = vrot.slane %v3588_v0, 5  ;;  %v2364_v55 = vrot.slane %v2362_v40, 4 }
 0x3fa   : > { %v2359_v29 = vrot.slane %v2357_v1, 5  ;;  %v4234_v1 = vld [vmem:[#allocation2 + $0x78] sm:$0xe]  ;;  %v4356_v8 = vrot.slane %v4354_v37, 4  ;;  %v2367_v6 = vrot.slane %v2365_v43, 5 }
 0x3fb   : > { %v11143_v35 = vrot.slane %v4234_v1, 9  ;;  %v2377_v32 = vrot.slane %v2375_v39, 4  ;;  %v2996_v39 = vrot.slane %v2994_v58, 4 }
 0x3fc   : > { %v2360_v27 = vsel %vm12668_vm3, %v2355_v46, %v2359_v29  ;;  %v2373_v29 = vrot.slane %v2371_v53, 5 }
 0x3fd   : > { %v2463_v57 = vunpack.c.l.b16 %v2360_v27  ;;  %v4355_v15 = vsel %vm12694_vm8, %v11143_v35, %v4354_v37 }
 0x3fe   : > { %v4424_v16 = vunpack.c.l.b16 %v4355_v15  ;;  %v549_v15 = vld [vmem:[%s12211_s30 + $0x74] sm:$0xf] }
 0x3ff   : > { %10877 = vmatmul.msk.bf16.gmra.mxu3 %vm1041_vm0, %v2481_v20  ;;  %v13199_v20 = vrot.slane %v777_v38, 7  ;;  %v2482_v24 = vpack.c.b16 %v2463_v57, %v2462_v47  ;;  %v13201_v46 = vld [vmem:[#allocation2 + $0xa4] sm:$0x1]  ;;  %v4358_v57 = vsel %vm12694_vm8, %v4356_v8, %v4357_v50  ;;  %v2378_v38 = vor.u32 %v2377_v32, %v2373_v29  ;;  %v13217_v0 = vpop.f32.mrf.mxu3 }
 0x400   : > { %v2381_v47 = vshll.u32 %v13201_v46, 16  ;;  %v4425_v53 = vunpack.c.l.b16 %v4358_v57  ;;  %16620 = vst [vmem:[#allocation12_spill] sm:$0xff] %v13217_v0 }
 0x401   : > { %10966 = vmatmul.msk.bf16.gmra.mxu1 %vm1041_vm0, %v11817_v3  ;;  %v2875_v3 = vld [vmem:[#allocation2 + $0x84] sm:$0xe]  ;;  %v782_v7 = vor.u32 %v780_v5, %v13199_v20  ;;  %v520_v5 = vld [vmem:[%s12211_s30] sm:$0xf]  ;;  %v2379_v32 = vrot.slane %v2378_v38, 4  ;;  %v805_v38 = vshll.u32 %v549_v15, 16 }
 0x402   : > { %v10981_v17 = vrot.slane %v2875_v3, 9  ;;  %v556_v1 = vshrl.u32 %v520_v5, 16  ;;  %v559_v43 = vshll.u32 %v520_v5, 16  ;;  %v2368_v3 = vor.u32 %v2367_v6, %v2364_v55  ;;  %v2877_v5 = vld [vmem:[#allocation2 + $0x9c] sm:$0xe] }
 0x403   : > { %v973_v27 = vsel %vm12535_vm14, %v782_v7, %v972_v34  ;;  %v2383_v37 = vrot.slane %v2381_v47, 5  ;;  %v2998_v34 = vsel %vm12694_vm8, %v2996_v39, %v2997_v63  ;;  %v13221_v8 = vpack.c.b16 %v4425_v53, %v4424_v16  ;;  %v548_v47 = vld [vmem:[%s12211_s30 + $0x70] sm:$0xf] }
 0x404   : > { %974 = vst [vmem:[#allocation2 + $0xa8] sm:$0xf] %v973_v27  ;;  %v2995_v40 = vsel %vm12694_vm8, %v10981_v17, %v2994_v58  ;;  %v3055_v35 = vunpack.c.l.b16 %v2998_v34  ;;  %v879_v17 = vld [vmem:[#allocation2 + $0xc] sm:$0xf]  ;;  %v2369_v55 = vrot.slane %v2368_v3, 4  ;;  %v794_v16 = vshrl.u32 %v548_v47, 16 }
 0x405   : > { %16621 = vst [vmem:[#allocation13_spill] sm:$0xff] %v13221_v8  ;;  %v3054_v7 = vunpack.c.l.b16 %v2995_v40  ;;  %v2384_v6 = vsel %vm12668_vm3, %v2379_v32, %v2383_v37  ;;  %v802_v53 = vshrl.u32 %v549_v15, 16  ;;  %v3011_v3 = vrot.slane %v13201_v46, 5  ;;  %v885_v8 = vld [vmem:[#allocation2 + $0x14] sm:$0x1] }
 0x406   : > { %v2374_v63 = vsel %vm12668_vm3, %v2369_v55, %v2373_v29  ;;  %v2465_v57 = vunpack.c.l.b16 %v2384_v6  ;;  %v796_v39 = vrot.slane %v794_v16, 7  ;;  %v3004_v16 = vrot.slane %v13170_v9, 5 }
 0x407   : > { %v13227_v50 = vpack.c.b16 %v3055_v35, %v3054_v7  ;;  %v2464_v40 = vunpack.c.l.b16 %v2374_v63  ;;  %v10983_v7 = vrot.slane %v2877_v5, 9  ;;  %v3001_v63 = vrot.slane %v13157_v22, 5 }
 0x408   : > { %v800_v29 = vrot.slane %v796_v39, 4  ;;  %v783_v22 = vrot.slane %v13199_v20, 4 }
 0x409   : > { %v2483_v37 = vpack.c.b16 %v2465_v57, %v2464_v40  ;;  %v2876_v57 = vld [vmem:[#allocation2 + $0x90] sm:$0xe]  ;;  %v3003_v5 = vrot.slane %v3001_v63, 4  ;;  %v547_v40 = vld [vmem:[%s12211_s30 + $0x6c] sm:$0xf] }
 0x40f   : > { %10878 = vmatmul.msk.bf16.gmra.mxu3 %vm1041_vm0, %v2482_v24  ;;  %v13224_v24 = vrot.slane %v556_v1, 7  ;;  %v3008_v1 = vrot.slane %v13190_v59, 5 }
 0x411   : > { %10967 = vmatmul.msk.bf16.gmra.mxu1 %vm1041_vm0, %v11818_v18  ;;  %v561_v58 = vor.u32 %v559_v43, %v13224_v24  ;;  %v13237_v18 = vrot.slane %v802_v53, 7  ;;  %v13240_v43 = vpop.f32.mrf.mxu3  ;;  %v3009_v32 = vsel %vm12694_vm8, %v10983_v7, %v3008_v1  ;;  %v1971_v53 = vld [vmem:[#allocation2 + $0xa8] sm:$0xf]  ;;  %v979_v7 = vld [vmem:[#allocation2 + $0xb4] sm:$0xf] }
 0x412   : > { %16622 = vst [vmem:[#allocation14_spill] sm:$0xff] %v13240_v43  ;;  %v3058_v46 = vunpack.c.l.b16 %v3009_v32  ;;  %v521_v32 = vld [vmem:[%s12211_s30 + $0x4] sm:$0xf] }
 0x413   : > { %v880_v27 = vsel %vm12535_vm14, %v561_v58, %v879_v17  ;;  %v807_v34 = vor.u32 %v805_v38, %v13237_v18  ;;  %v3010_v17 = vrot.slane %v3008_v1, 4  ;;  %v10982_v38 = vrot.slane %v2876_v57, 9  ;;  %v11805_v1 = vld [vmem:[#allocation2] sm:$0xff] }
 0x414   : > { %881 = vst [vmem:[#allocation2 + $0xc] sm:$0xf] %v880_v27  ;;  %v797_v27 = vshll.u32 %v548_v47, 16  ;;  %10954 = vmatmul.msk.bf16.vlgmr.msrb.gmra.mxu0 %vm1041_vm0, %v11805_v1  ;;  %v564_v20 = vshrl.u32 %v521_v32, 16  ;;  %v1994_v1 = vld [vmem:[#allocation2] sm:$0xf] }
 0x415   : > { %v808_v35 = vsel %vm12183_vm4, %v800_v29, %v807_v34  ;;  %v3012_v59 = vsel %vm12694_vm8, %v3010_v17, %v3011_v3  ;;  %v785_v29 = vshrl.u32 %v547_v40, 16  ;;  %v788_v34 = vshll.u32 %v547_v40, 16 }
 0x416   : > { %982 = vst.msk [vmem:[#allocation2 + $0xb8] sm:$0xf] %vm464_vm9, %v808_v35  ;;  %v3059_v58 = vunpack.c.l.b16 %v3012_v59  ;;  %v799_v15 = vor.u32 %v797_v27, %v796_v39  ;;  %v11825_v35 = vld [vmem:[%s16583_s5 + $0x20] sm:$0xff]  ;;  %v3002_v17 = vsel %vm12694_vm8, %v10982_v38, %v3001_v63  ;;  %v3005_v59 = vsel %vm12694_vm8, %v3003_v5, %v3004_v16  ;;  %v13283_v5 = vld [vmem:[#allocation2 + $0x8] sm:$0x1] }
 0x417   : > { %v787_v39 = vrot.slane %v785_v29, 7  ;;  %v809_v27 = vrot.slane %v13237_v18, 4  ;;  %3147 = vmatpush.bf16.msra.mxu1 %v11825_v35  ;;  %v566_v40 = vrot.slane %v564_v20, 7  ;;  %v3056_v29 = vunpack.c.l.b16 %v3002_v17 }
 0x418   : > { %v13254_v6 = vpack.c.b16 %v3059_v58, %v3058_v46  ;;  %v980_v9 = vsel %vm12535_vm14, %v799_v15, %v979_v7  ;;  %v976_v46 = vld [vmem:[#allocation2 + $0xb0] sm:$0x1]  ;;  %v567_v58 = vshll.u32 %v521_v32, 16  ;;  %v2050_v18 = vshrl.u32 %v1994_v1, 16 }
 0x419   : > { %v13252_v55 = vpop.f32.mrf.mxu3  ;;  %981 = vst [vmem:[#allocation2 + $0xb4] sm:$0xf] %v980_v9  ;;  %v792_v15 = vrot.slane %v787_v39, 4  ;;  %v790_v57 = vor.u32 %v788_v34, %v787_v39  ;;  %v2053_v7 = vshll.u32 %v1994_v1, 16  ;;  %v983_v9 = vld [vmem:[#allocation2 + $0xbc] sm:$0x1]  ;;  %v3057_v39 = vunpack.c.l.b16 %v3005_v59 }
 0x41a   : > { %16623 = vst [vmem:[#allocation15_spill] sm:$0xff] %v13252_v55  ;;  %v569_v34 = vor.u32 %v567_v58, %v566_v40  ;;  %v571_v32 = vrot.slane %v566_v40, 4  ;;  %v2052_v17 = vrot.slane %v2050_v18, 4  ;;  %v3590_v40 = vld [vmem:[#allocation2 + $0x88] sm:$0xf] }
 0x41b   : > { %16624 = vst [vmem:[#allocation16_spill] sm:$0xff] %v13254_v6  ;;  %v1877_v63 = vld [vmem:[#allocation2 + $0xc] sm:$0xf]  ;;  %v977_v16 = vsel %vm12241_vm7, %v792_v15, %v976_v46  ;;  %v791_v38 = vsel %vm12183_vm4, %v783_v22, %v790_v57  ;;  %v2055_v46 = vrot.slane %v2053_v7, 5  ;;  %v2069_v22 = vshll.u32 %v13283_v5, 16 }
 0x41c   : > { %978 = vst [vmem:[#allocation2 + $0xb0] sm:$0x1] %v977_v16  ;;  %v984_v16 = vsel %vm12241_vm7, %v809_v27, %v983_v9  ;;  %v13303_v27 = vpack.c.b16 %v3057_v39, %v3056_v29  ;;  %v13406_v6 = vld [vmem:[#allocation2 + $0x98] sm:$0x1] }
 0x41d   : > { %975 = vst.msk [vmem:[#allocation2 + $0xac] sm:$0xf] %vm464_vm9, %v791_v38  ;;  %v2056_v59 = vor.u32 %v2055_v46, %v2052_v17  ;;  %v4235_v38 = vld [vmem:[#allocation2 + $0x84] sm:$0xe]  ;;  %v2071_v7 = vrot.slane %v2069_v22, 5  ;;  %v4361_v17 = vrot.slane %v3590_v40, 5 }
 0x41e   : > { %985 = vst [vmem:[#allocation2 + $0xbc] sm:$0x1] %v984_v16 }
 0x41f   : > { %10879 = vmatmul.msk.bf16.gmra.mxu3 %vm1041_vm0, %v2483_v37  ;;  %16627 = vst [vmem:[#allocation19_spill] sm:$0xff] %v13303_v27 }
 0x421   : > { %v13259_v3 = vpop.f32.mrf.mxu3 }
 0x422   : > { %16625 = vst [vmem:[#allocation17_spill] sm:$0xff] %v13259_v3 }
 0x429   : > { %v13293_v1 = vpop.f32.mrf.mxu3 }
 0x42a   : > { %16626 = vst [vmem:[#allocation18_spill] sm:$0xff] %v13293_v1 }
 0x42d   : > { %v1810_v37 = vpop.permute.xlu2 %1809 }
 0x42e   : > { %v1972_v47 = vsel %vm12598_vm15, %v1810_v37, %v1971_v53  ;;  %v562_v53 = vrot.slane %v13224_v24, 4  ;;  %v13277_v37 = vld [vmem:[#allocation2 + $0x4] sm:$0xf] }
 0x42f   : > { %1973 = vst [vmem:[#allocation2 + $0xa8] sm:$0xf] %v1972_v47  ;;  %v2059_v24 = vshll.u32 %v13277_v37, 16  ;;  %v2063_v47 = vshrl.u32 %v13277_v37, 16 }
 0x430   : > { %v570_v58 = vsel %vm12183_vm4, %v562_v53, %v569_v34  ;;  %v886_v53 = vsel %vm12241_vm7, %v571_v32, %v885_v8  ;;  %v11844_v34 = vld [vmem:[%s16583_s5 + $0x38] sm:$0xff] }
 0x431   : > { %v2061_v15 = vrot.slane %v2059_v24, 5  ;;  %v2065_v57 = vrot.slane %v2063_v47, 4  ;;  %882 = vst.msk [vmem:[#allocation2 + $0x10] sm:$0xf] %vm464_vm9, %v570_v58  ;;  %v3591_v47 = vld [vmem:[#allocation2 + $0x8c] sm:$0x1]  ;;  %3444 = vmatpush.bf16.msrb.mxu2 %v11844_v34  ;;  %v13314_v16 = vpop.f32.mrf.mxu3 }
 0x432   : > { %887 = vst [vmem:[#allocation2 + $0x14] sm:$0x1] %v886_v53  ;;  %v4363_v58 = vrot.slane %v4361_v17, 4 }
 0x433   : > { %v2066_v18 = vor.u32 %v2065_v57, %v2061_v15  ;;  %v4364_v57 = vrot.slane %v3591_v47, 5  ;;  %16628 = vst [vmem:[#allocation20_spill] sm:$0xff] %v13314_v16 }
 0x435   : > { %v1732_v35 = vpop.permute.xlu2 %1731  ;;  %v2067_v24 = vrot.slane %v2066_v18, 4  ;;  %v4365_v39 = vsel %vm12694_vm8, %v4363_v58, %v4364_v57  ;;  %v1978_v58 = vld [vmem:[#allocation2 + $0xb4] sm:$0xf] }
 0x436   : > { %v1878_v20 = vsel %vm12598_vm15, %v1732_v35, %v1877_v63  ;;  %v2057_v63 = vrot.slane %v2056_v59, 4  ;;  %v11144_v35 = vrot.slane %v4235_v38, 9  ;;  %v4427_v59 = vunpack.c.l.b16 %v4365_v39  ;;  %v1975_v38 = vld [vmem:[#allocation2 + $0xb0] sm:$0x1]  ;;  %v2022_v18 = vld [vmem:[#allocation2 + $0xa8] sm:$0xf] }
 0x437   : > { %1879 = vst [vmem:[#allocation2 + $0xc] sm:$0xf] %v1878_v20  ;;  %v2072_v46 = vsel %vm12668_vm3, %v2067_v24, %v2071_v7 }
 0x438   : > { %v2062_v9 = vsel %vm12668_vm3, %v2057_v63, %v2061_v15  ;;  %v2439_v32 = vunpack.c.l.b16 %v2072_v46  ;;  %v4362_v20 = vsel %vm12694_vm8, %v11144_v35, %v4361_v17  ;;  %v2389_v46 = vshll.u32 %v2022_v18, 16 }
 0x439   : > { %v2438_v22 = vunpack.c.l.b16 %v2062_v9  ;;  %v4426_v15 = vunpack.c.l.b16 %v4362_v20  ;;  %v2386_v9 = vshrl.u32 %v2022_v18, 16  ;;  %v13325_v20 = vpop.f32.mrf.mxu3 }
 0x43a   : > { %16630 = vst [vmem:[#allocation22_spill] sm:$0xff] %v13325_v20 }
 0x43b   : > { %v2470_v29 = vpack.c.b16 %v2439_v32, %v2438_v22  ;;  %v13317_v40 = vpack.c.b16 %v4427_v59, %v4426_v15  ;;  %v11843_v32 = vld [vmem:[%s16583_s5 + $0x30] sm:$0xff]  ;;  %v2388_v57 = vrot.slane %v2386_v9, 4  ;;  %v2391_v59 = vrot.slane %v2389_v46, 5 }
 0x43c   : > { %3445 = vmatpush.bf16.msrb.mxu2 %v11843_v32 }
 0x43d   : > { %v1818_v8 = vpop.permute.xlu2 %1817  ;;  %10866 = vmatmul.msk.bf16.vlgmr.msra.gmra.mxu2 %vm1041_vm0, %v2470_v29  ;;  %16629 = vst [vmem:[#allocation21_spill] sm:$0xff] %v13317_v40 }
 0x43e   : > { %1981 = vst.msk [vmem:[#allocation2 + $0xb8] sm:$0xf] %vm1875_vm12, %v1818_v8 }
 0x445   : > { %v11985_v7 = vpop.permute.xlu2 %11984  ;;  %v1814_v63 = vpop.permute.xlu1 %1813 }
 0x446   : > { %v11987_v53 = vunpack.i.h.bf16 %v11985_v7  ;;  %v11986_v34 = vunpack.i.l.bf16 %v11985_v7  ;;  %v1976_v24 = vsel %vm12390_vm11, %v1814_v63, %v1975_v38 }
 0x447   : > { %1977 = vst [vmem:[#allocation2 + $0xb0] sm:$0x1] %v1976_v24  ;;  %v1812_v47 = vpop.permute.xlu0 %1811 }
 0x448   : > { %v1458_v35 = vpack.c.bf16 %v11987_v53, %v11987_v53  ;;  %v1457_v17 = vpack.c.bf16 %v11986_v34, %v11986_v34  ;;  %1974 = vst.msk [vmem:[#allocation2 + $0xac] sm:$0xf] %vm1875_vm12, %v1812_v47  ;;  %v1996_v47 = vld [vmem:[#allocation2 + $0xc] sm:$0xf] }
 0x449   : > { %v2074_v32 = vshrl.u32 %v1996_v47, 16 }
 0x44a   : > { %v1723_v22 = vshrl.u32 %v1458_v35, 16  ;;  %v1715_v8 = vshrl.u32 %v1457_v17, 16  ;;  %v1718_v15 = vshll.u32 %v1457_v17, 16  ;;  %v1726_v38 = vshll.u32 %v1458_v35, 16 }
 0x44b   : > { %v2392_v35 = vor.u32 %v2391_v59, %v2388_v57 }
 0x44c   : > { %v1725_v29 = vrot.slane %v1723_v22, 7  ;;  %v1717_v39 = vrot.slane %v1715_v8, 7 }
 0x44d   : > { %v1816_v7 = vpop.permute.xlu1 %1815  ;;  %v2393_v57 = vrot.slane %v2392_v35, 4 }
 0x44e   : > { %v1979_v18 = vsel %vm12598_vm15, %v1816_v7, %v1978_v58  ;;  %v1730_v63 = vrot.slane %v1725_v29, 4  ;;  %v1720_v53 = vor.u32 %v1718_v15, %v1717_v39  ;;  %v1721_v34 = vrot.slane %v1717_v39, 4  ;;  %v13329_v24 = vld [vmem:[#allocation2 + $0xb0] sm:$0x1]  ;;  %v13343_v39 = vld [vmem:[#allocation2 + $0xb8] sm:$0xf] }
 0x44f   : > { %1980 = vst [vmem:[#allocation2 + $0xb4] sm:$0xf] %v1979_v18  ;;  %v1734_v40 = vpop.permute.xlu0 %1733  ;;  %v1728_v20 = vor.u32 %v1726_v38, %v1725_v29  ;;  %v11819_v9 = vld [vmem:[#allocation2 + $0xa8] sm:$0xff]  ;;  %v1982_v15 = vld [vmem:[#allocation2 + $0xbc] sm:$0x1]  ;;  %v13345_v38 = vpop.f32.mrf.mxu3 }
 0x450   : > { %v13331_v22 = vld [vmem:[#allocation2 + $0xac] sm:$0xf]  ;;  %1881 = vst.msk [vmem:[#allocation2 + $0x10] sm:$0xf] %vm1875_vm12, %v1734_v40  ;;  %1825 = vrot.lane.b32.xlu2 %v1730_v63, %s12029_s12  ;;  %1821 = vrot.lane.b32.xlu0 %v1720_v53, %s12029_s12  ;;  %v2405_v40 = vshll.u32 %v13329_v24, 16  ;;  %v2076_v63 = vrot.slane %v2074_v32, 4 }
 0x451   : > { %v2395_v17 = vshll.u32 %v13331_v22, 16  ;;  %v2399_v46 = vshrl.u32 %v13331_v22, 16  ;;  %v1729_v8 = vsel %vm12183_vm4, %v1721_v34, %v1728_v20  ;;  %10968 = vmatmul.msk.bf16.gmra.mxu1 %vm1041_vm0, %v11819_v9  ;;  %16631 = vst [vmem:[#allocation23_spill] sm:$0xff] %v13345_v38  ;;  %v1884_v18 = vld [vmem:[#allocation2 + $0x14] sm:$0x1]  ;;  %v2077_v20 = vshll.u32 %v1996_v47, 16 }
 0x452   : > { %1823 = vrot.lane.b32.xlu1 %v1729_v8, %s12029_s12  ;;  %v2419_v53 = vshll.u32 %v13343_v39, 16  ;;  %v2423_v34 = vshrl.u32 %v13343_v39, 16  ;;  %v2407_v8 = vrot.slane %v2405_v40, 5 }
 0x453   : > { %v2397_v58 = vrot.slane %v2395_v17, 5  ;;  %v2401_v29 = vrot.slane %v2399_v46, 4 }
 0x454   : > { %v13362_v1 = vrot.slane %v2419_v53, 5  ;;  %v2425_v54 = vrot.slane %v2423_v34, 4  ;;  %v11866_v53 = vld [vmem:[%s16583_s5 + $0x68] sm:$0xff] }
 0x455   : > { %v2402_v59 = vor.u32 %v2401_v29, %v2397_v58  ;;  %v1820_v7 = vpop.permute.xlu1 %1819  ;;  %v2398_v17 = vsel %vm12668_vm3, %v2393_v57, %v2397_v58  ;;  %v2079_v57 = vrot.slane %v2077_v20, 5  ;;  %v11848_v20 = vld [vmem:[%s16583_s5 + $0x58] sm:$0xff]  ;;  %4819 = vmatpush.bf16.msrb.mxu1 %v11866_v53 }
 0x456   : > { %v1983_v9 = vsel %vm12390_vm11, %v1820_v7, %v1982_v15  ;;  %v2024_v35 = vld [vmem:[#allocation2 + $0xb4] sm:$0xf]  ;;  %v2466_v58 = vunpack.c.l.b16 %v2398_v17  ;;  %4520 = vmatpush.bf16.msra.mxu0 %v11848_v20 }
 0x457   : > { %v2403_v46 = vrot.slane %v2402_v59, 4  ;;  %1984 = vst [vmem:[#allocation2 + $0xbc] sm:$0x1] %v1983_v9  ;;  %v1736_v29 = vpop.permute.xlu0 %1735  ;;  %v11806_v38 = vld [vmem:[#allocation2 + $0xc] sm:$0xff]  ;;  %v2410_v32 = vshrl.u32 %v2024_v35, 16  ;;  %v2413_v59 = vshll.u32 %v2024_v35, 16 }
 0x458   : > { %v13353_v4 = vld [vmem:[#allocation2 + $0x10] sm:$0xf]  ;;  %v1885_v47 = vsel %vm12390_vm11, %v1736_v29, %v1884_v18  ;;  %10955 = vmatmul.msk.bf16.gmra.mxu0 %vm1041_vm0, %v11806_v38  ;;  %v11868_v18 = vld [vmem:[%s16583_s5 + $0x78] sm:$0xff]  ;;  %v11870_v38 = vld [vmem:[%s16583_s5 + $0x88] sm:$0xff] }
 0x459   : > { %v2408_v16 = vsel %vm12668_vm3, %v2403_v46, %v2407_v8  ;;  %v2083_v15 = vshll.u32 %v13353_v4, 16  ;;  %v2087_v7 = vshrl.u32 %v13353_v4, 16  ;;  %1886 = vst [vmem:[#allocation2 + $0x14] sm:$0x1] %v1885_v47  ;;  %v2412_v9 = vrot.slane %v2410_v32, 4  ;;  %5485 = vmatpush.bf16.msra.mxu2 %v11868_v18  ;;  %v13381_v32 = vpop.f32.mrf.mxu3  ;;  %5895 = vmatpush.bf16.msra.mxu3 %v11870_v38 }
 0x45a   : > { %v2467_v40 = vunpack.c.l.b16 %v2408_v16  ;;  %v2415_v3 = vrot.slane %v2413_v59, 5  ;;  %v2917_v47 = vrot.slane %v13277_v37, 5  ;;  %v2080_v16 = vor.u32 %v2079_v57, %v2076_v63  ;;  %v2864_v35 = vld [vmem:[#allocation2] sm:$0xe]  ;;  %16632 = vst [vmem:[#allocation24_spill] sm:$0xff] %v13381_v32  ;;  %v11820_v63 = vld [vmem:[#allocation2 + $0xb4] sm:$0xff] }
 0x45b   : > { %v2085_v8 = vrot.slane %v2083_v15, 5  ;;  %v2089_v29 = vrot.slane %v2087_v7, 4  ;;  %v2426_v37 = vor.u32 %v2425_v54, %v13362_v1  ;;  %v3559_v18 = vld [vmem:[#allocation2 + $0xc] sm:$0xf]  ;;  %v3560_v32 = vld [vmem:[#allocation2 + $0x10] sm:$0xf] }
 0x45c   : > { %v2484_v46 = vpack.c.b16 %v2467_v40, %v2466_v58  ;;  %v2416_v17 = vor.u32 %v2415_v3, %v2412_v9  ;;  %v2920_v58 = vrot.slane %v13283_v5, 5  ;;  %v2919_v57 = vrot.slane %v2917_v47, 4 }
 0x45d   : > { %v2090_v15 = vor.u32 %v2089_v29, %v2085_v8  ;;  %v2081_v3 = vrot.slane %v2080_v16, 4  ;;  %v10970_v9 = vrot.slane %v2864_v35, 9  ;;  %v2427_v29 = vrot.slane %v2426_v37, 4 }
 0x45e   : > { %10880 = vmatmul.msk.bf16.gmra.mxu3 %vm1041_vm0, %v2484_v46  ;;  %v13378_v34 = vld [vmem:[#allocation2 + $0xbc] sm:$0x1]  ;;  %v2417_v46 = vrot.slane %v2416_v17, 4  ;;  %v2921_v53 = vsel %vm12694_vm8, %v2919_v57, %v2920_v58  ;;  %v3608_v16 = vshrl.u32 %v3559_v18, 16  ;;  %v3617_v37 = vshll.u32 %v3560_v32, 16 }
 0x45f   : > { %v2429_v7 = vshll.u32 %v13378_v34, 16  ;;  %v2086_v38 = vsel %vm12668_vm3, %v2081_v3, %v2085_v8  ;;  %v2091_v20 = vrot.slane %v2090_v15, 4  ;;  %v2918_v17 = vsel %vm12694_vm8, %v10970_v9, %v2917_v47  ;;  %v4236_v8 = vld [vmem:[#allocation2 + $0x90] sm:$0xe]  ;;  %v13404_v58 = vld [vmem:[#allocation2 + $0x94] sm:$0xf] }
 0x460   : > { %v13385_v40 = vld [vmem:[#allocation2 + $0x14] sm:$0x1]  ;;  %v2440_v15 = vunpack.c.l.b16 %v2086_v38  ;;  %v11807_v57 = vld [vmem:[#allocation2 + $0x18] sm:$0xff]  ;;  %v3032_v43 = vunpack.c.l.b16 %v2918_v17  ;;  %v11145_v47 = vrot.slane %v4236_v8, 9  ;;  %v13411_v0 = vrot.slane %v3617_v37, 5 }
 0x461   : > { %10969 = vmatmul.msk.bf16.gmra.mxu1 %vm1041_vm0, %v11820_v63  ;;  %v2093_v54 = vshll.u32 %v13385_v40, 16  ;;  %v2431_v59 = vrot.slane %v2429_v7, 5  ;;  %v13395_v63 = vpop.f32.mrf.mxu1  ;;  %v3621_v7 = vshrl.u32 %v3560_v32, 16  ;;  %v13408_v9 = vpop.f32.mrf.mxu3  ;;  %v2878_v17 = vld [vmem:[#allocation2 + $0xa8] sm:$0xe] }
 0x462   : > { %16633 = vst [vmem:[#allocation25_spill] sm:$0xff] %v13408_v9 }
 0x463   : > { %v2095_v5 = vrot.slane %v2093_v54, 5  ;;  %v2432_v55 = vsel %vm12668_vm3, %v2427_v29, %v2431_v59  ;;  %v2422_v54 = vsel %vm12668_vm3, %v2417_v46, %v13362_v1  ;;  %v3611_v59 = vshll.u32 %v3559_v18, 16 }
 0x464   : > { %v2469_v29 = vunpack.c.l.b16 %v2432_v55  ;;  %v2468_v38 = vunpack.c.l.b16 %v2422_v54  ;;  %v3623_v1 = vrot.slane %v3621_v7, 4  ;;  %v4368_v18 = vrot.slane %v13404_v58, 5 }
 0x465   : > { %v2096_v35 = vsel %vm12668_vm3, %v2091_v20, %v2095_v5  ;;  %v3033_v20 = vunpack.c.l.b16 %v2921_v53  ;;  %v4225_v5 = vld [vmem:[#allocation2 + $0xc] sm:$0xe]  ;;  %v3610_v55 = vrot.slane %v3608_v16, 4  ;;  %v3613_v46 = vrot.slane %v3611_v59, 5 }
 0x466   : > { %v2441_v3 = vunpack.c.l.b16 %v2096_v35  ;;  %v3561_v35 = vld [vmem:[#allocation2 + $0x14] sm:$0x1]  ;;  %v4291_v53 = vrot.slane %v3560_v32, 5  ;;  %v4369_v9 = vsel %vm12694_vm8, %v11145_v47, %v4368_v18  ;;  %v4371_v54 = vrot.slane %v13406_v6, 5 }
 0x467   : > { %v4294_v37 = vrot.slane %v3561_v35, 5  ;;  %v11134_v12 = vrot.slane %v4225_v5, 9  ;;  %v3015_v7 = vrot.slane %v13331_v22, 5  ;;  %v3624_v16 = vor.u32 %v3623_v1, %v13411_v0 }
 0x468   : > { %v2471_v13 = vpack.c.b16 %v2441_v3, %v2440_v15  ;;  %10956 = vmatmul.msk.bf16.gmra.mxu0 %vm1041_vm0, %v11807_v57  ;;  %v2485_v15 = vpack.c.b16 %v2469_v29, %v2468_v38  ;;  %v11993_v3 = vld [vmem:[#allocation2 + $0x1c] sm:$0xf]  ;;  %v3627_v57 = vshll.u32 %v3561_v35, 16  ;;  %v10984_v32 = vrot.slane %v2878_v17, 9 }
 0x469   : > { %v3641_v8 = vshll.u32 %v11993_v3, 16  ;;  %v4370_v59 = vrot.slane %v4368_v18, 4  ;;  %v3614_v29 = vor.u32 %v3613_v46, %v3610_v55  ;;  %v4292_v38 = vsel %vm12694_vm8, %v11134_v12, %v4291_v53  ;;  %v13423_v27 = vpop.f32.mrf.mxu1  ;;  %v3562_v18 = vld [vmem:[#allocation2 + $0x18] sm:$0xf] }
 0x46a   : > { %10867 = vmatmul.msk.bf16.gmra.mxu2 %vm1041_vm0, %v2471_v13  ;;  %v3064_v13 = vpack.c.b16 %v3033_v20, %v3032_v43  ;;  %v4293_v56 = vrot.slane %v4291_v53, 4  ;;  %v4428_v47 = vunpack.c.l.b16 %v4369_v9  ;;  %v3016_v5 = vsel %vm12694_vm8, %v10984_v32, %v3015_v7 }
 0x46b   : > { %v3017_v35 = vrot.slane %v3015_v7, 4  ;;  %v3018_v22 = vrot.slane %v13329_v24, 5  ;;  %v4372_v43 = vsel %vm12694_vm8, %v4370_v59, %v4371_v54  ;;  %v3629_v20 = vrot.slane %v3627_v57, 5 }
 0x46c   : > { %v2924_v1 = vrot.slane %v13353_v4, 5  ;;  %v4295_v12 = vsel %vm12694_vm8, %v4293_v56, %v4294_v37  ;;  %v4429_v55 = vunpack.c.l.b16 %v4372_v43  ;;  %v3625_v46 = vrot.slane %v3624_v16, 4  ;;  %v11808_v43 = vld [vmem:[#allocation2 + $0x24] sm:$0xff] }
 0x46d   : > { %v4406_v53 = vunpack.c.l.b16 %v4292_v38  ;;  %v4407_v17 = vunpack.c.l.b16 %v4295_v12  ;;  %v3019_v24 = vsel %vm12694_vm8, %v3017_v35, %v3018_v22  ;;  %v3060_v54 = vunpack.c.l.b16 %v3016_v5  ;;  %v2865_v35 = vld [vmem:[#allocation2 + $0xc] sm:$0xe] }
 0x46e   : > { %10881 = vmatmul.msk.bf16.gmra.mxu3 %vm1041_vm0, %v2485_v15  ;;  %v3061_v57 = vunpack.c.l.b16 %v3019_v24  ;;  %v13439_v4 = vpack.c.b16 %v4429_v55, %v4428_v47  ;;  %v3632_v7 = vshrl.u32 %v3562_v18, 16  ;;  %v3635_v32 = vshll.u32 %v3562_v18, 16 }
 0x46f   : > { %v3645_v56 = vshrl.u32 %v11993_v3, 16  ;;  %v13441_v37 = vpack.c.b16 %v4407_v17, %v4406_v53  ;;  %v3615_v16 = vrot.slane %v3614_v29, 4  ;;  %v3630_v59 = vsel %vm12668_vm3, %v3625_v46, %v3629_v20 }
 0x470   : > { %v13446_v38 = vpack.c.b16 %v3061_v57, %v3060_v54  ;;  %v2926_v5 = vrot.slane %v2924_v1, 4  ;;  %v3643_v22 = vrot.slane %v3641_v8, 5  ;;  %v3997_v3 = vunpack.c.l.b16 %v3630_v59 }
 0x471   : > { %10998 = vmatmul.msk.bf16.vlgmr.msra.gmra.mxu1 %vm1041_vm0, %v3064_v13  ;;  %v2927_v13 = vrot.slane %v13385_v40, 5  ;;  %v3620_v47 = vsel %vm12668_vm3, %v3615_v16, %v13411_v0  ;;  %v3634_v18 = vrot.slane %v3632_v7, 4  ;;  %v3637_v12 = vrot.slane %v3635_v32, 5  ;;  %v11827_v40 = vld [vmem:[#allocation2 + $0xc] sm:$0xff]  ;;  %v2839_v53 = vpop.f32.mrf.mxu1  ;;  %v11994_v16 = vld [vmem:[#allocation2 + $0x20] sm:$0x1] }
 0x472   : > { %v2605_v9 = vpop.f32.mrf.mxu3  ;;  %v3647_v55 = vrot.slane %v3645_v56, 4  ;;  %v10971_v29 = vrot.slane %v2865_v35, 9  ;;  %v3022_v46 = vrot.slane %v13343_v39, 5  ;;  %v3996_v0 = vunpack.c.l.b16 %v3620_v47 }
 0x473   : > { %v13437_v15 = vadd.f32 %v13395_v63, %v2605_v9  ;;  %v2879_v63 = vld [vmem:[#allocation2 + $0xb4] sm:$0xe]  ;;  %v2928_v20 = vsel %vm12694_vm8, %v2926_v5, %v2927_v13  ;;  %v3638_v57 = vor.u32 %v3637_v12, %v3634_v18  ;;  %v3025_v39 = vrot.slane %v13378_v34, 5 }
 0x474   : > { %v10985_v9 = vrot.slane %v2879_v63, 9  ;;  %v2925_v8 = vsel %vm12694_vm8, %v10971_v29, %v2924_v1  ;;  %v4028_v24 = vpack.c.b16 %v3997_v3, %v3996_v0  ;;  %v3035_v54 = vunpack.c.l.b16 %v2928_v20 }
 0x475   : > { %v3648_v7 = vor.u32 %v3647_v55, %v3643_v22  ;;  %v3024_v56 = vrot.slane %v3022_v46, 4  ;;  %v3034_v13 = vunpack.c.l.b16 %v2925_v8  ;;  %v3651_v59 = vshll.u32 %v11994_v16, 16  ;;  %v13482_v16 = vld [vmem:[%s12211_s30 + $0x7c] sm:$0xf] }
 0x476   : > { %v3023_v32 = vsel %vm12694_vm8, %v10985_v9, %v3022_v46  ;;  %v3639_v5 = vrot.slane %v3638_v57, 4  ;;  %v11995_v9 = vld [vmem:[#allocation2 + $0x28] sm:$0xf] }
 0x477   : > { %v3026_v35 = vsel %vm12694_vm8, %v3024_v56, %v3025_v39  ;;  %v3065_v63 = vpack.c.b16 %v3035_v54, %v3034_v13  ;;  %v3062_v1 = vunpack.c.l.b16 %v3023_v32  ;;  %v3653_v34 = vrot.slane %v3651_v59, 5  ;;  %v11809_v54 = vld [vmem:[#allocation2 + $0x30] sm:$0xff] }
 0x478   : > { %10957 = vmatmul.msk.bf16.gmra.mxu0 %vm1041_vm0, %v11808_v43  ;;  %v3063_v47 = vunpack.c.l.b16 %v3026_v35  ;;  %v3649_v43 = vrot.slane %v3648_v7, 4  ;;  %v3644_v29 = vsel %vm12668_vm3, %v3639_v5, %v3643_v22  ;;  %v3665_v46 = vshll.u32 %v11995_v9, 16  ;;  %v11828_v7 = vld [vmem:[#allocation2 + $0x18] sm:$0xff]  ;;  %v11996_v35 = vld [vmem:[#allocation2 + $0x2c] sm:$0x1] }
 0x479   : > { %v13471_v55 = vpop.f32.mrf.mxu1  ;;  %v3669_v0 = vshrl.u32 %v11995_v9, 16  ;;  %v3998_v57 = vunpack.c.l.b16 %v3644_v29 }
 0x47a   : > { %v13454_v17 = vpop.f32.mrf.mxu3  ;;  %11090 = vmatmul.msk.bf16.vlgmr.msrb.gmra.mxu2 %vm1041_vm0, %v11827_v40  ;;  %v13467_v18 = vpack.c.b16 %v3063_v47, %v3062_v1  ;;  %v3565_v40 = vld [vmem:[#allocation2 + $0x24] sm:$0xf]  ;;  %v3654_v20 = vsel %vm12668_vm3, %v3649_v43, %v3653_v34  ;;  %v3667_v56 = vrot.slane %v3665_v46, 5  ;;  %v819_v1 = vshrl.u32 %v13482_v16, 16  ;;  %v990_v34 = vld [vmem:[#allocation2 + $0xc8] sm:$0x1] }
 0x47b   : > { %v3656_v8 = vshrl.u32 %v3565_v40, 16  ;;  %v3671_v39 = vrot.slane %v3669_v0, 4  ;;  %v3568_v0 = vld [vmem:[#allocation2 + $0x30] sm:$0xf] }
 0x47c   : > { %v821_v43 = vrot.slane %v819_v1, 7 }
 0x47d   : > { %v3658_v22 = vrot.slane %v3656_v8, 4  ;;  %v3672_v5 = vor.u32 %v3671_v39, %v3667_v56 }
 0x47e   : > { %11118 = vmatmul.msk.bf16.vlgmr.msrb.gmra.mxu3 %vm1041_vm0, %v4028_v24  ;;  %v3659_v24 = vshll.u32 %v3565_v40, 16  ;;  %v826_v29 = vrot.slane %v821_v43, 4 }
 0x47f   : > { %v3673_v9 = vrot.slane %v3672_v5, 4 }
 0x480   : > { %v3661_v13 = vrot.slane %v3659_v24, 5  ;;  %v991_v46 = vsel %vm12241_vm7, %v826_v29, %v990_v34 }
 0x481   : > { %10999 = vmatmul.msk.bf16.gmra.mxu1 %vm1041_vm0, %v3065_v63  ;;  %v3675_v63 = vshll.u32 %v11996_v35, 16  ;;  %v2844_v47 = vpop.f32.mrf.mxu1  ;;  %992 = vst [vmem:[#allocation2 + $0xc8] sm:$0x1] %v991_v46 }
 0x482   : > { %v2610_v3 = vpop.f32.mrf.mxu3 }
 0x483   : > { %v13469_v12 = vadd.f32 %v2839_v53, %v2610_v3  ;;  %v3999_v53 = vunpack.c.l.b16 %v3654_v20  ;;  %v3662_v3 = vor.u32 %v3661_v13, %v3658_v22  ;;  %v3677_v40 = vrot.slane %v3675_v63, 5  ;;  %v11829_v63 = vld [vmem:[#allocation2 + $0x24] sm:$0xff] }
 0x485   : > { %v4029_v59 = vpack.c.b16 %v3999_v53, %v3998_v57  ;;  %v3663_v24 = vrot.slane %v3662_v3, 4  ;;  %v3680_v57 = vshrl.u32 %v3568_v0, 16  ;;  %v3683_v53 = vshll.u32 %v3568_v0, 16 }
 0x487   : > { %v3682_v1 = vrot.slane %v3680_v57, 4 }
 0x488   : > { %10958 = vmatmul.msk.bf16.gmra.mxu0 %vm1041_vm0, %v11809_v54  ;;  %v3678_v54 = vsel %vm12668_vm3, %v3673_v9, %v3677_v40  ;;  %v11998_v9 = vld [vmem:[#allocation2 + $0x38] sm:$0x1] }
 0x489   : > { %v13496_v13 = vpop.f32.mrf.mxu1  ;;  %v4001_v35 = vunpack.c.l.b16 %v3678_v54  ;;  %v3699_v46 = vshll.u32 %v11998_v9, 16 }
 0x48a   : > { %v13477_v32 = vpop.f32.mrf.mxu3  ;;  %11091 = vmatmul.msk.bf16.gmra.mxu2 %vm1041_vm0, %v11828_v7  ;;  %v11997_v7 = vld [vmem:[#allocation2 + $0x34] sm:$0xf]  ;;  %16634 = vst [vmem:[#allocation26_spill] sm:$0xff] %v13496_v13  ;;  %v1989_v13 = vld [vmem:[#allocation2 + $0xc8] sm:$0x1] }
 0x48b   : > { %v3689_v39 = vshll.u32 %v11997_v7, 16  ;;  %v3693_v22 = vshrl.u32 %v11997_v7, 16  ;;  %v3701_v54 = vrot.slane %v3699_v46, 5  ;;  %v550_v7 = vld [vmem:[%s12211_s30 + $0x78] sm:$0xf]  ;;  %v11811_v46 = vld [vmem:[#allocation2 + $0x48] sm:$0xff] }
 0x48d   : > { %v3691_v5 = vrot.slane %v3689_v39, 5  ;;  %v3695_v3 = vrot.slane %v3693_v22, 4  ;;  %v811_v22 = vshrl.u32 %v550_v7, 16 }
 0x48e   : > { %11119 = vmatmul.msk.bf16.gmra.mxu3 %vm1041_vm0, %v4029_v59  ;;  %v11810_v59 = vld [vmem:[#allocation2 + $0x3c] sm:$0xff] }
 0x491   : > { %11000 = vmatmul.msk.bf16.gmra.mxu1 %vm1041_vm0, %v12729_v25  ;;  %v3668_v25 = vsel %vm12668_vm3, %v3663_v24, %v3667_v56  ;;  %v3696_v56 = vor.u32 %v3695_v3, %v3691_v5  ;;  %v2849_v57 = vpop.f32.mrf.mxu1  ;;  %v3571_v3 = vld [vmem:[#allocation2 + $0x3c] sm:$0xf] }
 0x492   : > { %v2615_v20 = vpop.f32.mrf.mxu3  ;;  %v4000_v40 = vunpack.c.l.b16 %v3668_v25  ;;  %v814_v25 = vshll.u32 %v550_v7, 16  ;;  %v3704_v7 = vshrl.u32 %v3571_v3, 16  ;;  %v3707_v61 = vshll.u32 %v3571_v3, 16 }
 0x493   : > { %v13490_v8 = vadd.f32 %v2844_v47, %v2615_v20  ;;  %v3685_v47 = vrot.slane %v3683_v53, 5  ;;  %v3697_v24 = vrot.slane %v3696_v56, 4 }
 0x494   : > { %v4030_v29 = vpack.c.b16 %v4001_v35, %v4000_v40  ;;  %v813_v40 = vrot.slane %v811_v22, 7  ;;  %v3706_v22 = vrot.slane %v3704_v7, 4 }
 0x495   : > { %v3686_v20 = vor.u32 %v3685_v47, %v3682_v1  ;;  %v3702_v47 = vsel %vm12668_vm3, %v3697_v24, %v3701_v54 }
 0x496   : > { %v817_v56 = vrot.slane %v813_v40, 4 }
 0x497   : > { %v3687_v0 = vrot.slane %v3686_v20, 4  ;;  %v986_v20 = vld [vmem:[#allocation2 + $0xc0] sm:$0xf] }
 0x498   : > { %10959 = vmatmul.msk.bf16.gmra.mxu0 %vm1041_vm0, %v11810_v59  ;;  %v11999_v59 = vld [vmem:[#allocation2 + $0x40] sm:$0xf] }
 0x499   : > { %v3713_v35 = vshll.u32 %v11999_v59, 16  ;;  %v3692_v1 = vsel %vm12668_vm3, %v3687_v0, %v3691_v5 }
 0x49a   : > { %v13498_v34 = vpop.f32.mrf.mxu3  ;;  %11092 = vmatmul.msk.bf16.gmra.mxu2 %vm1041_vm0, %v11829_v63  ;;  %v3717_v63 = vshrl.u32 %v11999_v59, 16  ;;  %v11830_v59 = vld [vmem:[#allocation2 + $0x30] sm:$0xff] }
 0x49b   : > { %16635 = vst [vmem:[#allocation27_spill] sm:$0xff] %v13498_v34  ;;  %v3715_v34 = vrot.slane %v3713_v35, 5 }
 0x49c   : > { %v3719_v5 = vrot.slane %v3717_v63, 4  ;;  %v12000_v63 = vld [vmem:[#allocation2 + $0x44] sm:$0x1] }
 0x49e   : > { %11120 = vmatmul.msk.bf16.gmra.mxu3 %vm1041_vm0, %v4030_v29  ;;  %v822_v29 = vshll.u32 %v13482_v16, 16  ;;  %v3720_v35 = vor.u32 %v3719_v5, %v3715_v34 }
 0x4a0   : > { %v824_v9 = vor.u32 %v822_v29, %v821_v43  ;;  %v12001_v29 = vld [vmem:[#allocation2 + $0x4c] sm:$0xf] }
 0x4a1   : > { %11001 = vmatmul.msk.bf16.gmra.mxu1 %vm1041_vm0, %v12745_v2  ;;  %v816_v2 = vor.u32 %v814_v25, %v813_v40  ;;  %v3709_v25 = vrot.slane %v3707_v61, 5  ;;  %v3721_v40 = vrot.slane %v3720_v35, 4 }
 0x4a2   : > { %v2620_v53 = vpop.f32.mrf.mxu3  ;;  %v825_v24 = vsel %vm12183_vm4, %v817_v56, %v824_v9  ;;  %v3574_v56 = vld [vmem:[#allocation2 + $0x48] sm:$0xf] }
 0x4a3   : > { %v13506_v39 = vadd.f32 %v2849_v57, %v2620_v53  ;;  %v4002_v57 = vunpack.c.l.b16 %v3692_v1  ;;  %v4003_v53 = vunpack.c.l.b16 %v3702_v47  ;;  %v987_v0 = vsel %vm12535_vm14, %v816_v2, %v986_v20  ;;  %989 = vst.msk [vmem:[#allocation2 + $0xc4] sm:$0xf] %vm464_vm9, %v825_v24  ;;  %v11847_v47 = vld [vmem:[%s16583_s5 + $0x50] sm:$0xff] }
 0x4a4   : > { %988 = vst [vmem:[#allocation2 + $0xc0] sm:$0xf] %v987_v0  ;;  %v3723_v1 = vshll.u32 %v12000_v63, 16  ;;  %v3710_v3 = vor.u32 %v3709_v25, %v3706_v22  ;;  %4521 = vmatpush.bf16.msra.mxu0 %v11847_v47  ;;  %v3737_v20 = vshll.u32 %v12001_v29, 16  ;;  %v3741_v2 = vshrl.u32 %v12001_v29, 16  ;;  %v2784_v47 = vpop.f32.mrf.mxu0 }
 0x4a5   : > { %v4031_v54 = vpack.c.b16 %v4003_v53, %v4002_v57  ;;  %v11831_v53 = vld [vmem:[#allocation2 + $0x3c] sm:$0xff]  ;;  %v3728_v7 = vshrl.u32 %v3574_v56, 16  ;;  %v12002_v22 = vld [vmem:[#allocation2 + $0x50] sm:$0x1] }
 0x4a6   : > { %v3725_v49 = vrot.slane %v3723_v1, 5  ;;  %v3739_v5 = vrot.slane %v3737_v20, 5  ;;  %v3743_v0 = vrot.slane %v3741_v2, 4 }
 0x4a8   : > { %10960 = vmatmul.msk.bf16.gmra.mxu0 %vm1041_vm0, %v11811_v46  ;;  %v3726_v61 = vsel %vm12668_vm3, %v3721_v40, %v3725_v49  ;;  %v11812_v46 = vld [vmem:[#allocation2 + $0x54] sm:$0xff] }
 0x4a9   : > { %v4005_v57 = vunpack.c.l.b16 %v3726_v61  ;;  %v3577_v49 = vld [vmem:[#allocation2 + $0x54] sm:$0xf] }
 0x4aa   : > { %11093 = vmatmul.msk.bf16.gmra.mxu2 %vm1041_vm0, %v11830_v59  ;;  %v1826_v16 = vpop.permute.xlu2 %1825  ;;  %v3731_v59 = vshll.u32 %v3574_v56, 16 }
 0x4ab   : > { %v1990_v43 = vsel %vm12390_vm11, %v1826_v16, %v1989_v13  ;;  %v3711_v13 = vrot.slane %v3710_v3, 4  ;;  %v3730_v16 = vrot.slane %v3728_v7, 4  ;;  %v1985_v25 = vld [vmem:[#allocation2 + $0xc0] sm:$0xf] }
 0x4ac   : > { %1991 = vst [vmem:[#allocation2 + $0xc8] sm:$0x1] %v1990_v43  ;;  %v3733_v43 = vrot.slane %v3731_v59, 5  ;;  %v3755_v59 = vshll.u32 %v3577_v49, 16 }
 0x4ad   : > { %v3716_v9 = vsel %vm12668_vm3, %v3711_v13, %v3715_v34  ;;  %v3747_v34 = vshll.u32 %v12002_v22, 16  ;;  %v12003_v13 = vld [vmem:[#allocation2 + $0x58] sm:$0xf] }
 0x4ae   : > { %11121 = vmatmul.msk.bf16.gmra.mxu3 %vm1041_vm0, %v4031_v54  ;;  %v3744_v54 = vor.u32 %v3743_v0, %v3739_v5  ;;  %v3734_v35 = vor.u32 %v3733_v43, %v3730_v16  ;;  %v3761_v61 = vshll.u32 %v12003_v13, 16  ;;  %v3765_v29 = vshrl.u32 %v12003_v13, 16 }
 0x4af   : > { %v3749_v3 = vrot.slane %v3747_v34, 5  ;;  %v3757_v22 = vrot.slane %v3755_v59, 5  ;;  %v13559_v59 = vpop.f32.mrf.mxu3 }
 0x4b0   : > { %v3745_v63 = vrot.slane %v3744_v54, 4  ;;  %v3735_v2 = vrot.slane %v3734_v35, 4  ;;  %v3763_v0 = vrot.slane %v3761_v61, 5 }
 0x4b1   : > { %11002 = vmatmul.msk.bf16.gmra.mxu1 %vm1041_vm0, %v12808_v36  ;;  %v4004_v36 = vunpack.c.l.b16 %v3716_v9 }
 0x4b2   : > { %v3750_v56 = vsel %vm12668_vm3, %v3745_v63, %v3749_v3  ;;  %v3740_v52 = vsel %vm12668_vm3, %v3735_v2, %v3739_v5  ;;  %v12004_v5 = vld [vmem:[#allocation2 + $0x5c] sm:$0x1] }
 0x4b3   : > { %v4032_v24 = vpack.c.b16 %v4005_v57, %v4004_v36  ;;  %v3752_v57 = vshrl.u32 %v3577_v49, 16  ;;  %v4007_v7 = vunpack.c.l.b16 %v3750_v56  ;;  %v3767_v36 = vrot.slane %v3765_v29, 4 }
 0x4b4   : > { %v4006_v16 = vunpack.c.l.b16 %v3740_v52  ;;  %v3771_v35 = vshll.u32 %v12004_v5, 16 }
 0x4b5   : > { %v3754_v54 = vrot.slane %v3752_v57, 4  ;;  %v3768_v34 = vor.u32 %v3767_v36, %v3763_v0 }
 0x4b6   : > { %v4033_v43 = vpack.c.b16 %v4007_v7, %v4006_v16  ;;  %v3773_v3 = vrot.slane %v3771_v35, 5  ;;  %v12006_v35 = vld [vmem:[#allocation2 + $0x68] sm:$0x1] }
 0x4b8   : > { %10961 = vmatmul.msk.bf16.gmra.mxu0 %vm1041_vm0, %v11812_v46  ;;  %v13544_v46 = vpop.f32.mrf.mxu1 }
 0x4b9   : > { %16636 = vst [vmem:[#allocation28_spill] sm:$0xff] %v13544_v46 }
 0x4ba   : > { %11094 = vmatmul.msk.bf16.gmra.mxu2 %vm1041_vm0, %v11831_v53  ;;  %v11813_v53 = vld [vmem:[#allocation2 + $0x60] sm:$0xff] }
 0x4be   : > { %11122 = vmatmul.msk.bf16.gmra.mxu3 %vm1041_vm0, %v4032_v24  ;;  %v11832_v24 = vld [vmem:[#allocation2 + $0x48] sm:$0xff] }
 0x4c0   : > { %v2555_v9 = vpop.f32.mrf.mxu2 }
 0x4c1   : > { %11003 = vmatmul.msk.bf16.gmra.mxu1 %vm1041_vm0, %v12766_v48  ;;  %v13542_v48 = vadd.f32 %v2784_v47, %v2555_v9  ;;  %v3769_v47 = vrot.slane %v3768_v34, 4 }
 0x4c2   : > { %v1822_v1 = vpop.permute.xlu0 %1821 }
 0x4c3   : > { %v1986_v40 = vsel %vm12598_vm15, %v1822_v1, %v1985_v25  ;;  %v13550_v25 = vpop.f32.mrf.mxu0  ;;  %v3758_v1 = vor.u32 %v3757_v22, %v3754_v54  ;;  %v3774_v13 = vsel %vm12668_vm3, %v3769_v47, %v3773_v3  ;;  %v11867_v22 = vld [vmem:[%s16583_s5 + $0x70] sm:$0xff] }
 0x4c4   : > { %1987 = vst [vmem:[#allocation2 + $0xc0] sm:$0xf] %v1986_v40  ;;  %v1824_v20 = vpop.permute.xlu1 %1823  ;;  %v3580_v40 = vld [vmem:[#allocation2 + $0x60] sm:$0xf]  ;;  %v4009_v7 = vunpack.c.l.b16 %v3774_v13  ;;  %5486 = vmatpush.bf16.msra.mxu2 %v11867_v22 }
 0x4c5   : > { %1988 = vst.msk [vmem:[#allocation2 + $0xc4] sm:$0xf] %vm1875_vm12, %v1824_v20  ;;  %v3759_v49 = vrot.slane %v3758_v1, 4  ;;  %v3776_v61 = vshrl.u32 %v3580_v40, 16  ;;  %v3779_v29 = vshll.u32 %v3580_v40, 16  ;;  %v3795_v1 = vshll.u32 %v12006_v35, 16 }
 0x4c6   : > { %v12005_v20 = vld [vmem:[#allocation2 + $0x64] sm:$0xf] }
 0x4c7   : > { %v3785_v2 = vshll.u32 %v12005_v20, 16  ;;  %v3789_v56 = vshrl.u32 %v12005_v20, 16  ;;  %v3764_v57 = vsel %vm12668_vm3, %v3759_v49, %v3763_v0  ;;  %v3778_v36 = vrot.slane %v3776_v61, 4  ;;  %v11869_v40 = vld [vmem:[%s16583_s5 + $0x80] sm:$0xff] }
 0x4c8   : > { %10962 = vmatmul.msk.bf16.gmra.mxu0 %vm1041_vm0, %v11813_v53  ;;  %v11814_v53 = vld [vmem:[#allocation2 + $0x6c] sm:$0xff]  ;;  %v4008_v54 = vunpack.c.l.b16 %v3764_v57  ;;  %v11865_v49 = vld [vmem:[%s16583_s5 + $0x60] sm:$0xff]  ;;  %v3797_v20 = vrot.slane %v3795_v1, 5  ;;  %5896 = vmatpush.bf16.msra.mxu3 %v11869_v40 }
 0x4c9   : > { %v3787_v16 = vrot.slane %v3785_v2, 5  ;;  %4820 = vmatpush.bf16.msrb.mxu1 %v11865_v49 }
 0x4ca   : > { %11095 = vmatmul.msk.bf16.gmra.mxu2 %vm1041_vm0, %v11832_v24  ;;  %v3781_v24 = vrot.slane %v3779_v29, 5  ;;  %v4034_v34 = vpack.c.b16 %v4009_v7, %v4008_v54  ;;  %v2557_v7 = vpop.f32.mrf.mxu2  ;;  %v12007_v54 = vld [vmem:[#allocation2 + $0x70] sm:$0xf] }
 0x4cb   : > { %v3813_v22 = vshrl.u32 %v12007_v54, 16 }
 0x4cc   : > { %v3782_v0 = vor.u32 %v3781_v24, %v3778_v36  ;;  %v11842_v46 = vld [vmem:[#allocation2 + $0xc0] sm:$0xff] }
 0x4cd   : > { %v3815_v49 = vrot.slane %v3813_v22, 4 }
 0x4ce   : > { %11123 = vmatmul.msk.bf16.gmra.mxu3 %vm1041_vm0, %v4033_v43  ;;  %v2854_v63 = vpop.f32.mrf.mxu1  ;;  %v3791_v43 = vrot.slane %v3789_v56, 4  ;;  %v3783_v61 = vrot.slane %v3782_v0, 4  ;;  %v3583_v56 = vld [vmem:[#allocation2 + $0x6c] sm:$0xf] }
 0x4cf   : > { %v3800_v24 = vshrl.u32 %v3583_v56, 16 }
 0x4d0   : > { %v3792_v5 = vor.u32 %v3791_v43, %v3787_v16  ;;  %v3788_v57 = vsel %vm12668_vm3, %v3783_v61, %v3787_v16  ;;  %v3803_v43 = vshll.u32 %v3583_v56, 16  ;;  %v12008_v61 = vld [vmem:[#allocation2 + $0x74] sm:$0x1] }
 0x4d1   : > { %11004 = vmatmul.msk.bf16.gmra.mxu1 %vm1041_vm0, %v12942_v60  ;;  %v11833_v60 = vld [vmem:[#allocation2 + $0x54] sm:$0xff]  ;;  %v3802_v16 = vrot.slane %v3800_v24, 4 }
 0x4d2   : > { %v3793_v29 = vrot.slane %v3792_v5, 4  ;;  %v11834_v5 = vld [vmem:[#allocation2 + $0x60] sm:$0xff]  ;;  %v3805_v1 = vrot.slane %v3803_v43, 5  ;;  %v3586_v43 = vld [vmem:[#allocation2 + $0x78] sm:$0xf] }
 0x4d5   : > { %v2789_v9 = vpop.f32.mrf.mxu0 }
 0x4d6   : > { %v2856_v52 = vpop.f32.mrf.mxu1 }
 0x4d8   : > { %10963 = vmatmul.msk.bf16.gmra.mxu0 %vm1041_vm0, %v11814_v53  ;;  %v3798_v53 = vsel %vm12668_vm3, %v3793_v29, %v3797_v20  ;;  %v3819_v29 = vshll.u32 %v12008_v61, 16 }
 0x4d9   : > { %v4011_v0 = vunpack.c.l.b16 %v3798_v53  ;;  %v3806_v53 = vor.u32 %v3805_v1, %v3802_v16  ;;  %v2787_v16 = vadd.f32 %v13550_v25, %v2557_v7 }
 0x4da   : > { %11096 = vmatmul.msk.bf16.gmra.mxu2 %vm1041_vm0, %v11833_v60 }
 0x4dd   : > { %v2791_v47 = vpop.f32.mrf.mxu0 }
 0x4de   : > { %11124 = vmatmul.msk.bf16.gmra.mxu3 %vm1041_vm0, %v4034_v34  ;;  %v2859_v3 = vpop.f32.mrf.mxu1  ;;  %v4010_v34 = vunpack.c.l.b16 %v3788_v57 }
 0x4e1   : > { %v2625_v13 = vpop.f32.mrf.mxu3  ;;  %11005 = vmatmul.msk.bf16.gmra.mxu1 %vm1041_vm0, %v12971_v21 }
 0x4e2   : > { %v13573_v2 = vadd.f32 %v2854_v63, %v2625_v13  ;;  %v3809_v63 = vshll.u32 %v12007_v54, 16  ;;  %v4035_v13 = vpack.c.b16 %v4011_v0, %v4010_v34  ;;  %v3824_v34 = vshrl.u32 %v3586_v43, 16 }
 0x4e3   : > { %v3827_v0 = vshll.u32 %v3586_v43, 16 }
 0x4e4   : > { %v3811_v40 = vrot.slane %v3809_v63, 5  ;;  %v3807_v63 = vrot.slane %v3806_v53, 4 }
 0x4e5   : > { %v13581_v60 = vpop.f32.mrf.mxu0  ;;  %v3829_v53 = vrot.slane %v3827_v0, 5 }
 0x4e6   : > { %v2861_v36 = vpop.f32.mrf.mxu1  ;;  %v3816_v54 = vor.u32 %v3815_v49, %v3811_v40 }
 0x4e8   : > { %11162 = vmatmul.msk.bf16.vlgmr.msra.gmra.mxu0 %vm1041_vm0, %v13441_v37  ;;  %v3817_v22 = vrot.slane %v3816_v54, 4  ;;  %v12009_v54 = vld [vmem:[#allocation2 + $0x7c] sm:$0xf] }
 0x4e9   : > { %v2627_v21 = vpop.f32.mrf.mxu3 }
 0x4ea   : > { %v13583_v35 = vadd.f32 %v2856_v52, %v2627_v21  ;;  %11097 = vmatmul.msk.bf16.gmra.mxu2 %vm1041_vm0, %v11834_v5  ;;  %v3821_v5 = vrot.slane %v3819_v29, 5 }
 0x4ec   : > { %16637 = vst [vmem:[#allocation29_spill] sm:$0xff] %v13583_v35 }
 0x4ed   : > { %v2560_v20 = vpop.f32.mrf.mxu2  ;;  %v13589_v57 = vpop.f32.mrf.mxu0 }
 0x4ee   : > { %11125 = vmatmul.msk.bf16.gmra.mxu3 %vm1041_vm0, %v4035_v13  ;;  %v2790_v56 = vadd.f32 %v2789_v9, %v2560_v20  ;;  %v3149_v52 = vpop.f32.mrf.mxu1  ;;  %v3822_v9 = vsel %vm12668_vm3, %v3817_v22, %v3821_v5  ;;  %v11835_v20 = vld [vmem:[#allocation2 + $0x6c] sm:$0xff]  ;;  %v3837_v5 = vshrl.u32 %v12009_v54, 16 }
 0x4ef   : > { %v3229_v37 = vadd.f32 %v3149_v52, %v13542_v48  ;;  %v3826_v52 = vrot.slane %v3824_v34, 4 }
 0x4f1   : > { %v2630_v21 = vpop.f32.mrf.mxu3  ;;  %11006 = vmatmul.msk.bf16.gmra.mxu1 %vm1041_vm0, %v13013_v23  ;;  %v4013_v23 = vunpack.c.l.b16 %v3822_v9  ;;  %v3830_v7 = vor.u32 %v3829_v53, %v3826_v52 }
 0x4f2   : > { %v13592_v24 = vadd.f32 %v2859_v3, %v2630_v21  ;;  %v3812_v3 = vsel %vm12668_vm3, %v3807_v63, %v3811_v40  ;;  %v3833_v21 = vshll.u32 %v12009_v54, 16  ;;  %v3839_v63 = vrot.slane %v3837_v5, 4  ;;  %v12011_v54 = vld [vmem:[#allocation2 + $0x88] sm:$0xf] }
 0x4f3   : > { %v4012_v25 = vunpack.c.l.b16 %v3812_v3  ;;  %v3831_v3 = vrot.slane %v3830_v7, 4  ;;  %v3861_v5 = vshrl.u32 %v12011_v54, 16 }
 0x4f4   : > { %16638 = vst [vmem:[#allocation30_spill] sm:$0xff] %v13592_v24  ;;  %v3835_v40 = vrot.slane %v3833_v21, 5  ;;  %v3857_v21 = vshll.u32 %v12011_v54, 16  ;;  %v16651_v24 = vld [vmem:[#allocation10_spill] sm:$0xff] }
 0x4f5   : > { %v2562_v1 = vpop.f32.mrf.mxu2  ;;  %v13599_v48 = vpop.f32.mrf.mxu0 }
 0x4f6   : > { %v2792_v49 = vadd.f32 %v2791_v47, %v2562_v1  ;;  %v3151_v13 = vpop.f32.mrf.mxu1  ;;  %v4036_v47 = vpack.c.b16 %v4013_v23, %v4012_v25  ;;  %v3840_v23 = vor.u32 %v3839_v63, %v3835_v40  ;;  %v3836_v52 = vsel %vm12668_vm3, %v3831_v3, %v3835_v40 }
 0x4f7   : > { %v3230_v61 = vadd.f32 %v3151_v13, %v2787_v16  ;;  %v12010_v16 = vld [vmem:[#allocation2 + $0x80] sm:$0x1] }
 0x4f8   : > { %11163 = vmatmul.msk.bf16.gmra.mxu0 %vm1041_vm0, %v12774_v26  ;;  %v11888_v26 = vld [vmem:[%s16586_s8 + $0x8] sm:$0xff]  ;;  %v3841_v53 = vrot.slane %v3840_v23, 4 }
 0x4f9   : > { %v2632_v29 = vpop.f32.mrf.mxu3  ;;  %7126 = vmatpush.bf16.msrb.mxu0 %v11888_v26 }
 0x4fa   : > { %v13603_v43 = vadd.f32 %v2861_v36, %v2632_v29  ;;  %11098 = vmatmul.msk.bf16.gmra.mxu2 %vm1041_vm0, %v11835_v20  ;;  %v3843_v36 = vshll.u32 %v12010_v16, 16  ;;  %v3589_v20 = vld [vmem:[#allocation2 + $0x84] sm:$0xf] }
 0x4fc   : > { %16639 = vst [vmem:[#allocation31_spill] sm:$0xff] %v13603_v43 }
 0x4fd   : > { %v3447_v22 = vpop.f32.mrf.mxu2  ;;  %v13609_v34 = vpop.f32.mrf.mxu0 }
 0x4fe   : > { %11126 = vmatmul.msk.bf16.gmra.mxu3 %vm1041_vm0, %v4036_v47  ;;  %v3527_v9 = vadd.f32 %v3447_v22, %v3229_v37  ;;  %v3154_v0 = vpop.f32.mrf.mxu1  ;;  %v3845_v37 = vrot.slane %v3843_v36, 5  ;;  %v3848_v22 = vshrl.u32 %v3589_v20, 16  ;;  %v11836_v36 = vld [vmem:[#allocation2 + $0x78] sm:$0xff] }
 0x4ff   : > { %v3231_v1 = vadd.f32 %v3154_v0, %v2790_v56  ;;  %v4014_v0 = vunpack.c.l.b16 %v3836_v52 }
 0x500   : > { %v3846_v63 = vsel %vm12668_vm3, %v3841_v53, %v3845_v37  ;;  %v3850_v3 = vrot.slane %v3848_v22, 4  ;;  %v12012_v37 = vld [vmem:[#allocation2 + $0x8c] sm:$0x1] }
 0x501   : > { %v4113_v13 = vpop.f32.mrf.mxu3  ;;  %11007 = vmatmul.msk.bf16.gmra.mxu1 %vm1041_vm0, %v13024_v10  ;;  %v3851_v10 = vshll.u32 %v3589_v20, 16  ;;  %v4015_v40 = vunpack.c.l.b16 %v3846_v63  ;;  %v3867_v53 = vshll.u32 %v12012_v37, 16 }
 0x502   : > { %v13614_v29 = vadd.f32 %v4113_v13, %v3527_v9  ;;  %v3859_v13 = vrot.slane %v3857_v21, 5 }
 0x503   : > { %v3853_v23 = vrot.slane %v3851_v10, 5 }
 0x505   : > { %v3449_v56 = vpop.f32.mrf.mxu2  ;;  %v13620_v47 = vpop.f32.mrf.mxu0  ;;  %v3854_v21 = vor.u32 %v3853_v23, %v3850_v3 }
 0x506   : > { %v3528_v25 = vadd.f32 %v3449_v56, %v3230_v61  ;;  %v3156_v7 = vpop.f32.mrf.mxu1  ;;  %v3863_v61 = vrot.slane %v3861_v5, 4  ;;  %v4037_v56 = vpack.c.b16 %v4015_v40, %v4014_v0  ;;  %v3592_v0 = vld [vmem:[#allocation2 + $0x90] sm:$0xf]  ;;  %v3885_v40 = vshrl.u32 %v13404_v58, 16 }
 0x507   : > { %v3232_v9 = vadd.f32 %v3156_v7, %v2792_v49  ;;  %v2795_v49 = vadd.f32 %v13581_v60, %v13091_v30  ;;  %v3869_v7 = vrot.slane %v3867_v53, 5  ;;  %v3855_v30 = vrot.slane %v3854_v21, 4 }
 0x508   : > { %11164 = vmatmul.msk.bf16.gmra.mxu0 %vm1041_vm0, %v12777_v19  ;;  %v3864_v52 = vor.u32 %v3863_v61, %v3859_v13  ;;  %v2797_v61 = vadd.f32 %v13589_v57, %v13115_v33 }
 0x509   : > { %v4115_v16 = vpop.f32.mrf.mxu3  ;;  %v3860_v37 = vsel %vm12668_vm3, %v3855_v30, %v3859_v13  ;;  %v3891_v13 = vshll.u32 %v13406_v6, 16  ;;  %v13663_v6 = vld [vmem:[#allocation2 + $0xa0] sm:$0xf] }
 0x50a   : > { %v13624_v26 = vadd.f32 %v4115_v16, %v3528_v25  ;;  %11099 = vmatmul.msk.bf16.gmra.mxu2 %vm1041_vm0, %v11836_v36  ;;  %v3865_v10 = vrot.slane %v3864_v52, 4  ;;  %v3872_v16 = vshrl.u32 %v3592_v0, 16  ;;  %v3881_v36 = vshll.u32 %v13404_v58, 16  ;;  %v11837_v52 = vld [vmem:[#allocation2 + $0x84] sm:$0xff] }
 0x50b   : > { %v4016_v33 = vunpack.c.l.b16 %v3860_v37 }
 0x50c   : > { %v3870_v60 = vsel %vm12668_vm3, %v3865_v10, %v3869_v7  ;;  %v3883_v21 = vrot.slane %v3881_v36, 5  ;;  %v3887_v7 = vrot.slane %v3885_v40, 4  ;;  %v2800_v10 = vadd.f32 %v13599_v48, %v13142_v45 }
 0x50d   : > { %v3452_v20 = vpop.f32.mrf.mxu2  ;;  %v13632_v25 = vpop.f32.mrf.mxu0 }
 0x50e   : > { %11127 = vmatmul.msk.bf16.gmra.mxu3 %vm1041_vm0, %v4037_v56  ;;  %v3529_v54 = vadd.f32 %v3452_v20, %v3231_v1  ;;  %v3159_v19 = vpop.f32.mrf.mxu1  ;;  %v3875_v1 = vshll.u32 %v3592_v0, 16 }
 0x50f   : > { %v3233_v5 = vadd.f32 %v3159_v19, %v2795_v49  ;;  %v4017_v49 = vunpack.c.l.b16 %v3870_v60 }
 0x510   : > { %v3877_v19 = vrot.slane %v3875_v1, 5 }
 0x511   : > { %v4118_v63 = vpop.f32.mrf.mxu3  ;;  %11008 = vmatmul.msk.bf16.gmra.mxu1 %vm1041_vm0, %v13192_v14  ;;  %v4038_v57 = vpack.c.b16 %v4017_v49, %v4016_v33  ;;  %v11838_v33 = vld [vmem:[#allocation2 + $0x90] sm:$0xff] }
 0x512   : > { %v13634_v22 = vadd.f32 %v4118_v63, %v3529_v54  ;;  %v3874_v54 = vrot.slane %v3872_v16, 4  ;;  %v3888_v63 = vor.u32 %v3887_v7, %v3883_v21 }
 0x514   : > { %v3889_v40 = vrot.slane %v3888_v63, 4 }
 0x515   : > { %v3454_v3 = vpop.f32.mrf.mxu2  ;;  %v13644_v56 = vpop.f32.mrf.mxu0 }
 0x516   : > { %v3530_v23 = vadd.f32 %v3454_v3, %v3232_v9  ;;  %v3161_v14 = vpop.f32.mrf.mxu1  ;;  %v3878_v9 = vor.u32 %v3877_v19, %v3874_v54 }
 0x517   : > { %v3234_v53 = vadd.f32 %v3161_v14, %v2797_v61  ;;  %v3893_v61 = vrot.slane %v3891_v13, 5  ;;  %v3595_v14 = vld [vmem:[#allocation2 + $0x9c] sm:$0xf] }
 0x518   : > { %11165 = vmatmul.msk.bf16.gmra.mxu0 %vm1041_vm0, %v12835_v42  ;;  %v3879_v36 = vrot.slane %v3878_v9, 4  ;;  %v3899_v9 = vshll.u32 %v3595_v14, 16 }
 0x519   : > { %v4120_v20 = vpop.f32.mrf.mxu3  ;;  %v3894_v48 = vsel %vm12668_vm3, %v3889_v40, %v3893_v61 }
 0x51a   : > { %v13648_v58 = vadd.f32 %v4120_v20, %v3530_v23  ;;  %11100 = vmatmul.msk.bf16.gmra.mxu2 %vm1041_vm0, %v11837_v52  ;;  %v3884_v45 = vsel %vm12668_vm3, %v3879_v36, %v3883_v21  ;;  %v3905_v52 = vshll.u32 %v13663_v6, 16  ;;  %v4019_v7 = vunpack.c.l.b16 %v3894_v48 }
 0x51b   : > { %v4018_v19 = vunpack.c.l.b16 %v3884_v45 }
 0x51d   : > { %v3457_v0 = vpop.f32.mrf.mxu2  ;;  %v13657_v60 = vpop.f32.mrf.mxu0  ;;  %v4039_v13 = vpack.c.b16 %v4019_v7, %v4018_v19  ;;  %v16641_v19 = vld [vmem:[#allocation11_spill] sm:$0xff] }
 0x51e   : > { %11128 = vmatmul.msk.bf16.gmra.mxu3 %vm1041_vm0, %v4038_v57  ;;  %v3531_v30 = vadd.f32 %v3457_v0, %v3233_v5  ;;  %v3164_v16 = vpop.f32.mrf.mxu1  ;;  %v2802_v5 = vadd.f32 %v13609_v34, %v13160_v11  ;;  %v3896_v57 = vshrl.u32 %v3595_v14, 16  ;;  %v13679_v11 = vld [vmem:[#allocation2 + $0xa4] sm:$0x1]  ;;  %v3907_v34 = vrot.slane %v3905_v52, 5 }
 0x51f   : > { %v3235_v1 = vadd.f32 %v3164_v16, %v2800_v10  ;;  %v3901_v0 = vrot.slane %v3899_v9, 5  ;;  %v2805_v16 = vadd.f32 %v13620_v47, %v13174_v44  ;;  %v2807_v7 = vadd.f32 %v13632_v25, %v16641_v19  ;;  %v16642_v25 = vld [vmem:[#allocation7_spill] sm:$0xff] }
 0x520   : > { %v3898_v10 = vrot.slane %v3896_v57, 4 }
 0x521   : > { %v4123_v42 = vpop.f32.mrf.mxu3  ;;  %11009 = vmatmul.msk.bf16.gmra.mxu1 %vm1041_vm0, %v13227_v50  ;;  %v3909_v50 = vshrl.u32 %v13663_v6, 16 }
 0x522   : > { %v13659_v3 = vadd.f32 %v4123_v42, %v3531_v30  ;;  %v3915_v30 = vshll.u32 %v13679_v11, 16 }
 0x525   : > { %v3459_v23 = vpop.f32.mrf.mxu2  ;;  %v13671_v49 = vpop.f32.mrf.mxu0 }
 0x526   : > { %v3532_v37 = vadd.f32 %v3459_v23, %v3234_v53  ;;  %v3166_v20 = vpop.f32.mrf.mxu1  ;;  %v3911_v53 = vrot.slane %v3909_v50, 4  ;;  %v3917_v23 = vrot.slane %v3915_v30, 5 }
 0x527   : > { %v3236_v54 = vadd.f32 %v3166_v20, %v2802_v5  ;;  %v3902_v5 = vor.u32 %v3901_v0, %v3898_v10  ;;  %v13692_v20 = vld [vmem:[#allocation2 + $0xac] sm:$0xf] }
 0x528   : > { %11166 = vmatmul.msk.bf16.gmra.mxu0 %vm1041_vm0, %v12796_v41  ;;  %v3912_v61 = vor.u32 %v3911_v53, %v3907_v34  ;;  %v3929_v52 = vshll.u32 %v13692_v20, 16  ;;  %v3933_v50 = vshrl.u32 %v13692_v20, 16 }
 0x529   : > { %v4125_v21 = vpop.f32.mrf.mxu3  ;;  %v3903_v47 = vrot.slane %v3902_v5, 4 }
 0x52a   : > { %v13675_v63 = vadd.f32 %v4125_v21, %v3532_v37  ;;  %11101 = vmatmul.msk.bf16.gmra.mxu2 %vm1041_vm0, %v11838_v33  ;;  %v16640_v37 = vld [vmem:[#allocation19_spill] sm:$0xff]  ;;  %v3913_v44 = vrot.slane %v3912_v61, 4  ;;  %v3935_v61 = vrot.slane %v3933_v50, 4 }
 0x52b   : > { %v3598_v33 = vld [vmem:[#allocation2 + $0xa8] sm:$0xf] }
 0x52d   : > { %v3462_v42 = vpop.f32.mrf.mxu2  ;;  %v13686_v40 = vpop.f32.mrf.mxu0 }
 0x52e   : > { %11129 = vmatmul.msk.bf16.gmra.mxu3 %vm1041_vm0, %v4039_v13  ;;  %v3533_v36 = vadd.f32 %v3462_v42, %v3235_v1  ;;  %v3169_v41 = vpop.f32.mrf.mxu1  ;;  %v3918_v1 = vsel %vm12668_vm3, %v3913_v44, %v3917_v23  ;;  %v3908_v13 = vsel %vm12668_vm3, %v3903_v47, %v3907_v34  ;;  %v3920_v42 = vshrl.u32 %v3598_v33, 16  ;;  %v13709_v23 = vld [vmem:[#allocation2 + $0xb0] sm:$0x1] }
 0x52f   : > { %v3237_v45 = vadd.f32 %v3169_v41, %v2805_v16  ;;  %v4021_v0 = vunpack.c.l.b16 %v3918_v1  ;;  %v11839_v16 = vld [vmem:[#allocation2 + $0x9c] sm:$0xff]  ;;  %v3931_v41 = vrot.slane %v3929_v52, 5  ;;  %v16643_v47 = vld [vmem:[#allocation12_spill] sm:$0xff] }
 0x530   : > { %v3922_v34 = vrot.slane %v3920_v42, 4  ;;  %v2810_v1 = vadd.f32 %v13644_v56, %v16643_v47  ;;  %v13721_v56 = vld [vmem:[#allocation2 + $0xb8] sm:$0xf]  ;;  %v3601_v42 = vld [vmem:[#allocation2 + $0xb4] sm:$0xf] }
 0x531   : > { %v4128_v48 = vpop.f32.mrf.mxu3  ;;  %11010 = vmatmul.msk.bf16.gmra.mxu1 %vm1041_vm0, %v16640_v37  ;;  %v3936_v44 = vor.u32 %v3935_v61, %v3931_v41  ;;  %v16645_v61 = vld [vmem:[#allocation14_spill] sm:$0xff] }
 0x532   : > { %v13688_v14 = vadd.f32 %v4128_v48, %v3533_v36  ;;  %v3923_v36 = vshll.u32 %v3598_v33, 16 }
 0x534   : > { %v3925_v37 = vrot.slane %v3923_v36, 5 }
 0x535   : > { %v3464_v21 = vpop.f32.mrf.mxu2  ;;  %v13700_v9 = vpop.f32.mrf.mxu0 }
 0x536   : > { %v3534_v57 = vadd.f32 %v3464_v21, %v3236_v54  ;;  %v3171_v53 = vpop.f32.mrf.mxu1  ;;  %v4020_v54 = vunpack.c.l.b16 %v3908_v13  ;;  %v3939_v21 = vshll.u32 %v13709_v23, 16  ;;  %v3937_v13 = vrot.slane %v3936_v44, 4 }
 0x537   : > { %v3238_v10 = vadd.f32 %v3171_v53, %v2807_v7  ;;  %v3926_v53 = vor.u32 %v3925_v37, %v3922_v34  ;;  %v3957_v34 = vshrl.u32 %v13721_v56, 16 }
 0x538   : > { %11167 = vmatmul.msk.bf16.gmra.mxu0 %vm1041_vm0, %v16642_v25  ;;  %v4040_v5 = vpack.c.b16 %v4021_v0, %v4020_v54  ;;  %v2812_v25 = vadd.f32 %v13657_v60, %v16645_v61 }
 0x539   : > { %v4130_v30 = vpop.f32.mrf.mxu3  ;;  %v3927_v36 = vrot.slane %v3926_v53, 4  ;;  %v11840_v53 = vld [vmem:[#allocation2 + $0xa8] sm:$0xff]  ;;  %v3959_v61 = vrot.slane %v3957_v34, 4 }
 0x53a   : > { %v13704_v48 = vadd.f32 %v4130_v30, %v3534_v57  ;;  %11102 = vmatmul.msk.bf16.gmra.mxu2 %vm1041_vm0, %v11839_v16  ;;  %v16644_v30 = vld [vmem:[#allocation16_spill] sm:$0xff]  ;;  %v3941_v16 = vrot.slane %v3939_v21, 5 }
 0x53d   : > { %v3467_v19 = vpop.f32.mrf.mxu2  ;;  %v13714_v50 = vpop.f32.mrf.mxu0 }
 0x53e   : > { %11130 = vmatmul.msk.bf16.gmra.mxu3 %vm1041_vm0, %v4040_v5  ;;  %v3535_v52 = vadd.f32 %v3467_v19, %v3237_v45  ;;  %v3174_v7 = vpop.f32.mrf.mxu1  ;;  %v3942_v45 = vsel %vm12668_vm3, %v3937_v13, %v3941_v16  ;;  %v3953_v5 = vshll.u32 %v13721_v56, 16  ;;  %v3944_v19 = vshrl.u32 %v3601_v42, 16  ;;  %v13733_v13 = vld [vmem:[#allocation2 + $0xbc] sm:$0x1] }
 0x53f   : > { %v3239_v33 = vadd.f32 %v3174_v7, %v2810_v1  ;;  %v3932_v1 = vsel %vm12668_vm3, %v3927_v36, %v3931_v41  ;;  %v4023_v21 = vunpack.c.l.b16 %v3942_v45  ;;  %v16648_v45 = vld [vmem:[#allocation15_spill] sm:$0xff] }
 0x540   : > { %v3955_v16 = vrot.slane %v3953_v5, 5 }
 0x541   : > { %v4133_v57 = vpop.f32.mrf.mxu3  ;;  %11011 = vmatmul.msk.bf16.gmra.mxu1 %vm1041_vm0, %v16644_v30  ;;  %v16647_v30 = vld [vmem:[#allocation8_spill] sm:$0xff] }
 0x542   : > { %v13717_v0 = vadd.f32 %v4133_v57, %v3535_v52  ;;  %v3947_v52 = vshll.u32 %v3601_v42, 16  ;;  %v3963_v42 = vshll.u32 %v13733_v13, 16 }
 0x544   : > { %v3949_v41 = vrot.slane %v3947_v52, 5 }
 0x545   : > { %v3469_v54 = vpop.f32.mrf.mxu2  ;;  %v13729_v44 = vpop.f32.mrf.mxu0 }
 0x546   : > { %v3536_v37 = vadd.f32 %v3469_v54, %v3238_v10  ;;  %v3176_v47 = vpop.f32.mrf.mxu1  ;;  %v4022_v10 = vunpack.c.l.b16 %v3932_v1  ;;  %v3946_v54 = vrot.slane %v3944_v19, 4 }
 0x547   : > { %v3240_v7 = vadd.f32 %v3176_v47, %v2812_v25  ;;  %v2815_v25 = vadd.f32 %v13671_v49, %v16648_v45  ;;  %v13750_v49 = vld [vmem:[#allocation2 + $0xc4] sm:$0xf] }
 0x548   : > { %11168 = vmatmul.msk.bf16.gmra.mxu0 %vm1041_vm0, %v16647_v30  ;;  %v4041_v36 = vpack.c.b16 %v4023_v21, %v4022_v10  ;;  %v3950_v5 = vor.u32 %v3949_v41, %v3946_v54  ;;  %v3965_v30 = vrot.slane %v3963_v42, 5  ;;  %v3604_v21 = vld [vmem:[#allocation2 + $0xc0] sm:$0xf]  ;;  %v3977_v54 = vshll.u32 %v13750_v49, 16  ;;  %v16649_v42 = vld [vmem:[#allocation17_spill] sm:$0xff] }
 0x549   : > { %v4135_v57 = vpop.f32.mrf.mxu3  ;;  %v3981_v41 = vshrl.u32 %v13750_v49, 16  ;;  %v2817_v45 = vadd.f32 %v13686_v40, %v16649_v42  ;;  %v13767_v42 = vld [vmem:[#allocation2 + $0xc8] sm:$0x1] }
 0x54a   : > { %v13735_v60 = vadd.f32 %v4135_v57, %v3536_v37  ;;  %11103 = vmatmul.msk.bf16.gmra.mxu2 %vm1041_vm0, %v11840_v53  ;;  %v3960_v37 = vor.u32 %v3959_v61, %v3955_v16  ;;  %v3951_v10 = vrot.slane %v3950_v5, 4  ;;  %v3968_v61 = vshrl.u32 %v3604_v21, 16 }
 0x54b   : > { %v3979_v62 = vrot.slane %v3977_v54, 5  ;;  %v3983_v51 = vrot.slane %v3981_v41, 4 }
 0x54c   : > { %16646 = vst [vmem:[#allocation19_spill] sm:$0xff] %v13735_v60  ;;  %v3961_v52 = vrot.slane %v3960_v37, 4 }
 0x54d   : > { %v3472_v47 = vpop.f32.mrf.mxu2  ;;  %v13744_v60 = vpop.f32.mrf.mxu0 }
 0x54e   : > { %11131 = vmatmul.msk.bf16.gmra.mxu3 %vm1041_vm0, %v4041_v36  ;;  %v3537_v57 = vadd.f32 %v3472_v47, %v3239_v33  ;;  %v3179_v1 = vpop.f32.mrf.mxu1  ;;  %v3966_v33 = vsel %vm12668_vm3, %v3961_v52, %v3965_v30  ;;  %v3971_v36 = vshll.u32 %v3604_v21, 16  ;;  %v3970_v52 = vrot.slane %v3968_v61, 4 }
 0x54f   : > { %v3241_v34 = vadd.f32 %v3179_v1, %v2815_v25  ;;  %v4025_v5 = vunpack.c.l.b16 %v3966_v33  ;;  %v16652_v33 = vld [vmem:[#allocation18_spill] sm:$0xff] }
 0x550   : > { %v3973_v21 = vrot.slane %v3971_v36, 5  ;;  %v4934_v36 = vld [vmem:[#allocation2 + $0x18] sm:$0xf] }
 0x551   : > { %v4138_v53 = vpop.f32.mrf.mxu3  ;;  %11012 = vmatmul.msk.bf16.gmra.mxu1 %vm1041_vm0, %v13446_v38 }
 0x552   : > { %v13746_v19 = vadd.f32 %v4138_v53, %v3537_v57  ;;  %v3956_v57 = vsel %vm12668_vm3, %v3951_v10, %v3955_v16  ;;  %v11841_v53 = vld [vmem:[#allocation2 + $0xb4] sm:$0xff]  ;;  %v3974_v16 = vor.u32 %v3973_v21, %v3970_v52  ;;  %v3984_v10 = vor.u32 %v3983_v51, %v3979_v62 }
 0x553   : > { %v4024_v40 = vunpack.c.l.b16 %v3956_v57  ;;  %v4983_v51 = vshrl.u32 %v4934_v36, 16 }
 0x555   : > { %v3474_v25 = vpop.f32.mrf.mxu2  ;;  %v13758_v38 = vpop.f32.mrf.mxu0 }
 0x556   : > { %v3538_v47 = vadd.f32 %v3474_v25, %v3240_v7  ;;  %v3181_v37 = vpop.f32.mrf.mxu1  ;;  %v4042_v7 = vpack.c.b16 %v4025_v5, %v4024_v40  ;;  %v3975_v5 = vrot.slane %v3974_v16, 4  ;;  %v4985_v16 = vrot.slane %v4983_v51, 4 }
 0x557   : > { %v3242_v1 = vadd.f32 %v3181_v37, %v2817_v45  ;;  %v2820_v45 = vadd.f32 %v13700_v9, %v16652_v33  ;;  %v4986_v9 = vshll.u32 %v4934_v36, 16 }
 0x558   : > { %11169 = vmatmul.msk.bf16.gmra.mxu0 %vm1041_vm0, %v16651_v24  ;;  %v3987_v24 = vshll.u32 %v13767_v42, 16  ;;  %v3980_v40 = vsel %vm12668_vm3, %v3975_v5, %v3979_v62 }
 0x559   : > { %v4140_v30 = vpop.f32.mrf.mxu3  ;;  %v4026_v35 = vunpack.c.l.b16 %v3980_v40 }
 0x55a   : > { %v13762_v43 = vadd.f32 %v4140_v30, %v3538_v47  ;;  %11104 = vmatmul.msk.bf16.gmra.mxu2 %vm1041_vm0, %v11841_v53  ;;  %v13775_v47 = vld [vmem:[#allocation2 + $0x1c] sm:$0xf]  ;;  %v3985_v30 = vrot.slane %v3984_v10, 4  ;;  %v3989_v21 = vrot.slane %v3987_v24, 5  ;;  %v16653_v10 = vld [vmem:[#allocation20_spill] sm:$0xff] }
 0x55b   : > { %v4996_v52 = vshrl.u32 %v13775_v47, 16  ;;  %v2822_v33 = vadd.f32 %v13714_v50, %v16653_v10 }
 0x55c   : > { %16650 = vst [vmem:[#allocation11_spill] sm:$0xff] %v13762_v43 }
 0x55d   : > { %v3477_v61 = vpop.f32.mrf.mxu2  ;;  %v13772_v41 = vpop.f32.mrf.mxu0 }
 0x55e   : > { %11132 = vmatmul.msk.bf16.gmra.mxu3 %vm1041_vm0, %v4042_v7  ;;  %v3539_v54 = vadd.f32 %v3477_v61, %v3241_v34  ;;  %v3184_v25 = vpop.f32.mrf.mxu1  ;;  %v4992_v34 = vshll.u32 %v13775_v47, 16  ;;  %v3990_v7 = vsel %vm12668_vm3, %v3985_v30, %v3989_v21  ;;  %v4988_v61 = vrot.slane %v4986_v9, 5  ;;  %v4936_v30 = vld [vmem:[#allocation2 + $0x20] sm:$0x1]  ;;  %v16656_v21 = vld [vmem:[#allocation9_spill] sm:$0xff] }
 0x55f   : > { %v3243_v37 = vadd.f32 %v3184_v25, %v2820_v45  ;;  %v4027_v62 = vunpack.c.l.b16 %v3990_v7 }
 0x560   : > { %v4989_v50 = vor.u32 %v4988_v61, %v4985_v16 }
 0x561   : > { %v4143_v57 = vpop.f32.mrf.mxu3  ;;  %11013 = vmatmul.msk.bf16.gmra.mxu1 %vm1041_vm0, %v13467_v18  ;;  %v4998_v18 = vrot.slane %v4996_v52, 4  ;;  %v5666_v52 = vrot.slane %v13775_v47, 5  ;;  %v13804_v47 = vld [vmem:[#allocation2 + $0x28] sm:$0xf] }
 0x562   : > { %v13777_v53 = vadd.f32 %v4143_v57, %v3539_v54  ;;  %v4994_v54 = vrot.slane %v4992_v34, 5  ;;  %v5002_v34 = vshll.u32 %v4936_v30, 16  ;;  %v4990_v10 = vrot.slane %v4989_v50, 4 }
 0x564   : > { %v4999_v9 = vor.u32 %v4998_v18, %v4994_v54  ;;  %v4937_v18 = vld [vmem:[#allocation2 + $0x24] sm:$0xf] }
 0x565   : > { %v3479_v45 = vpop.f32.mrf.mxu2  ;;  %v4523_v57 = vpop.f32.mrf.mxu0 }
 0x566   : > { %v3540_v36 = vadd.f32 %v3479_v45, %v3242_v1  ;;  %v3186_v25 = vpop.f32.mrf.mxu1  ;;  %v13790_v24 = vadd.f32 %v4523_v57, %v13614_v29  ;;  %v4043_v1 = vpack.c.b16 %v4027_v62, %v4026_v35  ;;  %v16657_v29 = vld [vmem:[#allocation22_spill] sm:$0xff]  ;;  %v5600_v57 = vld [vmem:[#allocation2 + $0x18] sm:$0xe]  ;;  %v5004_v35 = vrot.slane %v5002_v34, 5 }
 0x567   : > { %v3244_v43 = vadd.f32 %v3186_v25, %v2822_v33  ;;  %v2825_v40 = vadd.f32 %v13729_v44, %v16657_v29  ;;  %v5000_v33 = vrot.slane %v4999_v9, 4  ;;  %v5668_v44 = vrot.slane %v5666_v52, 4 }
 0x568   : > { %16654 = vst [vmem:[#allocation7_spill] sm:$0xff] %v13790_v24  ;;  %11170 = vmatmul.msk.bf16.gmra.mxu0 %vm1041_vm0, %v16656_v21  ;;  %v11298_v50 = vrot.slane %v5600_v57, 9  ;;  %v5007_v9 = vshrl.u32 %v4937_v18, 16  ;;  %v5020_v34 = vshrl.u32 %v13804_v47, 16  ;;  %v5010_v29 = vshll.u32 %v4937_v18, 16  ;;  %v16660_v24 = vld [vmem:[#allocation13_spill] sm:$0xff] }
 0x569   : > { %v4145_v5 = vpop.f32.mrf.mxu3  ;;  %v5005_v21 = vsel %vm12668_vm3, %v5000_v33, %v5004_v35  ;;  %v4939_v33 = vld [vmem:[#allocation2 + $0x2c] sm:$0x1] }
 0x56a   : > { %v13792_v51 = vadd.f32 %v4145_v5, %v3540_v36  ;;  %11105 = vmatmul.msk.bf16.gmra.mxu2 %vm1041_vm0, %v11842_v46  ;;  %v11849_v46 = vld [vmem:[#allocation2 + $0x18] sm:$0xff]  ;;  %v5009_v35 = vrot.slane %v5007_v9, 4 }
 0x56c   : > { %16655 = vst [vmem:[#allocation12_spill] sm:$0xff] %v13792_v51  ;;  %v5022_v51 = vrot.slane %v5020_v34, 4  ;;  %v16661_v34 = vld [vmem:[#allocation24_spill] sm:$0xff] }
 0x56d   : > { %v3482_v7 = vpop.f32.mrf.mxu2  ;;  %v4525_v25 = vpop.f32.mrf.mxu0 }
 0x56e   : > { %11133 = vmatmul.msk.bf16.gmra.mxu3 %vm1041_vm0, %v4043_v1  ;;  %v3541_v45 = vadd.f32 %v3482_v7, %v3243_v37  ;;  %v3189_v36 = vpop.f32.mrf.mxu1  ;;  %v13802_v61 = vadd.f32 %v4525_v25, %v13624_v26  ;;  %v4995_v37 = vsel %vm12668_vm3, %v4990_v10, %v4994_v54  ;;  %v5669_v26 = vrot.slane %v4936_v30, 5 }
 0x56f   : > { %v3245_v16 = vadd.f32 %v3189_v36, %v2825_v40  ;;  %v5016_v1 = vshll.u32 %v13804_v47, 16  ;;  %v5371_v40 = vunpack.c.l.b16 %v4995_v37  ;;  %v5372_v7 = vunpack.c.l.b16 %v5005_v21  ;;  %v16659_v36 = vld [vmem:[#allocation23_spill] sm:$0xff] }
 0x570   : > { %16658 = vst [vmem:[#allocation16_spill] sm:$0xff] %v13802_v61  ;;  %v2827_v25 = vadd.f32 %v13744_v60, %v16659_v36  ;;  %v5667_v10 = vsel %vm12694_vm8, %v11298_v50, %v5666_v52  ;;  %v5026_v60 = vshll.u32 %v4939_v33, 16 }
 0x571   : > { %v4148_v62 = vpop.f32.mrf.mxu3  ;;  %11254 = vmatmul.msk.bf16.vlgmr.msrb.gmra.mxu1 %vm1041_vm0, %v11849_v46  ;;  %v5403_v61 = vpack.c.b16 %v5372_v7, %v5371_v40  ;;  %v4940_v40 = vld [vmem:[#allocation2 + $0x30] sm:$0xf] }
 0x572   : > { %v13806_v5 = vadd.f32 %v4148_v62, %v3541_v45  ;;  %v5670_v45 = vsel %vm12694_vm8, %v5668_v44, %v5669_v26  ;;  %v5018_v62 = vrot.slane %v5016_v1, 5  ;;  %v5012_v44 = vrot.slane %v5010_v29, 5  ;;  %v5601_v29 = vld [vmem:[#allocation2 + $0x24] sm:$0xe] }
 0x573   : > { %v5782_v21 = vunpack.c.l.b16 %v5670_v45  ;;  %v5028_v1 = vrot.slane %v5026_v60, 5 }
 0x574   : > { %v5023_v52 = vor.u32 %v5022_v51, %v5018_v62  ;;  %v5013_v9 = vor.u32 %v5012_v44, %v5009_v35  ;;  %v5676_v44 = vrot.slane %v4939_v33, 5 }
 0x575   : > { %v3484_v54 = vpop.f32.mrf.mxu2  ;;  %v4528_v46 = vpop.f32.mrf.mxu0 }
 0x576   : > { %v3542_v30 = vadd.f32 %v3484_v54, %v3244_v43  ;;  %v3191_v57 = vpop.f32.mrf.mxu1  ;;  %v13822_v37 = vadd.f32 %v4528_v46, %v13634_v22  ;;  %v5781_v43 = vunpack.c.l.b16 %v5667_v10  ;;  %v2830_v22 = vadd.f32 %v13758_v38, %v16661_v34  ;;  %v13833_v10 = vld [vmem:[#allocation2 + $0x34] sm:$0xf]  ;;  %v16662_v34 = vld [vmem:[#allocation25_spill] sm:$0xff] }
 0x577   : > { %v3246_v18 = vadd.f32 %v3191_v57, %v2827_v25  ;;  %v11850_v57 = vld [vmem:[#allocation2 + $0x24] sm:$0xff]  ;;  %v5014_v46 = vrot.slane %v5013_v9, 4  ;;  %v5040_v60 = vshll.u32 %v13833_v10, 16 }
 0x578   : > { %11171 = vmatmul.msk.bf16.gmra.mxu0 %vm1041_vm0, %v16660_v24  ;;  %v5813_v50 = vpack.c.b16 %v5782_v21, %v5781_v43  ;;  %v5673_v24 = vrot.slane %v13804_v47, 5  ;;  %v11299_v21 = vrot.slane %v5601_v29, 9  ;;  %v5034_v47 = vshll.u32 %v4940_v40, 16 }
 0x579   : > { %v4150_v26 = vpop.f32.mrf.mxu3  ;;  %v5044_v43 = vshrl.u32 %v13833_v10, 16 }
 0x57a   : > { %v13824_v36 = vadd.f32 %v4150_v26, %v3542_v30  ;;  %11282 = vmatmul.msk.bf16.vlgmr.msra.gmra.mxu2 %vm1041_vm0, %v5403_v61  ;;  %v5024_v30 = vrot.slane %v5023_v52, 4  ;;  %v5019_v52 = vsel %vm12668_vm3, %v5014_v46, %v5018_v62  ;;  %v5674_v9 = vsel %vm12694_vm8, %v11299_v21, %v5673_v24  ;;  %v4942_v62 = vld [vmem:[#allocation2 + $0x38] sm:$0x1] }
 0x57b   : > { %v5036_v29 = vrot.slane %v5034_v47, 5 }
 0x57c   : > { %v5029_v35 = vsel %vm12668_vm3, %v5024_v30, %v5028_v1 }
 0x57d   : > { %v3487_v45 = vpop.f32.mrf.mxu2  ;;  %v4530_v54 = vpop.f32.mrf.mxu0 }
 0x57e   : > { %11326 = vmatmul.msk.bf16.vlgmr.msra.gmra.mxu3 %vm1041_vm0, %v5813_v50  ;;  %v3543_v7 = vadd.f32 %v3487_v45, %v3245_v16  ;;  %v3194_v25 = vpop.f32.mrf.mxu1  ;;  %v13836_v61 = vadd.f32 %v4530_v54, %v13648_v58  ;;  %v5031_v16 = vshrl.u32 %v4940_v40, 16  ;;  %v5675_v58 = vrot.slane %v5673_v24, 4 }
 0x57f   : > { %v3247_v51 = vadd.f32 %v3194_v25, %v2830_v22  ;;  %v5374_v50 = vunpack.c.l.b16 %v5029_v35  ;;  %v2832_v22 = vadd.f32 %v13772_v41, %v16662_v34  ;;  %v5042_v40 = vrot.slane %v5040_v60, 5  ;;  %v16664_v41 = vld [vmem:[#allocation21_spill] sm:$0xff]  ;;  %v5602_v34 = vld [vmem:[#allocation2 + $0x30] sm:$0xe] }
 0x580   : > { %v5677_v33 = vsel %vm12694_vm8, %v5675_v58, %v5676_v44  ;;  %v5033_v1 = vrot.slane %v5031_v16, 4  ;;  %v5783_v44 = vunpack.c.l.b16 %v5674_v9  ;;  %v5680_v58 = vrot.slane %v13833_v10, 5 }
 0x581   : > { %v4153_v38 = vpop.f32.mrf.mxu3  ;;  %11255 = vmatmul.msk.bf16.gmra.mxu1 %vm1041_vm0, %v11850_v57  ;;  %v5373_v57 = vunpack.c.l.b16 %v5019_v52  ;;  %v5784_v24 = vunpack.c.l.b16 %v5677_v33  ;;  %v13862_v52 = vld [vmem:[#allocation2 + $0x40] sm:$0xf] }
 0x582   : > { %v13840_v26 = vadd.f32 %v4153_v38, %v3543_v7  ;;  %v5046_v7 = vrot.slane %v5044_v43, 4  ;;  %v5037_v47 = vor.u32 %v5036_v29, %v5033_v1  ;;  %v5064_v10 = vshll.u32 %v13862_v52, 16 }
 0x583   : > { %v5404_v21 = vpack.c.b16 %v5374_v50, %v5373_v57  ;;  %v5814_v43 = vpack.c.b16 %v5784_v24, %v5783_v44  ;;  %v11300_v57 = vrot.slane %v5602_v34, 9  ;;  %v5682_v24 = vrot.slane %v5680_v58, 4 }
 0x584   : > { %v5047_v60 = vor.u32 %v5046_v7, %v5042_v40  ;;  %v5038_v50 = vrot.slane %v5037_v47, 4  ;;  %v11851_v7 = vld [vmem:[#allocation2 + $0x30] sm:$0xff]  ;;  %v13878_v44 = vrot.slane %v5064_v10, 5 }
 0x585   : > { %v3489_v45 = vpop.f32.mrf.mxu2  ;;  %v4533_v30 = vpop.f32.mrf.mxu0 }
 0x586   : > { %v3544_v25 = vadd.f32 %v3489_v45, %v3246_v18  ;;  %v3196_v54 = vpop.f32.mrf.mxu1  ;;  %v13854_v38 = vadd.f32 %v4533_v30, %v13659_v3  ;;  %v5050_v18 = vshll.u32 %v4942_v62, 16  ;;  %v5048_v9 = vrot.slane %v5047_v60, 4 }
 0x587   : > { %v3248_v46 = vadd.f32 %v3196_v54, %v2832_v22  ;;  %v5068_v54 = vshrl.u32 %v13862_v52, 16 }
 0x588   : > { %11172 = vmatmul.msk.bf16.gmra.mxu0 %vm1041_vm0, %v16664_v41  ;;  %v5052_v33 = vrot.slane %v5050_v18, 5  ;;  %v5681_v18 = vsel %vm12694_vm8, %v11300_v57, %v5680_v58 }
 0x589   : > { %v4155_v35 = vpop.f32.mrf.mxu3  ;;  %v5070_v41 = vrot.slane %v5068_v54, 4 }
 0x58a   : > { %v13856_v16 = vadd.f32 %v4155_v35, %v3544_v25  ;;  %11283 = vmatmul.msk.bf16.gmra.mxu2 %vm1041_vm0, %v5404_v21  ;;  %v5683_v35 = vrot.slane %v4942_v62, 5 }
 0x58c   : > { %16663 = vst [vmem:[#allocation14_spill] sm:$0xff] %v13856_v16  ;;  %v5684_v62 = vsel %vm12694_vm8, %v5682_v24, %v5683_v35  ;;  %v4375_v24 = vrot.slane %v13663_v6, 5 }
 0x58d   : > { %v3492_v3 = vpop.f32.mrf.mxu2  ;;  %v4535_v25 = vpop.f32.mrf.mxu0 }
 0x58e   : > { %11327 = vmatmul.msk.bf16.gmra.mxu3 %vm1041_vm0, %v5814_v43  ;;  %v3545_v22 = vadd.f32 %v3492_v3, %v3247_v51  ;;  %v3199_v45 = vpop.f32.mrf.mxu1  ;;  %v13867_v29 = vadd.f32 %v4535_v25, %v13675_v63  ;;  %v5043_v51 = vsel %vm12668_vm3, %v5038_v50, %v5042_v40  ;;  %v4943_v63 = vld [vmem:[#allocation2 + $0x3c] sm:$0xf]  ;;  %v5786_v25 = vunpack.c.l.b16 %v5684_v62 }
 0x58f   : > { %v3249_v1 = vadd.f32 %v3199_v45, %v13437_v15  ;;  %v5053_v15 = vsel %vm12668_vm3, %v5048_v9, %v5052_v33  ;;  %v5375_v47 = vunpack.c.l.b16 %v5043_v51  ;;  %v5055_v3 = vshrl.u32 %v4943_v63, 16  ;;  %v4945_v45 = vld [vmem:[#allocation2 + $0x44] sm:$0x1] }
 0x590   : > { %v5376_v60 = vunpack.c.l.b16 %v5053_v15  ;;  %v5058_v34 = vshll.u32 %v4943_v63, 16  ;;  %v5785_v33 = vunpack.c.l.b16 %v5681_v18  ;;  %v4378_v51 = vrot.slane %v13679_v11, 5  ;;  %v11852_v11 = vld [vmem:[#allocation2 + $0x3c] sm:$0xff] }
 0x591   : > { %v4158_v30 = vpop.f32.mrf.mxu3  ;;  %11256 = vmatmul.msk.bf16.gmra.mxu1 %vm1041_vm0, %v11851_v7  ;;  %v5071_v7 = vor.u32 %v5070_v41, %v13878_v44  ;;  %v5687_v15 = vrot.slane %v13862_v52, 5  ;;  %v4237_v41 = vld [vmem:[#allocation2 + $0x9c] sm:$0xe] }
 0x592   : > { %v13871_v21 = vadd.f32 %v4158_v30, %v3545_v22  ;;  %v5405_v54 = vpack.c.b16 %v5376_v60, %v5375_v47  ;;  %v5057_v30 = vrot.slane %v5055_v3, 4  ;;  %v5060_v57 = vrot.slane %v5058_v34, 5  ;;  %v13897_v3 = vld [vmem:[#allocation2 + $0x4c] sm:$0xf] }
 0x593   : > { %v5072_v35 = vrot.slane %v5071_v7, 4  ;;  %v5690_v7 = vrot.slane %v4945_v45, 5 }
 0x594   : > { %v5061_v47 = vor.u32 %v5060_v57, %v5057_v30  ;;  %v5092_v30 = vshrl.u32 %v13897_v3, 16  ;;  %v2837_v57 = vadd.f32 %v13423_v27, %v13454_v17 }
 0x595   : > { %v3494_v43 = vpop.f32.mrf.mxu2  ;;  %v4538_v50 = vpop.f32.mrf.mxu0 }
 0x596   : > { %v3546_v22 = vadd.f32 %v3494_v43, %v3248_v46  ;;  %v3201_v40 = vpop.f32.mrf.mxu1  ;;  %v13885_v9 = vadd.f32 %v4538_v50, %v13688_v14  ;;  %v5074_v46 = vshll.u32 %v4945_v45, 16  ;;  %v5815_v14 = vpack.c.b16 %v5786_v25, %v5785_v33 }
 0x597   : > { %v4377_v43 = vrot.slane %v4375_v24, 4  ;;  %v11146_v33 = vrot.slane %v4237_v41, 9  ;;  %v5689_v25 = vrot.slane %v5687_v15, 4 }
 0x598   : > { %11173 = vmatmul.msk.bf16.gmra.mxu0 %vm1041_vm0, %v13439_v4  ;;  %v5076_v60 = vrot.slane %v5074_v46, 5 }
 0x599   : > { %v4160_v10 = vpop.f32.mrf.mxu3  ;;  %v4376_v46 = vsel %vm12694_vm8, %v11146_v33, %v4375_v24  ;;  %v5094_v24 = vrot.slane %v5092_v30, 4 }
 0x59a   : > { %v13888_v58 = vadd.f32 %v4160_v10, %v3546_v22  ;;  %11284 = vmatmul.msk.bf16.gmra.mxu2 %vm1041_vm0, %v5405_v54  ;;  %v5077_v52 = vsel %vm12668_vm3, %v5072_v35, %v5076_v60  ;;  %v5603_v22 = vld [vmem:[#allocation2 + $0x3c] sm:$0xe]  ;;  %v4946_v54 = vld [vmem:[#allocation2 + $0x48] sm:$0xf]  ;;  %v4430_v27 = vunpack.c.l.b16 %v4376_v46 }
 0x59b   : > { %v5079_v60 = vshrl.u32 %v4946_v54, 16  ;;  %v5082_v17 = vshll.u32 %v4946_v54, 16 }
 0x59c   : > { %16665 = vst [vmem:[#allocation8_spill] sm:$0xff] %v13888_v58 }
 0x59d   : > { %v3497_v63 = vpop.f32.mrf.mxu2  ;;  %v4540_v62 = vpop.f32.mrf.mxu0  ;;  %v5084_v54 = vrot.slane %v5082_v17, 5  ;;  %v11853_v17 = vld [vmem:[#allocation2 + $0x48] sm:$0xff] }
 0x59e   : > { %11328 = vmatmul.msk.bf16.gmra.mxu3 %vm1041_vm0, %v5815_v14  ;;  %v3547_v4 = vadd.f32 %v3497_v63, %v3249_v1  ;;  %v3204_v18 = vpop.f32.mrf.mxu1  ;;  %v13901_v34 = vadd.f32 %v4540_v62, %v13704_v48  ;;  %v4379_v1 = vsel %vm12694_vm8, %v4377_v43, %v4378_v51  ;;  %v5088_v48 = vshll.u32 %v13897_v3, 16 }
 0x59f   : > { %v3251_v6 = vadd.f32 %v3204_v18, %v13469_v12  ;;  %v5062_v12 = vrot.slane %v5061_v47, 4  ;;  %v11301_v14 = vrot.slane %v5603_v22, 9  ;;  %v4431_v35 = vunpack.c.l.b16 %v4379_v1 }
 0x5a0   : > { %v5378_v51 = vunpack.c.l.b16 %v5077_v52  ;;  %v3250_v63 = vadd.f32 %v3201_v40, %v2837_v57  ;;  %v5691_v47 = vsel %vm12694_vm8, %v5689_v25, %v5690_v7  ;;  %v13923_v18 = vrot.slane %v5088_v48, 5  ;;  %v4948_v25 = vld [vmem:[#allocation2 + $0x50] sm:$0x1] }
 0x5a1   : > { %v4163_v50 = vpop.f32.mrf.mxu3  ;;  %11257 = vmatmul.msk.bf16.gmra.mxu1 %vm1041_vm0, %v11852_v11  ;;  %v5067_v45 = vsel %vm12668_vm3, %v5062_v12, %v13878_v44  ;;  %v5688_v41 = vsel %vm12694_vm8, %v11301_v14, %v5687_v15  ;;  %v4450_v40 = vpack.c.b16 %v4431_v35, %v4430_v27  ;;  %v5788_v52 = vunpack.c.l.b16 %v5691_v47 }
 0x5a2   : > { %v13907_v10 = vadd.f32 %v4163_v50, %v3547_v4  ;;  %v5377_v22 = vunpack.c.l.b16 %v5067_v45  ;;  %v5787_v33 = vunpack.c.l.b16 %v5688_v41  ;;  %v4382_v1 = vrot.slane %v13692_v20, 5  ;;  %v4238_v20 = vld [vmem:[#allocation2 + $0xa8] sm:$0xe] }
 0x5a3   : > { %v5081_v12 = vrot.slane %v5079_v60, 4  ;;  %v5095_v48 = vor.u32 %v5094_v24, %v13923_v18  ;;  %v5098_v30 = vshll.u32 %v4948_v25, 16  ;;  %v5694_v57 = vrot.slane %v13897_v3, 5 }
 0x5a4   : > { %v5406_v50 = vpack.c.b16 %v5378_v51, %v5377_v22  ;;  %v4384_v46 = vrot.slane %v4382_v1, 4  ;;  %v13936_v51 = vld [vmem:[#allocation2 + $0x58] sm:$0xf]  ;;  %v4385_v60 = vrot.slane %v13709_v23, 5  ;;  %v11147_v22 = vrot.slane %v4238_v20, 9 }
 0x5a5   : > { %v3499_v4 = vpop.f32.mrf.mxu2  ;;  %v4543_v11 = vpop.f32.mrf.mxu0  ;;  %v5085_v35 = vor.u32 %v5084_v54, %v5081_v12  ;;  %v5096_v45 = vrot.slane %v5095_v48, 4  ;;  %v5100_v3 = vrot.slane %v5098_v30, 5  ;;  %v5696_v24 = vrot.slane %v5694_v57, 4 }
 0x5a6   : > { %v3548_v62 = vadd.f32 %v3499_v4, %v3250_v63  ;;  %v3206_v43 = vpop.f32.mrf.mxu1  ;;  %v13926_v44 = vadd.f32 %v4543_v11, %v13717_v0  ;;  %v5816_v0 = vpack.c.b16 %v5788_v52, %v5787_v33  ;;  %v5604_v4 = vld [vmem:[#allocation2 + $0x48] sm:$0xe]  ;;  %v5112_v52 = vshll.u32 %v13936_v51, 16 }
 0x5a7   : > { %v5086_v23 = vrot.slane %v5085_v35, 4  ;;  %v2842_v33 = vadd.f32 %v13471_v55, %v13477_v32  ;;  %v4383_v12 = vsel %vm12694_vm8, %v11147_v22, %v4382_v1  ;;  %v11302_v54 = vrot.slane %v5604_v4, 9 }
 0x5a8   : > { %11174 = vmatmul.msk.bf16.gmra.mxu0 %vm1041_vm0, %v4450_v40  ;;  %v4386_v40 = vsel %vm12694_vm8, %v4384_v46, %v4385_v60  ;;  %v4432_v32 = vunpack.c.l.b16 %v4383_v12 }
 0x5a9   : > { %v4165_v15 = vpop.f32.mrf.mxu3  ;;  %v5091_v30 = vsel %vm12668_vm3, %v5086_v23, %v13923_v18  ;;  %v3252_v20 = vadd.f32 %v3206_v43, %v2842_v33  ;;  %v5695_v4 = vsel %vm12694_vm8, %v11302_v54, %v5694_v57  ;;  %v4951_v43 = vld [vmem:[#allocation2 + $0x5c] sm:$0x1]  ;;  %v4389_v57 = vrot.slane %v13721_v56, 5  ;;  %v5605_v54 = vld [vmem:[#allocation2 + $0x54] sm:$0xe] }
 0x5aa   : > { %v13929_v7 = vadd.f32 %v4165_v15, %v3548_v62  ;;  %11285 = vmatmul.msk.bf16.gmra.mxu2 %vm1041_vm0, %v5406_v50  ;;  %v4949_v62 = vld [vmem:[#allocation2 + $0x54] sm:$0xf]  ;;  %v5697_v50 = vrot.slane %v4948_v25, 5  ;;  %v13960_v25 = vrot.slane %v5112_v52, 5  ;;  %v5379_v60 = vunpack.c.l.b16 %v5091_v30  ;;  %v4952_v30 = vld [vmem:[#allocation2 + $0x60] sm:$0xf] }
 0x5ab   : > { %v5103_v48 = vshrl.u32 %v4949_v62, 16  ;;  %v5122_v23 = vshll.u32 %v4951_v43, 16  ;;  %v4392_v33 = vrot.slane %v13733_v13, 5  ;;  %v4391_v56 = vrot.slane %v4389_v57, 4  ;;  %v11854_v13 = vld [vmem:[#allocation2 + $0x54] sm:$0xff] }
 0x5ac   : > { %16666 = vst [vmem:[#allocation15_spill] sm:$0xff] %v13929_v7  ;;  %v5698_v46 = vsel %vm12694_vm8, %v5696_v24, %v5697_v50 }
 0x5ad   : > { %v3502_v14 = vpop.f32.mrf.mxu2  ;;  %v13938_v47 = vpop.f32.mrf.mxu0  ;;  %v5790_v24 = vunpack.c.l.b16 %v5698_v46 }
 0x5ae   : > { %11329 = vmatmul.msk.bf16.gmra.mxu3 %vm1041_vm0, %v5816_v0  ;;  %v3549_v63 = vadd.f32 %v3502_v14, %v3251_v6  ;;  %v3209_v41 = vpop.f32.mrf.mxu1  ;;  %v5116_v6 = vshrl.u32 %v13936_v51, 16  ;;  %v4433_v0 = vunpack.c.l.b16 %v4386_v40  ;;  %v5106_v14 = vshll.u32 %v4949_v62, 16 }
 0x5af   : > { %v3253_v27 = vadd.f32 %v3209_v41, %v13490_v8  ;;  %v5101_v8 = vsel %vm12668_vm3, %v5096_v45, %v5100_v3 }
 0x5b0   : > { %v5380_v35 = vunpack.c.l.b16 %v5101_v8  ;;  %v5118_v45 = vrot.slane %v5116_v6, 4  ;;  %v4451_v3 = vpack.c.b16 %v4433_v0, %v4432_v32  ;;  %v5108_v62 = vrot.slane %v5106_v14, 5  ;;  %v4239_v8 = vld [vmem:[#allocation2 + $0xb4] sm:$0xe] }
 0x5b1   : > { %v4168_v11 = vpop.f32.mrf.mxu3  ;;  %11258 = vmatmul.msk.bf16.gmra.mxu1 %vm1041_vm0, %v11853_v17  ;;  %v5105_v17 = vrot.slane %v5103_v48, 4  ;;  %v5789_v6 = vunpack.c.l.b16 %v5695_v4  ;;  %v5701_v48 = vrot.slane %v13936_v51, 5  ;;  %v4393_v51 = vsel %vm12694_vm8, %v4391_v56, %v4392_v33 }
 0x5b2   : > { %v13946_v15 = vadd.f32 %v4168_v11, %v3549_v63  ;;  %v5407_v22 = vpack.c.b16 %v5380_v35, %v5379_v60  ;;  %v5119_v40 = vor.u32 %v5118_v45, %v13960_v25  ;;  %v11148_v35 = vrot.slane %v4239_v8, 9 }
 0x5b3   : > { %v5109_v50 = vor.u32 %v5108_v62, %v5105_v17  ;;  %v5124_v45 = vrot.slane %v5122_v23, 5  ;;  %v5703_v4 = vrot.slane %v5701_v48, 4  ;;  %v5127_v17 = vshrl.u32 %v4952_v30, 16 }
 0x5b4   : > { %v5120_v12 = vrot.slane %v5119_v40, 4  ;;  %v5704_v23 = vrot.slane %v4951_v43, 5 }
 0x5b5   : > { %v3504_v55 = vpop.f32.mrf.mxu2  ;;  %v4548_v41 = vpop.f32.mrf.mxu0 }
 0x5b6   : > { %v3550_v63 = vadd.f32 %v3504_v55, %v3252_v20  ;;  %v3211_v1 = vpop.f32.mrf.mxu1  ;;  %v13965_v18 = vadd.f32 %v4548_v41, %v13746_v19  ;;  %v5817_v19 = vpack.c.b16 %v5790_v24, %v5789_v6  ;;  %v13978_v55 = vld [vmem:[#allocation2 + $0x64] sm:$0xf]  ;;  %v11303_v41 = vrot.slane %v5605_v54, 9 }
 0x5b7   : > { %v5130_v24 = vshll.u32 %v4952_v30, 16  ;;  %v5136_v62 = vshll.u32 %v13978_v55, 16  ;;  %v4390_v6 = vsel %vm12694_vm8, %v11148_v35, %v4389_v57  ;;  %v5705_v54 = vsel %vm12694_vm8, %v5703_v4, %v5704_v23 }
 0x5b8   : > { %11175 = vmatmul.msk.bf16.gmra.mxu0 %vm1041_vm0, %v4451_v3 }
 0x5b9   : > { %v4170_v11 = vpop.f32.mrf.mxu3  ;;  %v5138_v56 = vrot.slane %v5136_v62, 5 }
 0x5ba   : > { %v13968_v52 = vadd.f32 %v4170_v11, %v3550_v63  ;;  %11286 = vmatmul.msk.bf16.gmra.mxu2 %vm1041_vm0, %v5407_v22  ;;  %v5110_v63 = vrot.slane %v5109_v50, 4  ;;  %v16668_v11 = vld [vmem:[#allocation27_spill] sm:$0xff]  ;;  %v16669_v22 = vld [vmem:[#allocation26_spill] sm:$0xff]  ;;  %v5702_v50 = vsel %vm12694_vm8, %v11303_v41, %v5701_v48 }
 0x5bb   : > { %v2847_v40 = vadd.f32 %v16669_v22, %v16668_v11  ;;  %v4240_v11 = vld [vmem:[#allocation2 + $0xc0] sm:$0xe] }
 0x5bc   : > { %16667 = vst [vmem:[#allocation17_spill] sm:$0xff] %v13968_v52  ;;  %v5115_v8 = vsel %vm12668_vm3, %v5110_v63, %v13960_v25  ;;  %v5606_v22 = vld [vmem:[#allocation2 + $0x60] sm:$0xe] }
 0x5bd   : > { %v3507_v0 = vpop.f32.mrf.mxu2  ;;  %v13976_v20 = vpop.f32.mrf.mxu0  ;;  %v3254_v33 = vadd.f32 %v3211_v1, %v2847_v40  ;;  %v5792_v1 = vunpack.c.l.b16 %v5705_v54  ;;  %v5708_v40 = vrot.slane %v13978_v55, 5  ;;  %v11149_v54 = vrot.slane %v4240_v11, 9 }
 0x5be   : > { %11330 = vmatmul.msk.bf16.gmra.mxu3 %vm1041_vm0, %v5817_v19  ;;  %v3551_v46 = vadd.f32 %v3507_v0, %v3253_v27  ;;  %v3214_v14 = vpop.f32.mrf.mxu1  ;;  %v5125_v27 = vsel %vm12668_vm3, %v5120_v12, %v5124_v45  ;;  %v4435_v19 = vunpack.c.l.b16 %v4393_v51  ;;  %v5129_v0 = vrot.slane %v5127_v17, 4 }
 0x5bf   : > { %v3255_v32 = vadd.f32 %v3214_v14, %v13506_v39  ;;  %v5140_v39 = vshrl.u32 %v13978_v55, 16  ;;  %v5382_v12 = vunpack.c.l.b16 %v5125_v27  ;;  %v5132_v14 = vrot.slane %v5130_v24, 5 }
 0x5c0   : > { %v5791_v51 = vunpack.c.l.b16 %v5702_v50  ;;  %v4396_v27 = vrot.slane %v13750_v49, 5 }
 0x5c1   : > { %v4173_v60 = vpop.f32.mrf.mxu3  ;;  %11259 = vmatmul.msk.bf16.gmra.mxu1 %vm1041_vm0, %v11854_v13  ;;  %v5142_v57 = vrot.slane %v5140_v39, 4  ;;  %v5381_v13 = vunpack.c.l.b16 %v5115_v8  ;;  %v5133_v17 = vor.u32 %v5132_v14, %v5129_v0  ;;  %v4955_v8 = vld [vmem:[#allocation2 + $0x6c] sm:$0xf]  ;;  %v4399_v0 = vrot.slane %v13767_v42, 5 }
 0x5c2   : > { %v13985_v3 = vadd.f32 %v4173_v60, %v3551_v46  ;;  %v4434_v46 = vunpack.c.l.b16 %v4390_v6  ;;  %v4954_v60 = vld [vmem:[#allocation2 + $0x68] sm:$0x1]  ;;  %v5818_v39 = vpack.c.b16 %v5792_v1, %v5791_v51  ;;  %v11304_v14 = vrot.slane %v5606_v22, 9 }
 0x5c3   : > { %v5408_v41 = vpack.c.b16 %v5382_v12, %v5381_v13  ;;  %v5143_v24 = vor.u32 %v5142_v57, %v5138_v56  ;;  %v5146_v62 = vshll.u32 %v4954_v60, 16  ;;  %v5134_v23 = vrot.slane %v5133_v17, 4  ;;  %v14015_v57 = vld [vmem:[#allocation2 + $0x70] sm:$0xf] }
 0x5c4   : > { %v4452_v48 = vpack.c.b16 %v4435_v19, %v4434_v46  ;;  %v11855_v46 = vld [vmem:[#allocation2 + $0x60] sm:$0xff]  ;;  %v5711_v13 = vrot.slane %v4954_v60, 5  ;;  %v5154_v1 = vshll.u32 %v4955_v8, 16  ;;  %v4397_v51 = vsel %vm12694_vm8, %v11149_v54, %v4396_v27 }
 0x5c5   : > { %v3509_v30 = vpop.f32.mrf.mxu2  ;;  %v4553_v45 = vpop.f32.mrf.mxu0  ;;  %v5144_v49 = vrot.slane %v5143_v24, 4  ;;  %v5148_v19 = vrot.slane %v5146_v62, 5  ;;  %v5139_v42 = vsel %vm12668_vm3, %v5134_v23, %v5138_v56  ;;  %v5160_v60 = vshll.u32 %v14015_v57, 16 }
 0x5c6   : > { %v3552_v43 = vadd.f32 %v3509_v30, %v3254_v33  ;;  %v3216_v35 = vpop.f32.mrf.mxu1  ;;  %v14002_v25 = vadd.f32 %v4553_v45, %v13777_v53  ;;  %v4398_v53 = vrot.slane %v4396_v27, 4  ;;  %v5710_v45 = vrot.slane %v5708_v40, 4 }
 0x5c7   : > { %v5164_v17 = vshrl.u32 %v14015_v57, 16  ;;  %v5709_v62 = vsel %vm12694_vm8, %v11304_v14, %v5708_v40  ;;  %v5383_v56 = vunpack.c.l.b16 %v5139_v42  ;;  %v5156_v23 = vrot.slane %v5154_v1, 5 }
 0x5c8   : > { %11176 = vmatmul.msk.bf16.gmra.mxu0 %vm1041_vm0, %v4452_v48  ;;  %v5151_v48 = vshrl.u32 %v4955_v8, 16  ;;  %v5793_v8 = vunpack.c.l.b16 %v5709_v62  ;;  %v16675_v62 = vld [vmem:[#allocation30_spill] sm:$0xff] }
 0x5c9   : > { %v4175_v63 = vpop.f32.mrf.mxu3  ;;  %v5166_v54 = vrot.slane %v5164_v17, 4 }
 0x5ca   : > { %v14005_v4 = vadd.f32 %v4175_v63, %v3552_v43  ;;  %11287 = vmatmul.msk.bf16.gmra.mxu2 %vm1041_vm0, %v5408_v41  ;;  %v4400_v43 = vsel %vm12694_vm8, %v4398_v53, %v4399_v0  ;;  %v16671_v63 = vld [vmem:[#allocation28_spill] sm:$0xff]  ;;  %v5712_v53 = vsel %vm12694_vm8, %v5710_v45, %v5711_v13  ;;  %v16672_v0 = vld [vmem:[#allocation29_spill] sm:$0xff] }
 0x5cb   : > { %v2852_v41 = vadd.f32 %v16671_v63, %v13559_v59  ;;  %v4437_v24 = vunpack.c.l.b16 %v4400_v43  ;;  %v5153_v59 = vrot.slane %v5151_v48, 4  ;;  %v5794_v14 = vunpack.c.l.b16 %v5712_v53 }
 0x5cc   : > { %16670 = vst [vmem:[#allocation10_spill] sm:$0xff] %v14005_v4  ;;  %v11906_v4 = vld [vmem:[%s16586_s8 + $0x18] sm:$0xff] }
 0x5cd   : > { %v3512_v6 = vpop.f32.mrf.mxu2  ;;  %v14011_v12 = vpop.f32.mrf.mxu0  ;;  %v5819_v48 = vpack.c.b16 %v5794_v14, %v5793_v8  ;;  %v5157_v42 = vor.u32 %v5156_v23, %v5153_v59  ;;  %v14049_v59 = vld [vmem:[#allocation2 + $0x7c] sm:$0xf]  ;;  %7993 = vmatpush.bf16.msrb.mxu3 %v11906_v4 }
 0x5ce   : > { %11331 = vmatmul.msk.bf16.gmra.mxu3 %vm1041_vm0, %v5818_v39  ;;  %v3553_v50 = vadd.f32 %v3512_v6, %v3255_v32  ;;  %v3219_v33 = vpop.f32.mrf.mxu1  ;;  %v3256_v39 = vadd.f32 %v3216_v35, %v2852_v41  ;;  %v4436_v6 = vunpack.c.l.b16 %v4397_v51  ;;  %v4958_v41 = vld [vmem:[#allocation2 + $0x78] sm:$0xf] }
 0x5cf   : > { %v3257_v30 = vadd.f32 %v3219_v33, %v13573_v2  ;;  %v5149_v2 = vsel %vm12668_vm3, %v5144_v49, %v5148_v19  ;;  %v5162_v33 = vrot.slane %v5160_v60, 5  ;;  %v5175_v23 = vshrl.u32 %v4958_v41, 16 }
 0x5d0   : > { %v5384_v11 = vunpack.c.l.b16 %v5149_v2  ;;  %v4453_v40 = vpack.c.b16 %v4437_v24, %v4436_v6  ;;  %v5607_v24 = vld [vmem:[#allocation2 + $0x6c] sm:$0xe] }
 0x5d1   : > { %v4178_v55 = vpop.f32.mrf.mxu3  ;;  %11260 = vmatmul.msk.bf16.gmra.mxu1 %vm1041_vm0, %v11855_v46  ;;  %v5167_v2 = vor.u32 %v5166_v54, %v5162_v33  ;;  %v5184_v54 = vshll.u32 %v14049_v59, 16  ;;  %v5177_v14 = vrot.slane %v5175_v23, 4 }
 0x5d2   : > { %v14019_v32 = vadd.f32 %v4178_v55, %v3553_v50  ;;  %v4957_v50 = vld [vmem:[#allocation2 + $0x74] sm:$0x1]  ;;  %v5409_v43 = vpack.c.b16 %v5384_v11, %v5383_v56  ;;  %v11856_v56 = vld [vmem:[#allocation2 + $0x6c] sm:$0xff]  ;;  %v5158_v11 = vrot.slane %v5157_v42, 4 }
 0x5d3   : > { %v5170_v13 = vshll.u32 %v4957_v50, 16  ;;  %v5168_v53 = vrot.slane %v5167_v2, 4 }
 0x5d4   : > { %v5163_v8 = vsel %vm12668_vm3, %v5158_v11, %v5162_v33  ;;  %v4960_v33 = vld [vmem:[#allocation2 + $0x80] sm:$0x1]  ;;  %v14070_v11 = vld [vmem:[#allocation2 + $0x88] sm:$0xf] }
 0x5d5   : > { %v3514_v22 = vpop.f32.mrf.mxu2  ;;  %v4558_v19 = vpop.f32.mrf.mxu0  ;;  %v5172_v63 = vrot.slane %v5170_v13, 5  ;;  %v5194_v23 = vshll.u32 %v4960_v33, 16 }
 0x5d6   : > { %v3554_v49 = vadd.f32 %v3514_v22, %v3256_v39  ;;  %v3221_v27 = vpop.f32.mrf.mxu1  ;;  %v14038_v35 = vadd.f32 %v4558_v19, %v13806_v5  ;;  %v5715_v5 = vrot.slane %v14015_v57, 5  ;;  %v5718_v22 = vrot.slane %v4957_v50, 5 }
 0x5d7   : > { %v3258_v46 = vadd.f32 %v3221_v27, %v16672_v0  ;;  %v11305_v57 = vrot.slane %v5607_v24, 9  ;;  %v5188_v0 = vshrl.u32 %v14049_v59, 16 }
 0x5d8   : > { %16673 = vst [vmem:[#allocation18_spill] sm:$0xff] %v14038_v35  ;;  %11177 = vmatmul.msk.bf16.gmra.mxu0 %vm1041_vm0, %v4453_v40  ;;  %v5717_v19 = vrot.slane %v5715_v5, 4 }
 0x5d9   : > { %v4180_v55 = vpop.f32.mrf.mxu3  ;;  %v5716_v13 = vsel %vm12694_vm8, %v11305_v57, %v5715_v5 }
 0x5da   : > { %v14040_v45 = vadd.f32 %v4180_v55, %v3554_v49  ;;  %11288 = vmatmul.msk.bf16.gmra.mxu2 %vm1041_vm0, %v5409_v43  ;;  %v5178_v49 = vshll.u32 %v4958_v41, 16  ;;  %v5719_v50 = vsel %vm12694_vm8, %v5717_v19, %v5718_v22  ;;  %v4961_v41 = vld [vmem:[#allocation2 + $0x84] sm:$0xf]  ;;  %v5795_v5 = vunpack.c.l.b16 %v5716_v13 }
 0x5db   : > { %v5202_v57 = vshll.u32 %v4961_v41, 16  ;;  %v5208_v19 = vshll.u32 %v14070_v11, 16 }
 0x5dc   : > { %16674 = vst [vmem:[#allocation20_spill] sm:$0xff] %v14040_v45  ;;  %v5180_v55 = vrot.slane %v5178_v49, 5  ;;  %v5608_v49 = vld [vmem:[#allocation2 + $0x78] sm:$0xe] }
 0x5dd   : > { %v3517_v1 = vpop.f32.mrf.mxu2  ;;  %v14046_v17 = vpop.f32.mrf.mxu0 }
 0x5de   : > { %11332 = vmatmul.msk.bf16.gmra.mxu3 %vm1041_vm0, %v5819_v48  ;;  %v3555_v51 = vadd.f32 %v3517_v1, %v3257_v30  ;;  %v3224_v60 = vpop.f32.mrf.mxu1  ;;  %v5173_v30 = vsel %vm12668_vm3, %v5168_v53, %v5172_v63  ;;  %v5385_v1 = vunpack.c.l.b16 %v5163_v8  ;;  %v5796_v63 = vunpack.c.l.b16 %v5719_v50 }
 0x5df   : > { %v3259_v39 = vadd.f32 %v3224_v60, %v16675_v62  ;;  %v5386_v40 = vunpack.c.l.b16 %v5173_v30  ;;  %v5186_v62 = vrot.slane %v5184_v54, 5  ;;  %v5199_v30 = vshrl.u32 %v4961_v41, 16 }
 0x5e0   : > { %v5820_v8 = vpack.c.b16 %v5796_v63, %v5795_v5  ;;  %v5725_v41 = vrot.slane %v4960_v33, 5 }
 0x5e1   : > { %v4183_v6 = vpop.f32.mrf.mxu3  ;;  %11261 = vmatmul.msk.bf16.gmra.mxu1 %vm1041_vm0, %v11856_v56  ;;  %v5190_v56 = vrot.slane %v5188_v0, 4  ;;  %v5410_v22 = vpack.c.b16 %v5386_v40, %v5385_v1  ;;  %v11306_v0 = vrot.slane %v5608_v49, 9  ;;  %v5722_v40 = vrot.slane %v14049_v59, 5 }
 0x5e2   : > { %v14051_v27 = vadd.f32 %v4183_v6, %v3555_v51  ;;  %v16676_v51 = vld [vmem:[#allocation31_spill] sm:$0xff]  ;;  %v5201_v13 = vrot.slane %v5199_v30, 4 }
 0x5e3   : > { %v5191_v50 = vor.u32 %v5190_v56, %v5186_v62  ;;  %v4967_v56 = vld [vmem:[#allocation2 + $0x9c] sm:$0xf] }
 0x5e5   : > { %v3519_v43 = vpop.f32.mrf.mxu2  ;;  %v4563_v2 = vpop.f32.mrf.mxu0 }
 0x5e6   : > { %v3556_v48 = vadd.f32 %v3519_v43, %v3258_v46  ;;  %v3226_v42 = vpop.f32.mrf.mxu1  ;;  %v14068_v24 = vadd.f32 %v4563_v2, %v13840_v26  ;;  %v5181_v46 = vor.u32 %v5180_v55, %v5177_v14  ;;  %v5212_v26 = vshrl.u32 %v14070_v11, 16  ;;  %v4963_v55 = vld [vmem:[#allocation2 + $0x8c] sm:$0x1] }
 0x5e7   : > { %v14065_v60 = vadd.f32 %v3226_v42, %v16676_v51  ;;  %v5196_v14 = vrot.slane %v5194_v23, 5  ;;  %v5210_v51 = vrot.slane %v5208_v19, 5  ;;  %v5724_v23 = vrot.slane %v5722_v40, 4  ;;  %v14092_v19 = vld [vmem:[#allocation2 + $0xa0] sm:$0xf] }
 0x5e8   : > { %16677 = vst [vmem:[#allocation9_spill] sm:$0xff] %v14068_v24  ;;  %v5182_v54 = vrot.slane %v5181_v46, 4  ;;  %v5214_v63 = vrot.slane %v5212_v26, 4  ;;  %v5723_v46 = vsel %vm12694_vm8, %v11306_v0, %v5722_v40  ;;  %v5218_v49 = vshll.u32 %v4963_v55, 16 }
 0x5e9   : > { %v4185_v53 = vpop.f32.mrf.mxu3  ;;  %v5247_v26 = vshrl.u32 %v4967_v56, 16  ;;  %v5797_v40 = vunpack.c.l.b16 %v5723_v46 }
 0x5ea   : > { %v14072_v6 = vadd.f32 %v4185_v53, %v3556_v48  ;;  %11289 = vmatmul.msk.bf16.gmra.mxu2 %vm1041_vm0, %v5410_v22  ;;  %v5204_v48 = vrot.slane %v5202_v57, 5  ;;  %v11857_v53 = vld [vmem:[#allocation2 + $0x78] sm:$0xff]  ;;  %v5192_v22 = vrot.slane %v5191_v50, 4  ;;  %v5187_v59 = vsel %vm12668_vm3, %v5182_v54, %v5186_v62 }
 0x5eb   : > { %v5726_v62 = vsel %vm12694_vm8, %v5724_v23, %v5725_v41  ;;  %v5729_v50 = vrot.slane %v14070_v11, 5  ;;  %v5250_v54 = vshll.u32 %v4967_v56, 16  ;;  %v5387_v0 = vunpack.c.l.b16 %v5187_v59 }
 0x5ec   : > { %16678 = vst [vmem:[#allocation22_spill] sm:$0xff] %v14072_v6  ;;  %v5197_v33 = vsel %vm12668_vm3, %v5192_v22, %v5196_v14  ;;  %v5205_v57 = vor.u32 %v5204_v48, %v5201_v13  ;;  %v5260_v14 = vshrl.u32 %v14092_v19, 16  ;;  %v5798_v22 = vunpack.c.l.b16 %v5726_v62 }
 0x5ed   : > { %v3522_v43 = vpop.f32.mrf.mxu2  ;;  %v14079_v2 = vpop.f32.mrf.mxu0  ;;  %v5388_v48 = vunpack.c.l.b16 %v5197_v33  ;;  %v5249_v45 = vrot.slane %v5247_v26, 4  ;;  %v5731_v56 = vrot.slane %v5729_v50, 4  ;;  %v5252_v59 = vrot.slane %v5250_v54, 5  ;;  %v4969_v26 = vld [vmem:[#allocation2 + $0xa4] sm:$0x1] }
 0x5ee   : > { %11333 = vmatmul.msk.bf16.gmra.mxu3 %vm1041_vm0, %v5820_v8  ;;  %v3557_v42 = vadd.f32 %v3522_v43, %v3259_v39  ;;  %16679 = vst [vmem:[#allocation23_spill] sm:$0xff] %v14079_v2  ;;  %v14081_v1 = vpop.f32.mrf.mxu1  ;;  %v5609_v39 = vld [vmem:[#allocation2 + $0x84] sm:$0xe]  ;;  %v5215_v8 = vor.u32 %v5214_v63, %v5210_v51  ;;  %v5206_v6 = vrot.slane %v5205_v57, 4 }
 0x5ef   : > { %v11307_v43 = vrot.slane %v5609_v39, 9  ;;  %v5611_v39 = vld [vmem:[#allocation2 + $0x9c] sm:$0xe] }
 0x5f0   : > { %v5216_v11 = vrot.slane %v5215_v8, 4  ;;  %v5262_v8 = vrot.slane %v5260_v14, 4 }
 0x5f1   : > { %v4188_v5 = vpop.f32.mrf.mxu3  ;;  %11262 = vmatmul.msk.bf16.gmra.mxu1 %vm1041_vm0, %v11857_v53  ;;  %v5256_v53 = vshll.u32 %v14092_v19, 16 }
 0x5f2   : > { %v14087_v30 = vadd.f32 %v4188_v5, %v3557_v42  ;;  %v5220_v42 = vrot.slane %v5218_v49, 5  ;;  %v5732_v5 = vrot.slane %v4963_v55, 5  ;;  %v5411_v55 = vpack.c.b16 %v5388_v48, %v5387_v0 }
 0x5f3   : > { %v5730_v49 = vsel %vm12694_vm8, %v11307_v43, %v5729_v50  ;;  %v14111_v62 = vrot.slane %v5256_v53, 5  ;;  %v5743_v0 = vrot.slane %v14092_v19, 5  ;;  %v5821_v50 = vpack.c.b16 %v5798_v22, %v5797_v40  ;;  %v4964_v43 = vld [vmem:[#allocation2 + $0x90] sm:$0xf] }
 0x5f4   : > { %v5221_v57 = vsel %vm12668_vm3, %v5216_v11, %v5220_v42  ;;  %v11309_v42 = vrot.slane %v5611_v39, 9  ;;  %v5746_v53 = vrot.slane %v4969_v26, 5  ;;  %v16682_v11 = vld [vmem:[#allocation7_spill] sm:$0xff]  ;;  %v5226_v40 = vshll.u32 %v4964_v43, 16 }
 0x5f5   : > { %v3524_v13 = vpop.f32.mrf.mxu2  ;;  %v4568_v63 = vpop.f32.mrf.mxu0  ;;  %v14119_v48 = vunpack.c.l.b16 %v5221_v57  ;;  %v4902_v14 = vadd.f32 %v14081_v1, %v16682_v11 }
 0x5f6   : > { %v3558_v41 = vadd.f32 %v3524_v13, %v14065_v60  ;;  %v14100_v23 = vpop.f32.mrf.mxu1  ;;  %v14103_v46 = vadd.f32 %v4568_v63, %v13871_v21  ;;  %v5733_v60 = vsel %vm12694_vm8, %v5731_v56, %v5732_v5  ;;  %v5211_v21 = vsel %vm12668_vm3, %v5206_v6, %v5210_v51  ;;  %v14125_v56 = vld [vmem:[#allocation2 + $0x94] sm:$0xf] }
 0x5f7   : > { %v5253_v13 = vor.u32 %v5252_v59, %v5249_v45  ;;  %v5799_v5 = vunpack.c.l.b16 %v5730_v49  ;;  %v5800_v63 = vunpack.c.l.b16 %v5733_v60  ;;  %v5263_v6 = vor.u32 %v5262_v8, %v14111_v62  ;;  %v14130_v59 = vld [vmem:[#allocation2 + $0x90] sm:$0xe]  ;;  %v14142_v60 = vld [vmem:[%s16584_s6] ss:$0 sm:$0xff] }
 0x5f8   : > { %16680 = vst [vmem:[#allocation13_spill] sm:$0xff] %v14103_v46  ;;  %v5266_v51 = vshll.u32 %v4969_v26, 16  ;;  %v5223_v45 = vshrl.u32 %v4964_v43, 16  ;;  %v5232_v22 = vshll.u32 %v14125_v56, 16  ;;  %v11858_v26 = vld [vmem:[#allocation2 + $0x84] sm:$0xff]  ;;  %v11308_v11 = vrot.slane %v14130_v59, 9 }
 0x5f9   : > { %v4190_v33 = vpop.f32.mrf.mxu3  ;;  %v14137_v57 = vrot.slane %v5253_v13, 4 }
 0x5fa   : > { %v14113_v54 = vadd.f32 %v4190_v33, %v3558_v41  ;;  %11290 = vmatmul.msk.bf16.gmra.mxu2 %vm1041_vm0, %v5411_v55  ;;  %v14123_v41 = vunpack.c.l.b16 %v5211_v21  ;;  %v5745_v55 = vrot.slane %v5743_v0, 4  ;;  %v5236_v33 = vshrl.u32 %v14125_v56, 16 }
 0x5fb   : > { %v14146_v21 = vpack.c.b16 %v5800_v63, %v5799_v5  ;;  %v14165_v5 = vld [vmem:[%s16585_s7] ss:$0 sm:$0xff]  ;;  %v5228_v63 = vrot.slane %v5226_v40, 5 }
 0x5fc   : > { %16681 = vst [vmem:[#allocation24_spill] sm:$0xff] %v14113_v54  ;;  %v5412_v8 = vpack.c.b16 %v14119_v48, %v14123_v41  ;;  %v14154_v43 = vsel %vm12694_vm8, %v5745_v55, %v5746_v53  ;;  %v14160_v54 = vrot.slane %v5266_v51, 5  ;;  %v14170_v53 = vrot.slane %v5232_v22, 5  ;;  %v11889_v41 = vld [vmem:[%s16586_s8 + $0x10] sm:$0xff]  ;;  %v6613_v40 = vld [vmem:[#allocation3 + $0x8] sm:$0x1] }
 0x5fd   : > { %v5488_v19 = vpop.f32.mrf.mxu2  ;;  %v14132_v39 = vpop.f32.mrf.mxu0  ;;  %v5238_v51 = vrot.slane %v5236_v33, 4  ;;  %v16684_v33 = vld [vmem:[#allocation16_spill] sm:$0xff]  ;;  %7703 = vmatpush.bf16.msrb.mxu2 %v11889_v41  ;;  %v6649_v59 = vshll.u32 %v6613_v40, 16 }
 0x5fe   : > { %11334 = vmatmul.msk.bf16.gmra.mxu3 %vm1041_vm0, %v5821_v50  ;;  %v5568_v49 = vadd.f32 %v5488_v19, %v4902_v14  ;;  %16683 = vst [vmem:[#allocation25_spill] sm:$0xff] %v14132_v39  ;;  %v14134_v1 = vpop.f32.mrf.mxu1  ;;  %v14150_v50 = vsel %vm12694_vm8, %v11309_v42, %v5743_v0  ;;  %v5736_v14 = vrot.slane %v14125_v56, 5  ;;  %v14158_v19 = vrot.slane %v5263_v6, 4  ;;  %v14168_v0 = vld [vmem:[#allocation2 + $0x98] sm:$0x1] }
 0x5ff   : > { %v5225_v42 = vrot.slane %v5223_v45, 4  ;;  %v6579_v56 = vld [vmem:[#allocation3] sm:$0xf]  ;;  %v6580_v6 = vld [vmem:[#allocation3 + $0x4] sm:$0xf]  ;;  %v4903_v52 = vadd.f32 %v14100_v23, %v16684_v33  ;;  %v5242_v55 = vshll.u32 %v14168_v0, 16  ;;  %v5239_v23 = vor.u32 %v5238_v51, %v14170_v53 }
 0x600   : > { %v6630_v22 = vshrl.u32 %v6579_v56, 16  ;;  %v6643_v7 = vshrl.u32 %v6580_v6, 16 }
 0x601   : > { %v5898_v13 = vpop.f32.mrf.mxu3  ;;  %11263 = vmatmul.msk.bf16.gmra.mxu1 %vm1041_vm0, %v11858_v26  ;;  %v6633_v26 = vshll.u32 %v6579_v56, 16  ;;  %v5229_v35 = vor.u32 %v5228_v63, %v5225_v42  ;;  %v4970_v42 = vld [vmem:[#allocation2 + $0xa8] sm:$0xf] }
 0x602   : > { %v5978_v48 = vadd.f32 %v5898_v13, %v5568_v49  ;;  %v6639_v13 = vshll.u32 %v6580_v6, 16  ;;  %v6645_v24 = vrot.slane %v6643_v7, 4  ;;  %v5738_v7 = vrot.slane %v5736_v14, 4 }
 0x603   : > { %v6635_v58 = vrot.slane %v6633_v26, 5  ;;  %v5240_v26 = vrot.slane %v5239_v23, 4 }
 0x604   : > { %v6013_v45 = vmul.f32 %v14142_v60, %v5978_v48  ;;  %v6632_v48 = vrot.slane %v6630_v22, 4  ;;  %v6641_v46 = vrot.slane %v6639_v13, 5  ;;  %v5274_v13 = vshll.u32 %v4970_v42, 16 }
 0x605   : > { %v5490_v39 = vpop.f32.mrf.mxu2  ;;  %v4573_v2 = vpop.f32.mrf.mxu0 }
 0x606   : > { %v6048_v49 = vadd.f32 %v14165_v5, %v6013_v45  ;;  %v5569_v56 = vadd.f32 %v5490_v39, %v4903_v52  ;;  %v14189_v16 = vpop.f32.mrf.mxu1  ;;  %v14193_v6 = vadd.f32 %v4573_v2, %v13907_v10  ;;  %v6636_v40 = vor.u32 %v6635_v58, %v6632_v48 }
 0x607   : > { %v5269_v45 = vsel %vm12668_vm3, %v14158_v19, %v14160_v54  ;;  %v6646_v4 = vor.u32 %v6645_v24, %v6641_v46  ;;  %v6651_v52 = vrot.slane %v6649_v59, 5  ;;  %v14201_v39 = vsel %vm12694_vm8, %v11308_v11, %v5736_v14  ;;  %v11887_v14 = vld [vmem:[%s16586_s8] sm:$0xff] }
 0x608   : > { %v6080_v41 = vmax.f32 %v6048_v49, 0.0  ;;  %16685 = vst [vmem:[#allocation21_spill] sm:$0xff] %v14193_v6  ;;  %v6637_v49 = vrot.slane %v6636_v40, 4  ;;  %v5739_v10 = vrot.slane %v14168_v0, 5  ;;  %v5230_v2 = vrot.slane %v5229_v35, 4  ;;  %v11907_v0 = vld [vmem:[%s16586_s8 + $0x20] sm:$0xff]  ;;  %7349 = vmatpush.bf16.msra.mxu1 %v11887_v14 }
 0x609   : > { %v5900_v22 = vpop.f32.mrf.mxu3  ;;  %v6647_v58 = vrot.slane %v6646_v4, 4  ;;  %v5244_v54 = vrot.slane %v5242_v55, 5  ;;  %v5271_v59 = vshrl.u32 %v4970_v42, 16  ;;  %v4904_v35 = vadd.f32 %v14134_v1, %v13822_v37  ;;  %v6465_v40 = vld [vmem:[#allocation3 + $0xc] sm:$0xf]  ;;  %8651 = vmatpush.bf16.msra.mxu0 %v11907_v0 }
 0x60a   : > { %v6112_v63 = vpack.c.bf16 %v6080_v41, %v6080_v41  ;;  %v5979_v51 = vadd.f32 %v5900_v22, %v5569_v56  ;;  %11291 = vmatmul.msk.bf16.gmra.mxu2 %vm1041_vm0, %v5412_v8  ;;  %v6642_v11 = vsel %vm12668_vm3, %v6637_v49, %v6641_v46  ;;  %v14223_v41 = vld [vmem:[#allocation2 + $0xb8] sm:$0xf]  ;;  %v5235_v4 = vsel %vm12668_vm3, %v5230_v2, %v14170_v53 }
 0x60b   : > { %v6652_v8 = vsel %vm12668_vm3, %v6647_v58, %v6651_v52  ;;  %v7016_v55 = vunpack.c.l.b16 %v6642_v11  ;;  %v5245_v52 = vsel %vm12668_vm3, %v5240_v26, %v5244_v54  ;;  %v5273_v49 = vrot.slane %v5271_v59, 4 }
 0x60c   : > { %v6145_v19 = vshrl.u32 %v6112_v63, 16  ;;  %v6014_v24 = vmul.f32 %v14142_v60, %v5979_v51  ;;  %v6148_v46 = vshll.u32 %v6112_v63, 16  ;;  %v7017_v23 = vunpack.c.l.b16 %v6652_v8  ;;  %v11859_v51 = vld [vmem:[#allocation2 + $0x90] sm:$0xff] }
 0x60d   : > { %v5493_v56 = vpop.f32.mrf.mxu2  ;;  %v14225_v1 = vpop.f32.mrf.mxu0  ;;  %v5304_v11 = vshll.u32 %v14223_v41, 16  ;;  %v5308_v53 = vshrl.u32 %v14223_v41, 16  ;;  %v5801_v0 = vunpack.c.l.b16 %v14201_v39  ;;  %v16689_v8 = vunpack.c.l.b16 %v14150_v50 }
 0x60e   : > { %v14218_v33 = vrot.slane %v6145_v19, 7  ;;  %v6049_v48 = vadd.f32 %v14165_v5, %v6014_v24  ;;  %11335 = vmatmul.msk.bf16.gmra.mxu3 %vm1041_vm0, %v14146_v21  ;;  %v5570_v37 = vadd.f32 %v5493_v56, %v4904_v35  ;;  %16686 = vst [vmem:[#allocation27_spill] sm:$0xff] %v14225_v1  ;;  %v14227_v22 = vpop.f32.mrf.mxu1  ;;  %v14236_v21 = vsel %vm12694_vm8, %v5738_v7, %v5739_v10  ;;  %v14263_v56 = vld [vmem:[#allocation2 + $0xac] sm:$0xf] }
 0x60f   : > { %v7048_v19 = vpack.c.b16 %v7017_v23, %v7016_v55  ;;  %v5276_v24 = vrot.slane %v5274_v13, 5  ;;  %v16688_v10 = vsel %vm12668_vm3, %v14137_v57, %v14111_v62  ;;  %v5802_v59 = vunpack.c.l.b16 %v14236_v21 }
 0x610   : > { %v6150_v42 = vor.u32 %v6148_v46, %v14218_v33  ;;  %v6081_v63 = vmax.f32 %v6049_v48, 0.0  ;;  %v14249_v14 = vunpack.c.l.b16 %v16688_v10  ;;  %v14254_v35 = vunpack.c.l.b16 %v5269_v45 }
 0x611   : > { %v5903_v58 = vpop.f32.mrf.mxu3  ;;  %11264 = vmatmul.msk.bf16.gmra.mxu1 %vm1041_vm0, %v11859_v51  ;;  %11348 = vmatmul.msk.bf16.vlgmr.msrb.gmra.mxu0 %vm7070_vm10, %v7048_v19  ;;  %v16690_v55 = vunpack.c.l.b16 %v14154_v43  ;;  %v5391_v57 = vunpack.c.l.b16 %v5235_v4  ;;  %v5392_v48 = vunpack.c.l.b16 %v5245_v52  ;;  %v4905_v39 = vadd.f32 %v14189_v16, %v13836_v61  ;;  %v6469_v52 = vld [vmem:[#allocation3 + $0x14] sm:$0x1] }
 0x612   : > { %v6466_v26 = vsel %vm12535_vm14, %v6150_v42, %v6465_v40  ;;  %v6113_v54 = vpack.c.bf16 %v6081_v63, %v6081_v63  ;;  %v5980_v7 = vadd.f32 %v5903_v58, %v5570_v37  ;;  %v5277_v23 = vor.u32 %v5276_v24, %v5273_v49  ;;  %v5612_v42 = vld [vmem:[#allocation2 + $0xa8] sm:$0xe] }
 0x613   : > { %6467 = vst [vmem:[#allocation3 + $0xc] sm:$0xf] %v6466_v26  ;;  %v14260_v13 = vpack.c.b16 %v16690_v55, %v16689_v8  ;;  %v14267_v40 = vrot.slane %v5304_v11, 5  ;;  %v5310_v45 = vrot.slane %v5308_v53, 4  ;;  %v16596_v63 = vrot.slane %v14223_v41, 5 }
 0x614   : > { %v6153_v46 = vshrl.u32 %v6113_v54, 16  ;;  %v6015_v62 = vmul.f32 %v14142_v60, %v5980_v7  ;;  %v6156_v50 = vshll.u32 %v6113_v54, 16  ;;  %v6151_v4 = vrot.slane %v14218_v33, 4 }
 0x615   : > { %v5495_v21 = vpop.f32.mrf.mxu2  ;;  %v4578_v58 = vpop.f32.mrf.mxu0  ;;  %v5280_v61 = vshll.u32 %v14263_v56, 16  ;;  %v5284_v16 = vshrl.u32 %v14263_v56, 16  ;;  %v5413_v54 = vpack.c.b16 %v5392_v48, %v5391_v57  ;;  %v11310_v7 = vrot.slane %v5612_v42, 9 }
 0x616   : > { %v6155_v37 = vrot.slane %v6153_v46, 7  ;;  %v6050_v43 = vadd.f32 %v14165_v5, %v6015_v62  ;;  %v5571_v51 = vadd.f32 %v5495_v21, %v4905_v39  ;;  %v14272_v19 = vpop.f32.mrf.mxu1  ;;  %v14277_v53 = vadd.f32 %v4578_v58, %v13946_v15 }
 0x617   : > { %v5311_v10 = vor.u32 %v5310_v45, %v14267_v40  ;;  %v5278_v15 = vrot.slane %v5277_v23, 4  ;;  %v5282_v57 = vrot.slane %v5280_v61, 5  ;;  %v5286_v48 = vrot.slane %v5284_v16, 4 }
 0x618   : > { %v6158_v49 = vor.u32 %v6156_v50, %v6155_v37  ;;  %v6160_v24 = vrot.slane %v6155_v37, 4  ;;  %v6082_v11 = vmax.f32 %v6050_v43, 0.0  ;;  %16691 = vst [vmem:[#allocation26_spill] sm:$0xff] %v14277_v53  ;;  %v4972_v50 = vld [vmem:[#allocation2 + $0xb0] sm:$0x1]  ;;  %v14290_v43 = vrot.slane %v16596_v63, 4 }
 0x619   : > { %v5905_v26 = vpop.f32.mrf.mxu3  ;;  %v5823_v42 = vpack.c.b16 %v5802_v59, %v5801_v0  ;;  %v5290_v23 = vshll.u32 %v4972_v50, 16  ;;  %v6472_v0 = vld [vmem:[#allocation3 + $0x18] sm:$0xf] }
 0x61a   : > { %v6159_v55 = vsel %vm12183_vm4, %v6151_v4, %v6158_v49  ;;  %v6470_v62 = vsel %vm12241_vm7, %v6160_v24, %v6469_v52  ;;  %v6114_v39 = vpack.c.bf16 %v6082_v11, %v6082_v11  ;;  %v5981_v37 = vadd.f32 %v5905_v26, %v5571_v51  ;;  %11292 = vmatmul.msk.bf16.gmra.mxu2 %vm1041_vm0, %v5413_v54  ;;  %v6581_v4 = vld [vmem:[#allocation3 + $0xc] sm:$0xf]  ;;  %v4973_v26 = vld [vmem:[#allocation2 + $0xb4] sm:$0xf] }
 0x61b   : > { %6468 = vst.msk [vmem:[#allocation3 + $0x10] sm:$0xf] %vm464_vm9, %v6159_v55  ;;  %v5750_v52 = vrot.slane %v14263_v56, 5  ;;  %v4906_v51 = vadd.f32 %v14227_v22, %v13854_v38  ;;  %v6654_v58 = vshrl.u32 %v6581_v4, 16  ;;  %v6657_v49 = vshll.u32 %v6581_v4, 16 }
 0x61c   : > { %6471 = vst [vmem:[#allocation3 + $0x14] sm:$0x1] %v6470_v62  ;;  %v6162_v45 = vshrl.u32 %v6114_v39, 16  ;;  %v6016_v21 = vmul.f32 %v14142_v60, %v5981_v37  ;;  %v6165_v16 = vshll.u32 %v6114_v39, 16  ;;  %v14300_v54 = vrot.slane %v5311_v10, 4 }
 0x61d   : > { %v5498_v11 = vpop.f32.mrf.mxu2  ;;  %v14302_v56 = vpop.f32.mrf.mxu0  ;;  %v5283_v38 = vsel %vm12668_vm3, %v5278_v15, %v5282_v57  ;;  %v5287_v22 = vor.u32 %v5286_v48, %v5282_v57  ;;  %v5753_v62 = vrot.slane %v4972_v50, 5  ;;  %v5752_v10 = vrot.slane %v5750_v52, 4 }
 0x61e   : > { %v14296_v61 = vrot.slane %v6162_v45, 7  ;;  %v6051_v24 = vadd.f32 %v14165_v5, %v6016_v21  ;;  %11336 = vmatmul.msk.bf16.gmra.mxu3 %vm1041_vm0, %v5823_v42  ;;  %v5572_v59 = vadd.f32 %v5498_v11, %v4906_v51  ;;  %16694 = vst [vmem:[#allocation28_spill] sm:$0xff] %v14302_v56  ;;  %v14304_v55 = vpop.f32.mrf.mxu1  ;;  %v11860_v45 = vld [vmem:[#allocation2 + $0x9c] sm:$0xff]  ;;  %v14311_v21 = vsel %vm12694_vm8, %v11310_v7, %v5750_v52  ;;  %v6476_v56 = vld [vmem:[#allocation3 + $0x20] sm:$0x1] }
 0x61f   : > { %v6656_v4 = vrot.slane %v6654_v58, 4  ;;  %v6659_v51 = vrot.slane %v6657_v49, 5  ;;  %v14313_v11 = vrot.slane %v5290_v23, 5  ;;  %v5295_v63 = vshrl.u32 %v4973_v26, 16 }
 0x620   : > { %v6167_v39 = vor.u32 %v6165_v16, %v14296_v61  ;;  %v6083_v37 = vmax.f32 %v6051_v24, 0.0  ;;  %v14320_v16 = vunpack.c.l.b16 %v5283_v38  ;;  %v14323_v52 = vrot.slane %v5287_v22, 4 }
 0x621   : > { %v5908_v42 = vpop.f32.mrf.mxu3  ;;  %11265 = vmatmul.msk.bf16.gmra.mxu1 %vm1041_vm0, %v11860_v45  ;;  %v5298_v49 = vshll.u32 %v4973_v26, 16  ;;  %v4907_v38 = vadd.f32 %v14272_v19, %v13867_v29  ;;  %v5297_v45 = vrot.slane %v5295_v63, 4  ;;  %v6168_v33 = vrot.slane %v14296_v61, 4 }
 0x622   : > { %v6473_v15 = vsel %vm12535_vm14, %v6167_v39, %v6472_v0  ;;  %v6115_v57 = vpack.c.bf16 %v6083_v37, %v6083_v37  ;;  %v5982_v50 = vadd.f32 %v5908_v42, %v5572_v59  ;;  %v14318_v48 = vld [vmem:[#allocation3 + $0x10] sm:$0xf]  ;;  %v14332_v39 = vsel %vm12694_vm8, %v5752_v10, %v5753_v62 }
 0x623   : > { %6474 = vst [vmem:[#allocation3 + $0x18] sm:$0xf] %v6473_v15  ;;  %v6663_v7 = vshll.u32 %v14318_v48, 16  ;;  %v14327_v0 = vld [vmem:[#allocation3 + $0x14] sm:$0x1]  ;;  %v6667_v59 = vshrl.u32 %v14318_v48, 16  ;;  %v6660_v37 = vor.u32 %v6659_v51, %v6656_v4  ;;  %v5293_v61 = vsel %vm12668_vm3, %v14323_v52, %v14313_v11 }
 0x624   : > { %v6170_v23 = vshrl.u32 %v6115_v57, 16  ;;  %v6017_v24 = vmul.f32 %v14142_v60, %v5982_v50  ;;  %v6173_v15 = vshll.u32 %v6115_v57, 16  ;;  %v6673_v62 = vshll.u32 %v14327_v0, 16  ;;  %v5613_v51 = vld [vmem:[#allocation2 + $0xb4] sm:$0xe] }
 0x625   : > { %v6665_v22 = vrot.slane %v6663_v7, 5  ;;  %v5500_v58 = vpop.f32.mrf.mxu2  ;;  %v6669_v50 = vrot.slane %v6667_v59, 4  ;;  %v4583_v1 = vpop.f32.mrf.mxu0  ;;  %v5300_v10 = vrot.slane %v5298_v49, 5  ;;  %v6661_v7 = vrot.slane %v6660_v37, 4 }
 0x626   : > { %v6172_v42 = vrot.slane %v6170_v23, 7  ;;  %v6052_v26 = vadd.f32 %v14165_v5, %v6017_v24  ;;  %v5573_v53 = vadd.f32 %v5500_v58, %v4907_v38  ;;  %v14338_v6 = vpop.f32.mrf.mxu1  ;;  %v14342_v63 = vadd.f32 %v4583_v1, %v13985_v3  ;;  %v4975_v24 = vld [vmem:[#allocation2 + $0xbc] sm:$0x1] }
 0x627   : > { %v6670_v23 = vor.u32 %v6669_v50, %v6665_v22  ;;  %v5806_v58 = vunpack.c.l.b16 %v14332_v39  ;;  %v16695_v38 = vpack.c.b16 %v14254_v35, %v14249_v14  ;;  %v6675_v11 = vrot.slane %v6673_v62, 5 }
 0x628   : > { %v6175_v29 = vor.u32 %v6173_v15, %v6172_v42  ;;  %v6177_v19 = vrot.slane %v6172_v42, 4  ;;  %v6084_v4 = vmax.f32 %v6052_v26, 0.0  ;;  %v5301_v52 = vor.u32 %v5300_v10, %v5297_v45 }
 0x629   : > { %v5910_v57 = vpop.f32.mrf.mxu3  ;;  %v6671_v37 = vrot.slane %v6670_v23, 4  ;;  %v11311_v39 = vrot.slane %v5613_v51, 9  ;;  %v4908_v26 = vadd.f32 %v14304_v55, %v13885_v9 }
 0x62a   : > { %v6176_v49 = vsel %vm12183_vm4, %v6168_v33, %v6175_v29  ;;  %v6477_v59 = vsel %vm12241_vm7, %v6177_v19, %v6476_v56  ;;  %v6116_v3 = vpack.c.bf16 %v6084_v4, %v6084_v4  ;;  %v5983_v1 = vadd.f32 %v5910_v57, %v5573_v53  ;;  %11293 = vmatmul.msk.bf16.gmra.mxu2 %vm1041_vm0, %v16695_v38  ;;  %v6583_v15 = vld [vmem:[#allocation3 + $0x18] sm:$0xf]  ;;  %v6479_v19 = vld [vmem:[#allocation3 + $0x24] sm:$0xf] }
 0x62b   : > { %6475 = vst.msk [vmem:[#allocation3 + $0x1c] sm:$0xf] %vm464_vm9, %v6176_v49  ;;  %v6666_v56 = vsel %vm12668_vm3, %v6661_v7, %v6665_v22  ;;  %v5314_v53 = vshll.u32 %v4975_v24, 16  ;;  %v6676_v14 = vsel %vm12668_vm3, %v6671_v37, %v6675_v11  ;;  %v6678_v35 = vshrl.u32 %v6583_v15, 16 }
 0x62c   : > { %6478 = vst [vmem:[#allocation3 + $0x20] sm:$0x1] %v6477_v59  ;;  %v6179_v42 = vshrl.u32 %v6116_v3, 16  ;;  %v6018_v33 = vmul.f32 %v14142_v60, %v5983_v1  ;;  %v6681_v50 = vshll.u32 %v6583_v15, 16  ;;  %v6182_v45 = vshll.u32 %v6116_v3, 16  ;;  %v11861_v59 = vld [vmem:[#allocation2 + $0xa8] sm:$0xff] }
 0x62d   : > { %v5503_v29 = vpop.f32.mrf.mxu2  ;;  %v7019_v22 = vunpack.c.l.b16 %v6676_v14  ;;  %v14370_v51 = vpop.f32.mrf.mxu0  ;;  %v7018_v55 = vunpack.c.l.b16 %v6666_v56  ;;  %v5396_v57 = vunpack.c.l.b16 %v5293_v61  ;;  %v5302_v7 = vrot.slane %v5301_v52, 4 }
 0x62e   : > { %v14365_v62 = vrot.slane %v6179_v42, 7  ;;  %v6053_v10 = vadd.f32 %v14165_v5, %v6018_v33  ;;  %11337 = vmatmul.msk.bf16.gmra.mxu3 %vm1041_vm0, %v14260_v13  ;;  %v5574_v4 = vadd.f32 %v5503_v29, %v4908_v26  ;;  %v14372_v9 = vpop.f32.mrf.mxu1  ;;  %v16696_v3 = vrot.slane %v14223_v41, 5 }
 0x62f   : > { %v5760_v13 = vrot.slane %v4975_v24, 5  ;;  %v7049_v38 = vpack.c.b16 %v7019_v22, %v7018_v55  ;;  %v6680_v11 = vrot.slane %v6678_v35, 4  ;;  %v6683_v42 = vrot.slane %v6681_v50, 5 }
 0x630   : > { %v6184_v23 = vor.u32 %v6182_v45, %v14365_v62  ;;  %v6085_v49 = vmax.f32 %v6053_v10, 0.0  ;;  %v5758_v1 = vsel %vm12694_vm8, %v11311_v39, %v16696_v3  ;;  %v5316_v33 = vrot.slane %v5314_v53, 5 }
 0x631   : > { %v5913_v37 = vpop.f32.mrf.mxu3  ;;  %11266 = vmatmul.msk.bf16.gmra.mxu1 %vm1041_vm0, %v11861_v59  ;;  %v16697_v15 = vunpack.c.l.b16 %v14311_v21  ;;  %11349 = vmatmul.msk.bf16.gmra.mxu0 %vm7070_vm10, %v7049_v38  ;;  %v5415_v24 = vpack.c.b16 %v5396_v57, %v14320_v16  ;;  %v5307_v53 = vsel %vm12668_vm3, %v5302_v7, %v14267_v40  ;;  %v5807_v14 = vunpack.c.l.b16 %v5758_v1  ;;  %v4976_v38 = vld [vmem:[#allocation2 + $0xc0] sm:$0xf] }
 0x632   : > { %v6480_v56 = vsel %vm12535_vm14, %v6184_v23, %v6479_v19  ;;  %v6117_v61 = vpack.c.bf16 %v6085_v49, %v6085_v49  ;;  %v5984_v52 = vadd.f32 %v5913_v37, %v5574_v4  ;;  %v14386_v41 = vld [vmem:[#allocation3 + $0x1c] sm:$0xf]  ;;  %v5761_v45 = vsel %vm12694_vm8, %v14290_v43, %v5760_v13  ;;  %v6483_v23 = vld [vmem:[#allocation3 + $0x2c] sm:$0x1] }
 0x633   : > { %v14384_v26 = vpack.c.b16 %v5806_v58, %v16697_v15  ;;  %6481 = vst [vmem:[#allocation3 + $0x24] sm:$0xf] %v6480_v56  ;;  %v6687_v39 = vshll.u32 %v14386_v41, 16  ;;  %v14395_v21 = vld [vmem:[#allocation3 + $0x20] sm:$0x1]  ;;  %v6691_v58 = vshrl.u32 %v14386_v41, 16  ;;  %v4909_v16 = vadd.f32 %v14338_v6, %v13901_v34 }
 0x634   : > { %v6187_v35 = vshrl.u32 %v6117_v61, 16  ;;  %v6019_v50 = vmul.f32 %v14142_v60, %v5984_v52  ;;  %v6684_v10 = vor.u32 %v6683_v42, %v6680_v11  ;;  %v5317_v40 = vsel %vm12668_vm3, %v14300_v54, %v5316_v33 }
 0x635   : > { %v6689_v29 = vrot.slane %v6687_v39, 5  ;;  %v6190_v19 = vshll.u32 %v6117_v61, 16  ;;  %v5505_v55 = vpop.f32.mrf.mxu2  ;;  %v6693_v57 = vrot.slane %v6691_v58, 4  ;;  %v6185_v7 = vrot.slane %v14365_v62, 4  ;;  %v4588_v43 = vpop.f32.mrf.mxu0  ;;  %v14422_v39 = vld [vmem:[#allocation2 + $0xc4] sm:$0xf] }
 0x636   : > { %v6189_v22 = vrot.slane %v6187_v35, 7  ;;  %v6054_v4 = vadd.f32 %v14165_v5, %v6019_v50  ;;  %v5575_v49 = vadd.f32 %v5505_v55, %v4909_v16  ;;  %v14408_v59 = vpop.f32.mrf.mxu1  ;;  %v6697_v34 = vshll.u32 %v14395_v21, 16 }
 0x637   : > { %v5808_v6 = vunpack.c.l.b16 %v5761_v45  ;;  %v14412_v54 = vadd.f32 %v4588_v43, %v14019_v32  ;;  %v6685_v11 = vrot.slane %v6684_v10, 4  ;;  %v6694_v42 = vor.u32 %v6693_v57, %v6689_v29 }
 0x638   : > { %v6192_v3 = vor.u32 %v6190_v19, %v6189_v22  ;;  %v6194_v1 = vrot.slane %v6189_v22, 4  ;;  %v6086_v13 = vmax.f32 %v6054_v4, 0.0  ;;  %v14414_v33 = vunpack.c.l.b16 %v5307_v53 }
 0x639   : > { %v5915_v37 = vpop.f32.mrf.mxu3  ;;  %v14416_v62 = vunpack.c.l.b16 %v5317_v40  ;;  %v6695_v32 = vrot.slane %v6694_v42, 4  ;;  %v6699_v35 = vrot.slane %v6697_v34, 5  ;;  %v14426_v53 = vpack.c.b16 %v5808_v6, %v5807_v14  ;;  %v14444_v34 = vld [vmem:[#allocation2 + $0xc8] sm:$0x1] }
 0x63a   : > { %v6193_v56 = vsel %vm12183_vm4, %v6185_v7, %v6192_v3  ;;  %v6484_v61 = vsel %vm12241_vm7, %v6194_v1, %v6483_v23  ;;  %v6118_v52 = vpack.c.bf16 %v6086_v13, %v6086_v13  ;;  %v5985_v15 = vadd.f32 %v5915_v37, %v5575_v49  ;;  %11294 = vmatmul.msk.bf16.gmra.mxu2 %vm1041_vm0, %v5415_v24  ;;  %v6585_v10 = vld [vmem:[#allocation3 + $0x24] sm:$0xf]  ;;  %v6486_v23 = vld [vmem:[#allocation3 + $0x30] sm:$0xf] }
 0x63b   : > { %6482 = vst.msk [vmem:[#allocation3 + $0x28] sm:$0xf] %vm464_vm9, %v6193_v56  ;;  %v5319_v50 = vshrl.u32 %v4976_v38, 16  ;;  %v6690_v16 = vsel %vm12668_vm3, %v6685_v11, %v6689_v29  ;;  %v5322_v40 = vshll.u32 %v4976_v38, 16  ;;  %v4910_v22 = vadd.f32 %v14372_v9, %v13926_v44  ;;  %v11862_v38 = vld [vmem:[#allocation2 + $0xb4] sm:$0xff] }
 0x63c   : > { %6485 = vst [vmem:[#allocation3 + $0x2c] sm:$0x1] %v6484_v61  ;;  %v6196_v58 = vshrl.u32 %v6118_v52, 16  ;;  %v6020_v45 = vmul.f32 %v14142_v60, %v5985_v15  ;;  %v6700_v24 = vsel %vm12668_vm3, %v6695_v32, %v6699_v35  ;;  %v6702_v19 = vshrl.u32 %v6585_v10, 16 }
 0x63d   : > { %v6705_v4 = vshll.u32 %v6585_v10, 16  ;;  %v6199_v55 = vshll.u32 %v6118_v52, 16  ;;  %v5508_v7 = vpop.f32.mrf.mxu2  ;;  %v7021_v29 = vunpack.c.l.b16 %v6700_v24  ;;  %v14440_v43 = vpop.f32.mrf.mxu0  ;;  %v7020_v9 = vunpack.c.l.b16 %v6690_v16  ;;  %v16698_v16 = vld [vmem:[#allocation19_spill] sm:$0xff] }
 0x63e   : > { %v14435_v14 = vrot.slane %v6196_v58, 7  ;;  %v6055_v57 = vadd.f32 %v14165_v5, %v6020_v45  ;;  %11338 = vmatmul.msk.bf16.gmra.mxu3 %vm1041_vm0, %v14384_v26  ;;  %v5576_v49 = vadd.f32 %v5508_v7, %v4910_v22  ;;  %v14442_v44 = vpop.f32.mrf.mxu1  ;;  %v5328_v6 = vshll.u32 %v14422_v39, 16 }
 0x63f   : > { %v5332_v3 = vshrl.u32 %v14422_v39, 16  ;;  %v5416_v26 = vpack.c.b16 %v14416_v62, %v14414_v33  ;;  %v5321_v37 = vrot.slane %v5319_v50, 4  ;;  %v7050_v11 = vpack.c.b16 %v7021_v29, %v7020_v9 }
 0x640   : > { %v6201_v1 = vor.u32 %v6199_v55, %v14435_v14  ;;  %v6087_v13 = vmax.f32 %v6055_v57, 0.0  ;;  %v6704_v56 = vrot.slane %v6702_v19, 4  ;;  %v6707_v61 = vrot.slane %v6705_v4, 5 }
 0x641   : > { %v5918_v42 = vpop.f32.mrf.mxu3  ;;  %v5324_v52 = vrot.slane %v5322_v40, 5  ;;  %11267 = vmatmul.msk.bf16.gmra.mxu1 %vm1041_vm0, %v11862_v38  ;;  %v5338_v45 = vshll.u32 %v14444_v34, 16  ;;  %v4612_v33 = vadd.f32 %v13938_v47, %v16698_v16  ;;  %11350 = vmatmul.msk.bf16.gmra.mxu0 %vm7070_vm10, %v7050_v11  ;;  %v14461_v50 = vrot.slane %v5328_v6, 5 }
 0x642   : > { %v6487_v15 = vsel %vm12535_vm14, %v6201_v1, %v6486_v23  ;;  %v6119_v32 = vpack.c.bf16 %v6087_v13, %v6087_v13  ;;  %v5986_v35 = vadd.f32 %v5918_v42, %v5576_v49  ;;  %v14454_v58 = vld [vmem:[#allocation3 + $0x28] sm:$0xf]  ;;  %v5334_v10 = vrot.slane %v5332_v3, 4  ;;  %v6490_v13 = vld [vmem:[#allocation3 + $0x38] sm:$0x1] }
 0x643   : > { %6488 = vst [vmem:[#allocation3 + $0x30] sm:$0xf] %v6487_v15  ;;  %v6711_v62 = vshll.u32 %v14454_v58, 16  ;;  %v14464_v24 = vld [vmem:[#allocation3 + $0x2c] sm:$0x1]  ;;  %v6715_v19 = vshrl.u32 %v14454_v58, 16  ;;  %v4911_v55 = vadd.f32 %v14408_v59, %v4612_v33  ;;  %v6708_v47 = vor.u32 %v6707_v61, %v6704_v56 }
 0x644   : > { %v6204_v40 = vshrl.u32 %v6119_v32, 16  ;;  %v6021_v22 = vmul.f32 %v14142_v60, %v5986_v35  ;;  %v5764_v4 = vrot.slane %v14422_v39, 5  ;;  %v5325_v7 = vor.u32 %v5324_v52, %v5321_v37  ;;  %v14470_v3 = vld [vmem:[#allocation2 + $0xc0] sm:$0xe] }
 0x645   : > { %v6713_v57 = vrot.slane %v6711_v62, 5  ;;  %v6207_v23 = vshll.u32 %v6119_v32, 16  ;;  %v5510_v9 = vpop.f32.mrf.mxu2  ;;  %v6717_v6 = vrot.slane %v6715_v19, 4  ;;  %v6202_v1 = vrot.slane %v14435_v14, 4  ;;  %v4593_v11 = vpop.f32.mrf.mxu0 }
 0x646   : > { %v6206_v29 = vrot.slane %v6204_v40, 7  ;;  %v6056_v49 = vadd.f32 %v14165_v5, %v6021_v22  ;;  %v5577_v38 = vadd.f32 %v5510_v9, %v4911_v55  ;;  %v14473_v42 = vpop.f32.mrf.mxu1  ;;  %v6721_v59 = vshll.u32 %v14464_v24, 16 }
 0x647   : > { %v5335_v56 = vor.u32 %v5334_v10, %v14461_v50  ;;  %v14478_v15 = vadd.f32 %v4593_v11, %v14051_v27  ;;  %v6709_v35 = vrot.slane %v6708_v47, 4  ;;  %v6718_v16 = vor.u32 %v6717_v6, %v6713_v57 }
 0x648   : > { %v6209_v37 = vor.u32 %v6207_v23, %v6206_v29  ;;  %v6211_v61 = vrot.slane %v6206_v29, 4  ;;  %v6088_v52 = vmax.f32 %v6056_v49, 0.0  ;;  %v11312_v14 = vrot.slane %v14470_v3, 9 }
 0x649   : > { %v5920_v32 = vpop.f32.mrf.mxu3  ;;  %v5767_v33 = vrot.slane %v14444_v34, 5  ;;  %v6719_v27 = vrot.slane %v6718_v16, 4  ;;  %v6723_v19 = vrot.slane %v6721_v59, 5  ;;  %v5326_v55 = vrot.slane %v5325_v7, 4 }
 0x64a   : > { %v6210_v62 = vsel %vm12183_vm4, %v6202_v1, %v6209_v37  ;;  %v6491_v40 = vsel %vm12241_vm7, %v6211_v61, %v6490_v13  ;;  %v6120_v10 = vpack.c.bf16 %v6088_v52, %v6088_v52  ;;  %v5987_v22 = vadd.f32 %v5920_v32, %v5577_v38  ;;  %11295 = vmatmul.msk.bf16.gmra.mxu2 %vm1041_vm0, %v5416_v26  ;;  %v6587_v6 = vld [vmem:[#allocation3 + $0x30] sm:$0xf] }
 0x64b   : > { %6489 = vst.msk [vmem:[#allocation3 + $0x34] sm:$0xf] %vm464_vm9, %v6210_v62  ;;  %v5766_v47 = vrot.slane %v5764_v4, 4  ;;  %v6714_v49 = vsel %vm12668_vm3, %v6709_v35, %v6713_v57  ;;  %v5336_v9 = vrot.slane %v5335_v56, 4  ;;  %v4912_v3 = vadd.f32 %v14442_v44, %v13965_v18  ;;  %v6493_v56 = vld [vmem:[#allocation3 + $0x3c] sm:$0xf] }
 0x64c   : > { %6492 = vst [vmem:[#allocation3 + $0x38] sm:$0x1] %v6491_v40  ;;  %v6213_v29 = vshrl.u32 %v6120_v10, 16  ;;  %v6022_v23 = vmul.f32 %v14142_v60, %v5987_v22  ;;  %v6724_v26 = vsel %vm12668_vm3, %v6719_v27, %v6723_v19  ;;  %v6726_v1 = vshrl.u32 %v6587_v6, 16  ;;  %v11863_v62 = vld [vmem:[#allocation2 + $0xc0] sm:$0xff] }
 0x64d   : > { %v6729_v7 = vshll.u32 %v6587_v6, 16  ;;  %v6216_v38 = vshll.u32 %v6120_v10, 16  ;;  %v5513_v59 = vpop.f32.mrf.mxu2  ;;  %v7023_v57 = vunpack.c.l.b16 %v6724_v26  ;;  %v14502_v61 = vpop.f32.mrf.mxu0  ;;  %v7022_v44 = vunpack.c.l.b16 %v6714_v49  ;;  %v16699_v49 = vld [vmem:[#allocation11_spill] sm:$0xff] }
 0x64e   : > { %v14497_v13 = vrot.slane %v6213_v29, 7  ;;  %v6057_v11 = vadd.f32 %v14165_v5, %v6022_v23  ;;  %11339 = vmatmul.msk.bf16.gmra.mxu3 %vm1041_vm0, %v14426_v53  ;;  %v5578_v37 = vadd.f32 %v5513_v59, %v4912_v3  ;;  %v14504_v18 = vpop.f32.mrf.mxu1  ;;  %v6728_v52 = vrot.slane %v6726_v1, 4 }
 0x64f   : > { %v6731_v32 = vrot.slane %v6729_v7, 5  ;;  %v5340_v40 = vrot.slane %v5338_v45, 5  ;;  %v7051_v10 = vpack.c.b16 %v7023_v57, %v7022_v44  ;;  %v5331_v53 = vsel %vm12668_vm3, %v5326_v55, %v14461_v50 }
 0x650   : > { %v6218_v35 = vor.u32 %v6216_v38, %v14497_v13  ;;  %v6089_v16 = vmax.f32 %v6057_v11, 0.0  ;;  %v5768_v27 = vsel %vm12694_vm8, %v5766_v47, %v5767_v33  ;;  %v4614_v6 = vadd.f32 %v13976_v20, %v16699_v49 }
 0x651   : > { %v5923_v22 = vpop.f32.mrf.mxu3  ;;  %11268 = vmatmul.msk.bf16.gmra.mxu1 %vm1041_vm0, %v11863_v62  ;;  %v5341_v34 = vsel %vm12668_vm3, %v5336_v9, %v5340_v40  ;;  %11351 = vmatmul.msk.bf16.gmra.mxu0 %vm7070_vm10, %v7051_v10  ;;  %v5765_v50 = vsel %vm12694_vm8, %v11312_v14, %v5764_v4  ;;  %v6732_v33 = vor.u32 %v6731_v32, %v6728_v52  ;;  %v5810_v9 = vunpack.c.l.b16 %v5768_v27 }
 0x652   : > { %v6494_v19 = vsel %vm12535_vm14, %v6218_v35, %v6493_v56  ;;  %v6121_v29 = vpack.c.bf16 %v6089_v16, %v6089_v16  ;;  %v5988_v23 = vadd.f32 %v5923_v22, %v5578_v37  ;;  %v14519_v45 = vld [vmem:[#allocation3 + $0x34] sm:$0xf]  ;;  %v4913_v20 = vadd.f32 %v14473_v42, %v4614_v6  ;;  %v6497_v37 = vld [vmem:[#allocation3 + $0x44] sm:$0x1]  ;;  %v16700_v6 = vld [vmem:[#allocation12_spill] sm:$0xff] }
 0x653   : > { %6495 = vst [vmem:[#allocation3 + $0x3c] sm:$0xf] %v6494_v19  ;;  %v6735_v55 = vshll.u32 %v14519_v45, 16  ;;  %v14530_v26 = vld [vmem:[#allocation3 + $0x38] sm:$0x1]  ;;  %v6739_v1 = vshrl.u32 %v14519_v45, 16  ;;  %v5399_v7 = vunpack.c.l.b16 %v5331_v53  ;;  %v5400_v38 = vunpack.c.l.b16 %v5341_v34 }
 0x654   : > { %v6221_v47 = vshrl.u32 %v6121_v29, 16  ;;  %v6023_v3 = vmul.f32 %v14142_v60, %v5988_v23  ;;  %v6224_v59 = vshll.u32 %v6121_v29, 16  ;;  %v6219_v56 = vrot.slane %v14497_v13, 4 }
 0x655   : > { %v6737_v11 = vrot.slane %v6735_v55, 5  ;;  %v5515_v14 = vpop.f32.mrf.mxu2  ;;  %v6741_v57 = vrot.slane %v6739_v1, 4  ;;  %v4598_v52 = vpop.f32.mrf.mxu0  ;;  %v6733_v35 = vrot.slane %v6732_v33, 4  ;;  %v6745_v16 = vshll.u32 %v14530_v26, 16 }
 0x656   : > { %v6223_v39 = vrot.slane %v6221_v47, 7  ;;  %v6058_v4 = vadd.f32 %v14165_v5, %v6023_v3  ;;  %v5579_v44 = vadd.f32 %v5515_v14, %v4913_v20  ;;  %v4854_v32 = vpop.f32.mrf.mxu1  ;;  %v14538_v10 = vadd.f32 %v4598_v52, %v14087_v30 }
 0x657   : > { %v5417_v53 = vpack.c.b16 %v5400_v38, %v5399_v7  ;;  %v5809_v27 = vunpack.c.l.b16 %v5765_v50  ;;  %v6738_v19 = vsel %vm12668_vm3, %v6733_v35, %v6737_v11  ;;  %v6742_v13 = vor.u32 %v6741_v57, %v6737_v11  ;;  %v4979_v7 = vld [vmem:[#allocation2 + $0xcc] sm:$0xf]  ;;  %v4980_v11 = vld [vmem:[#allocation2 + $0xd0] sm:$0xf] }
 0x658   : > { %v6226_v62 = vor.u32 %v6224_v59, %v6223_v39  ;;  %v6228_v42 = vrot.slane %v6223_v39, 4  ;;  %v6090_v40 = vmax.f32 %v6058_v4, 0.0  ;;  %v4616_v33 = vadd.f32 %v14011_v12, %v16700_v6 }
 0x659   : > { %v5925_v22 = vpop.f32.mrf.mxu3  ;;  %v5827_v30 = vpack.c.b16 %v5810_v9, %v5809_v27  ;;  %v6743_v50 = vrot.slane %v6742_v13, 4  ;;  %v6747_v55 = vrot.slane %v6745_v16, 5  ;;  %v4914_v47 = vadd.f32 %v14504_v18, %v14002_v25  ;;  %v11864_v18 = vld [vmem:[#allocation2 + $0xcc] sm:$0xff] }
 0x65a   : > { %v6227_v29 = vsel %vm12183_vm4, %v6219_v56, %v6226_v62  ;;  %v6498_v23 = vsel %vm12241_vm7, %v6228_v42, %v6497_v37  ;;  %v6122_v34 = vpack.c.bf16 %v6090_v40, %v6090_v40  ;;  %v5989_v49 = vadd.f32 %v5925_v22, %v5579_v44  ;;  %11296 = vmatmul.msk.bf16.gmra.mxu2 %vm1041_vm0, %v5417_v53  ;;  %v4981_v40 = vld [vmem:[#allocation2 + $0xd4] sm:$0x1]  ;;  %v5615_v22 = vld [vmem:[#allocation2 + $0xcc] sm:$0xe] }
 0x65b   : > { %6496 = vst.msk [vmem:[#allocation3 + $0x40] sm:$0xf] %vm464_vm9, %v6227_v29  ;;  %v7024_v20 = vunpack.c.l.b16 %v6738_v19  ;;  %v6748_v12 = vsel %vm12668_vm3, %v6743_v50, %v6747_v55  ;;  %v5343_v39 = vshrl.u32 %v4979_v7, 16  ;;  %v5346_v59 = vshll.u32 %v4979_v7, 16  ;;  %v16701_v50 = vld [vmem:[#allocation18_spill] sm:$0xff] }
 0x65c   : > { %6499 = vst [vmem:[#allocation3 + $0x44] sm:$0x1] %v6498_v23  ;;  %v6230_v3 = vshrl.u32 %v6122_v34, 16  ;;  %v6024_v1 = vmul.f32 %v14142_v60, %v5989_v49  ;;  %v6233_v38 = vshll.u32 %v6122_v34, 16  ;;  %v7025_v25 = vunpack.c.l.b16 %v6748_v12  ;;  %v6500_v60 = vld [vmem:[#allocation3 + $0x48] sm:$0xf] }
 0x65d   : > { %v5518_v14 = vpop.f32.mrf.mxu2  ;;  %v5352_v57 = vshll.u32 %v4980_v11, 16  ;;  %v5345_v44 = vrot.slane %v5343_v39, 4  ;;  %v5348_v52 = vrot.slane %v5346_v59, 5  ;;  %v5356_v35 = vshrl.u32 %v4980_v11, 16 }
 0x65e   : > { %v14555_v4 = vrot.slane %v6230_v3, 7  ;;  %v6059_v9 = vadd.f32 %v14165_v5, %v6024_v1  ;;  %11340 = vmatmul.msk.bf16.gmra.mxu3 %vm1041_vm0, %v5827_v30  ;;  %v5580_v56 = vadd.f32 %v5518_v14, %v4914_v47  ;;  %v4857_v37 = vpop.f32.mrf.mxu1  ;;  %v14561_v16 = vadd.f32 %v14046_v17, %v13824_v36  ;;  %v14573_v47 = vld [vmem:[%s16584_s6] ss:$0 sm:$0xff] }
 0x65f   : > { %v4915_v42 = vadd.f32 %v4854_v32, %v4616_v33  ;;  %v7052_v27 = vpack.c.b16 %v7025_v25, %v7024_v20  ;;  %v5349_v13 = vor.u32 %v5348_v52, %v5345_v44  ;;  %v5354_v29 = vrot.slane %v5352_v57, 5  ;;  %v6589_v20 = vld [vmem:[#allocation3 + $0x3c] sm:$0xf] }
 0x660   : > { %v6235_v62 = vor.u32 %v6233_v38, %v14555_v4  ;;  %v6091_v5 = vmax.f32 %v6059_v9, 0.0  ;;  %v6236_v53 = vrot.slane %v14555_v4, 4  ;;  %v5358_v36 = vrot.slane %v5356_v35, 4  ;;  %v14583_v4 = vld [vmem:[%s16585_s7] ss:$0 sm:$0xff] }
 0x661   : > { %v5928_v19 = vpop.f32.mrf.mxu3  ;;  %11269 = vmatmul.msk.bf16.gmra.mxu1 %vm1041_vm0, %v11864_v18  ;;  %11352 = vmatmul.msk.bf16.gmra.mxu0 %vm7070_vm10, %v7052_v27  ;;  %v5350_v17 = vrot.slane %v5349_v13, 4  ;;  %v5362_v32 = vshll.u32 %v4981_v40, 16  ;;  %v11313_v6 = vrot.slane %v5615_v22, 9  ;;  %v5771_v33 = vrot.slane %v4980_v11, 5  ;;  %v6504_v18 = vld [vmem:[#allocation3 + $0x50] sm:$0x1] }
 0x662   : > { %v6501_v23 = vsel %vm12535_vm14, %v6235_v62, %v6500_v60  ;;  %v6123_v34 = vpack.c.bf16 %v6091_v5, %v6091_v5  ;;  %v5990_v49 = vadd.f32 %v5928_v19, %v5580_v56  ;;  %v4916_v55 = vadd.f32 %v4857_v37, %v16701_v50  ;;  %v14586_v22 = vld [vmem:[#allocation3 + $0x40] sm:$0xf] }
 0x663   : > { %6502 = vst [vmem:[#allocation3 + $0x48] sm:$0xf] %v6501_v23  ;;  %v5359_v1 = vor.u32 %v5358_v36, %v5354_v29  ;;  %v5355_v7 = vsel %vm12668_vm3, %v5350_v17, %v5354_v29  ;;  %v5364_v38 = vrot.slane %v5362_v32, 5  ;;  %v5772_v12 = vsel %vm12694_vm8, %v11313_v6, %v5771_v33  ;;  %v14597_v32 = vld [vmem:[#allocation3 + $0x44] sm:$0x1] }
 0x664   : > { %v6238_v30 = vshrl.u32 %v6123_v34, 16  ;;  %v6025_v3 = vmul.f32 %v14573_v47, %v5990_v49  ;;  %v5773_v11 = vrot.slane %v5771_v33, 4  ;;  %v6241_v59 = vshll.u32 %v6123_v34, 16 }
 0x665   : > { %v5520_v14 = vpop.f32.mrf.mxu2  ;;  %v5360_v25 = vrot.slane %v5359_v1, 4  ;;  %v5401_v56 = vunpack.c.l.b16 %v5355_v7  ;;  %v5774_v37 = vrot.slane %v4981_v40, 5  ;;  %v6750_v44 = vshrl.u32 %v6589_v20, 16 }
 0x666   : > { %v6240_v39 = vrot.slane %v6238_v30, 7  ;;  %v6060_v9 = vadd.f32 %v14583_v4, %v6025_v3  ;;  %v5581_v57 = vadd.f32 %v5520_v14, %v4915_v42  ;;  %v4859_v60 = vpop.f32.mrf.mxu1  ;;  %v5811_v5 = vunpack.c.l.b16 %v5772_v12  ;;  %v7431_v12 = vld [vmem:[#allocation3] sm:$0xe] }
 0x667   : > { %v5365_v19 = vsel %vm12668_vm3, %v5360_v25, %v5364_v38  ;;  %v5775_v13 = vsel %vm12694_vm8, %v5773_v11, %v5774_v37  ;;  %v6752_v29 = vrot.slane %v6750_v44, 4  ;;  %v6753_v23 = vshll.u32 %v6589_v20, 16  ;;  %v11871_v25 = vld [vmem:[#allocation3] sm:$0xff] }
 0x668   : > { %v6243_v52 = vor.u32 %v6241_v59, %v6240_v39  ;;  %v6245_v35 = vrot.slane %v6240_v39, 4  ;;  %v6092_v62 = vmax.f32 %v6060_v9, 0.0  ;;  %v5402_v36 = vunpack.c.l.b16 %v5365_v19 }
 0x669   : > { %v5930_v27 = vpop.f32.mrf.mxu3  ;;  %v5812_v17 = vunpack.c.l.b16 %v5775_v13  ;;  %v6755_v6 = vrot.slane %v6753_v23, 5  ;;  %v6759_v33 = vshll.u32 %v14586_v22, 16  ;;  %v6769_v14 = vshll.u32 %v14597_v32, 16 }
 0x66a   : > { %v6244_v42 = vsel %vm12183_vm4, %v6236_v53, %v6243_v52  ;;  %v6505_v40 = vsel %vm12241_vm7, %v6245_v35, %v6504_v18  ;;  %v6124_v34 = vpack.c.bf16 %v6092_v62, %v6092_v62  ;;  %v5991_v49 = vadd.f32 %v5930_v27, %v5581_v57  ;;  %v6507_v18 = vld [vmem:[#allocation3 + $0x54] sm:$0xf]  ;;  %v12015_v52 = vld [vmem:[#allocation3 + $0x4] sm:$0xf] }
 0x66b   : > { %6503 = vst.msk [vmem:[#allocation3 + $0x4c] sm:$0xf] %vm464_vm9, %v6244_v42  ;;  %v6763_v53 = vshrl.u32 %v14586_v22, 16  ;;  %v5418_v1 = vpack.c.b16 %v5402_v36, %v5401_v56  ;;  %v5828_v20 = vpack.c.b16 %v5812_v17, %v5811_v5  ;;  %v6756_v7 = vor.u32 %v6755_v6, %v6752_v29  ;;  %v6591_v42 = vld [vmem:[#allocation3 + $0x48] sm:$0xf] }
 0x66c   : > { %6506 = vst [vmem:[#allocation3 + $0x50] sm:$0x1] %v6505_v40  ;;  %v6247_v30 = vshrl.u32 %v6124_v34, 16  ;;  %v6250_v50 = vshll.u32 %v6124_v34, 16  ;;  %v6026_v3 = vmul.f32 %v14573_v47, %v5991_v49  ;;  %v6761_v38 = vrot.slane %v6759_v33, 5 }
 0x66d   : > { %v5523_v59 = vpop.f32.mrf.mxu2  ;;  %v6765_v9 = vrot.slane %v6763_v53, 4  ;;  %11297 = vmatmul.msk.bf16.gmra.mxu2 %vm1041_vm0, %v5418_v1  ;;  %v6757_v37 = vrot.slane %v6756_v7, 4  ;;  %v11448_v44 = vrot.slane %v7431_v12, 9  ;;  %v7481_v35 = vrot.slane %v12015_v52, 5  ;;  %v12016_v33 = vld [vmem:[#allocation3 + $0x8] sm:$0x1] }
 0x66e   : > { %v14602_v11 = vrot.slane %v6247_v30, 7  ;;  %v6061_v39 = vadd.f32 %v14583_v4, %v6026_v3  ;;  %v5582_v57 = vadd.f32 %v5523_v59, %v4916_v55  ;;  %11341 = vmatmul.msk.bf16.gmra.mxu3 %vm1041_vm0, %v5828_v20  ;;  %v14608_v56 = vpop.f32.mrf.mxu1  ;;  %v4917_v5 = vadd.f32 %v4859_v60, %v14561_v16 }
 0x66f   : > { %v6762_v13 = vsel %vm12668_vm3, %v6757_v37, %v6761_v38  ;;  %v6766_v29 = vor.u32 %v6765_v9, %v6761_v38  ;;  %v7482_v23 = vsel %vm12694_vm8, %v11448_v44, %v7481_v35  ;;  %v6771_v49 = vrot.slane %v6769_v14, 5 }
 0x670   : > { %v6252_v62 = vor.u32 %v6250_v50, %v14602_v11  ;;  %v6093_v27 = vmax.f32 %v6061_v39, 0.0  ;;  %v6253_v19 = vrot.slane %v14602_v11, 4  ;;  %v7026_v17 = vunpack.c.l.b16 %v6762_v13 }
 0x671   : > { %v5933_v55 = vpop.f32.mrf.mxu3  ;;  %11432 = vmatmul.msk.bf16.vlgmr.msra.gmra.mxu1 %vm7070_vm10, %v11871_v25  ;;  %v6767_v60 = vrot.slane %v6766_v29, 4  ;;  %v7483_v6 = vrot.slane %v7481_v35, 4  ;;  %v7484_v30 = vrot.slane %v12016_v33, 5  ;;  %v7594_v53 = vunpack.c.l.b16 %v7482_v23  ;;  %v6511_v25 = vld [vmem:[#allocation3 + $0x5c] sm:$0x1] }
 0x672   : > { %v6508_v40 = vsel %vm12535_vm14, %v6252_v62, %v6507_v18  ;;  %v6125_v34 = vpack.c.bf16 %v6093_v27, %v6093_v27  ;;  %v5992_v36 = vadd.f32 %v5933_v55, %v5582_v57  ;;  %v14620_v16 = vld [vmem:[#allocation3 + $0x4c] sm:$0xf]  ;;  %v6774_v1 = vshrl.u32 %v6591_v42, 16 }
 0x673   : > { %6509 = vst [vmem:[#allocation3 + $0x54] sm:$0xf] %v6508_v40  ;;  %v6772_v20 = vsel %vm12668_vm3, %v6767_v60, %v6771_v49  ;;  %v7485_v7 = vsel %vm12694_vm8, %v7483_v6, %v7484_v30  ;;  %v6777_v38 = vshll.u32 %v6591_v42, 16  ;;  %v6783_v12 = vshll.u32 %v14620_v16, 16  ;;  %v14629_v29 = vld [vmem:[#allocation3 + $0x50] sm:$0x1] }
 0x674   : > { %v6255_v50 = vshrl.u32 %v6125_v34, 16  ;;  %v6027_v3 = vmul.f32 %v14573_v47, %v5992_v36  ;;  %v6258_v39 = vshll.u32 %v6125_v34, 16  ;;  %v7027_v59 = vunpack.c.l.b16 %v6772_v20 }
 0x675   : > { %v5525_v14 = vpop.f32.mrf.mxu2  ;;  %v7595_v37 = vunpack.c.l.b16 %v7485_v7  ;;  %v6776_v44 = vrot.slane %v6774_v1, 4  ;;  %v6779_v52 = vrot.slane %v6777_v38, 5  ;;  %v6785_v42 = vrot.slane %v6783_v12, 5  ;;  %v16703_v38 = vld [vmem:[#allocation14_spill] sm:$0xff]  ;;  %v16704_v12 = vld [vmem:[#allocation23_spill] sm:$0xff] }
 0x676   : > { %v6257_v11 = vrot.slane %v6255_v50, 7  ;;  %v6062_v9 = vadd.f32 %v14583_v4, %v6027_v3  ;;  %v5583_v18 = vadd.f32 %v5525_v14, %v4917_v5  ;;  %v4864_v57 = vpop.f32.mrf.mxu1  ;;  %v7053_v27 = vpack.c.b16 %v7027_v59, %v7026_v17  ;;  %v16702_v50 = vld [vmem:[#allocation9_spill] sm:$0xff]  ;;  %v11890_v3 = vld [vmem:[#allocation3 + $0xc] sm:$0xff] }
 0x677   : > { %v6780_v23 = vor.u32 %v6779_v52, %v6776_v44  ;;  %v6787_v40 = vshrl.u32 %v14620_v16, 16  ;;  %v7626_v60 = vpack.c.b16 %v7595_v37, %v7594_v53  ;;  %v6793_v6 = vshll.u32 %v14629_v29, 16  ;;  %v7432_v14 = vld [vmem:[#allocation3 + $0xc] sm:$0xe] }
 0x678   : > { %v6260_v35 = vor.u32 %v6258_v39, %v6257_v11  ;;  %v6262_v62 = vrot.slane %v6257_v11, 4  ;;  %v6094_v13 = vmax.f32 %v6062_v9, 0.0  ;;  %11353 = vmatmul.msk.bf16.gmra.mxu0 %vm7070_vm10, %v7053_v27  ;;  %v7488_v7 = vrot.slane %v14318_v48, 5 }
 0x679   : > { %v5935_v55 = vpop.f32.mrf.mxu3  ;;  %v6789_v17 = vrot.slane %v6787_v40, 4  ;;  %v6781_v1 = vrot.slane %v6780_v23, 4  ;;  %v4620_v11 = vadd.f32 %v16704_v12, %v16703_v38  ;;  %v6795_v44 = vrot.slane %v6793_v6, 5 }
 0x67a   : > { %v6261_v34 = vsel %vm12183_vm4, %v6253_v19, %v6260_v35  ;;  %v6512_v5 = vsel %vm12241_vm7, %v6262_v62, %v6511_v25  ;;  %v6126_v49 = vpack.c.bf16 %v6094_v13, %v6094_v13  ;;  %v5993_v36 = vadd.f32 %v5935_v55, %v5583_v18  ;;  %v6593_v25 = vld [vmem:[#allocation3 + $0x54] sm:$0xf]  ;;  %v6514_v18 = vld [vmem:[#allocation3 + $0x60] sm:$0xf]  ;;  %v11872_v13 = vld [vmem:[#allocation3 + $0xc] sm:$0xff] }
 0x67b   : > { %6510 = vst.msk [vmem:[#allocation3 + $0x58] sm:$0xf] %vm464_vm9, %v6261_v34  ;;  %v4918_v19 = vadd.f32 %v14608_v56, %v16702_v50  ;;  %v6790_v20 = vor.u32 %v6789_v17, %v6785_v42  ;;  %v4919_v35 = vadd.f32 %v4864_v57, %v4620_v11  ;;  %v6786_v27 = vsel %vm12668_vm3, %v6781_v1, %v6785_v42 }
 0x67c   : > { %6513 = vst [vmem:[#allocation3 + $0x5c] sm:$0x1] %v6512_v5  ;;  %v6264_v33 = vshrl.u32 %v6126_v49, 16  ;;  %v6028_v30 = vmul.f32 %v14573_v47, %v5993_v36  ;;  %v6267_v53 = vshll.u32 %v6126_v49, 16  ;;  %v11449_v40 = vrot.slane %v7432_v14, 9 }
 0x67d   : > { %v5528_v9 = vpop.f32.mrf.mxu2  ;;  %11470 = vmatmul.msk.bf16.vlgmr.msrb.gmra.mxu2 %vm7070_vm10, %v7626_v60  ;;  %v6791_v48 = vrot.slane %v6790_v20, 4  ;;  %v7490_v34 = vrot.slane %v7488_v7, 4  ;;  %v6798_v5 = vshrl.u32 %v6593_v25, 16  ;;  %v7028_v42 = vunpack.c.l.b16 %v6786_v27 }
 0x67e   : > { %v14645_v39 = vrot.slane %v6264_v33, 7  ;;  %v6063_v59 = vadd.f32 %v14583_v4, %v6028_v30  ;;  %v5584_v56 = vadd.f32 %v5528_v9, %v4918_v19  ;;  %11556 = vmatmul.msk.bf16.vlgmr.msrb.gmra.mxu3 %vm7070_vm10, %v11890_v3  ;;  %v14650_v37 = vpop.f32.mrf.mxu1  ;;  %v7491_v6 = vrot.slane %v14327_v0, 5 }
 0x67f   : > { %v6796_v55 = vsel %vm12668_vm3, %v6791_v48, %v6795_v44  ;;  %v6800_v33 = vrot.slane %v6798_v5, 4  ;;  %v6801_v30 = vshll.u32 %v6593_v25, 16  ;;  %v7489_v1 = vsel %vm12694_vm8, %v11449_v40, %v7488_v7  ;;  %v6518_v25 = vld [vmem:[#allocation3 + $0x68] sm:$0x1] }
 0x680   : > { %v6269_v52 = vor.u32 %v6267_v53, %v14645_v39  ;;  %v6095_v62 = vmax.f32 %v6063_v59, 0.0  ;;  %v7029_v60 = vunpack.c.l.b16 %v6796_v55  ;;  %v6270_v50 = vrot.slane %v14645_v39, 4 }
 0x681   : > { %v5938_v23 = vpop.f32.mrf.mxu3  ;;  %11433 = vmatmul.msk.bf16.gmra.mxu1 %vm7070_vm10, %v11872_v13  ;;  %v7492_v20 = vsel %vm12694_vm8, %v7490_v34, %v7491_v6  ;;  %v6803_v12 = vrot.slane %v6801_v30, 5  ;;  %v16705_v30 = vld [vmem:[#allocation13_spill] sm:$0xff] }
 0x682   : > { %v6515_v49 = vsel %vm12535_vm14, %v6269_v52, %v6514_v18  ;;  %v6127_v36 = vpack.c.bf16 %v6095_v62, %v6095_v62  ;;  %v5994_v17 = vadd.f32 %v5938_v23, %v5584_v56  ;;  %v14660_v57 = vld [vmem:[#allocation3 + $0x58] sm:$0xf]  ;;  %v7054_v9 = vpack.c.b16 %v7029_v60, %v7028_v42 }
 0x683   : > { %6516 = vst [vmem:[#allocation3 + $0x60] sm:$0xf] %v6515_v49  ;;  %v14669_v38 = vld [vmem:[#allocation3 + $0x5c] sm:$0x1]  ;;  %v6807_v11 = vshll.u32 %v14660_v57, 16  ;;  %v6811_v0 = vshrl.u32 %v14660_v57, 16  ;;  %v6804_v7 = vor.u32 %v6803_v12, %v6800_v33  ;;  %v7597_v23 = vunpack.c.l.b16 %v7492_v20 }
 0x684   : > { %v6272_v19 = vshrl.u32 %v6127_v36, 16  ;;  %v6029_v3 = vmul.f32 %v14573_v47, %v5994_v17  ;;  %v6275_v59 = vshll.u32 %v6127_v36, 16  ;;  %v6817_v13 = vshll.u32 %v14669_v38, 16  ;;  %v11891_v20 = vld [vmem:[#allocation3 + $0x18] sm:$0xff] }
 0x685   : > { %v5530_v14 = vpop.f32.mrf.mxu2  ;;  %v6809_v48 = vrot.slane %v6807_v11, 5  ;;  %v6813_v44 = vrot.slane %v6811_v0, 4  ;;  %v7596_v36 = vunpack.c.l.b16 %v7489_v1  ;;  %v6805_v60 = vrot.slane %v6804_v7, 4 }
 0x686   : > { %v6274_v53 = vrot.slane %v6272_v19, 7  ;;  %v6064_v39 = vadd.f32 %v14583_v4, %v6029_v3  ;;  %v5585_v18 = vadd.f32 %v5530_v14, %v4919_v35  ;;  %v4869_v56 = vpop.f32.mrf.mxu1  ;;  %v6819_v33 = vrot.slane %v6817_v13, 5 }
 0x687   : > { %v6814_v40 = vor.u32 %v6813_v44, %v6809_v48  ;;  %v7627_v3 = vpack.c.b16 %v7597_v23, %v7596_v36  ;;  %v6810_v12 = vsel %vm12668_vm3, %v6805_v60, %v6809_v48  ;;  %v11873_v44 = vld [vmem:[#allocation3 + $0x18] sm:$0xff] }
 0x688   : > { %v6277_v52 = vor.u32 %v6275_v59, %v6274_v53  ;;  %v6279_v62 = vrot.slane %v6274_v53, 4  ;;  %v6096_v27 = vmax.f32 %v6064_v39, 0.0  ;;  %11354 = vmatmul.msk.bf16.gmra.mxu0 %vm7070_vm10, %v7054_v9  ;;  %v7495_v9 = vrot.slane %v14386_v41, 5  ;;  %v6521_v39 = vld [vmem:[#allocation3 + $0x6c] sm:$0xf] }
 0x689   : > { %v5940_v55 = vpop.f32.mrf.mxu3  ;;  %v6815_v17 = vrot.slane %v6814_v40, 4 }
 0x68a   : > { %v6278_v34 = vsel %vm12183_vm4, %v6270_v50, %v6277_v52  ;;  %v6519_v5 = vsel %vm12241_vm7, %v6279_v62, %v6518_v25  ;;  %v6128_v35 = vpack.c.bf16 %v6096_v27, %v6096_v27  ;;  %v5995_v49 = vadd.f32 %v5940_v55, %v5585_v18  ;;  %v6595_v11 = vld [vmem:[#allocation3 + $0x60] sm:$0xf]  ;;  %v7433_v52 = vld [vmem:[#allocation3 + $0x18] sm:$0xe] }
 0x68b   : > { %6517 = vst.msk [vmem:[#allocation3 + $0x64] sm:$0xf] %vm464_vm9, %v6278_v34  ;;  %v4920_v50 = vadd.f32 %v14650_v37, %v16705_v30  ;;  %v6820_v59 = vsel %vm12668_vm3, %v6815_v17, %v6819_v33  ;;  %v6822_v25 = vshrl.u32 %v6595_v11, 16  ;;  %v6825_v18 = vshll.u32 %v6595_v11, 16  ;;  %v16706_v62 = vld [vmem:[#allocation8_spill] sm:$0xff]  ;;  %v16707_v27 = vld [vmem:[#allocation25_spill] sm:$0xff] }
 0x68c   : > { %6520 = vst [vmem:[#allocation3 + $0x68] sm:$0x1] %v6519_v5  ;;  %v6281_v42 = vshrl.u32 %v6128_v35, 16  ;;  %v6030_v6 = vmul.f32 %v14573_v47, %v5995_v49  ;;  %v6284_v19 = vshll.u32 %v6128_v35, 16  ;;  %v4622_v13 = vadd.f32 %v16707_v27, %v16706_v62 }
 0x68d   : > { %v5533_v53 = vpop.f32.mrf.mxu2  ;;  %11471 = vmatmul.msk.bf16.gmra.mxu2 %vm7070_vm10, %v7627_v3  ;;  %v7030_v55 = vunpack.c.l.b16 %v6810_v12  ;;  %v7031_v23 = vunpack.c.l.b16 %v6820_v59  ;;  %v7497_v35 = vrot.slane %v7495_v9, 4  ;;  %v11450_v36 = vrot.slane %v7433_v52, 9 }
 0x68e   : > { %v6283_v0 = vrot.slane %v6281_v42, 7  ;;  %v6065_v1 = vadd.f32 %v14583_v4, %v6030_v6  ;;  %v5586_v37 = vadd.f32 %v5533_v53, %v4920_v50  ;;  %11557 = vmatmul.msk.bf16.gmra.mxu3 %vm7070_vm10, %v11891_v20  ;;  %v14692_v14 = vpop.f32.mrf.mxu1  ;;  %v6824_v60 = vrot.slane %v6822_v25, 4  ;;  %v6525_v25 = vld [vmem:[#allocation3 + $0x74] sm:$0x1] }
 0x68f   : > { %v6827_v17 = vrot.slane %v6825_v18, 5  ;;  %v4921_v6 = vadd.f32 %v4869_v56, %v4622_v13  ;;  %v7498_v50 = vrot.slane %v14395_v21, 5  ;;  %v7496_v3 = vsel %vm12694_vm8, %v11450_v36, %v7495_v9 }
 0x690   : > { %v6286_v7 = vor.u32 %v6284_v19, %v6283_v0  ;;  %v6097_v48 = vmax.f32 %v6065_v1, 0.0  ;;  %v7055_v19 = vpack.c.b16 %v7031_v23, %v7030_v55  ;;  %v14709_v1 = vpop.f32.mrf.mxu0  ;;  %v6287_v21 = vrot.slane %v6283_v0, 4 }
 0x691   : > { %v5943_v41 = vpop.f32.mrf.mxu3  ;;  %11434 = vmatmul.msk.bf16.gmra.mxu1 %vm7070_vm10, %v11873_v44  ;;  %v6828_v9 = vor.u32 %v6827_v17, %v6824_v60 }
 0x692   : > { %v6522_v40 = vsel %vm12535_vm14, %v6286_v7, %v6521_v39  ;;  %v6129_v34 = vpack.c.bf16 %v6097_v48, %v6097_v48  ;;  %v5996_v5 = vadd.f32 %v5943_v41, %v5586_v37  ;;  %v14699_v49 = vld [vmem:[#allocation3 + $0x64] sm:$0xf]  ;;  %v7499_v37 = vsel %vm12694_vm8, %v7497_v35, %v7498_v50 }
 0x693   : > { %6523 = vst [vmem:[#allocation3 + $0x6c] sm:$0xf] %v6522_v40  ;;  %v6831_v42 = vshll.u32 %v14699_v49, 16  ;;  %v14706_v20 = vld [vmem:[#allocation3 + $0x68] sm:$0x1]  ;;  %v6835_v11 = vshrl.u32 %v14699_v49, 16  ;;  %v7599_v55 = vunpack.c.l.b16 %v7499_v37 }
 0x694   : > { %v6289_v33 = vshrl.u32 %v6129_v34, 16  ;;  %v6031_v30 = vmul.f32 %v14573_v47, %v5996_v5  ;;  %v6292_v59 = vshll.u32 %v6129_v34, 16  ;;  %v6841_v27 = vshll.u32 %v14706_v20, 16 }
 0x695   : > { %v6833_v12 = vrot.slane %v6831_v42, 5  ;;  %v5535_v39 = vpop.f32.mrf.mxu2  ;;  %v6837_v48 = vrot.slane %v6835_v11, 4  ;;  %v7598_v5 = vunpack.c.l.b16 %v7496_v3  ;;  %v6829_v35 = vrot.slane %v6828_v9, 4  ;;  %v11892_v11 = vld [vmem:[#allocation3 + $0x24] sm:$0xff] }
 0x696   : > { %v6291_v53 = vrot.slane %v6289_v33, 7  ;;  %v6066_v56 = vadd.f32 %v14583_v4, %v6031_v30  ;;  %v5587_v18 = vadd.f32 %v5535_v39, %v4921_v6  ;;  %v4874_v7 = vpop.f32.mrf.mxu1  ;;  %v6843_v42 = vrot.slane %v6841_v27, 5  ;;  %v16708_v6 = vld [vmem:[#allocation21_spill] sm:$0xff]  ;;  %v16709_v27 = vld [vmem:[#allocation15_spill] sm:$0xff] }
 0x697   : > { %v6838_v23 = vor.u32 %v6837_v48, %v6833_v12  ;;  %v4922_v33 = vadd.f32 %v14692_v14, %v16708_v6  ;;  %v7628_v50 = vpack.c.b16 %v7599_v55, %v7598_v5 }
 0x698   : > { %v6294_v44 = vor.u32 %v6292_v59, %v6291_v53  ;;  %v6296_v52 = vrot.slane %v6291_v53, 4  ;;  %v6098_v62 = vmax.f32 %v6066_v56, 0.0  ;;  %11355 = vmatmul.msk.bf16.gmra.mxu0 %vm7070_vm10, %v7055_v19  ;;  %v6834_v19 = vsel %vm12668_vm3, %v6829_v35, %v6833_v12  ;;  %v14726_v56 = vpop.f32.mrf.mxu0 }
 0x699   : > { %v5945_v13 = vpop.f32.mrf.mxu3  ;;  %v6839_v36 = vrot.slane %v6838_v23, 4  ;;  %v7032_v23 = vunpack.c.l.b16 %v6834_v19 }
 0x69a   : > { %v6295_v41 = vsel %vm12183_vm4, %v6287_v21, %v6294_v44  ;;  %v6526_v40 = vsel %vm12241_vm7, %v6296_v52, %v6525_v25  ;;  %v6130_v0 = vpack.c.bf16 %v6098_v62, %v6098_v62  ;;  %v5997_v34 = vadd.f32 %v5945_v13, %v5587_v18  ;;  %v6597_v53 = vld [vmem:[#allocation3 + $0x6c] sm:$0xf]  ;;  %v6528_v25 = vld [vmem:[#allocation3 + $0x78] sm:$0xf]  ;;  %v11874_v52 = vld [vmem:[#allocation3 + $0x24] sm:$0xff] }
 0x69b   : > { %6524 = vst.msk [vmem:[#allocation3 + $0x70] sm:$0xf] %vm464_vm9, %v6295_v41  ;;  %v6844_v37 = vsel %vm12668_vm3, %v6839_v36, %v6843_v42  ;;  %v7502_v21 = vrot.slane %v14454_v58, 5  ;;  %v6846_v12 = vshrl.u32 %v6597_v53, 16  ;;  %v6849_v9 = vshll.u32 %v6597_v53, 16  ;;  %v16710_v13 = vld [vmem:[#allocation27_spill] sm:$0xff] }
 0x69c   : > { %6527 = vst [vmem:[#allocation3 + $0x74] sm:$0x1] %v6526_v40  ;;  %v6298_v60 = vshrl.u32 %v6130_v0, 16  ;;  %v6032_v17 = vmul.f32 %v14573_v47, %v5997_v34  ;;  %v6301_v30 = vshll.u32 %v6130_v0, 16  ;;  %v7434_v62 = vld [vmem:[#allocation3 + $0x24] sm:$0xe]  ;;  %v4624_v55 = vadd.f32 %v16710_v13, %v16709_v27 }
 0x69d   : > { %v5538_v39 = vpop.f32.mrf.mxu2  ;;  %11472 = vmatmul.msk.bf16.gmra.mxu2 %vm7070_vm10, %v7628_v50  ;;  %v7033_v41 = vunpack.c.l.b16 %v6844_v37  ;;  %v7504_v5 = vrot.slane %v7502_v21, 4  ;;  %v11451_v36 = vrot.slane %v7434_v62, 9  ;;  %v7505_v50 = vrot.slane %v14464_v24, 5 }
 0x69e   : > { %v6300_v59 = vrot.slane %v6298_v60, 7  ;;  %v6067_v3 = vadd.f32 %v14583_v4, %v6032_v17  ;;  %v5588_v14 = vadd.f32 %v5538_v39, %v4922_v33  ;;  %11558 = vmatmul.msk.bf16.gmra.mxu3 %vm7070_vm10, %v11892_v11  ;;  %v14734_v18 = vpop.f32.mrf.mxu1  ;;  %v6848_v60 = vrot.slane %v6846_v12, 4 }
 0x69f   : > { %v6851_v17 = vrot.slane %v6849_v9, 5  ;;  %v4923_v6 = vadd.f32 %v4874_v7, %v4624_v55  ;;  %v7056_v11 = vpack.c.b16 %v7033_v41, %v7032_v23  ;;  %v7503_v19 = vsel %vm12694_vm8, %v11451_v36, %v7502_v21 }
 0x6a0   : > { %v6303_v48 = vor.u32 %v6301_v30, %v6300_v59  ;;  %v6099_v44 = vmax.f32 %v6067_v3, 0.0  ;;  %v7506_v7 = vsel %vm12694_vm8, %v7504_v5, %v7505_v50  ;;  %v6304_v9 = vrot.slane %v6300_v59, 4  ;;  %v14754_v13 = vpop.f32.mrf.mxu0 }
 0x6a1   : > { %v5948_v58 = vpop.f32.mrf.mxu3  ;;  %11435 = vmatmul.msk.bf16.gmra.mxu1 %vm7070_vm10, %v11874_v52  ;;  %v6852_v52 = vor.u32 %v6851_v17, %v6848_v60  ;;  %v7600_v36 = vunpack.c.l.b16 %v7503_v19 }
 0x6a2   : > { %v6529_v40 = vsel %vm12535_vm14, %v6303_v48, %v6528_v25  ;;  %v6131_v0 = vpack.c.bf16 %v6099_v44, %v6099_v44  ;;  %v5998_v34 = vadd.f32 %v5948_v58, %v5588_v14  ;;  %v14741_v35 = vld [vmem:[#allocation3 + $0x70] sm:$0xf]  ;;  %v6532_v48 = vld [vmem:[#allocation3 + $0x80] sm:$0x1]  ;;  %v7601_v58 = vunpack.c.l.b16 %v7506_v7 }
 0x6a3   : > { %6530 = vst [vmem:[#allocation3 + $0x78] sm:$0xf] %v6529_v40  ;;  %v6855_v42 = vshll.u32 %v14741_v35, 16  ;;  %v14748_v53 = vld [vmem:[#allocation3 + $0x74] sm:$0x1]  ;;  %v6859_v39 = vshrl.u32 %v14741_v35, 16 }
 0x6a4   : > { %v6306_v33 = vshrl.u32 %v6131_v0, 16  ;;  %v6033_v30 = vmul.f32 %v14573_v47, %v5998_v34  ;;  %v6309_v25 = vshll.u32 %v6131_v0, 16  ;;  %v6865_v23 = vshll.u32 %v14748_v53, 16 }
 0x6a5   : > { %v6857_v3 = vrot.slane %v6855_v42, 5  ;;  %v5540_v12 = vpop.f32.mrf.mxu2  ;;  %v6861_v62 = vrot.slane %v6859_v39, 4  ;;  %v6853_v60 = vrot.slane %v6852_v52, 4 }
 0x6a6   : > { %v6308_v37 = vrot.slane %v6306_v33, 7  ;;  %v6068_v14 = vadd.f32 %v14583_v4, %v6033_v30  ;;  %v5589_v24 = vadd.f32 %v5540_v12, %v4923_v6  ;;  %v4879_v44 = vpop.f32.mrf.mxu1  ;;  %v6867_v33 = vrot.slane %v6865_v23, 5  ;;  %v16711_v30 = vld [vmem:[#allocation26_spill] sm:$0xff]  ;;  %v11875_v23 = vld [vmem:[#allocation3 + $0x30] sm:$0xff] }
 0x6a7   : > { %v6862_v40 = vor.u32 %v6861_v62, %v6857_v3  ;;  %v4924_v50 = vadd.f32 %v14734_v18, %v16711_v30 }
 0x6a8   : > { %v6311_v21 = vor.u32 %v6309_v25, %v6308_v37  ;;  %v6313_v27 = vrot.slane %v6308_v37, 4  ;;  %v6100_v55 = vmax.f32 %v6068_v14, 0.0  ;;  %11356 = vmatmul.msk.bf16.gmra.mxu0 %vm7070_vm10, %v7056_v11  ;;  %v7629_v37 = vpack.c.b16 %v7601_v58, %v7600_v36  ;;  %v11893_v25 = vld [vmem:[#allocation3 + $0x30] sm:$0xff]  ;;  %v16712_v58 = vld [vmem:[#allocation17_spill] sm:$0xff] }
 0x6a9   : > { %v5950_v41 = vpop.f32.mrf.mxu3  ;;  %v6863_v17 = vrot.slane %v6862_v40, 4  ;;  %v6858_v11 = vsel %vm12668_vm3, %v6853_v60, %v6857_v3  ;;  %v16713_v40 = vld [vmem:[#allocation28_spill] sm:$0xff] }
 0x6aa   : > { %v6312_v0 = vsel %vm12183_vm4, %v6304_v9, %v6311_v21  ;;  %v6533_v59 = vsel %vm12241_vm7, %v6313_v27, %v6532_v48  ;;  %v6132_v34 = vpack.c.bf16 %v6100_v55, %v6100_v55  ;;  %v5999_v5 = vadd.f32 %v5950_v41, %v5589_v24  ;;  %v6599_v14 = vld [vmem:[#allocation3 + $0x78] sm:$0xf]  ;;  %v6535_v24 = vld [vmem:[#allocation3 + $0x84] sm:$0xf]  ;;  %v7435_v41 = vld [vmem:[#allocation3 + $0x30] sm:$0xe] }
 0x6ab   : > { %6531 = vst.msk [vmem:[#allocation3 + $0x7c] sm:$0xf] %vm464_vm9, %v6312_v0  ;;  %v6868_v9 = vsel %vm12668_vm3, %v6863_v17, %v6867_v33  ;;  %v7509_v48 = vrot.slane %v14519_v45, 5  ;;  %v6870_v62 = vshrl.u32 %v6599_v14, 16  ;;  %v6873_v3 = vshll.u32 %v6599_v14, 16 }
 0x6ac   : > { %6534 = vst [vmem:[#allocation3 + $0x80] sm:$0x1] %v6533_v59  ;;  %v6315_v42 = vshrl.u32 %v6132_v34, 16  ;;  %v6034_v6 = vmul.f32 %v14573_v47, %v5999_v5  ;;  %v6318_v39 = vshll.u32 %v6132_v34, 16  ;;  %v4626_v0 = vadd.f32 %v16713_v40, %v16712_v58 }
 0x6ad   : > { %v5543_v7 = vpop.f32.mrf.mxu2  ;;  %11473 = vmatmul.msk.bf16.gmra.mxu2 %vm7070_vm10, %v7629_v37  ;;  %v7034_v45 = vunpack.c.l.b16 %v6858_v11  ;;  %v7035_v59 = vunpack.c.l.b16 %v6868_v9  ;;  %v7511_v17 = vrot.slane %v7509_v48, 4  ;;  %v6872_v33 = vrot.slane %v6870_v62, 4 }
 0x6ae   : > { %v6317_v12 = vrot.slane %v6315_v42, 7  ;;  %v6069_v19 = vadd.f32 %v14583_v4, %v6034_v6  ;;  %v5590_v18 = vadd.f32 %v5543_v7, %v4924_v50  ;;  %11559 = vmatmul.msk.bf16.gmra.mxu3 %vm7070_vm10, %v11893_v25  ;;  %v14774_v52 = vpop.f32.mrf.mxu1  ;;  %v14776_v55 = vpop.f32.mrf.mxu0  ;;  %v11452_v6 = vrot.slane %v7435_v41, 9 }
 0x6af   : > { %v6875_v30 = vrot.slane %v6873_v3, 5  ;;  %v7512_v11 = vrot.slane %v14530_v26, 5  ;;  %v7057_v14 = vpack.c.b16 %v7035_v59, %v7034_v45 }
 0x6b0   : > { %v6320_v21 = vor.u32 %v6318_v39, %v6317_v12  ;;  %v6101_v27 = vmax.f32 %v6069_v19, 0.0  ;;  %v4925_v39 = vadd.f32 %v4879_v44, %v4626_v0  ;;  %v7510_v19 = vsel %vm12694_vm8, %v11452_v6, %v7509_v48 }
 0x6b1   : > { %v5953_v34 = vpop.f32.mrf.mxu3  ;;  %11436 = vmatmul.msk.bf16.gmra.mxu1 %vm7070_vm10, %v11875_v23  ;;  %v7513_v44 = vsel %vm12694_vm8, %v7511_v17, %v7512_v11  ;;  %v6539_v23 = vld [vmem:[#allocation3 + $0x8c] sm:$0x1]  ;;  %v6876_v58 = vor.u32 %v6875_v30, %v6872_v33  ;;  %v7602_v30 = vunpack.c.l.b16 %v7510_v19 }
 0x6b2   : > { %v6536_v5 = vsel %vm12535_vm14, %v6320_v21, %v6535_v24  ;;  %v6133_v36 = vpack.c.bf16 %v6101_v27, %v6101_v27  ;;  %v6000_v60 = vadd.f32 %v5953_v34, %v5590_v18  ;;  %v14783_v42 = vld [vmem:[#allocation3 + $0x7c] sm:$0xf]  ;;  %v6321_v27 = vrot.slane %v6317_v12, 4 }
 0x6b3   : > { %6537 = vst [vmem:[#allocation3 + $0x84] sm:$0xf] %v6536_v5  ;;  %v6879_v50 = vshll.u32 %v14783_v42, 16  ;;  %v14790_v7 = vld [vmem:[#allocation3 + $0x80] sm:$0x1]  ;;  %v6883_v24 = vshrl.u32 %v14783_v42, 16 }
 0x6b4   : > { %v6323_v37 = vshrl.u32 %v6133_v36, 16  ;;  %v6035_v25 = vmul.f32 %v14573_v47, %v6000_v60  ;;  %v6326_v62 = vshll.u32 %v6133_v36, 16  ;;  %v6889_v34 = vshll.u32 %v14790_v7, 16 }
 0x6b5   : > { %v6881_v9 = vrot.slane %v6879_v50, 5  ;;  %v5545_v21 = vpop.f32.mrf.mxu2  ;;  %v6885_v40 = vrot.slane %v6883_v24, 4  ;;  %v7603_v36 = vunpack.c.l.b16 %v7513_v44  ;;  %v6877_v50 = vrot.slane %v6876_v58, 4  ;;  %v6542_v58 = vld [vmem:[#allocation3 + $0x90] sm:$0xf] }
 0x6b6   : > { %v6325_v18 = vrot.slane %v6323_v37, 7  ;;  %v6070_v3 = vadd.f32 %v14583_v4, %v6035_v25  ;;  %v5591_v26 = vadd.f32 %v5545_v21, %v4925_v39  ;;  %v4884_v41 = vpop.f32.mrf.mxu1  ;;  %v14796_v59 = vpop.f32.mrf.mxu0  ;;  %v6891_v11 = vrot.slane %v6889_v34, 5  ;;  %v11876_v34 = vld [vmem:[#allocation3 + $0x3c] sm:$0xff] }
 0x6b7   : > { %v6886_v60 = vor.u32 %v6885_v40, %v6881_v9  ;;  %v4926_v24 = vadd.f32 %v14774_v52, %v14342_v63 }
 0x6b8   : > { %v6328_v48 = vor.u32 %v6326_v62, %v6325_v18  ;;  %v6330_v0 = vrot.slane %v6325_v18, 4  ;;  %v6102_v45 = vmax.f32 %v6070_v3, 0.0  ;;  %11357 = vmatmul.msk.bf16.gmra.mxu0 %vm7070_vm10, %v7057_v14  ;;  %v7630_v62 = vpack.c.b16 %v7603_v36, %v7602_v30  ;;  %v11894_v3 = vld [vmem:[#allocation3 + $0x3c] sm:$0xff]  ;;  %v16714_v36 = vld [vmem:[#allocation10_spill] sm:$0xff] }
 0x6b9   : > { %v5955_v5 = vpop.f32.mrf.mxu3  ;;  %v6887_v39 = vrot.slane %v6886_v60, 4  ;;  %v6882_v14 = vsel %vm12668_vm3, %v6877_v50, %v6881_v9  ;;  %v4628_v60 = vadd.f32 %v14370_v51, %v16714_v36 }
 0x6ba   : > { %v6329_v6 = vsel %vm12183_vm4, %v6321_v27, %v6328_v48  ;;  %v6540_v12 = vsel %vm12241_vm7, %v6330_v0, %v6539_v23  ;;  %v6134_v17 = vpack.c.bf16 %v6102_v45, %v6102_v45  ;;  %v6001_v33 = vadd.f32 %v5955_v5, %v5591_v26  ;;  %v6601_v21 = vld [vmem:[#allocation3 + $0x84] sm:$0xf]  ;;  %v7436_v5 = vld [vmem:[#allocation3 + $0x3c] sm:$0xe] }
 0x6bb   : > { %6538 = vst.msk [vmem:[#allocation3 + $0x88] sm:$0xf] %vm464_vm9, %v6329_v6  ;;  %v6892_v23 = vsel %vm12668_vm3, %v6887_v39, %v6891_v11  ;;  %v7516_v26 = vrot.slane %v14586_v22, 5  ;;  %v6894_v40 = vshrl.u32 %v6601_v21, 16  ;;  %v6897_v9 = vshll.u32 %v6601_v21, 16 }
 0x6bc   : > { %6541 = vst [vmem:[#allocation3 + $0x8c] sm:$0x1] %v6540_v12  ;;  %v6332_v37 = vshrl.u32 %v6134_v17, 16  ;;  %v6036_v25 = vmul.f32 %v14573_v47, %v6001_v33  ;;  %v6335_v18 = vshll.u32 %v6134_v17, 16  ;;  %v7036_v22 = vunpack.c.l.b16 %v6882_v14 }
 0x6bd   : > { %v5548_v27 = vpop.f32.mrf.mxu2  ;;  %11474 = vmatmul.msk.bf16.gmra.mxu2 %vm7070_vm10, %v7630_v62  ;;  %v7037_v6 = vunpack.c.l.b16 %v6892_v23  ;;  %v7518_v50 = vrot.slane %v7516_v26, 4  ;;  %v6899_v11 = vrot.slane %v6897_v9, 5  ;;  %v4927_v51 = vadd.f32 %v4884_v41, %v4628_v60 }
 0x6be   : > { %v6334_v44 = vrot.slane %v6332_v37, 7  ;;  %v6071_v19 = vadd.f32 %v14583_v4, %v6036_v25  ;;  %v5592_v63 = vadd.f32 %v5548_v27, %v4926_v24  ;;  %11560 = vmatmul.msk.bf16.gmra.mxu3 %vm7070_vm10, %v11894_v3  ;;  %v14816_v52 = vpop.f32.mrf.mxu1  ;;  %v14818_v45 = vpop.f32.mrf.mxu0  ;;  %v11453_v37 = vrot.slane %v7436_v5, 9 }
 0x6bf   : > { %v6896_v25 = vrot.slane %v6894_v40, 4  ;;  %v7519_v3 = vrot.slane %v14597_v32, 5  ;;  %v7058_v21 = vpack.c.b16 %v7037_v6, %v7036_v22 }
 0x6c0   : > { %v6337_v48 = vor.u32 %v6335_v18, %v6334_v44  ;;  %v6103_v0 = vmax.f32 %v6071_v19, 0.0  ;;  %v7517_v19 = vsel %vm12694_vm8, %v11453_v37, %v7516_v26  ;;  %v6338_v36 = vrot.slane %v6334_v44, 4 }
 0x6c1   : > { %v5958_v12 = vpop.f32.mrf.mxu3  ;;  %11437 = vmatmul.msk.bf16.gmra.mxu1 %vm7070_vm10, %v11876_v34  ;;  %v7520_v41 = vsel %vm12694_vm8, %v7518_v50, %v7519_v3  ;;  %v7604_v44 = vunpack.c.l.b16 %v7517_v19  ;;  %v4928_v3 = vadd.f32 %v14816_v52, %v14412_v54  ;;  %v7523_v54 = vrot.slane %v14620_v16, 5 }
 0x6c2   : > { %v6543_v17 = vsel %vm12535_vm14, %v6337_v48, %v6542_v58  ;;  %v6135_v33 = vpack.c.bf16 %v6103_v0, %v6103_v0  ;;  %v6002_v30 = vadd.f32 %v5958_v12, %v5592_v63  ;;  %v14825_v39 = vld [vmem:[#allocation3 + $0x88] sm:$0xf]  ;;  %v6900_v0 = vor.u32 %v6899_v11, %v6896_v25 }
 0x6c3   : > { %6544 = vst [vmem:[#allocation3 + $0x90] sm:$0xf] %v6543_v17  ;;  %v6903_v24 = vshll.u32 %v14825_v39, 16  ;;  %v14830_v14 = vld [vmem:[#allocation3 + $0x8c] sm:$0x1]  ;;  %v6907_v23 = vshrl.u32 %v14825_v39, 16  ;;  %v7605_v17 = vunpack.c.l.b16 %v7520_v41 }
 0x6c4   : > { %v6340_v18 = vshrl.u32 %v6135_v33, 16  ;;  %v6037_v62 = vmul.f32 %v14573_v47, %v6002_v30  ;;  %v6343_v63 = vshll.u32 %v6135_v33, 16  ;;  %v6546_v47 = vld [vmem:[#allocation3 + $0x98] sm:$0x1]  ;;  %v6913_v5 = vshll.u32 %v14830_v14, 16 }
 0x6c5   : > { %v6905_v27 = vrot.slane %v6903_v24, 5  ;;  %v5550_v9 = vpop.f32.mrf.mxu2  ;;  %v6909_v34 = vrot.slane %v6907_v23, 4  ;;  %v6901_v25 = vrot.slane %v6900_v0, 4  ;;  %v11895_v23 = vld [vmem:[#allocation3 + $0x48] sm:$0xff] }
 0x6c6   : > { %v6342_v58 = vrot.slane %v6340_v18, 7  ;;  %v6072_v40 = vadd.f32 %v14583_v4, %v6037_v62  ;;  %v5593_v48 = vadd.f32 %v5550_v9, %v4927_v51  ;;  %v4889_v32 = vpop.f32.mrf.mxu1  ;;  %v14839_v6 = vpop.f32.mrf.mxu0  ;;  %v6915_v24 = vrot.slane %v6913_v5, 5  ;;  %v14850_v18 = vld [vmem:[%s16584_s6] ss:$0 sm:$0xff] }
 0x6c7   : > { %v6910_v4 = vor.u32 %v6909_v34, %v6905_v27  ;;  %v6906_v19 = vsel %vm12668_vm3, %v6901_v25, %v6905_v27  ;;  %v14864_v9 = vld [vmem:[%s16585_s7] ss:$0 sm:$0xff]  ;;  %v7525_v25 = vrot.slane %v7523_v54, 4 }
 0x6c8   : > { %v6345_v26 = vor.u32 %v6343_v63, %v6342_v58  ;;  %v6347_v60 = vrot.slane %v6342_v58, 4  ;;  %v6104_v22 = vmax.f32 %v6072_v40, 0.0  ;;  %11358 = vmatmul.msk.bf16.gmra.mxu0 %vm7070_vm10, %v7058_v21  ;;  %v7631_v21 = vpack.c.b16 %v7605_v17, %v7604_v44 }
 0x6c9   : > { %v5960_v12 = vpop.f32.mrf.mxu3  ;;  %v6911_v11 = vrot.slane %v6910_v4, 4  ;;  %v7038_v17 = vunpack.c.l.b16 %v6906_v19 }
 0x6ca   : > { %v6346_v33 = vsel %vm12183_vm4, %v6338_v36, %v6345_v26  ;;  %v6547_v30 = vsel %vm12241_vm7, %v6347_v60, %v6546_v47  ;;  %v6136_v50 = vpack.c.bf16 %v6104_v22, %v6104_v22  ;;  %v6003_v37 = vadd.f32 %v5960_v12, %v5593_v48  ;;  %v6603_v52 = vld [vmem:[#allocation3 + $0x90] sm:$0xf]  ;;  %v6549_v48 = vld [vmem:[#allocation3 + $0x9c] sm:$0xf]  ;;  %v11877_v60 = vld [vmem:[#allocation3 + $0x48] sm:$0xff] }
 0x6cb   : > { %6545 = vst.msk [vmem:[#allocation3 + $0x94] sm:$0xf] %vm464_vm9, %v6346_v33  ;;  %v6916_v58 = vsel %vm12668_vm3, %v6911_v11, %v6915_v24  ;;  %v7437_v22 = vld [vmem:[#allocation3 + $0x48] sm:$0xe]  ;;  %v16715_v12 = vld [vmem:[#allocation20_spill] sm:$0xff]  ;;  %v6918_v33 = vshrl.u32 %v6603_v52, 16 }
 0x6cc   : > { %6548 = vst [vmem:[#allocation3 + $0x98] sm:$0x1] %v6547_v30  ;;  %v6349_v51 = vshrl.u32 %v6136_v50, 16  ;;  %v6038_v62 = vmul.f32 %v14850_v18, %v6003_v37  ;;  %v6352_v40 = vshll.u32 %v6136_v50, 16  ;;  %v7039_v26 = vunpack.c.l.b16 %v6916_v58 }
 0x6cd   : > { %v5553_v47 = vpop.f32.mrf.mxu2  ;;  %11475 = vmatmul.msk.bf16.gmra.mxu2 %vm7070_vm10, %v7631_v21  ;;  %v4630_v16 = vadd.f32 %v14440_v43, %v16715_v12  ;;  %v6921_v30 = vshll.u32 %v6603_v52, 16  ;;  %v6920_v58 = vrot.slane %v6918_v33, 4 }
 0x6ce   : > { %v14859_v63 = vrot.slane %v6349_v51, 7  ;;  %v6073_v41 = vadd.f32 %v14864_v9, %v6038_v62  ;;  %v5594_v27 = vadd.f32 %v5553_v47, %v4928_v3  ;;  %11561 = vmatmul.msk.bf16.gmra.mxu3 %vm7070_vm10, %v11895_v23  ;;  %v14870_v0 = vpop.f32.mrf.mxu1  ;;  %v14873_v36 = vpop.f32.mrf.mxu0  ;;  %v11454_v51 = vrot.slane %v7437_v22, 9 }
 0x6cf   : > { %v4929_v24 = vadd.f32 %v4889_v32, %v4630_v16  ;;  %v7059_v3 = vpack.c.b16 %v7039_v26, %v7038_v17  ;;  %v7526_v23 = vrot.slane %v14629_v29, 5  ;;  %v6553_v26 = vld [vmem:[#allocation3 + $0xa4] sm:$0x1] }
 0x6d0   : > { %v6354_v34 = vor.u32 %v6352_v40, %v14859_v63  ;;  %v6105_v5 = vmax.f32 %v6073_v41, 0.0  ;;  %v6923_v40 = vrot.slane %v6921_v30, 5  ;;  %v7524_v22 = vsel %vm12694_vm8, %v11454_v51, %v7523_v54 }
 0x6d1   : > { %v5963_v4 = vpop.f32.mrf.mxu3  ;;  %11438 = vmatmul.msk.bf16.gmra.mxu1 %vm7070_vm10, %v11877_v60 }
 0x6d2   : > { %v6550_v50 = vsel %vm12535_vm14, %v6354_v34, %v6549_v48  ;;  %v6137_v37 = vpack.c.bf16 %v6105_v5, %v6105_v5  ;;  %v6004_v44 = vadd.f32 %v5963_v4, %v5594_v27  ;;  %v14880_v11 = vld [vmem:[#allocation3 + $0x94] sm:$0xf]  ;;  %v7527_v34 = vsel %vm12694_vm8, %v7525_v25, %v7526_v23 }
 0x6d3   : > { %6551 = vst [vmem:[#allocation3 + $0x9c] sm:$0xf] %v6550_v50  ;;  %v6927_v62 = vshll.u32 %v14880_v11, 16  ;;  %v14885_v19 = vld [vmem:[#allocation3 + $0x98] sm:$0x1]  ;;  %v6931_v47 = vshrl.u32 %v14880_v11, 16 }
 0x6d4   : > { %v6357_v43 = vshrl.u32 %v6137_v37, 16  ;;  %v6039_v21 = vmul.f32 %v14850_v18, %v6004_v44  ;;  %v6360_v48 = vshll.u32 %v6137_v37, 16  ;;  %v6355_v5 = vrot.slane %v14859_v63, 4 }
 0x6d5   : > { %v14887_v41 = vrot.slane %v6927_v62, 5  ;;  %v5555_v27 = vpop.f32.mrf.mxu2  ;;  %v6933_v12 = vrot.slane %v6931_v47, 4  ;;  %v6937_v33 = vshll.u32 %v14885_v19, 16  ;;  %v7607_v37 = vunpack.c.l.b16 %v7527_v34 }
 0x6d6   : > { %v6359_v52 = vrot.slane %v6357_v43, 7  ;;  %v6074_v32 = vadd.f32 %v14864_v9, %v6039_v21  ;;  %v5595_v29 = vadd.f32 %v5555_v27, %v4929_v24  ;;  %v4894_v60 = vpop.f32.mrf.mxu1  ;;  %v14897_v30 = vpop.f32.mrf.mxu0  ;;  %v6924_v44 = vor.u32 %v6923_v40, %v6920_v58 }
 0x6d7   : > { %v6934_v25 = vor.u32 %v6933_v12, %v14887_v41  ;;  %v7606_v62 = vunpack.c.l.b16 %v7524_v22  ;;  %v6939_v58 = vrot.slane %v6937_v33, 5  ;;  %v4930_v40 = vadd.f32 %v14870_v0, %v14478_v15  ;;  %v16716_v22 = vld [vmem:[#allocation22_spill] sm:$0xff] }
 0x6d8   : > { %v6362_v16 = vor.u32 %v6360_v48, %v6359_v52  ;;  %v6364_v17 = vrot.slane %v6359_v52, 4  ;;  %v6106_v4 = vmax.f32 %v6074_v32, 0.0  ;;  %11359 = vmatmul.msk.bf16.gmra.mxu0 %vm7070_vm10, %v7059_v3  ;;  %v11896_v48 = vld [vmem:[#allocation3 + $0x54] sm:$0xff]  ;;  %v6925_v32 = vrot.slane %v6924_v44, 4 }
 0x6d9   : > { %v5965_v50 = vpop.f32.mrf.mxu3  ;;  %v6935_v43 = vrot.slane %v6934_v25, 4  ;;  %v7632_v52 = vpack.c.b16 %v7607_v37, %v7606_v62  ;;  %v4632_v12 = vadd.f32 %v14502_v61, %v16716_v22  ;;  %v7438_v37 = vld [vmem:[#allocation3 + $0x54] sm:$0xe] }
 0x6da   : > { %v6363_v63 = vsel %vm12183_vm4, %v6355_v5, %v6362_v16  ;;  %v6554_v24 = vsel %vm12241_vm7, %v6364_v17, %v6553_v26  ;;  %v6138_v54 = vpack.c.bf16 %v6106_v4, %v6106_v4  ;;  %v6005_v51 = vadd.f32 %v5965_v50, %v5595_v29  ;;  %v6605_v27 = vld [vmem:[#allocation3 + $0x9c] sm:$0xf]  ;;  %v6556_v16 = vld [vmem:[#allocation3 + $0xa8] sm:$0xf]  ;;  %v11878_v50 = vld [vmem:[#allocation3 + $0x54] sm:$0xff] }
 0x6db   : > { %6552 = vst.msk [vmem:[#allocation3 + $0xa0] sm:$0xf] %vm464_vm9, %v6363_v63  ;;  %v6940_v26 = vsel %vm12668_vm3, %v6935_v43, %v6939_v58  ;;  %v7530_v29 = vrot.slane %v14660_v57, 5  ;;  %v6930_v17 = vsel %vm12668_vm3, %v6925_v32, %v14887_v41  ;;  %v6942_v57 = vshrl.u32 %v6605_v27, 16 }
 0x6dc   : > { %6555 = vst [vmem:[#allocation3 + $0xa4] sm:$0x1] %v6554_v24  ;;  %v6366_v21 = vshrl.u32 %v6138_v54, 16  ;;  %v6040_v23 = vmul.f32 %v14850_v18, %v6005_v51  ;;  %v6369_v47 = vshll.u32 %v6138_v54, 16  ;;  %v6945_v44 = vshll.u32 %v6605_v27, 16 }
 0x6dd   : > { %v5558_v5 = vpop.f32.mrf.mxu2  ;;  %11476 = vmatmul.msk.bf16.gmra.mxu2 %vm7070_vm10, %v7632_v52  ;;  %v4931_v25 = vadd.f32 %v4894_v60, %v4632_v12  ;;  %v7041_v61 = vunpack.c.l.b16 %v6940_v26  ;;  %v7532_v62 = vrot.slane %v7530_v29, 4  ;;  %v7533_v58 = vrot.slane %v14669_v38, 5 }
 0x6de   : > { %v6368_v3 = vrot.slane %v6366_v21, 7  ;;  %v6075_v34 = vadd.f32 %v14864_v9, %v6040_v23  ;;  %v5596_v15 = vadd.f32 %v5558_v5, %v4930_v40  ;;  %11562 = vmatmul.msk.bf16.gmra.mxu3 %vm7070_vm10, %v11896_v48  ;;  %v14917_v0 = vpop.f32.mrf.mxu1  ;;  %v14927_v41 = vpop.f32.mrf.mxu0  ;;  %v7040_v21 = vunpack.c.l.b16 %v6930_v17 }
 0x6df   : > { %v11455_v23 = vrot.slane %v7438_v37, 9  ;;  %v6944_v48 = vrot.slane %v6942_v57, 4  ;;  %v6947_v32 = vrot.slane %v6945_v44, 5 }
 0x6e0   : > { %v6371_v4 = vor.u32 %v6369_v47, %v6368_v3  ;;  %v6107_v33 = vmax.f32 %v6075_v34, 0.0  ;;  %v7060_v27 = vpack.c.b16 %v7041_v61, %v7040_v21  ;;  %v6372_v17 = vrot.slane %v6368_v3, 4 }
 0x6e1   : > { %v5968_v63 = vpop.f32.mrf.mxu3  ;;  %11439 = vmatmul.msk.bf16.gmra.mxu1 %vm7070_vm10, %v11878_v50  ;;  %v7531_v34 = vsel %vm12694_vm8, %v11455_v23, %v7530_v29 }
 0x6e2   : > { %v6557_v24 = vsel %vm12535_vm14, %v6371_v4, %v6556_v16  ;;  %v6139_v54 = vpack.c.bf16 %v6107_v33, %v6107_v33  ;;  %v6006_v51 = vadd.f32 %v5968_v63, %v5596_v15  ;;  %v14925_v43 = vld [vmem:[#allocation3 + $0xa0] sm:$0xf]  ;;  %v7534_v15 = vsel %vm12694_vm8, %v7532_v62, %v7533_v58  ;;  %v6560_v4 = vld [vmem:[#allocation3 + $0xb0] sm:$0x1] }
 0x6e3   : > { %6558 = vst [vmem:[#allocation3 + $0xa8] sm:$0xf] %v6557_v24  ;;  %v6951_v60 = vshll.u32 %v14925_v43, 16  ;;  %v14932_v52 = vld [vmem:[#allocation3 + $0xa4] sm:$0x1]  ;;  %v6955_v26 = vshrl.u32 %v14925_v43, 16  ;;  %v6948_v63 = vor.u32 %v6947_v32, %v6944_v48  ;;  %v7608_v23 = vunpack.c.l.b16 %v7531_v34 }
 0x6e4   : > { %v6374_v40 = vshrl.u32 %v6139_v54, 16  ;;  %v6041_v47 = vmul.f32 %v14850_v18, %v6006_v51  ;;  %v6377_v12 = vshll.u32 %v6139_v54, 16  ;;  %v6961_v57 = vshll.u32 %v14932_v52, 16 }
 0x6e5   : > { %v6953_v5 = vrot.slane %v6951_v60, 5  ;;  %v5560_v16 = vpop.f32.mrf.mxu2  ;;  %v6957_v37 = vrot.slane %v6955_v26, 4  ;;  %v7609_v54 = vunpack.c.l.b16 %v7534_v15  ;;  %v6949_v48 = vrot.slane %v6948_v63, 4  ;;  %v6563_v15 = vld [vmem:[#allocation3 + $0xb4] sm:$0xf] }
 0x6e6   : > { %v6376_v22 = vrot.slane %v6374_v40, 7  ;;  %v6076_v38 = vadd.f32 %v14864_v9, %v6041_v47  ;;  %v5597_v33 = vadd.f32 %v5560_v16, %v4931_v25  ;;  %v14940_v50 = vpop.f32.mrf.mxu1  ;;  %v6963_v60 = vrot.slane %v6961_v57, 5  ;;  %v14950_v32 = vpop.f32.mrf.mxu0 }
 0x6e7   : > { %v6958_v51 = vor.u32 %v6957_v37, %v6953_v5  ;;  %v7633_v26 = vpack.c.b16 %v7609_v54, %v7608_v23  ;;  %v6954_v34 = vsel %vm12668_vm3, %v6949_v48, %v6953_v5 }
 0x6e8   : > { %v6379_v29 = vor.u32 %v6377_v12, %v6376_v22  ;;  %v6381_v44 = vrot.slane %v6376_v22, 4  ;;  %v6108_v61 = vmax.f32 %v6076_v38, 0.0  ;;  %11360 = vmatmul.msk.bf16.gmra.mxu0 %vm7070_vm10, %v7060_v27  ;;  %v11897_v22 = vld [vmem:[#allocation3 + $0x60] sm:$0xff]  ;;  %v7042_v63 = vunpack.c.l.b16 %v6954_v34 }
 0x6e9   : > { %v5970_v24 = vpop.f32.mrf.mxu3  ;;  %v6959_v58 = vrot.slane %v6958_v51, 4 }
 0x6ea   : > { %v6380_v21 = vsel %vm12183_vm4, %v6372_v17, %v6379_v29  ;;  %v6561_v3 = vsel %vm12241_vm7, %v6381_v44, %v6560_v4  ;;  %v6140_v25 = vpack.c.bf16 %v6108_v61, %v6108_v61  ;;  %v6007_v62 = vadd.f32 %v5970_v24, %v5597_v33  ;;  %v11879_v29 = vld [vmem:[#allocation3 + $0x60] sm:$0xff]  ;;  %v6607_v44 = vld [vmem:[#allocation3 + $0xa8] sm:$0xf] }
 0x6eb   : > { %6559 = vst.msk [vmem:[#allocation3 + $0xac] sm:$0xf] %vm464_vm9, %v6380_v21  ;;  %v6964_v12 = vsel %vm12668_vm3, %v6959_v58, %v6963_v60  ;;  %v7537_v4 = vrot.slane %v14699_v49, 5  ;;  %v4932_v61 = vadd.f32 %v14917_v0, %v14538_v10  ;;  %v7439_v24 = vld [vmem:[#allocation3 + $0x60] sm:$0xe]  ;;  %v7540_v58 = vrot.slane %v14706_v20, 5 }
 0x6ec   : > { %6562 = vst [vmem:[#allocation3 + $0xb0] sm:$0x1] %v6561_v3  ;;  %v6383_v40 = vshrl.u32 %v6140_v25, 16  ;;  %v6042_v47 = vmul.f32 %v14850_v18, %v6007_v62  ;;  %v6386_v38 = vshll.u32 %v6140_v25, 16  ;;  %v7043_v57 = vunpack.c.l.b16 %v6964_v12  ;;  %v16717_v10 = vld [vmem:[#allocation24_spill] sm:$0xff] }
 0x6ed   : > { %11477 = vmatmul.msk.bf16.gmra.mxu2 %vm7070_vm10, %v7633_v26  ;;  %v7539_v5 = vrot.slane %v7537_v4, 4  ;;  %v6966_v25 = vshrl.u32 %v6607_v44, 16  ;;  %v6969_v62 = vshll.u32 %v6607_v44, 16  ;;  %v4634_v0 = vadd.f32 %v14709_v1, %v16717_v10  ;;  %v6567_v1 = vld [vmem:[#allocation3 + $0xbc] sm:$0x1] }
 0x6ee   : > { %v6385_v27 = vrot.slane %v6383_v40, 7  ;;  %v6077_v16 = vadd.f32 %v14864_v9, %v6042_v47  ;;  %11563 = vmatmul.msk.bf16.gmra.mxu3 %vm7070_vm10, %v11897_v22  ;;  %v14959_v17 = vpop.f32.mrf.mxu1  ;;  %v7061_v40 = vpack.c.b16 %v7043_v57, %v7042_v63  ;;  %v11456_v47 = vrot.slane %v7439_v24, 9 }
 0x6ef   : > { %v7541_v26 = vsel %vm12694_vm8, %v7539_v5, %v7540_v58  ;;  %v6971_v20 = vrot.slane %v6969_v62, 5 }
 0x6f0   : > { %v6388_v33 = vor.u32 %v6386_v38, %v6385_v27  ;;  %v6109_v37 = vmax.f32 %v6077_v16, 0.0  ;;  %v5563_v21 = vpop.f32.mrf.mxu2  ;;  %v6389_v63 = vrot.slane %v6385_v27, 4 }
 0x6f1   : > { %v5973_v3 = vpop.f32.mrf.mxu3  ;;  %11440 = vmatmul.msk.bf16.gmra.mxu1 %vm7070_vm10, %v11879_v29  ;;  %v5598_v23 = vadd.f32 %v5563_v21, %v4932_v61  ;;  %v7611_v21 = vunpack.c.l.b16 %v7541_v26 }
 0x6f2   : > { %v6564_v54 = vsel %vm12535_vm14, %v6388_v33, %v6563_v15  ;;  %v6141_v51 = vpack.c.bf16 %v6109_v37, %v6109_v37  ;;  %v14967_v49 = vld [vmem:[#allocation3 + $0xac] sm:$0xf]  ;;  %v6968_v15 = vrot.slane %v6966_v25, 4  ;;  %v4933_v33 = vadd.f32 %v14940_v50, %v4634_v0 }
 0x6f3   : > { %6565 = vst [vmem:[#allocation3 + $0xb4] sm:$0xf] %v6564_v54  ;;  %v6008_v48 = vadd.f32 %v5973_v3, %v5598_v23  ;;  %v6975_v22 = vshll.u32 %v14967_v49, 16  ;;  %v6979_v12 = vshrl.u32 %v14967_v49, 16  ;;  %v14976_v34 = vld [vmem:[#allocation3 + $0xb0] sm:$0x1]  ;;  %v7538_v54 = vsel %vm12694_vm8, %v11456_v47, %v7537_v4 }
 0x6f4   : > { %v6391_v60 = vshrl.u32 %v6141_v51, 16  ;;  %v6394_v16 = vshll.u32 %v6141_v51, 16  ;;  %v6985_v3 = vshll.u32 %v14976_v34, 16  ;;  %v6972_v58 = vor.u32 %v6971_v20, %v6968_v15 }
 0x6f5   : > { %v14979_v37 = vpop.f32.mrf.mxu0  ;;  %v6043_v57 = vmul.f32 %v14850_v18, %v6008_v48  ;;  %v14984_v44 = vrot.slane %v6975_v22, 5  ;;  %v6981_v61 = vrot.slane %v6979_v12, 4  ;;  %v7610_v0 = vunpack.c.l.b16 %v7538_v54  ;;  %v11898_v12 = vld [vmem:[#allocation3 + $0x6c] sm:$0xff] }
 0x6f6   : > { %v6393_v38 = vrot.slane %v6391_v60, 7  ;;  %v14982_v29 = vpop.f32.mrf.mxu1  ;;  %v7544_v47 = vrot.slane %v14741_v35, 5  ;;  %v11880_v54 = vld [vmem:[#allocation3 + $0x6c] sm:$0xff] }
 0x6f7   : > { %v6078_v51 = vadd.f32 %v14864_v9, %v6043_v57  ;;  %v6982_v50 = vor.u32 %v6981_v61, %v14984_v44  ;;  %v7634_v22 = vpack.c.b16 %v7611_v21, %v7610_v0 }
 0x6f8   : > { %v6396_v24 = vor.u32 %v6394_v16, %v6393_v38  ;;  %v6398_v5 = vrot.slane %v6393_v38, 4  ;;  %11361 = vmatmul.msk.bf16.gmra.mxu0 %vm7070_vm10, %v7061_v40  ;;  %v5565_v27 = vpop.f32.mrf.mxu2  ;;  %v6987_v38 = vrot.slane %v6985_v3, 5  ;;  %v7440_v40 = vld [vmem:[#allocation3 + $0x6c] sm:$0xe] }
 0x6f9   : > { %v5975_v23 = vpop.f32.mrf.mxu3  ;;  %v6110_v4 = vmax.f32 %v6078_v51, 0.0  ;;  %v5599_v10 = vadd.f32 %v5565_v27, %v4933_v33  ;;  %v6983_v60 = vrot.slane %v6982_v50, 4  ;;  %v11925_v33 = vld [vmem:[%s16586_s8 + $0x30] sm:$0xff]  ;;  %v7546_v51 = vrot.slane %v7544_v47, 4  ;;  %v6570_v27 = vld [vmem:[#allocation3 + $0xc0] sm:$0xf] }
 0x6fa   : > { %v6397_v25 = vsel %vm12183_vm4, %v6389_v63, %v6396_v24  ;;  %v6568_v62 = vsel %vm12241_vm7, %v6398_v5, %v6567_v1  ;;  %v6609_v16 = vld [vmem:[#allocation3 + $0xb4] sm:$0xf]  ;;  %v6973_v1 = vrot.slane %v6972_v58, 4  ;;  %v11926_v63 = vld [vmem:[%s16586_s8 + $0x38] sm:$0xff]  ;;  %v7352_v24 = vadd.f32 %v14959_v17, %v14726_v56  ;;  %9344 = vmatpush.bf16.msra.mxu2 %v11925_v33 }
 0x6fb   : > { %6566 = vst.msk [vmem:[#allocation3 + $0xb8] sm:$0xf] %vm464_vm9, %v6397_v25  ;;  %v6142_v48 = vpack.c.bf16 %v6110_v4, %v6110_v4  ;;  %v6009_v26 = vadd.f32 %v5975_v23, %v5599_v10  ;;  %v6988_v35 = vsel %vm12668_vm3, %v6983_v60, %v6987_v38  ;;  %v6990_v21 = vshrl.u32 %v6609_v16, 16  ;;  %10002 = vmatpush.bf16.msra.mxu3 %v11926_v63 }
 0x6fc   : > { %6569 = vst [vmem:[#allocation3 + $0xbc] sm:$0x1] %v6568_v62  ;;  %v6978_v5 = vsel %vm12668_vm3, %v6973_v1, %v14984_v44  ;;  %v6993_v62 = vshll.u32 %v6609_v16, 16  ;;  %v7045_v58 = vunpack.c.l.b16 %v6988_v35  ;;  %v11457_v56 = vrot.slane %v7440_v40, 9 }
 0x6fd   : > { %v6400_v57 = vshrl.u32 %v6142_v48, 16  ;;  %v14998_v61 = vpop.f32.mrf.mxu0  ;;  %v6044_v15 = vmul.f32 %v14850_v18, %v6009_v26  ;;  %11478 = vmatmul.msk.bf16.gmra.mxu2 %vm7070_vm10, %v7634_v22  ;;  %v11908_v18 = vld [vmem:[%s16586_s8 + $0x28] sm:$0xff]  ;;  %v6403_v3 = vshll.u32 %v6142_v48, 16  ;;  %v7547_v17 = vrot.slane %v14748_v53, 5 }
 0x6fe   : > { %11564 = vmatmul.msk.bf16.gmra.mxu3 %vm7070_vm10, %v11898_v12  ;;  %v15005_v20 = vpop.f32.mrf.mxu1  ;;  %v7044_v48 = vunpack.c.l.b16 %v6978_v5  ;;  %9053 = vmatpush.bf16.msrb.mxu1 %v11908_v18  ;;  %v6992_v26 = vrot.slane %v6990_v21, 4  ;;  %v6995_v1 = vrot.slane %v6993_v62, 5  ;;  %v6574_v62 = vld [vmem:[#allocation3 + $0xc8] sm:$0x1] }
 0x6ff   : > { %v6402_v50 = vrot.slane %v6400_v57, 7  ;;  %v6079_v25 = vadd.f32 %v14864_v9, %v6044_v15  ;;  %v7548_v9 = vsel %vm12694_vm8, %v7546_v51, %v7547_v17 }
 0x700   : > { %v7705_v23 = vpop.f32.mrf.mxu2  ;;  %v7062_v40 = vpack.c.b16 %v7045_v58, %v7044_v48  ;;  %v7613_v2 = vunpack.c.l.b16 %v7548_v9  ;;  %v11899_v48 = vld [vmem:[#allocation3 + $0x78] sm:$0xff] }
 0x701   : > { %v7995_v4 = vpop.f32.mrf.mxu3  ;;  %11441 = vmatmul.msk.bf16.gmra.mxu1 %vm7070_vm10, %v11880_v54  ;;  %v6405_v10 = vor.u32 %v6403_v3, %v6402_v50  ;;  %v6111_v0 = vmax.f32 %v6079_v25, 0.0  ;;  %v7785_v60 = vadd.f32 %v7705_v23, %v7352_v24  ;;  %v7545_v24 = vsel %vm12694_vm8, %v11457_v56, %v7544_v47  ;;  %v11927_v47 = vld [vmem:[%s16586_s8 + $0x40] sm:$0xff] }
 0x702   : > { %v15024_v44 = vld [vmem:[#allocation3 + $0xb8] sm:$0xf]  ;;  %v7354_v54 = vadd.f32 %v14982_v29, %v14754_v13  ;;  %v6406_v25 = vrot.slane %v6402_v50, 4  ;;  %v7612_v58 = vunpack.c.l.b16 %v7545_v24  ;;  %10404 = vmatpush.bf16.msrb.mxu0 %v11927_v47 }
 0x703   : > { %v6999_v22 = vshll.u32 %v15024_v44, 16  ;;  %v7003_v12 = vshrl.u32 %v15024_v44, 16  ;;  %v6571_v38 = vsel %vm12535_vm14, %v6405_v10, %v6570_v27  ;;  %v6143_v16 = vpack.c.bf16 %v6111_v0, %v6111_v0  ;;  %v15034_v57 = vld [vmem:[#allocation3 + $0xbc] sm:$0x1] }
 0x704   : > { %v15032_v53 = vadd.f32 %v7995_v4, %v7785_v60  ;;  %6572 = vst [vmem:[#allocation3 + $0xc0] sm:$0xf] %v6571_v38  ;;  %v7009_v3 = vshll.u32 %v15034_v57, 16  ;;  %v6996_v4 = vor.u32 %v6995_v1, %v6992_v26  ;;  %v7635_v29 = vpack.c.b16 %v7613_v2, %v7612_v58 }
 0x705   : > { %v7001_v15 = vrot.slane %v6999_v22, 5  ;;  %v7005_v35 = vrot.slane %v7003_v12, 4  ;;  %v6408_v33 = vshrl.u32 %v6143_v16, 16  ;;  %v15036_v63 = vpop.f32.mrf.mxu0  ;;  %v6411_v21 = vshll.u32 %v6143_v16, 16  ;;  %v15057_v22 = vld [vmem:[#allocation3 + $0x10] sm:$0xf] }
 0x706   : > { %v15038_v18 = vpop.f32.mrf.mxu1  ;;  %v7011_v9 = vrot.slane %v7009_v3, 5  ;;  %v7551_v26 = vrot.slane %v14783_v42, 5  ;;  %v6997_v8 = vrot.slane %v6996_v4, 4  ;;  %v11881_v16 = vld [vmem:[#allocation3 + $0x78] sm:$0xff]  ;;  %v7357_v1 = vadd.f32 %v15005_v20, %v14776_v55 }
 0x707   : > { %v7006_v5 = vor.u32 %v7005_v35, %v7001_v15  ;;  %v6410_v51 = vrot.slane %v6408_v33, 7  ;;  %v8165_v35 = vshll.u32 %v15057_v22, 16  ;;  %v8169_v33 = vshrl.u32 %v15057_v22, 16 }
 0x708   : > { %11362 = vmatmul.msk.bf16.gmra.mxu0 %vm7070_vm10, %v7062_v40  ;;  %v7707_v27 = vpop.f32.mrf.mxu2  ;;  %v7002_v42 = vsel %vm12668_vm3, %v6997_v8, %v7001_v15  ;;  %v8107_v40 = vld [vmem:[#allocation3 + $0xc] sm:$0xf] }
 0x709   : > { %v7997_v23 = vpop.f32.mrf.mxu3  ;;  %v6413_v56 = vor.u32 %v6411_v21, %v6410_v51  ;;  %v6415_v17 = vrot.slane %v6410_v51, 4  ;;  %v7786_v10 = vadd.f32 %v7707_v27, %v7354_v54  ;;  %v7007_v13 = vrot.slane %v7006_v5, 4  ;;  %v7441_v21 = vld [vmem:[#allocation3 + $0x78] sm:$0xe] }
 0x70a   : > { %v7553_v54 = vrot.slane %v7551_v26, 4  ;;  %v7046_v3 = vunpack.c.l.b16 %v7002_v42  ;;  %v8156_v55 = vshrl.u32 %v8107_v40, 16  ;;  %v8159_v15 = vshll.u32 %v8107_v40, 16 }
 0x70b   : > { %v6414_v50 = vsel %vm12183_vm4, %v6406_v25, %v6413_v56  ;;  %v6575_v0 = vsel %vm12241_vm7, %v6415_v17, %v6574_v62  ;;  %v15053_v60 = vadd.f32 %v7997_v23, %v7786_v10  ;;  %v7012_v46 = vsel %vm12668_vm3, %v7007_v13, %v7011_v9  ;;  %v15081_v10 = vld [vmem:[#allocation3 + $0x14] sm:$0x1] }
 0x70c   : > { %6573 = vst.msk [vmem:[#allocation3 + $0xc4] sm:$0xf] %vm464_vm9, %v6414_v50  ;;  %v7047_v2 = vunpack.c.l.b16 %v7012_v46  ;;  %v7554_v25 = vrot.slane %v14790_v7, 5  ;;  %v8167_v62 = vrot.slane %v8165_v35, 5  ;;  %v8171_v27 = vrot.slane %v8169_v33, 4 }
 0x70d   : > { %6576 = vst [vmem:[#allocation3 + $0xc8] sm:$0x1] %v6575_v0  ;;  %v15059_v12 = vpop.f32.mrf.mxu0  ;;  %11479 = vmatmul.msk.bf16.gmra.mxu2 %vm7070_vm10, %v7635_v29  ;;  %v11458_v58 = vrot.slane %v7441_v21, 9  ;;  %v8158_v7 = vrot.slane %v8156_v55, 4  ;;  %v7359_v13 = vadd.f32 %v15038_v18, %v14796_v59  ;;  %v8161_v50 = vrot.slane %v8159_v15, 5  ;;  %v11900_v18 = vld [vmem:[#allocation3 + $0x84] sm:$0xff] }
 0x70e   : > { %11565 = vmatmul.msk.bf16.gmra.mxu3 %vm7070_vm10, %v11899_v48  ;;  %v7361_v38 = vpop.f32.mrf.mxu1  ;;  %v7063_v23 = vpack.c.b16 %v7047_v2, %v7046_v3  ;;  %v7555_v4 = vsel %vm12694_vm8, %v7553_v54, %v7554_v25  ;;  %v8172_v0 = vor.u32 %v8171_v27, %v8167_v62  ;;  %v15085_v48 = vld [vmem:[#allocation3 + $0x1c] sm:$0xf]  ;;  %v7558_v2 = vrot.slane %v14825_v39, 5  ;;  %v11882_v3 = vld [vmem:[#allocation3 + $0x84] sm:$0xff] }
 0x70f   : > { %v7552_v17 = vsel %vm12694_vm8, %v11458_v58, %v7551_v26  ;;  %v7615_v29 = vunpack.c.l.b16 %v7555_v4  ;;  %v8110_v26 = vld [vmem:[#allocation3 + $0x18] sm:$0xf]  ;;  %v8189_v42 = vshll.u32 %v15085_v48, 16  ;;  %v8193_v40 = vshrl.u32 %v15085_v48, 16 }
 0x710   : > { %v7710_v24 = vpop.f32.mrf.mxu2  ;;  %v8162_v33 = vor.u32 %v8161_v50, %v8158_v7  ;;  %v8180_v21 = vshrl.u32 %v8110_v26, 16  ;;  %v8183_v25 = vshll.u32 %v8110_v26, 16  ;;  %v7362_v27 = vadd.f32 %v7361_v38, %v14818_v45  ;;  %v15106_v50 = vld [vmem:[#allocation3 + $0x20] sm:$0x1] }
 0x711   : > { %v8000_v5 = vpop.f32.mrf.mxu3  ;;  %11442 = vmatmul.msk.bf16.gmra.mxu1 %vm7070_vm10, %v11881_v16  ;;  %v7787_v51 = vadd.f32 %v7710_v24, %v7357_v1  ;;  %v7614_v16 = vunpack.c.l.b16 %v7552_v17  ;;  %v8175_v1 = vshll.u32 %v15081_v10, 16  ;;  %v8173_v24 = vrot.slane %v8172_v0, 4 }
 0x712   : > { %v8191_v55 = vrot.slane %v8189_v42, 5  ;;  %v8195_v15 = vrot.slane %v8193_v40, 4  ;;  %v7560_v17 = vrot.slane %v7558_v2, 4  ;;  %v8182_v0 = vrot.slane %v8180_v21, 4  ;;  %v8114_v21 = vld [vmem:[#allocation3 + $0x28] sm:$0xf] }
 0x713   : > { %v15073_v20 = vadd.f32 %v8000_v5, %v7787_v51  ;;  %v7636_v59 = vpack.c.b16 %v7615_v29, %v7614_v16  ;;  %v8177_v51 = vrot.slane %v8175_v1, 5  ;;  %v7442_v29 = vld [vmem:[#allocation3 + $0x84] sm:$0xe]  ;;  %v7561_v45 = vrot.slane %v14830_v14, 5 }
 0x714   : > { %v8185_v38 = vrot.slane %v8183_v25, 5  ;;  %v11459_v1 = vrot.slane %v7442_v29, 9  ;;  %v8199_v42 = vshll.u32 %v15106_v50, 16 }
 0x715   : > { %v15077_v47 = vpop.f32.mrf.mxu0  ;;  %v8178_v39 = vsel %vm12668_vm3, %v8173_v24, %v8177_v51  ;;  %v7562_v26 = vsel %vm12694_vm8, %v7560_v17, %v7561_v45  ;;  %v8213_v17 = vshll.u32 %v8114_v21, 16 }
 0x716   : > { %v7363_v56 = vpop.f32.mrf.mxu1  ;;  %v8186_v14 = vor.u32 %v8185_v38, %v8182_v0  ;;  %v7617_v51 = vunpack.c.l.b16 %v7562_v26 }
 0x717   : > { %v7364_v24 = vadd.f32 %v7363_v56, %v14839_v6  ;;  %v11901_v6 = vld [vmem:[#allocation3 + $0x90] sm:$0xff] }
 0x718   : > { %11363 = vmatmul.msk.bf16.gmra.mxu0 %vm7070_vm10, %v7063_v23  ;;  %v7712_v9 = vpop.f32.mrf.mxu2  ;;  %v8163_v23 = vrot.slane %v8162_v33, 4 }
 0x719   : > { %v8002_v8 = vpop.f32.mrf.mxu3  ;;  %v7788_v46 = vadd.f32 %v7712_v9, %v7359_v13  ;;  %v8543_v9 = vunpack.c.l.b16 %v8178_v39 }
 0x71a   : > { %v8168_v13 = vsel %vm12668_vm3, %v8163_v23, %v8167_v62 }
 0x71b   : > { %v15091_v35 = vadd.f32 %v8002_v8, %v7788_v46  ;;  %v8196_v8 = vor.u32 %v8195_v15, %v8191_v55  ;;  %v8542_v16 = vunpack.c.l.b16 %v8168_v13  ;;  %v8201_v15 = vrot.slane %v8199_v42, 5 }
 0x71d   : > { %16718 = vst [vmem:[#allocation29_spill] sm:$0xff] %v15091_v35  ;;  %v15094_v5 = vpop.f32.mrf.mxu0  ;;  %11480 = vmatmul.msk.bf16.gmra.mxu2 %vm7070_vm10, %v7636_v59  ;;  %v8574_v59 = vpack.c.b16 %v8543_v9, %v8542_v16  ;;  %v8197_v33 = vrot.slane %v8196_v8, 4  ;;  %v7565_v9 = vrot.slane %v14880_v11, 5  ;;  %v11883_v16 = vld [vmem:[#allocation3 + $0x90] sm:$0xff] }
 0x71e   : > { %11566 = vmatmul.msk.bf16.gmra.mxu3 %vm7070_vm10, %v11900_v18  ;;  %v15098_v54 = vpop.f32.mrf.mxu1  ;;  %v7559_v18 = vsel %vm12694_vm8, %v11459_v1, %v7558_v2  ;;  %v8217_v2 = vshrl.u32 %v8114_v21, 16  ;;  %v15135_v1 = vrot.slane %v8213_v17, 5  ;;  %v15139_v11 = vld [vmem:[#allocation3 + $0x34] sm:$0xf] }
 0x71f   : > { %v7616_v39 = vunpack.c.l.b16 %v7559_v18  ;;  %v7367_v42 = vadd.f32 %v15098_v54, %v14873_v36  ;;  %v8237_v54 = vshll.u32 %v15139_v11, 16 }
 0x720   : > { %v7715_v58 = vpop.f32.mrf.mxu2  ;;  %v8219_v26 = vrot.slane %v8217_v2, 4 }
 0x721   : > { %v8005_v4 = vpop.f32.mrf.mxu3  ;;  %11443 = vmatmul.msk.bf16.gmra.mxu1 %vm7070_vm10, %v11882_v3  ;;  %v7789_v7 = vadd.f32 %v7715_v58, %v7362_v27  ;;  %v8113_v27 = vld [vmem:[#allocation3 + $0x24] sm:$0xf]  ;;  %v8187_v58 = vrot.slane %v8186_v14, 4  ;;  %v7637_v13 = vpack.c.b16 %v7617_v51, %v7616_v39  ;;  %v7568_v39 = vrot.slane %v14885_v19, 5 }
 0x722   : > { %v8204_v56 = vshrl.u32 %v8113_v27, 16  ;;  %v8207_v29 = vshll.u32 %v8113_v27, 16  ;;  %v8767_v51 = vld [vmem:[#allocation3 + $0x24] sm:$0xe]  ;;  %v8115_v27 = vld [vmem:[#allocation3 + $0x2c] sm:$0x1]  ;;  %v8220_v36 = vor.u32 %v8219_v26, %v15135_v1 }
 0x723   : > { %v15109_v46 = vadd.f32 %v8005_v4, %v7789_v7  ;;  %v8202_v4 = vsel %vm12668_vm3, %v8197_v33, %v8201_v15  ;;  %v8192_v0 = vsel %vm12668_vm3, %v8187_v58, %v8191_v55  ;;  %v7443_v15 = vld [vmem:[#allocation3 + $0x90] sm:$0xe]  ;;  %v8241_v58 = vshrl.u32 %v15139_v11, 16 }
 0x724   : > { %v8545_v8 = vunpack.c.l.b16 %v8202_v4  ;;  %v8206_v55 = vrot.slane %v8204_v56, 4  ;;  %v8209_v18 = vrot.slane %v8207_v29, 5  ;;  %v11596_v2 = vrot.slane %v8767_v51, 9 }
 0x725   : > { %16719 = vst [vmem:[#allocation30_spill] sm:$0xff] %v15109_v46  ;;  %v15114_v40 = vpop.f32.mrf.mxu0  ;;  %v8223_v29 = vshll.u32 %v8115_v27, 16 }
 0x726   : > { %v15116_v62 = vpop.f32.mrf.mxu1  ;;  %v8210_v17 = vor.u32 %v8209_v18, %v8206_v55  ;;  %v15158_v18 = vrot.slane %v8237_v54, 5 }
 0x728   : > { %11578 = vmatmul.msk.bf16.vlgmr.msra.gmra.mxu0 %vm7070_vm10, %v8574_v59  ;;  %v7717_v3 = vpop.f32.mrf.mxu2  ;;  %v8544_v59 = vunpack.c.l.b16 %v8192_v0  ;;  %v8211_v51 = vrot.slane %v8210_v17, 4 }
 0x729   : > { %v8007_v25 = vpop.f32.mrf.mxu3  ;;  %v7790_v23 = vadd.f32 %v7717_v3, %v7364_v24  ;;  %v7567_v24 = vrot.slane %v7565_v9, 4 }
 0x72b   : > { %v15124_v7 = vadd.f32 %v8007_v25, %v7790_v23  ;;  %v8575_v25 = vpack.c.b16 %v8545_v8, %v8544_v59  ;;  %v8116_v23 = vld [vmem:[#allocation3 + $0x30] sm:$0xf]  ;;  %v7569_v56 = vsel %vm12694_vm8, %v7567_v24, %v7568_v39  ;;  %v8848_v59 = vrot.slane %v8115_v27, 5 }
 0x72c   : > { %v8228_v0 = vshrl.u32 %v8116_v23, 16  ;;  %v7619_v24 = vunpack.c.l.b16 %v7569_v56  ;;  %v8225_v39 = vrot.slane %v8223_v29, 5  ;;  %v15171_v56 = vld [vmem:[#allocation3 + $0x40] sm:$0xf] }
 0x72d   : > { %16720 = vst [vmem:[#allocation31_spill] sm:$0xff] %v15124_v7  ;;  %v15129_v45 = vpop.f32.mrf.mxu0  ;;  %11481 = vmatmul.msk.bf16.gmra.mxu2 %vm7070_vm10, %v7637_v13  ;;  %v8845_v13 = vrot.slane %v8114_v21, 5  ;;  %v8221_v21 = vrot.slane %v8220_v36, 4 }
 0x72e   : > { %11567 = vmatmul.msk.bf16.gmra.mxu3 %vm7070_vm10, %v11901_v6  ;;  %v15133_v38 = vpop.f32.mrf.mxu1  ;;  %v11460_v6 = vrot.slane %v7443_v15, 9 }
 0x72f   : > { %v8846_v26 = vsel %vm12694_vm8, %v11596_v2, %v8845_v13  ;;  %v8230_v2 = vrot.slane %v8228_v0, 4  ;;  %v8226_v17 = vsel %vm12668_vm3, %v8221_v21, %v8225_v39 }
 0x730   : > { %v7720_v14 = vpop.f32.mrf.mxu2  ;;  %v7566_v55 = vsel %vm12694_vm8, %v11460_v6, %v7565_v9  ;;  %v8119_v9 = vld [vmem:[#allocation3 + $0x3c] sm:$0xf]  ;;  %v8948_v36 = vunpack.c.l.b16 %v8846_v26 }
 0x731   : > { %v8010_v33 = vpop.f32.mrf.mxu3  ;;  %11444 = vmatmul.msk.bf16.gmra.mxu1 %vm7070_vm10, %v11883_v16  ;;  %v7791_v3 = vadd.f32 %v7720_v14, %v7367_v42  ;;  %v8231_v16 = vshll.u32 %v8116_v23, 16  ;;  %v8847_v42 = vrot.slane %v8845_v13, 4  ;;  %v8243_v14 = vrot.slane %v8241_v58, 4 }
 0x732   : > { %v7618_v58 = vunpack.c.l.b16 %v7566_v55  ;;  %v8252_v55 = vshrl.u32 %v8119_v9, 16 }
 0x733   : > { %v15146_v4 = vadd.f32 %v8010_v33, %v7791_v3  ;;  %v7369_v33 = vadd.f32 %v15116_v62, %v14897_v30  ;;  %v8118_v3 = vld [vmem:[#allocation3 + $0x38] sm:$0x1]  ;;  %v8849_v15 = vsel %vm12694_vm8, %v8847_v42, %v8848_v59  ;;  %v8216_v30 = vsel %vm12668_vm3, %v8211_v51, %v15135_v1  ;;  %v11902_v42 = vld [vmem:[#allocation3 + $0x9c] sm:$0xff] }
 0x734   : > { %v8949_v54 = vunpack.c.l.b16 %v8849_v15  ;;  %v8233_v62 = vrot.slane %v8231_v16, 5  ;;  %v8244_v6 = vor.u32 %v8243_v14, %v15158_v18  ;;  %v7638_v26 = vpack.c.b16 %v7619_v24, %v7618_v58  ;;  %v11884_v24 = vld [vmem:[#allocation3 + $0x9c] sm:$0xff] }
 0x735   : > { %16721 = vst [vmem:[#allocation7_spill] sm:$0xff] %v15146_v4  ;;  %v15150_v8 = vpop.f32.mrf.mxu0  ;;  %v7572_v59 = vrot.slane %v14925_v43, 5  ;;  %v8255_v1 = vshll.u32 %v8119_v9, 16  ;;  %v8852_v16 = vrot.slane %v15139_v11, 5  ;;  %v8546_v14 = vunpack.c.l.b16 %v8216_v30 }
 0x736   : > { %v15152_v19 = vpop.f32.mrf.mxu1  ;;  %v15173_v29 = vpack.c.b16 %v8949_v54, %v8948_v36  ;;  %v8547_v15 = vunpack.c.l.b16 %v8226_v17  ;;  %v8261_v43 = vshll.u32 %v15171_v56, 16  ;;  %v7372_v11 = vadd.f32 %v15133_v38, %v14927_v41  ;;  %v15188_v54 = vld [vmem:[#allocation3 + $0x44] sm:$0x1] }
 0x737   : > { %v7574_v9 = vrot.slane %v7572_v59, 4  ;;  %v8854_v58 = vrot.slane %v8852_v16, 4  ;;  %v8257_v30 = vrot.slane %v8255_v1, 5  ;;  %v8855_v17 = vrot.slane %v8118_v3, 5  ;;  %v15200_v1 = vld [vmem:[#allocation3 + $0x48] sm:$0xf] }
 0x738   : > { %11579 = vmatmul.msk.bf16.gmra.mxu0 %vm7070_vm10, %v8575_v25  ;;  %v7722_v23 = vpop.f32.mrf.mxu2  ;;  %v8247_v25 = vshll.u32 %v8118_v3, 16  ;;  %v7575_v41 = vrot.slane %v14932_v52, 5 }
 0x739   : > { %v8012_v27 = vpop.f32.mrf.mxu3  ;;  %v7792_v13 = vadd.f32 %v7722_v23, %v7369_v33  ;;  %v8768_v33 = vld [vmem:[#allocation3 + $0x30] sm:$0xe]  ;;  %v8234_v23 = vor.u32 %v8233_v62, %v8230_v2  ;;  %v8265_v2 = vshrl.u32 %v15171_v56, 16  ;;  %v8856_v4 = vsel %vm12694_vm8, %v8854_v58, %v8855_v17 }
 0x73a   : > { %v8249_v39 = vrot.slane %v8247_v25, 5  ;;  %v11597_v36 = vrot.slane %v8768_v33, 9  ;;  %v8576_v25 = vpack.c.b16 %v8547_v15, %v8546_v14  ;;  %v7444_v33 = vld [vmem:[#allocation3 + $0x9c] sm:$0xe]  ;;  %v7576_v14 = vsel %vm12694_vm8, %v7574_v9, %v7575_v41 }
 0x73b   : > { %v15175_v0 = vadd.f32 %v8012_v27, %v7792_v13  ;;  %v8245_v27 = vrot.slane %v8244_v6, 4  ;;  %v8254_v13 = vrot.slane %v8252_v55, 4  ;;  %v8235_v38 = vrot.slane %v8234_v23, 4 }
 0x73c   : > { %v8853_v62 = vsel %vm12694_vm8, %v11597_v36, %v8852_v16  ;;  %v8769_v16 = vld [vmem:[#allocation3 + $0x3c] sm:$0xe]  ;;  %v8951_v15 = vunpack.c.l.b16 %v8856_v4  ;;  %v11461_v23 = vrot.slane %v7444_v33, 9  ;;  %v8276_v58 = vshrl.u32 %v15200_v1, 16 }
 0x73d   : > { %16722 = vst [vmem:[#allocation16_spill] sm:$0xff] %v15175_v0  ;;  %v15179_v51 = vpop.f32.mrf.mxu0  ;;  %11482 = vmatmul.msk.bf16.gmra.mxu2 %vm7070_vm10, %v7638_v26  ;;  %v8250_v55 = vsel %vm12668_vm3, %v8245_v27, %v8249_v39  ;;  %v15197_v0 = vrot.slane %v8261_v43, 5  ;;  %v8950_v52 = vunpack.c.l.b16 %v8853_v62  ;;  %v8240_v27 = vsel %vm12668_vm3, %v8235_v38, %v15158_v18 }
 0x73e   : > { %11568 = vmatmul.msk.bf16.gmra.mxu3 %vm7070_vm10, %v11902_v42  ;;  %v15183_v21 = vpop.f32.mrf.mxu1  ;;  %v8258_v39 = vor.u32 %v8257_v30, %v8254_v13  ;;  %v8267_v43 = vrot.slane %v8265_v2, 4  ;;  %v11598_v9 = vrot.slane %v8769_v16, 9  ;;  %v8859_v4 = vrot.slane %v15171_v56, 5  ;;  %v10116_v30 = vld [vmem:[#allocation3 + $0x18] sm:$0xe] }
 0x73f   : > { %v7573_v62 = vsel %vm12694_vm8, %v11461_v23, %v7572_v59  ;;  %v7621_v17 = vunpack.c.l.b16 %v7576_v14  ;;  %v15223_v18 = vunpack.c.l.b16 %v8250_v55  ;;  %v8279_v13 = vshll.u32 %v15200_v1, 16  ;;  %v8765_v23 = vld [vmem:[#allocation3 + $0xc] sm:$0xe] }
 0x740   : > { %v7725_v26 = vpop.f32.mrf.mxu2  ;;  %v7374_v2 = vadd.f32 %v15152_v19, %v14950_v32  ;;  %v8860_v33 = vsel %vm12694_vm8, %v11598_v9, %v8859_v4  ;;  %v8861_v41 = vrot.slane %v8859_v4, 4  ;;  %v8862_v56 = vrot.slane %v15188_v54, 5 }
 0x741   : > { %v8015_v42 = vpop.f32.mrf.mxu3  ;;  %11445 = vmatmul.msk.bf16.gmra.mxu1 %vm7070_vm10, %v11884_v24  ;;  %v7793_v6 = vadd.f32 %v7725_v26, %v7372_v11  ;;  %v8271_v24 = vshll.u32 %v15188_v54, 16  ;;  %v15216_v26 = vld [vmem:[#allocation3 + $0x1c] sm:$0xf]  ;;  %v8259_v55 = vrot.slane %v8258_v39, 4  ;;  %v8268_v16 = vor.u32 %v8267_v43, %v15197_v0  ;;  %v11903_v43 = vld [vmem:[#allocation3 + $0xa8] sm:$0xff] }
 0x742   : > { %v8831_v1 = vrot.slane %v15057_v22, 5  ;;  %v10182_v14 = vrot.slane %v15216_v26, 5  ;;  %v7620_v19 = vunpack.c.l.b16 %v7573_v62  ;;  %v8952_v9 = vunpack.c.l.b16 %v8860_v33 }
 0x743   : > { %v15204_v3 = vadd.f32 %v8015_v42, %v7793_v6  ;;  %v15218_v42 = vpack.c.b16 %v8951_v15, %v8950_v52  ;;  %v15228_v6 = vld [vmem:[#allocation3 + $0x20] sm:$0x1]  ;;  %v8863_v52 = vsel %vm12694_vm8, %v8861_v41, %v8862_v56  ;;  %v11740_v15 = vrot.slane %v10116_v30, 9 }
 0x744   : > { %v8953_v54 = vunpack.c.l.b16 %v8863_v52  ;;  %v10184_v4 = vrot.slane %v10182_v14, 4  ;;  %v7639_v39 = vpack.c.b16 %v7621_v17, %v7620_v19  ;;  %v7579_v22 = vrot.slane %v14967_v49, 5  ;;  %v8123_v19 = vld [vmem:[#allocation3 + $0x4c] sm:$0xf] }
 0x745   : > { %16723 = vst [vmem:[#allocation6_spill] sm:$0xff] %v15204_v3  ;;  %v15211_v36 = vpop.f32.mrf.mxu0  ;;  %v15245_v62 = vunpack.c.l.b16 %v8240_v27  ;;  %v8264_v49 = vsel %vm12668_vm3, %v8259_v55, %v15197_v0  ;;  %v8273_v27 = vrot.slane %v8271_v24, 5  ;;  %v8278_v56 = vrot.slane %v8276_v58, 4  ;;  %v10117_v58 = vld [vmem:[#allocation3 + $0x24] sm:$0xe] }
 0x746   : > { %v15213_v11 = vpop.f32.mrf.mxu1  ;;  %v15247_v41 = vpack.c.b16 %v8953_v54, %v8952_v9  ;;  %v8281_v52 = vrot.slane %v8279_v13, 5  ;;  %v7377_v54 = vadd.f32 %v15183_v21, %v14979_v37  ;;  %v8834_v24 = vrot.slane %v15081_v10, 5 }
 0x747   : > { %v8289_v10 = vshrl.u32 %v8123_v19, 16  ;;  %v11741_v7 = vrot.slane %v10117_v58, 9 }
 0x748   : > { %11580 = vmatmul.msk.bf16.gmra.mxu0 %vm7070_vm10, %v8576_v25  ;;  %v7727_v59 = vpop.f32.mrf.mxu2  ;;  %v10185_v25 = vrot.slane %v15228_v6, 5 }
 0x749   : > { %v8017_v38 = vpop.f32.mrf.mxu3  ;;  %v7794_v32 = vadd.f32 %v7727_v59, %v7374_v2  ;;  %v10183_v2 = vsel %vm12694_vm8, %v11740_v15, %v10182_v14  ;;  %v8269_v59 = vrot.slane %v8268_v16, 4  ;;  %v15260_v16 = vld [vmem:[#allocation3 + $0x28] sm:$0xf]  ;;  %v8577_v14 = vpack.c.b16 %v15223_v18, %v15245_v62  ;;  %v15280_v62 = vld [vmem:[#allocation3 + $0x2c] sm:$0x1] }
 0x74a   : > { %v10186_v30 = vsel %vm12694_vm8, %v10184_v4, %v10185_v25  ;;  %v10295_v15 = vunpack.c.l.b16 %v10183_v2  ;;  %v7581_v4 = vrot.slane %v7579_v22, 4  ;;  %v7445_v18 = vld [vmem:[#allocation3 + $0xa8] sm:$0xe]  ;;  %v15274_v25 = vunpack.c.l.b16 %v8264_v49 }
 0x74b   : > { %v15240_v3 = vadd.f32 %v8017_v38, %v7794_v32  ;;  %v11594_v38 = vrot.slane %v8765_v23, 9  ;;  %v11885_v32 = vld [vmem:[#allocation3 + $0xa8] sm:$0xff]  ;;  %v10296_v9 = vunpack.c.l.b16 %v10186_v30  ;;  %v8274_v13 = vsel %vm12668_vm3, %v8269_v59, %v8273_v27 }
 0x74c   : > { %v10189_v37 = vrot.slane %v15260_v16, 5  ;;  %v8285_v2 = vshll.u32 %v8123_v19, 16  ;;  %v8282_v30 = vor.u32 %v8281_v52, %v8278_v56  ;;  %v11462_v49 = vrot.slane %v7445_v18, 9 }
 0x74d   : > { %16724 = vst [vmem:[#allocation4_spill] sm:$0xff] %v15240_v3  ;;  %v15251_v33 = vpop.f32.mrf.mxu0  ;;  %11483 = vmatmul.msk.bf16.gmra.mxu2 %vm7070_vm10, %v7639_v39  ;;  %v15268_v0 = vsel %vm12694_vm8, %v11594_v38, %v8831_v1  ;;  %v15276_v39 = vpack.c.b16 %v10296_v9, %v10295_v15  ;;  %v8833_v38 = vrot.slane %v8831_v1, 4  ;;  %v8770_v3 = vld [vmem:[#allocation3 + $0x48] sm:$0xe]  ;;  %v15287_v15 = vunpack.c.l.b16 %v8274_v13  ;;  %v8124_v9 = vld [vmem:[#allocation3 + $0x50] sm:$0x1] }
 0x74e   : > { %11569 = vmatmul.msk.bf16.gmra.mxu3 %vm7070_vm10, %v11903_v43  ;;  %v15255_v17 = vpop.f32.mrf.mxu1  ;;  %v7582_v43 = vrot.slane %v14976_v34, 5  ;;  %v8866_v34 = vrot.slane %v8123_v19, 5  ;;  %v10192_v1 = vrot.slane %v15280_v62, 5  ;;  %v7580_v58 = vsel %vm12694_vm8, %v11462_v49, %v7579_v22 }
 0x74f   : > { %16725 = vst [vmem:[#allocation5_spill] sm:$0xff] %v15276_v39  ;;  %v11599_v18 = vrot.slane %v8770_v3, 9  ;;  %v7622_v49 = vunpack.c.l.b16 %v7580_v58 }
 0x750   : > { %v7730_v55 = vpop.f32.mrf.mxu2  ;;  %v7583_v27 = vsel %vm12694_vm8, %v7581_v4, %v7582_v43  ;;  %v8291_v4 = vrot.slane %v8289_v10, 4  ;;  %v8868_v19 = vrot.slane %v8866_v34, 4  ;;  %v8869_v43 = vrot.slane %v8124_v9, 5 }
 0x751   : > { %v8020_v23 = vpop.f32.mrf.mxu3  ;;  %11446 = vmatmul.msk.bf16.gmra.mxu1 %vm7070_vm10, %v11885_v32  ;;  %v7795_v21 = vadd.f32 %v7730_v55, %v7377_v54  ;;  %v10190_v54 = vsel %vm12694_vm8, %v11741_v7, %v10189_v37  ;;  %v10191_v55 = vrot.slane %v10189_v37, 4  ;;  %v7623_v13 = vunpack.c.l.b16 %v7583_v27  ;;  %v9458_v32 = vld [vmem:[#allocation3 + $0x18] sm:$0xf] }
 0x752   : > { %v7379_v37 = vadd.f32 %v15213_v11, %v14998_v61  ;;  %v8867_v39 = vsel %vm12694_vm8, %v11599_v18, %v8866_v34  ;;  %v10297_v22 = vunpack.c.l.b16 %v10190_v54  ;;  %v8283_v27 = vrot.slane %v8282_v30, 4  ;;  %v15317_v18 = vld [vmem:[#allocation3 + $0x38] sm:$0x1] }
 0x753   : > { %v15283_v59 = vadd.f32 %v8020_v23, %v7795_v21  ;;  %v15298_v23 = vrot.slane %v8285_v2, 5  ;;  %v15300_v21 = vld [vmem:[#allocation3 + $0x34] sm:$0xf]  ;;  %v10193_v7 = vsel %vm12694_vm8, %v10191_v55, %v10192_v1  ;;  %v8870_v46 = vsel %vm12694_vm8, %v8868_v19, %v8869_v43  ;;  %v10118_v55 = vld [vmem:[#allocation3 + $0x30] sm:$0xe] }
 0x754   : > { %v10298_v2 = vunpack.c.l.b16 %v10193_v7  ;;  %v8955_v35 = vunpack.c.l.b16 %v8870_v46  ;;  %v10196_v11 = vrot.slane %v15300_v21, 5  ;;  %v9507_v54 = vshrl.u32 %v9458_v32, 16  ;;  %v11904_v19 = vld [vmem:[#allocation3 + $0xb4] sm:$0xff] }
 0x755   : > { %16726 = vst [vmem:[#allocation19_spill] sm:$0xff] %v15283_v59  ;;  %v15292_v56 = vpop.f32.mrf.mxu0  ;;  %v8295_v59 = vshll.u32 %v8124_v9, 16  ;;  %v8292_v34 = vor.u32 %v8291_v4, %v15298_v23  ;;  %v8954_v30 = vunpack.c.l.b16 %v8867_v39  ;;  %v7640_v58 = vpack.c.b16 %v7623_v13, %v7622_v49  ;;  %v15347_v7 = vld [vmem:[#allocation3 + $0x18] sm:$0xe] }
 0x756   : > { %v15294_v52 = vpop.f32.mrf.mxu1  ;;  %v15311_v61 = vpack.c.b16 %v10298_v2, %v10297_v22  ;;  %v7586_v43 = vrot.slane %v15024_v44, 5  ;;  %v11742_v46 = vrot.slane %v10118_v55, 9  ;;  %v9520_v4 = vshrl.u32 %v15216_v26, 16 }
 0x757   : > { %v15326_v22 = vpack.c.b16 %v8955_v35, %v8954_v30  ;;  %v10198_v13 = vrot.slane %v10196_v11, 4  ;;  %v10199_v2 = vrot.slane %v15317_v18, 5  ;;  %v8288_v35 = vsel %vm12668_vm3, %v8283_v27, %v15298_v23 }
 0x758   : > { %11581 = vmatmul.msk.bf16.gmra.mxu0 %vm7070_vm10, %v8577_v14  ;;  %v7732_v3 = vpop.f32.mrf.mxu2  ;;  %16727 = vst [vmem:[#allocation11_spill] sm:$0xff] %v15311_v61  ;;  %v8835_v14 = vsel %vm12694_vm8, %v8833_v38, %v8834_v24  ;;  %v9510_v38 = vshll.u32 %v9458_v32, 16  ;;  %v10197_v44 = vsel %vm12694_vm8, %v11742_v46, %v10196_v11  ;;  %v7382_v55 = vadd.f32 %v15255_v17, %v15036_v63 }
 0x759   : > { %v8022_v10 = vpop.f32.mrf.mxu3  ;;  %v7796_v1 = vadd.f32 %v7732_v3, %v7379_v37  ;;  %v9516_v37 = vshll.u32 %v15216_v26, 16  ;;  %16729 = vst [vmem:[#allocation18_spill] sm:$0xff] %v15326_v22  ;;  %v11886_v3 = vld [vmem:[#allocation3 + $0xb4] sm:$0xff]  ;;  %v8293_v26 = vrot.slane %v8292_v34, 4  ;;  %v8945_v49 = vunpack.c.l.b16 %v8835_v14  ;;  %v11905_v22 = vld [vmem:[#allocation3 + $0xc0] sm:$0xff] }
 0x75a   : > { %v9509_v30 = vrot.slane %v9507_v54, 4  ;;  %v10200_v32 = vsel %vm12694_vm8, %v10198_v13, %v10199_v2  ;;  %v9522_v46 = vrot.slane %v9520_v4, 4  ;;  %v10299_v23 = vunpack.c.l.b16 %v10197_v44  ;;  %v7446_v34 = vld [vmem:[#allocation3 + $0xb4] sm:$0xe]  ;;  %v15355_v2 = vld [vmem:[#allocation3 + $0x58] sm:$0xf] }
 0x75b   : > { %v15319_v9 = vadd.f32 %v8022_v10, %v7796_v1  ;;  %v8297_v10 = vrot.slane %v8295_v59, 5  ;;  %v7588_v1 = vrot.slane %v7586_v43, 4  ;;  %v10300_v59 = vunpack.c.l.b16 %v10200_v32  ;;  %v8771_v4 = vld [vmem:[#allocation3 + $0x54] sm:$0xe]  ;;  %v15371_v32 = vld [vmem:[#allocation3 + $0x5c] sm:$0x1] }
 0x75c   : > { %v7589_v63 = vrot.slane %v15034_v57, 5  ;;  %v9512_v17 = vrot.slane %v9510_v38, 5  ;;  %v9526_v14 = vshll.u32 %v15228_v6, 16  ;;  %v15353_v13 = vunpack.c.l.b16 %v8288_v35 }
 0x75d   : > { %16728 = vst [vmem:[#allocation12_spill] sm:$0xff] %v15319_v9  ;;  %v15328_v24 = vpop.f32.mrf.mxu0  ;;  %11484 = vmatmul.msk.bf16.gmra.mxu2 %vm7070_vm10, %v7640_v58  ;;  %v8298_v54 = vsel %vm12668_vm3, %v8293_v26, %v8297_v10  ;;  %v11595_v38 = vrot.slane %v15347_v7, 9  ;;  %v8841_v6 = vrot.slane %v15106_v50, 5  ;;  %v16732_v35 = vunpack.c.l.b16 %v15268_v0 }
 0x75e   : > { %11570 = vmatmul.msk.bf16.gmra.mxu3 %vm7070_vm10, %v11904_v19  ;;  %v15332_v39 = vpop.f32.mrf.mxu1  ;;  %v15345_v19 = vrot.slane %v9516_v37, 5  ;;  %v16597_v37 = vrot.slane %v15085_v48, 5  ;;  %v7590_v57 = vsel %vm12694_vm8, %v7588_v1, %v7589_v63  ;;  %v15380_v7 = vunpack.c.l.b16 %v8298_v54 }
 0x75f   : > { %v15368_v26 = vpack.c.b16 %v8945_v49, %v16732_v35  ;;  %v9513_v50 = vor.u32 %v9512_v17, %v9509_v30  ;;  %v11600_v0 = vrot.slane %v8771_v4, 9  ;;  %v7384_v49 = vadd.f32 %v15294_v52, %v15059_v12 }
 0x760   : > { %v7735_v58 = vpop.f32.mrf.mxu2  ;;  %v9523_v10 = vor.u32 %v9522_v46, %v15345_v19  ;;  %v8840_v63 = vrot.slane %v16597_v37, 4  ;;  %v8876_v54 = vrot.slane %v15371_v32, 5  ;;  %v16734_v17 = vpack.c.b16 %v15287_v15, %v15274_v25  ;;  %v15402_v15 = vld [vmem:[#allocation3 + $0x44] sm:$0x1] }
 0x761   : > { %v8025_v11 = vpop.f32.mrf.mxu3  ;;  %11447 = vmatmul.msk.bf16.gmra.mxu1 %vm7070_vm10, %v11886_v3  ;;  %v7797_v27 = vadd.f32 %v7735_v58, %v7382_v55  ;;  %v15358_v3 = vpack.c.b16 %v10300_v59, %v10299_v23  ;;  %v11463_v55 = vrot.slane %v7446_v34, 9  ;;  %v15373_v58 = vld [vmem:[#allocation3 + $0x40] sm:$0xf]  ;;  %v9528_v59 = vrot.slane %v9526_v14, 5 }
 0x762   : > { %v7625_v34 = vunpack.c.l.b16 %v7590_v57  ;;  %v10203_v30 = vrot.slane %v15373_v58, 5  ;;  %v9540_v57 = vshll.u32 %v15260_v16, 16  ;;  %v8842_v25 = vsel %vm12694_vm8, %v8840_v63, %v8841_v6 }
 0x763   : > { %16730 = vst [vmem:[#allocation9_spill] sm:$0xff] %v15358_v3  ;;  %v15360_v44 = vadd.f32 %v8025_v11, %v7797_v27  ;;  %v8873_v11 = vrot.slane %v15355_v2, 5  ;;  %v9461_v27 = vld [vmem:[#allocation3 + $0x24] sm:$0xf]  ;;  %v7587_v46 = vsel %vm12694_vm8, %v11463_v55, %v7586_v43  ;;  %v9524_v43 = vrot.slane %v9523_v10, 4 }
 0x764   : > { %v9531_v14 = vshrl.u32 %v9461_v27, 16  ;;  %v9534_v4 = vshll.u32 %v9461_v27, 16  ;;  %v10119_v55 = vld [vmem:[#allocation3 + $0x3c] sm:$0xe] }
 0x765   : > { %16731 = vst [vmem:[#allocation14_spill] sm:$0xff] %v15360_v44  ;;  %v15376_v23 = vpop.f32.mrf.mxu0  ;;  %v8874_v35 = vsel %vm12694_vm8, %v11600_v0, %v8873_v11  ;;  %v8875_v3 = vrot.slane %v8873_v11, 4  ;;  %v7624_v0 = vunpack.c.l.b16 %v7587_v46  ;;  %v9544_v11 = vshrl.u32 %v15260_v16, 16 }
 0x766   : > { %16733 = vst [vmem:[#allocation23_spill] sm:$0xff] %v15376_v23  ;;  %v15378_v1 = vpop.f32.mrf.mxu1  ;;  %v9514_v44 = vrot.slane %v9513_v50, 4  ;;  %v11743_v23 = vrot.slane %v10119_v55, 9  ;;  %v9529_v16 = vsel %vm12668_vm3, %v9524_v43, %v9528_v59  ;;  %v9533_v46 = vrot.slane %v9531_v14, 4 }
 0x767   : > { %v8877_v61 = vsel %vm12694_vm8, %v8875_v3, %v8876_v54  ;;  %v7641_v27 = vpack.c.b16 %v7625_v34, %v7624_v0  ;;  %v9546_v6 = vrot.slane %v9544_v11, 4  ;;  %v10206_v59 = vrot.slane %v15402_v15, 5 }
 0x768   : > { %11582 = vmatmul.msk.bf16.gmra.mxu0 %vm7070_vm10, %v16734_v17  ;;  %v7737_v12 = vpop.f32.mrf.mxu2  ;;  %v8956_v17 = vunpack.c.l.b16 %v8874_v35  ;;  %v8957_v10 = vunpack.c.l.b16 %v8877_v61  ;;  %v10204_v34 = vsel %vm12694_vm8, %v11743_v23, %v10203_v30  ;;  %v9519_v63 = vsel %vm12668_vm3, %v9514_v44, %v15345_v19  ;;  %v8125_v35 = vld [vmem:[#allocation3 + $0x54] sm:$0xf] }
 0x769   : > { %v8027_v52 = vpop.f32.mrf.mxu3  ;;  %v7798_v37 = vadd.f32 %v7737_v12, %v7384_v49  ;;  %v10205_v49 = vrot.slane %v10203_v30, 4  ;;  %v9536_v12 = vrot.slane %v9534_v4, 5  ;;  %v8309_v54 = vshll.u32 %v15355_v2, 16  ;;  %v15434_v4 = vld [vmem:[#allocation3 + $0x4c] sm:$0xf] }
 0x76a   : > { %v15408_v3 = vpack.c.b16 %v8957_v10, %v8956_v17  ;;  %v7387_v14 = vadd.f32 %v15332_v39, %v15077_v47  ;;  %v15432_v23 = vunpack.c.l.b16 %v9529_v16  ;;  %v8947_v30 = vunpack.c.l.b16 %v8842_v25  ;;  %v15444_v10 = vld [vmem:[#allocation3 + $0x64] sm:$0xf] }
 0x76b   : > { %v15404_v9 = vadd.f32 %v8027_v52, %v7798_v37  ;;  %v15416_v37 = vrot.slane %v9540_v57, 5  ;;  %v8313_v52 = vshrl.u32 %v15355_v2, 16  ;;  %v10207_v19 = vsel %vm12694_vm8, %v10205_v49, %v10206_v59 }
 0x76c   : > { %v9550_v2 = vshll.u32 %v15280_v62, 16  ;;  %v10302_v55 = vunpack.c.l.b16 %v10207_v19  ;;  %v8300_v47 = vshrl.u32 %v8125_v35, 16  ;;  %v8303_v39 = vshll.u32 %v8125_v35, 16  ;;  %v15461_v19 = vld [vmem:[#allocation3 + $0x68] sm:$0x1] }
 0x76d   : > { %16735 = vst [vmem:[#allocation13_spill] sm:$0xff] %v15404_v9  ;;  %v15410_v50 = vpop.f32.mrf.mxu0  ;;  %11485 = vmatmul.msk.bf16.gmra.mxu2 %vm7070_vm10, %v7641_v27  ;;  %v9547_v11 = vor.u32 %v9546_v6, %v15416_v37  ;;  %v15442_v25 = vrot.slane %v8309_v54, 5  ;;  %v8315_v17 = vrot.slane %v8313_v52, 4  ;;  %v10210_v49 = vrot.slane %v15434_v4, 5 }
 0x76e   : > { %11571 = vmatmul.msk.bf16.gmra.mxu3 %vm7070_vm10, %v11905_v22  ;;  %v15414_v61 = vpop.f32.mrf.mxu1  ;;  %v16736_v22 = vrot.slane %v15085_v48, 5  ;;  %v9537_v48 = vor.u32 %v9536_v12, %v9533_v46  ;;  %v9893_v16 = vunpack.c.l.b16 %v9519_v63  ;;  %v8579_v46 = vpack.c.b16 %v15380_v7, %v15353_v13  ;;  %v15463_v63 = vld [vmem:[#allocation3 + $0x50] sm:$0x1] }
 0x76f   : > { %v8880_v6 = vrot.slane %v15444_v10, 5  ;;  %v8302_v52 = vrot.slane %v8300_v47, 4  ;;  %v8316_v13 = vor.u32 %v8315_v17, %v15442_v25  ;;  %v9548_v7 = vrot.slane %v9547_v11, 4 }
 0x770   : > { %v8839_v43 = vsel %vm12694_vm8, %v11595_v38, %v16736_v22  ;;  %v7740_v44 = vpop.f32.mrf.mxu2  ;;  %v10301_v38 = vunpack.c.l.b16 %v10204_v34  ;;  %v15453_v12 = vrot.slane %v9537_v48, 4  ;;  %v8772_v34 = vld [vmem:[#allocation3 + $0x60] sm:$0xe]  ;;  %v9925_v54 = vpack.c.b16 %v15432_v23, %v9893_v16 }
 0x771   : > { %v8030_v57 = vpop.f32.mrf.mxu3  ;;  %11616 = vmatmul.msk.bf16.vlgmr.msrb.gmra.mxu1 %vm7070_vm10, %v15368_v26  ;;  %v7799_v0 = vadd.f32 %v7740_v44, %v7387_v14  ;;  %v8946_v62 = vunpack.c.l.b16 %v8839_v43  ;;  %v8305_v22 = vrot.slane %v8303_v39, 5  ;;  %v9552_v43 = vrot.slane %v9550_v2, 5  ;;  %v9464_v44 = vld [vmem:[#allocation3 + $0x30] sm:$0xf]  ;;  %v10120_v2 = vld [vmem:[#allocation3 + $0x48] sm:$0xe] }
 0x772   : > { %v15446_v27 = vpack.c.b16 %v10302_v55, %v10301_v38  ;;  %v7389_v48 = vadd.f32 %v15378_v1, %v15094_v5  ;;  %v9564_v38 = vshll.u32 %v15300_v21, 16  ;;  %v11601_v55 = vrot.slane %v8772_v34, 9 }
 0x773   : > { %v15449_v26 = vadd.f32 %v8030_v57, %v7799_v0  ;;  %v8977_v14 = vpack.c.b16 %v8947_v30, %v8946_v62  ;;  %v10212_v57 = vrot.slane %v10210_v49, 4  ;;  %v8882_v23 = vrot.slane %v8880_v6, 4 }
 0x774   : > { %16737 = vst [vmem:[#allocation8_spill] sm:$0xff] %v15446_v27  ;;  %v8319_v47 = vshll.u32 %v15371_v32, 16  ;;  %v9568_v39 = vshrl.u32 %v15300_v21, 16  ;;  %v8883_v11 = vrot.slane %v15461_v19, 5  ;;  %v10213_v17 = vrot.slane %v15463_v63, 5 }
 0x775   : > { %16738 = vst [vmem:[#allocation25_spill] sm:$0xff] %v15449_v26  ;;  %v15456_v59 = vpop.f32.mrf.mxu0  ;;  %v8306_v62 = vor.u32 %v8305_v22, %v8302_v52  ;;  %v9555_v5 = vshrl.u32 %v9464_v44, 16  ;;  %v8881_v1 = vsel %vm12694_vm8, %v11601_v55, %v8880_v6  ;;  %v8317_v34 = vrot.slane %v8316_v13, 4  ;;  %v11909_v26 = vld [vmem:[#allocation3 + $0x18] sm:$0xff] }
 0x776   : > { %v15458_v35 = vpop.f32.mrf.mxu1  ;;  %v9558_v27 = vshll.u32 %v9464_v44, 16  ;;  %v10214_v32 = vsel %vm12694_vm8, %v10212_v57, %v10213_v17  ;;  %v9553_v9 = vsel %vm12668_vm3, %v9548_v7, %v9552_v43  ;;  %v11744_v52 = vrot.slane %v10120_v2, 9  ;;  %v15509_v2 = vld [vmem:[#allocation3 + $0x58] sm:$0xf] }
 0x777   : > { %v8321_v22 = vrot.slane %v8319_v47, 5  ;;  %v8958_v6 = vunpack.c.l.b16 %v8881_v1  ;;  %v8307_v55 = vrot.slane %v8306_v62, 4  ;;  %v9543_v7 = vsel %vm12668_vm3, %v15453_v12, %v15416_v37  ;;  %v15516_v1 = vld [vmem:[#allocation3 + $0x3c] sm:$0xf] }
 0x778   : > { %11583 = vmatmul.msk.bf16.gmra.mxu0 %vm7070_vm10, %v8579_v46  ;;  %v7742_v30 = vpop.f32.mrf.mxu2  ;;  %v8884_v46 = vsel %vm12694_vm8, %v8882_v23, %v8883_v11  ;;  %v9557_v43 = vrot.slane %v9555_v5, 4  ;;  %v15506_v11 = vunpack.c.l.b16 %v9553_v9  ;;  %v9560_v37 = vrot.slane %v9558_v27, 5 }
 0x779   : > { %v8032_v0 = vpop.f32.mrf.mxu3  ;;  %v7800_v16 = vadd.f32 %v7742_v30, %v7389_v48  ;;  %v15484_v48 = vrot.slane %v9564_v38, 5  ;;  %v9570_v30 = vrot.slane %v9568_v39, 4  ;;  %v8959_v13 = vunpack.c.l.b16 %v8884_v46  ;;  %v15520_v46 = vld [vmem:[#allocation3 + $0x70] sm:$0xf] }
 0x77a   : > { %v10211_v38 = vsel %vm12694_vm8, %v11744_v52, %v10210_v49  ;;  %v8322_v23 = vsel %vm12668_vm3, %v8317_v34, %v8321_v22  ;;  %v7392_v39 = vadd.f32 %v15414_v61, %v15114_v40  ;;  %v9574_v12 = vshll.u32 %v15317_v18, 16 }
 0x77b   : > { %v15480_v21 = vadd.f32 %v8032_v0, %v7800_v16  ;;  %v8128_v0 = vld [vmem:[#allocation3 + $0x60] sm:$0xf]  ;;  %v15502_v47 = vpack.c.b16 %v8959_v13, %v8958_v6  ;;  %v8312_v17 = vsel %vm12668_vm3, %v8307_v55, %v15442_v25  ;;  %v10303_v62 = vunpack.c.l.b16 %v10211_v38  ;;  %v8773_v13 = vld [vmem:[#allocation3 + $0x6c] sm:$0xe] }
 0x77c   : > { %v10304_v5 = vunpack.c.l.b16 %v10214_v32  ;;  %v8555_v9 = vunpack.c.l.b16 %v8322_v23  ;;  %v8324_v61 = vshrl.u32 %v8128_v0, 16  ;;  %v8327_v27 = vshll.u32 %v8128_v0, 16 }
 0x77d   : > { %16739 = vst [vmem:[#allocation21_spill] sm:$0xff] %v15480_v21  ;;  %v15486_v44 = vpop.f32.mrf.mxu0  ;;  %11702 = vmatmul.msk.bf16.vlgmr.msra.gmra.mxu2 %vm7070_vm10, %v11909_v26  ;;  %v8333_v26 = vshll.u32 %v15444_v10, 16  ;;  %v10217_v25 = vrot.slane %v15509_v2, 5  ;;  %v9895_v22 = vunpack.c.l.b16 %v9543_v7  ;;  %v9576_v32 = vrot.slane %v9574_v12, 5  ;;  %v11910_v21 = vld [vmem:[#allocation3 + $0x24] sm:$0xff] }
 0x77e   : > { %11724 = vmatmul.msk.bf16.vlgmr.msra.gmra.mxu3 %vm7070_vm10, %v9925_v54  ;;  %v15490_v57 = vpop.f32.mrf.mxu1  ;;  %v8337_v54 = vshrl.u32 %v15444_v10, 16  ;;  %v9571_v10 = vor.u32 %v9570_v30, %v15484_v48  ;;  %v15522_v52 = vpack.c.b16 %v10304_v5, %v10303_v62  ;;  %v8554_v30 = vunpack.c.l.b16 %v8312_v17 }
 0x77f   : > { %v15518_v18 = vrot.slane %v8333_v26, 5  ;;  %v9579_v6 = vshrl.u32 %v15516_v1, 16  ;;  %v8887_v55 = vrot.slane %v15520_v46, 5  ;;  %v9926_v0 = vpack.c.b16 %v15506_v11, %v9895_v22 }
 0x780   : > { %v7745_v49 = vpop.f32.mrf.mxu2  ;;  %v8339_v34 = vrot.slane %v8337_v54, 4  ;;  %16740 = vst [vmem:[#allocation15_spill] sm:$0xff] %v15522_v52  ;;  %v8326_v26 = vrot.slane %v8324_v61, 4  ;;  %v8329_v54 = vrot.slane %v8327_v27, 5  ;;  %v8580_v7 = vpack.c.b16 %v8555_v9, %v8554_v30  ;;  %v10121_v27 = vld [vmem:[#allocation3 + $0x54] sm:$0xe] }
 0x781   : > { %v8035_v16 = vpop.f32.mrf.mxu3  ;;  %11617 = vmatmul.msk.bf16.gmra.mxu1 %vm7070_vm10, %v8977_v14  ;;  %v7801_v40 = vadd.f32 %v7745_v49, %v7392_v39  ;;  %v9561_v39 = vor.u32 %v9560_v37, %v9557_v43  ;;  %v15534_v49 = vld [vmem:[#allocation3 + $0x74] sm:$0x1]  ;;  %v9572_v17 = vrot.slane %v9571_v10, 4  ;;  %v10219_v62 = vrot.slane %v10217_v25, 4 }
 0x782   : > { %v8340_v12 = vor.u32 %v8339_v34, %v15518_v18  ;;  %v7394_v5 = vadd.f32 %v15458_v35, %v15129_v45  ;;  %v11602_v52 = vrot.slane %v8773_v13, 9  ;;  %v8343_v37 = vshll.u32 %v15461_v19, 16 }
 0x783   : > { %v15525_v14 = vadd.f32 %v8035_v16, %v7801_v40  ;;  %v15536_v16 = vld [vmem:[#allocation3 + $0x5c] sm:$0x1]  ;;  %v9588_v40 = vshll.u32 %v15373_v58, 16  ;;  %v9592_v61 = vshrl.u32 %v15373_v58, 16  ;;  %v8890_v9 = vrot.slane %v15534_v49, 5 }
 0x784   : > { %v10220_v10 = vrot.slane %v15536_v16, 5  ;;  %v8330_v22 = vor.u32 %v8329_v54, %v8326_v26  ;;  %v9562_v45 = vrot.slane %v9561_v39, 4  ;;  %v8888_v35 = vsel %vm12694_vm8, %v11602_v52, %v8887_v55 }
 0x785   : > { %16741 = vst [vmem:[#allocation27_spill] sm:$0xff] %v15525_v14  ;;  %v15529_v38 = vpop.f32.mrf.mxu0  ;;  %v8889_v14 = vrot.slane %v8887_v55, 4  ;;  %v8341_v30 = vrot.slane %v8340_v12, 4  ;;  %v9582_v13 = vshll.u32 %v15516_v1, 16  ;;  %v15558_v26 = vrot.slane %v9588_v40, 5 }
 0x786   : > { %v15531_v23 = vpop.f32.mrf.mxu1  ;;  %v10221_v58 = vsel %vm12694_vm8, %v10219_v62, %v10220_v10  ;;  %v11745_v54 = vrot.slane %v10121_v27, 9  ;;  %v8345_v39 = vrot.slane %v8343_v37, 5  ;;  %v9594_v52 = vrot.slane %v9592_v61, 4  ;;  %v15582_v27 = vld [vmem:[#allocation3 + $0x64] sm:$0xf] }
 0x787   : > { %v8960_v55 = vunpack.c.l.b16 %v8888_v35  ;;  %v8331_v62 = vrot.slane %v8330_v22, 4  ;;  %v8357_v37 = vshll.u32 %v15520_v46, 16  ;;  %v7397_v61 = vadd.f32 %v15490_v57, %v15150_v8 }
 0x788   : > { %11584 = vmatmul.msk.bf16.gmra.mxu0 %vm7070_vm10, %v8580_v7  ;;  %v7747_v11 = vpop.f32.mrf.mxu2  ;;  %v8891_v7 = vsel %vm12694_vm8, %v8889_v14, %v8890_v9  ;;  %v10218_v40 = vsel %vm12694_vm8, %v11745_v54, %v10217_v25  ;;  %v10306_v8 = vunpack.c.l.b16 %v10221_v58 }
 0x789   : > { %v8037_v43 = vpop.f32.mrf.mxu3  ;;  %v7802_v34 = vadd.f32 %v7747_v11, %v7394_v5  ;;  %v9577_v5 = vsel %vm12668_vm3, %v9572_v17, %v9576_v32  ;;  %v8961_v12 = vunpack.c.l.b16 %v8891_v7  ;;  %v9567_v32 = vsel %vm12668_vm3, %v9562_v45, %v15484_v48 }
 0x78a   : > { %v9581_v17 = vrot.slane %v9579_v6, 4  ;;  %v8346_v11 = vsel %vm12668_vm3, %v8341_v30, %v8345_v39  ;;  %v15579_v9 = vunpack.c.l.b16 %v9577_v5  ;;  %v9584_v48 = vrot.slane %v9582_v13, 5  ;;  %v15592_v5 = vld [vmem:[#allocation3 + $0x7c] sm:$0xf] }
 0x78b   : > { %v15554_v19 = vadd.f32 %v8037_v43, %v7802_v34  ;;  %v8131_v43 = vld [vmem:[#allocation3 + $0x6c] sm:$0xf]  ;;  %v9598_v6 = vshll.u32 %v15402_v15, 16  ;;  %v8336_v10 = vsel %vm12668_vm3, %v8331_v62, %v15518_v18  ;;  %v10305_v22 = vunpack.c.l.b16 %v10218_v40  ;;  %v9470_v15 = vld [vmem:[#allocation3 + $0x48] sm:$0xf] }
 0x78c   : > { %v8557_v45 = vunpack.c.l.b16 %v8346_v11  ;;  %v8348_v35 = vshrl.u32 %v8131_v43, 16  ;;  %v8351_v30 = vshll.u32 %v8131_v43, 16  ;;  %v15590_v13 = vrot.slane %v8357_v37, 5  ;;  %v8774_v40 = vld [vmem:[#allocation3 + $0x78] sm:$0xe] }
 0x78d   : > { %v15560_v1 = vpop.f32.mrf.mxu0  ;;  %11703 = vmatmul.msk.bf16.gmra.mxu2 %vm7070_vm10, %v11910_v21  ;;  %v8361_v21 = vshrl.u32 %v15520_v46, 16  ;;  %v9595_v46 = vor.u32 %v9594_v52, %v15558_v26  ;;  %v15594_v54 = vpack.c.b16 %v10306_v8, %v10305_v22  ;;  %v10224_v18 = vrot.slane %v15582_v27, 5  ;;  %v15605_v22 = vld [vmem:[#allocation3 + $0x80] sm:$0x1] }
 0x78e   : > { %11725 = vmatmul.msk.bf16.gmra.mxu3 %vm7070_vm10, %v9926_v0  ;;  %v15564_v14 = vpop.f32.mrf.mxu1  ;;  %v15575_v0 = vpack.c.b16 %v8961_v12, %v8960_v55  ;;  %v9585_v52 = vor.u32 %v9584_v48, %v9581_v17  ;;  %v9600_v55 = vrot.slane %v9598_v6, 5  ;;  %v8556_v58 = vunpack.c.l.b16 %v8336_v10 }
 0x78f   : > { %v8363_v7 = vrot.slane %v8361_v21, 4  ;;  %16742 = vst [vmem:[#allocation26_spill] sm:$0xff] %v15594_v54  ;;  %v9596_v12 = vrot.slane %v9595_v46, 4  ;;  %v9603_v62 = vshrl.u32 %v9470_v15, 16  ;;  %v8894_v11 = vrot.slane %v15592_v5, 5 }
 0x790   : > { %v7750_v25 = vpop.f32.mrf.mxu2  ;;  %v9606_v48 = vshll.u32 %v9470_v15, 16  ;;  %v10226_v6 = vrot.slane %v10224_v18, 4  ;;  %v7399_v10 = vadd.f32 %v15531_v23, %v15179_v51  ;;  %v9586_v46 = vrot.slane %v9585_v52, 4 }
 0x791   : > { %v8040_v34 = vpop.f32.mrf.mxu3  ;;  %11618 = vmatmul.msk.bf16.gmra.mxu1 %vm7070_vm10, %v15173_v29  ;;  %v7803_v57 = vadd.f32 %v7750_v25, %v7397_v61  ;;  %v9897_v29 = vunpack.c.l.b16 %v9567_v32  ;;  %v8350_v61 = vrot.slane %v8348_v35, 4  ;;  %v8353_v25 = vrot.slane %v8351_v30, 5 }
 0x792   : > { %v8581_v32 = vpack.c.b16 %v8557_v45, %v8556_v58  ;;  %v8364_v17 = vor.u32 %v8363_v7, %v15590_v13  ;;  %v11603_v8 = vrot.slane %v8774_v40, 9  ;;  %v8367_v30 = vshll.u32 %v15534_v49, 16  ;;  %v10122_v7 = vld [vmem:[#allocation3 + $0x60] sm:$0xe] }
 0x793   : > { %v15597_v39 = vadd.f32 %v8040_v34, %v7803_v57  ;;  %v9927_v21 = vpack.c.b16 %v15579_v9, %v9897_v29  ;;  %v15607_v34 = vld [vmem:[#allocation3 + $0x68] sm:$0x1]  ;;  %v8896_v57 = vrot.slane %v8894_v11, 4  ;;  %v9601_v29 = vsel %vm12668_vm3, %v9596_v12, %v9600_v55  ;;  %v11911_v12 = vld [vmem:[#allocation3 + $0x30] sm:$0xff] }
 0x794   : > { %v8897_v45 = vrot.slane %v15605_v22, 5  ;;  %v10227_v15 = vrot.slane %v15607_v34, 5  ;;  %v8354_v54 = vor.u32 %v8353_v25, %v8350_v61  ;;  %v9605_v51 = vrot.slane %v9603_v62, 4 }
 0x795   : > { %16743 = vst [vmem:[#allocation17_spill] sm:$0xff] %v15597_v39  ;;  %v15600_v43 = vpop.f32.mrf.mxu0  ;;  %v8895_v23 = vsel %vm12694_vm8, %v11603_v8, %v8894_v11  ;;  %v8365_v52 = vrot.slane %v8364_v17, 4  ;;  %v9608_v40 = vrot.slane %v9606_v48, 5  ;;  %v9612_v39 = vshll.u32 %v15434_v4, 16 }
 0x796   : > { %v15602_v37 = vpop.f32.mrf.mxu1  ;;  %v10228_v49 = vsel %vm12694_vm8, %v10226_v6, %v10227_v15  ;;  %v11746_v61 = vrot.slane %v10122_v7, 9  ;;  %v8369_v62 = vrot.slane %v8367_v30, 5  ;;  %v8962_v25 = vunpack.c.l.b16 %v8895_v23 }
 0x797   : > { %v8355_v48 = vrot.slane %v8354_v54, 4  ;;  %v9591_v6 = vsel %vm12668_vm3, %v9586_v46, %v15558_v26  ;;  %v15637_v8 = vunpack.c.l.b16 %v9601_v29  ;;  %v8381_v30 = vshll.u32 %v15592_v5, 16  ;;  %v15651_v29 = vld [vmem:[#allocation3 + $0x70] sm:$0xf] }
 0x798   : > { %11585 = vmatmul.msk.bf16.gmra.mxu0 %vm7070_vm10, %v8581_v32  ;;  %v7752_v9 = vpop.f32.mrf.mxu2  ;;  %v8898_v32 = vsel %vm12694_vm8, %v8896_v57, %v8897_v45  ;;  %v8370_v57 = vsel %vm12668_vm3, %v8365_v52, %v8369_v62  ;;  %v7402_v54 = vadd.f32 %v15564_v14, %v15211_v36  ;;  %v9609_v7 = vor.u32 %v9608_v40, %v9605_v51 }
 0x799   : > { %v8042_v35 = vpop.f32.mrf.mxu3  ;;  %v7804_v58 = vadd.f32 %v7752_v9, %v7399_v10  ;;  %v9616_v10 = vshrl.u32 %v15434_v4, 16  ;;  %v8963_v9 = vunpack.c.l.b16 %v8898_v32  ;;  %v10225_v4 = vsel %vm12694_vm8, %v11746_v61, %v10224_v18 }
 0x79a   : > { %v15649_v26 = vrot.slane %v9612_v39, 5  ;;  %v8360_v15 = vsel %vm12668_vm3, %v8355_v48, %v15590_v13  ;;  %v10307_v23 = vunpack.c.l.b16 %v10225_v4  ;;  %v10308_v52 = vunpack.c.l.b16 %v10228_v49 }
 0x79b   : > { %v15624_v55 = vadd.f32 %v8042_v35, %v7804_v58  ;;  %v8134_v35 = vld [vmem:[#allocation3 + $0x78] sm:$0xf]  ;;  %v15645_v45 = vpack.c.b16 %v8963_v9, %v8962_v25  ;;  %v9618_v46 = vrot.slane %v9616_v10, 4  ;;  %v8559_v14 = vunpack.c.l.b16 %v8370_v57  ;;  %v9473_v9 = vld [vmem:[#allocation3 + $0x54] sm:$0xf] }
 0x79c   : > { %v8372_v39 = vshrl.u32 %v8134_v35, 16  ;;  %v8375_v51 = vshll.u32 %v8134_v35, 16  ;;  %v15659_v40 = vrot.slane %v8381_v30, 5  ;;  %v15663_v10 = vpack.c.b16 %v10308_v52, %v10307_v23  ;;  %v15688_v23 = vld [vmem:[#allocation3 + $0x8c] sm:$0x1] }
 0x79d   : > { %16744 = vst [vmem:[#allocation28_spill] sm:$0xff] %v15624_v55  ;;  %v15628_v11 = vpop.f32.mrf.mxu0  ;;  %11704 = vmatmul.msk.bf16.gmra.mxu2 %vm7070_vm10, %v11911_v12  ;;  %v15661_v12 = vld [vmem:[#allocation3 + $0x88] sm:$0xf]  ;;  %v10231_v13 = vrot.slane %v15651_v29, 5  ;;  %v8558_v62 = vunpack.c.l.b16 %v8360_v15  ;;  %v9610_v49 = vrot.slane %v9609_v7, 4  ;;  %v9627_v52 = vshrl.u32 %v9473_v9, 16 }
 0x79e   : > { %11726 = vmatmul.msk.bf16.gmra.mxu3 %vm7070_vm10, %v9927_v21  ;;  %v15632_v17 = vpop.f32.mrf.mxu1  ;;  %v8385_v21 = vshrl.u32 %v15592_v5, 16  ;;  %v9622_v5 = vshll.u32 %v15463_v63, 16  ;;  %16745 = vst [vmem:[#allocation10_spill] sm:$0xff] %v15663_v10  ;;  %v9619_v63 = vor.u32 %v9618_v46, %v15649_v26  ;;  %v8901_v48 = vrot.slane %v15661_v12, 5 }
 0x79f   : > { %v8374_v30 = vrot.slane %v8372_v39, 4  ;;  %v8582_v46 = vpack.c.b16 %v8559_v14, %v8558_v62  ;;  %v10233_v15 = vrot.slane %v10231_v13, 4  ;;  %v8391_v14 = vshll.u32 %v15605_v22, 16 }
 0x7a0   : > { %v7755_v18 = vpop.f32.mrf.mxu2  ;;  %v8387_v32 = vrot.slane %v8385_v21, 4  ;;  %v15669_v25 = vrot.slane %v9622_v5, 5  ;;  %v8377_v21 = vrot.slane %v8375_v51, 5  ;;  %v9615_v5 = vsel %vm12668_vm3, %v9610_v49, %v15649_v26 }
 0x7a1   : > { %v8045_v58 = vpop.f32.mrf.mxu3  ;;  %11619 = vmatmul.msk.bf16.gmra.mxu1 %vm7070_vm10, %v15218_v42  ;;  %v7805_v36 = vadd.f32 %v7755_v18, %v7402_v54  ;;  %v9899_v42 = vunpack.c.l.b16 %v9591_v6  ;;  %v15675_v54 = vld [vmem:[#allocation3 + $0x74] sm:$0x1]  ;;  %v8775_v18 = vld [vmem:[#allocation3 + $0x84] sm:$0xe]  ;;  %v8903_v51 = vrot.slane %v8901_v48, 4  ;;  %v9630_v62 = vshll.u32 %v9473_v9, 16 }
 0x7a2   : > { %v8388_v7 = vor.u32 %v8387_v32, %v15659_v40  ;;  %v11604_v39 = vrot.slane %v8775_v18, 9  ;;  %v10123_v32 = vld [vmem:[#allocation3 + $0x6c] sm:$0xe]  ;;  %v9636_v26 = vshll.u32 %v15509_v2, 16  ;;  %v11912_v18 = vld [vmem:[#allocation3 + $0x3c] sm:$0xff]  ;;  %v15705_v9 = vunpack.c.l.b16 %v9615_v5 }
 0x7a3   : > { %v15666_v61 = vadd.f32 %v8045_v58, %v7805_v36  ;;  %v9928_v35 = vpack.c.b16 %v15637_v8, %v9899_v42  ;;  %v7404_v58 = vadd.f32 %v15602_v37, %v15251_v33  ;;  %v15686_v8 = vrot.slane %v9619_v63, 4 }
 0x7a4   : > { %v10234_v33 = vrot.slane %v15675_v54, 5  ;;  %v8378_v42 = vor.u32 %v8377_v21, %v8374_v30  ;;  %v8389_v63 = vrot.slane %v8388_v7, 4  ;;  %v8902_v49 = vsel %vm12694_vm8, %v11604_v39, %v8901_v48 }
 0x7a5   : > { %16746 = vst [vmem:[#allocation20_spill] sm:$0xff] %v15666_v61  ;;  %v8653_v4 = vpop.f32.mrf.mxu0  ;;  %v9625_v30 = vsel %vm12668_vm3, %v15686_v8, %v15669_v25  ;;  %v11747_v21 = vrot.slane %v10123_v32, 9  ;;  %v8393_v7 = vrot.slane %v8391_v14, 5  ;;  %v9640_v48 = vshrl.u32 %v15509_v2, 16  ;;  %v15718_v25 = vld [vmem:[#allocation3 + $0x7c] sm:$0xf] }
 0x7a6   : > { %v15672_v57 = vpop.f32.mrf.mxu1  ;;  %v15678_v6 = vadd.f32 %v8653_v4, %v15032_v53  ;;  %v8904_v4 = vrot.slane %v15688_v23, 5  ;;  %v15716_v39 = vrot.slane %v9630_v62, 5  ;;  %v8964_v5 = vunpack.c.l.b16 %v8902_v49  ;;  %v8137_v32 = vld [vmem:[#allocation3 + $0x84] sm:$0xf]  ;;  %v15733_v49 = vld [vmem:[#allocation3 + $0x80] sm:$0x1] }
 0x7a7   : > { %v8379_v14 = vrot.slane %v8378_v42, 4  ;;  %v8409_v62 = vshrl.u32 %v15661_v12, 16  ;;  %v9642_v42 = vrot.slane %v9640_v48, 4 }
 0x7a8   : > { %11586 = vmatmul.msk.bf16.gmra.mxu0 %vm7070_vm10, %v8582_v46  ;;  %v7757_v53 = vpop.f32.mrf.mxu2  ;;  %v10235_v46 = vsel %vm12694_vm8, %v10233_v15, %v10234_v33  ;;  %v7407_v33 = vadd.f32 %v15632_v17, %v15292_v56 }
 0x7a9   : > { %v8047_v36 = vpop.f32.mrf.mxu3  ;;  %v7806_v37 = vadd.f32 %v7757_v53, %v7404_v58  ;;  %v15707_v58 = vrot.slane %v9627_v52, 4  ;;  %v8905_v53 = vsel %vm12694_vm8, %v8903_v51, %v8904_v4  ;;  %v10232_v52 = vsel %vm12694_vm8, %v11747_v21, %v10231_v13 }
 0x7aa   : > { %v8965_v8 = vunpack.c.l.b16 %v8905_v53  ;;  %v8394_v51 = vsel %vm12668_vm3, %v8389_v63, %v8393_v7  ;;  %v10309_v63 = vunpack.c.l.b16 %v10232_v52  ;;  %v10238_v21 = vrot.slane %v15718_v25, 5 }
 0x7ab   : > { %v15699_v22 = vadd.f32 %v8047_v36, %v7806_v37  ;;  %v8405_v37 = vshll.u32 %v15661_v12, 16  ;;  %v8384_v17 = vsel %vm12668_vm3, %v8379_v14, %v15659_v40  ;;  %v8396_v12 = vshrl.u32 %v8137_v32, 16 }
 0x7ac   : > { %v15735_v13 = vpack.c.b16 %v8965_v8, %v8964_v5  ;;  %v8399_v7 = vshll.u32 %v8137_v32, 16  ;;  %v8561_v53 = vunpack.c.l.b16 %v8394_v51  ;;  %v10240_v8 = vrot.slane %v10238_v21, 4 }
 0x7ad   : > { %16747 = vst [vmem:[#allocation22_spill] sm:$0xff] %v15699_v22  ;;  %v8655_v15 = vpop.f32.mrf.mxu0  ;;  %11705 = vmatmul.msk.bf16.gmra.mxu2 %vm7070_vm10, %v11912_v18  ;;  %v10124_v18 = vld [vmem:[#allocation3 + $0x78] sm:$0xe]  ;;  %v8411_v52 = vrot.slane %v8409_v62, 4  ;;  %v9633_v40 = vor.u32 %v15716_v39, %v15707_v58  ;;  %v9660_v58 = vshll.u32 %v15582_v27, 16  ;;  %v9664_v39 = vshrl.u32 %v15582_v27, 16 }
 0x7ae   : > { %11727 = vmatmul.msk.bf16.gmra.mxu3 %vm7070_vm10, %v9928_v35  ;;  %v15714_v36 = vpop.f32.mrf.mxu1  ;;  %v15723_v2 = vadd.f32 %v8655_v15, %v15053_v60  ;;  %v15727_v35 = vrot.slane %v9636_v26, 5  ;;  %v10310_v26 = vunpack.c.l.b16 %v10235_v46  ;;  %v9476_v15 = vld [vmem:[#allocation3 + $0x60] sm:$0xf]  ;;  %v15748_v46 = vrot.slane %v8405_v37, 5 }
 0x7af   : > { %v11748_v10 = vrot.slane %v10124_v18, 9  ;;  %v7409_v18 = vadd.f32 %v15672_v57, %v15328_v24  ;;  %v15773_v24 = vld [vmem:[#allocation3 + $0x94] sm:$0xf]  ;;  %v15775_v57 = vrot.slane %v9660_v58, 5 }
 0x7b0   : > { %v7760_v60 = vpop.f32.mrf.mxu2  ;;  %v15743_v5 = vpack.c.b16 %v10310_v26, %v10309_v63  ;;  %v9643_v63 = vor.u32 %v9642_v42, %v15727_v35  ;;  %v9651_v26 = vshrl.u32 %v9476_v15, 16  ;;  %v8412_v42 = vor.u32 %v8411_v52, %v15748_v46 }
 0x7b1   : > { %v8050_v4 = vpop.f32.mrf.mxu3  ;;  %11620 = vmatmul.msk.bf16.gmra.mxu1 %vm7070_vm10, %v15247_v41  ;;  %v7807_v56 = vadd.f32 %v7760_v60, %v7407_v33  ;;  %v10241_v41 = vrot.slane %v15733_v49, 5  ;;  %v8560_v33 = vunpack.c.l.b16 %v8384_v17  ;;  %v9902_v60 = vunpack.c.l.b16 %v9625_v30 }
 0x7b2   : > { %16748 = vst [vmem:[#allocation24_spill] sm:$0xff] %v15743_v5  ;;  %v10239_v37 = vsel %vm12694_vm8, %v11748_v10, %v10238_v21  ;;  %v8401_v17 = vrot.slane %v8399_v7, 5  ;;  %v8415_v10 = vshll.u32 %v15688_v23, 16  ;;  %v9644_v27 = vrot.slane %v9643_v63, 4 }
 0x7b3   : > { %v15746_v48 = vadd.f32 %v8050_v4, %v7807_v56  ;;  %v10242_v14 = vsel %vm12694_vm8, %v10240_v8, %v10241_v41  ;;  %v9646_v4 = vshll.u32 %v15536_v16, 16  ;;  %v8583_v30 = vpack.c.b16 %v8561_v53, %v8560_v33 }
 0x7b4   : > { %v8398_v56 = vrot.slane %v8396_v12, 4  ;;  %v10311_v21 = vunpack.c.l.b16 %v10239_v37  ;;  %v10312_v53 = vunpack.c.l.b16 %v10242_v14  ;;  %v9929_v33 = vpack.c.b16 %v9902_v60, %v15705_v9  ;;  %v15785_v60 = vld [vmem:[#allocation3 + $0x88] sm:$0xf] }
 0x7b5   : > { %16749 = vst [vmem:[#allocation32_spill] sm:$0xff] %v15746_v48  ;;  %v8658_v51 = vpop.f32.mrf.mxu0  ;;  %v9666_v12 = vrot.slane %v9664_v39, 4  ;;  %v9648_v37 = vrot.slane %v9646_v4, 5  ;;  %v8417_v14 = vrot.slane %v8415_v10, 5  ;;  %v8429_v39 = vshll.u32 %v15773_v24, 16 }
 0x7b6   : > { %v15754_v32 = vpop.f32.mrf.mxu1  ;;  %v15761_v62 = vadd.f32 %v8658_v51, %v15073_v20  ;;  %v9654_v20 = vshll.u32 %v9476_v15, 16  ;;  %v15771_v51 = vrot.slane %v9633_v40, 4  ;;  %v15777_v7 = vpack.c.b16 %v10312_v53, %v10311_v21  ;;  %v16753_v21 = vld [vmem:[#allocation23_spill] sm:$0xff] }
 0x7b7   : > { %v8402_v23 = vor.u32 %v8401_v17, %v8398_v56  ;;  %v8413_v15 = vrot.slane %v8412_v42, 4  ;;  %v9649_v4 = vsel %vm12668_vm3, %v9644_v27, %v9648_v37  ;;  %v8433_v56 = vshrl.u32 %v15773_v24, 16  ;;  %v10125_v17 = vld [vmem:[#allocation3 + $0x84] sm:$0xe]  ;;  %v16754_v37 = vld [vmem:[#allocation18_spill] sm:$0xff] }
 0x7b8   : > { %11587 = vmatmul.msk.bf16.gmra.mxu0 %vm7070_vm10, %v8583_v30  ;;  %v7762_v16 = vpop.f32.mrf.mxu2  ;;  %16750 = vst [vmem:[#allocation33_spill] sm:$0xff] %v15777_v7  ;;  %v11913_v30 = vld [vmem:[#allocation3 + $0x48] sm:$0xff]  ;;  %v15783_v9 = vrot.slane %v9654_v20, 5  ;;  %v9639_v58 = vsel %vm12668_vm3, %v15771_v51, %v15727_v35  ;;  %v16752_v42 = vld [vmem:[#allocation29_spill] sm:$0xff]  ;;  %v9670_v10 = vshll.u32 %v15607_v34, 16  ;;  %v9684_v20 = vshll.u32 %v15651_v29, 16 }
 0x7b9   : > { %v8052_v8 = vpop.f32.mrf.mxu3  ;;  %v7808_v41 = vadd.f32 %v7762_v16, %v7409_v18  ;;  %v15781_v18 = vrot.slane %v9651_v26, 4  ;;  %v8140_v26 = vld [vmem:[#allocation3 + $0x90] sm:$0xf]  ;;  %v7412_v35 = vadd.f32 %v15714_v36, %v16753_v21  ;;  %v8403_v53 = vrot.slane %v8402_v23, 4 }
 0x7ba   : > { %v10245_v27 = vrot.slane %v15785_v60, 5  ;;  %v8423_v34 = vshll.u32 %v8140_v26, 16  ;;  %v15818_v23 = vrot.slane %v8429_v39, 5 }
 0x7bb   : > { %v15779_v52 = vadd.f32 %v8052_v8, %v7808_v41  ;;  %v9667_v8 = vor.u32 %v9666_v12, %v15775_v57  ;;  %v8418_v41 = vsel %vm12668_vm3, %v8413_v15, %v8417_v14  ;;  %v8420_v12 = vshrl.u32 %v8140_v26, 16 }
 0x7bc   : > { %v8408_v36 = vsel %vm12668_vm3, %v8403_v53, %v15748_v46  ;;  %v8435_v15 = vrot.slane %v8433_v56, 4  ;;  %v8563_v14 = vunpack.c.l.b16 %v8418_v41  ;;  %v10247_v5 = vrot.slane %v10245_v27, 4  ;;  %v9479_v56 = vld [vmem:[#allocation3 + $0x6c] sm:$0xf] }
 0x7bd   : > { %16751 = vst [vmem:[#allocation34_spill] sm:$0xff] %v15779_v52  ;;  %v8660_v40 = vpop.f32.mrf.mxu0  ;;  %11706 = vmatmul.msk.bf16.gmra.mxu2 %vm7070_vm10, %v11913_v30  ;;  %v9904_v26 = vunpack.c.l.b16 %v9649_v4  ;;  %v8422_v46 = vrot.slane %v8420_v12, 4  ;;  %v8425_v39 = vrot.slane %v8423_v34, 5  ;;  %v7414_v34 = vadd.f32 %v15754_v32, %v15410_v50 }
 0x7be   : > { %11728 = vmatmul.msk.bf16.gmra.mxu3 %vm7070_vm10, %v9929_v33  ;;  %v15789_v63 = vpop.f32.mrf.mxu1  ;;  %v15800_v16 = vadd.f32 %v8660_v40, %v16752_v42  ;;  %v15809_v33 = vld [vmem:[#allocation3 + $0x8c] sm:$0x1]  ;;  %v9688_v40 = vshrl.u32 %v15651_v29, 16  ;;  %v11749_v42 = vrot.slane %v10125_v17, 9  ;;  %v9657_v29 = vor.u32 %v15783_v9, %v15781_v18 }
 0x7bf   : > { %v9672_v17 = vrot.slane %v9670_v10, 5  ;;  %v15837_v10 = vrot.slane %v9684_v20, 5 }
 0x7c0   : > { %v7765_v51 = vpop.f32.mrf.mxu2  ;;  %v10246_v21 = vsel %vm12694_vm8, %v11749_v42, %v10245_v27  ;;  %v9690_v12 = vrot.slane %v9688_v40, 4  ;;  %v15847_v40 = vld [vmem:[#allocation3 + $0xa0] sm:$0xf]  ;;  %v15849_v50 = vrot.slane %v9657_v29, 4  ;;  %v8143_v29 = vld [vmem:[#allocation3 + $0x9c] sm:$0xf] }
 0x7c1   : > { %v8055_v30 = vpop.f32.mrf.mxu3  ;;  %11621 = vmatmul.msk.bf16.gmra.mxu1 %vm7070_vm10, %v16754_v37  ;;  %v7809_v7 = vadd.f32 %v7765_v51, %v7412_v35  ;;  %v10248_v37 = vrot.slane %v15809_v33, 5  ;;  %v8562_v35 = vunpack.c.l.b16 %v8408_v36  ;;  %v15827_v51 = vld [vmem:[#allocation3 + $0x98] sm:$0x1]  ;;  %v10313_v4 = vunpack.c.l.b16 %v10246_v21 }
 0x7c2   : > { %v9675_v36 = vshrl.u32 %v9479_v56, 16  ;;  %v9903_v21 = vunpack.c.l.b16 %v9639_v58  ;;  %v9691_v32 = vor.u32 %v9690_v12, %v15837_v10  ;;  %v15856_v58 = vld [vmem:[#allocation3 + $0x78] sm:$0xf] }
 0x7c3   : > { %v15823_v52 = vadd.f32 %v8055_v30, %v7809_v7  ;;  %v10249_v53 = vsel %vm12694_vm8, %v10247_v5, %v10248_v37  ;;  %v8436_v7 = vor.u32 %v8435_v15, %v15818_v23  ;;  %v9668_v30 = vrot.slane %v9667_v8, 4 }
 0x7c4   : > { %v10314_v42 = vunpack.c.l.b16 %v10249_v53  ;;  %v8584_v9 = vpack.c.b16 %v8563_v14, %v8562_v35  ;;  %v8439_v5 = vshll.u32 %v15827_v51, 16  ;;  %v8426_v53 = vor.u32 %v8425_v39, %v8422_v46 }
 0x7c5   : > { %16755 = vst [vmem:[#allocation29_spill] sm:$0xff] %v15823_v52  ;;  %v8663_v41 = vpop.f32.mrf.mxu0  ;;  %v16756_v52 = vld [vmem:[#allocation30_spill] sm:$0xff]  ;;  %v9673_v20 = vsel %vm12668_vm3, %v9668_v30, %v9672_v17  ;;  %v9678_v14 = vshll.u32 %v9479_v56, 16  ;;  %v8453_v56 = vshll.u32 %v15847_v40, 16 }
 0x7c6   : > { %v15831_v27 = vpop.f32.mrf.mxu1  ;;  %v15835_v18 = vadd.f32 %v8663_v41, %v16756_v52  ;;  %v15842_v37 = vpack.c.b16 %v10314_v42, %v10313_v4  ;;  %v8437_v41 = vrot.slane %v8436_v7, 4  ;;  %v11914_v4 = vld [vmem:[#allocation3 + $0x54] sm:$0xff]  ;;  %v9930_v42 = vpack.c.b16 %v9904_v26, %v9903_v21 }
 0x7c7   : > { %v8427_v46 = vrot.slane %v8426_v53, 4  ;;  %v15862_v39 = vunpack.c.l.b16 %v9673_v20  ;;  %v15865_v7 = vld [vmem:[#allocation3 + $0x94] sm:$0xf]  ;;  %v9699_v20 = vshrl.u32 %v15856_v58, 16 }
 0x7c8   : > { %16757 = vst [vmem:[#allocation23_spill] sm:$0xff] %v15842_v37  ;;  %11588 = vmatmul.msk.bf16.gmra.mxu0 %vm7070_vm10, %v8584_v9  ;;  %v7767_v8 = vpop.f32.mrf.mxu2  ;;  %v8441_v9 = vrot.slane %v8439_v5, 5  ;;  %v15854_v37 = vrot.slane %v9675_v36, 4  ;;  %v15874_v5 = vrot.slane %v9678_v14, 5  ;;  %v9694_v36 = vshll.u32 %v15675_v54, 16 }
 0x7c9   : > { %v8057_v15 = vpop.f32.mrf.mxu3  ;;  %v7810_v52 = vadd.f32 %v7767_v8, %v7414_v34  ;;  %v8457_v34 = vshrl.u32 %v15847_v40, 16  ;;  %v8776_v8 = vld [vmem:[#allocation3 + $0x90] sm:$0xe]  ;;  %v8432_v53 = vsel %vm12668_vm3, %v8427_v46, %v15818_v23  ;;  %v8444_v14 = vshrl.u32 %v8143_v29, 16 }
 0x7ca   : > { %v8442_v12 = vsel %vm12668_vm3, %v8437_v41, %v8441_v9  ;;  %v7417_v41 = vadd.f32 %v15789_v63, %v15456_v59  ;;  %v8908_v54 = vrot.slane %v15773_v24, 5  ;;  %v10252_v9 = vrot.slane %v15865_v7, 5 }
 0x7cb   : > { %v15852_v35 = vadd.f32 %v8057_v15, %v7810_v52  ;;  %v16759_v15 = vld [vmem:[#allocation31_spill] sm:$0xff]  ;;  %v15883_v52 = vrot.slane %v9691_v32, 4  ;;  %v8447_v23 = vshll.u32 %v8143_v29, 16  ;;  %v15894_v32 = vrot.slane %v8453_v56, 5 }
 0x7cc   : > { %v11605_v46 = vrot.slane %v8776_v8, 9  ;;  %v8459_v48 = vrot.slane %v8457_v34, 4  ;;  %v8910_v59 = vrot.slane %v8908_v54, 4  ;;  %v8911_v24 = vrot.slane %v15827_v51, 5  ;;  %v15906_v8 = vld [vmem:[#allocation3 + $0xa4] sm:$0x1] }
 0x7cd   : > { %16758 = vst [vmem:[#allocation18_spill] sm:$0xff] %v15852_v35  ;;  %v8665_v30 = vpop.f32.mrf.mxu0  ;;  %11707 = vmatmul.msk.bf16.gmra.mxu2 %vm7070_vm10, %v11914_v4  ;;  %v10126_v4 = vld [vmem:[#allocation3 + $0x90] sm:$0xe]  ;;  %v10254_v61 = vrot.slane %v10252_v9, 4  ;;  %v9708_v29 = vshll.u32 %v15718_v25, 16  ;;  %v8564_v34 = vunpack.c.l.b16 %v8432_v53 }
 0x7ce   : > { %11729 = vmatmul.msk.bf16.gmra.mxu3 %vm7070_vm10, %v9930_v42  ;;  %v15869_v26 = vpop.f32.mrf.mxu1  ;;  %v15878_v21 = vadd.f32 %v8665_v30, %v16759_v15  ;;  %v15888_v42 = vld [vmem:[#allocation3 + $0x98] sm:$0x1]  ;;  %v8565_v15 = vunpack.c.l.b16 %v8442_v12  ;;  %v11750_v63 = vrot.slane %v10126_v4, 9  ;;  %v8909_v22 = vsel %vm12694_vm8, %v11605_v46, %v8908_v54 }
 0x7cf   : > { %v10255_v12 = vrot.slane %v15888_v42, 5  ;;  %v8446_v4 = vrot.slane %v8444_v14, 4 }
 0x7d0   : > { %v7770_v30 = vpop.f32.mrf.mxu2  ;;  %v10253_v56 = vsel %vm12694_vm8, %v11750_v63, %v10252_v9  ;;  %v8585_v53 = vpack.c.b16 %v8565_v15, %v8564_v34 }
 0x7d1   : > { %v8060_v17 = vpop.f32.mrf.mxu3  ;;  %11622 = vmatmul.msk.bf16.gmra.mxu1 %vm7070_vm10, %v15408_v3  ;;  %v7811_v35 = vadd.f32 %v7770_v30, %v7417_v41  ;;  %v9702_v3 = vshll.u32 %v15856_v58, 16  ;;  %v8912_v41 = vsel %vm12694_vm8, %v8910_v59, %v8911_v24  ;;  %v10256_v51 = vsel %vm12694_vm8, %v10254_v61, %v10255_v12 }
 0x7d2   : > { %v8460_v58 = vor.u32 %v8459_v48, %v15894_v32  ;;  %v8966_v30 = vunpack.c.l.b16 %v8909_v22  ;;  %v8967_v46 = vunpack.c.l.b16 %v8912_v41  ;;  %v10315_v63 = vunpack.c.l.b16 %v10253_v56 }
 0x7d3   : > { %v15900_v55 = vadd.f32 %v8060_v17, %v7811_v35  ;;  %v8449_v17 = vrot.slane %v8447_v23, 5  ;;  %v10316_v14 = vunpack.c.l.b16 %v10256_v51  ;;  %v7419_v59 = vadd.f32 %v15831_v27, %v15486_v44 }
 0x7d4   : > { %v8463_v24 = vshll.u32 %v15906_v8, 16  ;;  %v9712_v61 = vshrl.u32 %v15718_v25, 16  ;;  %v15922_v12 = vpack.c.b16 %v8967_v46, %v8966_v30  ;;  %v9681_v23 = vor.u32 %v15874_v5, %v15854_v37  ;;  %v11915_v46 = vld [vmem:[#allocation3 + $0x60] sm:$0xff] }
 0x7d5   : > { %16760 = vst [vmem:[#allocation30_spill] sm:$0xff] %v15900_v55  ;;  %v8668_v54 = vpop.f32.mrf.mxu0  ;;  %v16761_v55 = vld [vmem:[#allocation7_spill] sm:$0xff]  ;;  %v9696_v44 = vrot.slane %v9694_v36, 5  ;;  %v15932_v27 = vpack.c.b16 %v10316_v14, %v10315_v63  ;;  %v8450_v25 = vor.u32 %v8449_v17, %v8446_v4  ;;  %v8461_v34 = vrot.slane %v8460_v58, 4 }
 0x7d6   : > { %v15912_v35 = vpop.f32.mrf.mxu1  ;;  %v15916_v9 = vadd.f32 %v8668_v54, %v16761_v55  ;;  %v16762_v55 = vsel %vm12668_vm3, %v15849_v50, %v15775_v57  ;;  %v15938_v54 = vld [vmem:[#allocation3 + $0xac] sm:$0xf]  ;;  %v9701_v30 = vrot.slane %v9699_v20, 4  ;;  %v9704_v57 = vrot.slane %v9702_v3, 5  ;;  %v8146_v3 = vld [vmem:[#allocation3 + $0xa8] sm:$0xf] }
 0x7d7   : > { %v9905_v15 = vunpack.c.l.b16 %v16762_v55  ;;  %v9697_v51 = vsel %vm12668_vm3, %v15883_v52, %v9696_v44  ;;  %v8465_v37 = vrot.slane %v8463_v24, 5  ;;  %v15942_v5 = vrot.slane %v9708_v29, 5  ;;  %v16763_v29 = vld [vmem:[#allocation16_spill] sm:$0xff] }
 0x7d8   : > { %11589 = vmatmul.msk.bf16.gmra.mxu0 %vm7070_vm10, %v8585_v53  ;;  %v7772_v48 = vpop.f32.mrf.mxu2  ;;  %v9714_v36 = vrot.slane %v9712_v61, 4  ;;  %v9682_v53 = vrot.slane %v9681_v23, 4  ;;  %v8451_v52 = vrot.slane %v8450_v25, 4  ;;  %v8477_v17 = vshll.u32 %v15938_v54, 16  ;;  %v8777_v24 = vld [vmem:[#allocation3 + $0x9c] sm:$0xe] }
 0x7d9   : > { %v8062_v22 = vpop.f32.mrf.mxu3  ;;  %v7812_v56 = vadd.f32 %v7772_v48, %v7419_v59  ;;  %v9931_v41 = vpack.c.b16 %v15862_v39, %v9905_v15  ;;  %v8466_v20 = vsel %vm12668_vm3, %v8461_v34, %v8465_v37  ;;  %v8481_v58 = vshrl.u32 %v15938_v54, 16 }
 0x7da   : > { %v9687_v14 = vsel %vm12668_vm3, %v9682_v53, %v15837_v10  ;;  %v15958_v59 = vunpack.c.l.b16 %v9697_v51  ;;  %v7422_v61 = vadd.f32 %v15869_v26, %v15529_v38  ;;  %v8456_v48 = vsel %vm12668_vm3, %v8451_v52, %v15894_v32  ;;  %v9485_v52 = vld [vmem:[#allocation3 + $0x84] sm:$0xf] }
 0x7db   : > { %v15940_v50 = vadd.f32 %v8062_v22, %v7812_v56  ;;  %v9705_v22 = vor.u32 %v9704_v57, %v9701_v30  ;;  %v9715_v55 = vor.u32 %v9714_v36, %v15942_v5  ;;  %v8567_v23 = vunpack.c.l.b16 %v8466_v20  ;;  %v15975_v36 = vld [vmem:[#allocation3 + $0xa0] sm:$0xf] }
 0x7dc   : > { %v8468_v10 = vshrl.u32 %v8146_v3, 16  ;;  %v8471_v56 = vshll.u32 %v8146_v3, 16  ;;  %v8915_v25 = vrot.slane %v15847_v40, 5  ;;  %v8483_v38 = vrot.slane %v8481_v58, 4 }
 0x7dd   : > { %v8670_v4 = vpop.f32.mrf.mxu0  ;;  %11708 = vmatmul.msk.bf16.gmra.mxu2 %vm7070_vm10, %v11915_v46  ;;  %v11606_v26 = vrot.slane %v8777_v24, 9  ;;  %v9907_v51 = vunpack.c.l.b16 %v9687_v14  ;;  %v8918_v30 = vrot.slane %v15906_v8, 5  ;;  %v8566_v57 = vunpack.c.l.b16 %v8456_v48  ;;  %v16764_v24 = vld [vmem:[#allocation6_spill] sm:$0xff] }
 0x7de   : > { %11730 = vmatmul.msk.bf16.gmra.mxu3 %vm7070_vm10, %v9931_v41  ;;  %v15946_v39 = vpop.f32.mrf.mxu1  ;;  %v15953_v63 = vadd.f32 %v8670_v4, %v16763_v29  ;;  %v15969_v41 = vrot.slane %v8477_v17, 5  ;;  %v8917_v32 = vrot.slane %v8915_v25, 4  ;;  %v9718_v37 = vshll.u32 %v15733_v49, 16  ;;  %v15988_v49 = vld [vmem:[#allocation3 + $0xb0] sm:$0x1] }
 0x7df   : > { %v9932_v40 = vpack.c.b16 %v15958_v59, %v9907_v51  ;;  %v15980_v53 = vrot.slane %v9705_v22, 4  ;;  %v15982_v4 = vrot.slane %v9715_v55, 4  ;;  %v8586_v3 = vpack.c.b16 %v8567_v23, %v8566_v57  ;;  %v10127_v22 = vld [vmem:[#allocation3 + $0x9c] sm:$0xe] }
 0x7e0   : > { %v7775_v15 = vpop.f32.mrf.mxu2  ;;  %v8919_v8 = vsel %vm12694_vm8, %v8917_v32, %v8918_v30  ;;  %v8470_v58 = vrot.slane %v8468_v10, 4  ;;  %v8473_v29 = vrot.slane %v8471_v56, 5  ;;  %v8484_v14 = vor.u32 %v8483_v38, %v15969_v41  ;;  %v16008_v30 = vld [vmem:[#allocation3 + $0xb8] sm:$0xf] }
 0x7e1   : > { %v8065_v44 = vpop.f32.mrf.mxu3  ;;  %11623 = vmatmul.msk.bf16.gmra.mxu1 %vm7070_vm10, %v15502_v47  ;;  %v7813_v34 = vadd.f32 %v7775_v15, %v7422_v61  ;;  %v8916_v47 = vsel %vm12694_vm8, %v11606_v26, %v8915_v25  ;;  %v8969_v48 = vunpack.c.l.b16 %v8919_v8  ;;  %v10259_v55 = vrot.slane %v15975_v36, 5 }
 0x7e2   : > { %v8968_v61 = vunpack.c.l.b16 %v8916_v47  ;;  %v7424_v15 = vadd.f32 %v15912_v35, %v15560_v1  ;;  %v9720_v23 = vrot.slane %v9718_v37, 5  ;;  %v9726_v25 = vshll.u32 %v9485_v52, 16 }
 0x7e3   : > { %v15972_v46 = vadd.f32 %v8065_v44, %v7813_v34  ;;  %v9723_v44 = vshrl.u32 %v9485_v52, 16  ;;  %v15997_v34 = vld [vmem:[#allocation3 + $0xa4] sm:$0x1]  ;;  %v8487_v38 = vshll.u32 %v15988_v49, 16  ;;  %v9711_v26 = vsel %vm12668_vm3, %v15980_v53, %v15942_v5 }
 0x7e4   : > { %v9732_v51 = vshll.u32 %v15785_v60, 16  ;;  %v16006_v32 = vpack.c.b16 %v8969_v48, %v8968_v61  ;;  %v8474_v35 = vor.u32 %v8473_v29, %v8470_v58  ;;  %v9736_v57 = vshrl.u32 %v15785_v60, 16  ;;  %v8149_v29 = vld [vmem:[#allocation3 + $0xb4] sm:$0xf] }
 0x7e5   : > { %v8673_v20 = vpop.f32.mrf.mxu0  ;;  %v11751_v37 = vrot.slane %v10127_v22, 9  ;;  %v8485_v47 = vrot.slane %v8484_v14, 4  ;;  %v9721_v52 = vsel %vm12668_vm3, %v15982_v4, %v9720_v23  ;;  %v10261_v8 = vrot.slane %v10259_v55, 4 }
 0x7e6   : > { %v15986_v17 = vpop.f32.mrf.mxu1  ;;  %v15992_v59 = vadd.f32 %v8673_v20, %v16764_v24  ;;  %v10262_v20 = vrot.slane %v15997_v34, 5  ;;  %v11916_v24 = vld [vmem:[#allocation3 + $0x6c] sm:$0xff]  ;;  %v16017_v61 = vrot.slane %v9723_v44, 4  ;;  %v16019_v48 = vrot.slane %v9726_v25, 5 }
 0x7e7   : > { %v10260_v58 = vsel %vm12694_vm8, %v11751_v37, %v10259_v55  ;;  %v8489_v60 = vrot.slane %v8487_v38, 5  ;;  %v8501_v14 = vshll.u32 %v16008_v30, 16  ;;  %v8505_v22 = vshrl.u32 %v16008_v30, 16 }
 0x7e8   : > { %11590 = vmatmul.msk.bf16.gmra.mxu0 %vm7070_vm10, %v8586_v3  ;;  %v7777_v10 = vpop.f32.mrf.mxu2  ;;  %v10263_v4 = vsel %vm12694_vm8, %v10261_v8, %v10262_v20  ;;  %v8475_v23 = vrot.slane %v8474_v35, 4  ;;  %v16029_v25 = vrot.slane %v9732_v51, 5  ;;  %v8778_v8 = vld [vmem:[#allocation3 + $0xa8] sm:$0xe]  ;;  %v10317_v20 = vunpack.c.l.b16 %v10260_v58 }
 0x7e9   : > { %v8067_v56 = vpop.f32.mrf.mxu3  ;;  %v7814_v1 = vadd.f32 %v7777_v10, %v7424_v15  ;;  %v9738_v10 = vrot.slane %v9736_v57, 4  ;;  %v10318_v55 = vunpack.c.l.b16 %v10263_v4  ;;  %v8492_v35 = vshrl.u32 %v8149_v29, 16 }
 0x7ea   : > { %v8480_v51 = vsel %vm12668_vm3, %v8475_v23, %v15969_v41  ;;  %v8495_v57 = vshll.u32 %v8149_v29, 16  ;;  %v9910_v41 = vunpack.c.l.b16 %v9721_v52  ;;  %v16052_v23 = vld [vmem:[#allocation3 + $0xbc] sm:$0x1]  ;;  %v9729_v29 = vor.u32 %v16019_v48, %v16017_v61 }
 0x7eb   : > { %v16015_v3 = vadd.f32 %v8067_v56, %v7814_v1  ;;  %v16765_v56 = vld [vmem:[#allocation4_spill] sm:$0xff]  ;;  %v8490_v1 = vsel %vm12668_vm3, %v8485_v47, %v8489_v60  ;;  %v16046_v47 = vrot.slane %v8501_v14, 5  ;;  %v8922_v60 = vrot.slane %v15938_v54, 5 }
 0x7ec   : > { %v16049_v58 = vpack.c.b16 %v10318_v55, %v10317_v20  ;;  %v8925_v14 = vrot.slane %v15988_v49, 5  ;;  %v9742_v55 = vshll.u32 %v15809_v33, 16  ;;  %v8497_v52 = vrot.slane %v8495_v57, 5 }
 0x7ed   : > { %v8675_v15 = vpop.f32.mrf.mxu0  ;;  %11709 = vmatmul.msk.bf16.gmra.mxu2 %vm7070_vm10, %v11916_v24  ;;  %v8511_v49 = vshll.u32 %v16052_v23, 16 }
 0x7ee   : > { %11731 = vmatmul.msk.bf16.gmra.mxu3 %vm7070_vm10, %v9932_v40  ;;  %v9055_v44 = vpop.f32.mrf.mxu1  ;;  %v16032_v38 = vadd.f32 %v8675_v15, %v16765_v56  ;;  %v7427_v40 = vadd.f32 %v15946_v39, %v15600_v43  ;;  %v8569_v43 = vunpack.c.l.b16 %v8490_v1  ;;  %v9739_v39 = vor.u32 %v9738_v10, %v16029_v25  ;;  %v16056_v56 = vld [vmem:[#allocation3 + $0xac] sm:$0xf] }
 0x7ef   : > { %v16037_v37 = vadd.f32 %v9055_v44, %v15678_v6  ;;  %v8507_v6 = vrot.slane %v8505_v22, 4  ;;  %v11607_v44 = vrot.slane %v8778_v8, 9  ;;  %v8568_v22 = vunpack.c.l.b16 %v8480_v51 }
 0x7f0   : > { %16766 = vst [vmem:[#allocation31_spill] sm:$0xff] %v16032_v38  ;;  %v7780_v24 = vpop.f32.mrf.mxu2  ;;  %v8494_v1 = vrot.slane %v8492_v35, 4  ;;  %v9740_v51 = vrot.slane %v9739_v39, 4  ;;  %v16082_v39 = vld [vmem:[#allocation3 + $0xb0] sm:$0x1]  ;;  %v8513_v53 = vrot.slane %v8511_v49, 5 }
 0x7f1   : > { %v8070_v4 = vpop.f32.mrf.mxu3  ;;  %11624 = vmatmul.msk.bf16.gmra.mxu1 %vm7070_vm10, %v15575_v0  ;;  %v7815_v15 = vadd.f32 %v7780_v24, %v7427_v40  ;;  %v8924_v0 = vrot.slane %v8922_v60, 4  ;;  %v8923_v10 = vsel %vm12694_vm8, %v11607_v44, %v8922_v60  ;;  %v8508_v8 = vor.u32 %v8507_v6, %v16046_v47  ;;  %v10128_v6 = vld [vmem:[#allocation3 + $0xa8] sm:$0xe] }
 0x7f2   : > { %v8587_v20 = vpack.c.b16 %v8569_v43, %v8568_v22  ;;  %v10266_v24 = vrot.slane %v16056_v56, 5  ;;  %v8970_v35 = vunpack.c.l.b16 %v8923_v10  ;;  %v9909_v43 = vunpack.c.l.b16 %v9711_v26  ;;  %v16085_v10 = vld [vmem:[#allocation3 + $0x90] sm:$0xf] }
 0x7f3   : > { %v16059_v54 = vadd.f32 %v8070_v4, %v7815_v15  ;;  %v8926_v61 = vsel %vm12694_vm8, %v8924_v0, %v8925_v14  ;;  %v16767_v4 = vld [vmem:[#allocation19_spill] sm:$0xff]  ;;  %v7429_v15 = vadd.f32 %v15986_v17, %v15628_v11  ;;  %v8509_v14 = vrot.slane %v8508_v8, 4 }
 0x7f4   : > { %v8971_v57 = vunpack.c.l.b16 %v8926_v61  ;;  %v9744_v22 = vrot.slane %v9742_v55, 5  ;;  %v9933_v17 = vpack.c.b16 %v9910_v41, %v9909_v43  ;;  %v11752_v5 = vrot.slane %v10128_v6, 9  ;;  %v11917_v55 = vld [vmem:[#allocation3 + $0x78] sm:$0xff] }
 0x7f5   : > { %v8678_v48 = vpop.f32.mrf.mxu0 }
 0x7f6   : > { %v9057_v40 = vpop.f32.mrf.mxu1  ;;  %v16070_v33 = vadd.f32 %v8678_v48, %v16767_v4  ;;  %v16087_v61 = vpack.c.b16 %v8971_v57, %v8970_v35  ;;  %v16089_v48 = vrot.slane %v9729_v29, 4  ;;  %v9745_v26 = vsel %vm12668_vm3, %v9740_v51, %v9744_v22  ;;  %v8152_v4 = vld [vmem:[#allocation3 + $0xc0] sm:$0xf]  ;;  %v16127_v29 = vld [vmem:[#allocation3 + $0xbc] sm:$0x1] }
 0x7f7   : > { %v16073_v60 = vadd.f32 %v9057_v40, %v15723_v2  ;;  %v8498_v2 = vor.u32 %v8497_v52, %v8494_v1  ;;  %v16091_v40 = vld [vmem:[#allocation3 + $0xc4] sm:$0xf]  ;;  %v10269_v1 = vrot.slane %v16082_v39, 5  ;;  %v10267_v8 = vsel %vm12694_vm8, %v11752_v5, %v10266_v24 }
 0x7f8   : > { %16768 = vst [vmem:[#allocation7_spill] sm:$0xff] %v16070_v33  ;;  %11591 = vmatmul.msk.bf16.gmra.mxu0 %vm7070_vm10, %v8587_v20  ;;  %v7782_v44 = vpop.f32.mrf.mxu2  ;;  %v10268_v20 = vrot.slane %v10266_v24, 4  ;;  %v8514_v51 = vsel %vm12668_vm3, %v8509_v14, %v8513_v53  ;;  %v8525_v35 = vshll.u32 %v16091_v40, 16  ;;  %v16112_v43 = vunpack.c.l.b16 %v9745_v26  ;;  %v16769_v14 = vld [vmem:[#allocation12_spill] sm:$0xff]  ;;  %v10129_v26 = vld [vmem:[#allocation3 + $0xb4] sm:$0xe] }
 0x7f9   : > { %v8072_v0 = vpop.f32.mrf.mxu3  ;;  %v7816_v11 = vadd.f32 %v7782_v44, %v7429_v15  ;;  %v8499_v49 = vrot.slane %v8498_v2, 4  ;;  %v8529_v24 = vshrl.u32 %v16091_v40, 16  ;;  %v9756_v44 = vshll.u32 %v15865_v7, 16 }
 0x7fa   : > { %v10270_v57 = vsel %vm12694_vm8, %v10268_v20, %v10269_v1  ;;  %v10319_v53 = vunpack.c.l.b16 %v10267_v8  ;;  %v8571_v20 = vunpack.c.l.b16 %v8514_v51  ;;  %v8516_v1 = vshrl.u32 %v8152_v4, 16 }
 0x7fb   : > { %v16096_v52 = vadd.f32 %v8072_v0, %v7816_v11  ;;  %v8779_v0 = vld [vmem:[#allocation3 + $0xb4] sm:$0xe]  ;;  %v10320_v2 = vunpack.c.l.b16 %v10270_v57  ;;  %v8504_v11 = vsel %vm12668_vm3, %v8499_v49, %v16046_v47  ;;  %v8929_v57 = vrot.slane %v16008_v30, 5 }
 0x7fc   : > { %v16132_v47 = vrot.slane %v8525_v35, 5  ;;  %v11753_v41 = vrot.slane %v10129_v26, 9  ;;  %v8570_v35 = vunpack.c.l.b16 %v8504_v11 }
 0x7fd   : > { %v8680_v6 = vpop.f32.mrf.mxu0  ;;  %11710 = vmatmul.msk.bf16.gmra.mxu2 %vm7070_vm10, %v11917_v55  ;;  %v8519_v55 = vshll.u32 %v8152_v4, 16  ;;  %v16134_v49 = vpack.c.b16 %v10320_v2, %v10319_v53  ;;  %v8932_v4 = vrot.slane %v16052_v23, 5 }
 0x7fe   : > { %11732 = vmatmul.msk.bf16.gmra.mxu3 %vm7070_vm10, %v9933_v17  ;;  %v9060_v15 = vpop.f32.mrf.mxu1  ;;  %v16117_v22 = vadd.f32 %v8680_v6, %v16769_v14  ;;  %v16125_v17 = vld [vmem:[#allocation3 + $0xb8] sm:$0xf] }
 0x7ff   : > { %v16123_v5 = vadd.f32 %v9060_v15, %v15761_v62  ;;  %v11608_v62 = vrot.slane %v8779_v0, 9  ;;  %16771 = vst [vmem:[#allocation6_spill] sm:$0xff] %v16134_v49  ;;  %v10273_v8 = vrot.slane %v16125_v17, 5  ;;  %v8531_v15 = vrot.slane %v8529_v24, 4 }
 0x800   : > { %16770 = vst [vmem:[#allocation16_spill] sm:$0xff] %v16117_v22  ;;  %v9346_v6 = vpop.f32.mrf.mxu2  ;;  %v8931_v22 = vrot.slane %v8929_v57, 4  ;;  %v9760_v0 = vshrl.u32 %v15865_v7, 16  ;;  %v8521_v24 = vrot.slane %v8519_v55, 5  ;;  %v16772_v7 = vld [vmem:[#allocation14_spill] sm:$0xff]  ;;  %v9750_v55 = vshll.u32 %v16085_v10, 16 }
 0x801   : > { %v10004_v14 = vpop.f32.mrf.mxu3  ;;  %11625 = vmatmul.msk.bf16.gmra.mxu1 %vm7070_vm10, %v15645_v45  ;;  %v9426_v51 = vadd.f32 %v9346_v6, %v16037_v37  ;;  %v8930_v30 = vsel %vm12694_vm8, %v11608_v62, %v8929_v57  ;;  %v10275_v33 = vrot.slane %v10273_v8, 4  ;;  %v10276_v45 = vrot.slane %v16127_v29, 5  ;;  %v16151_v62 = vld [vmem:[#allocation3 + $0xc8] sm:$0x1] }
 0x802   : > { %v10274_v2 = vsel %vm12694_vm8, %v11753_v41, %v10273_v8  ;;  %v8518_v37 = vrot.slane %v8516_v1, 4  ;;  %v8933_v23 = vsel %vm12694_vm8, %v8931_v22, %v8932_v4  ;;  %v8588_v57 = vpack.c.b16 %v8571_v20, %v8570_v35 }
 0x803   : > { %v16142_v38 = vadd.f32 %v10004_v14, %v9426_v51  ;;  %v10277_v53 = vsel %vm12694_vm8, %v10275_v33, %v10276_v45  ;;  %v8972_v11 = vunpack.c.l.b16 %v8930_v30  ;;  %v8973_v14 = vunpack.c.l.b16 %v8933_v23 }
 0x804   : > { %v10322_v51 = vunpack.c.l.b16 %v10277_v53  ;;  %v8532_v1 = vor.u32 %v8531_v15, %v16132_v47  ;;  %v10321_v22 = vunpack.c.l.b16 %v10274_v2  ;;  %v16161_v33 = vrot.slane %v9756_v44, 5 }
 0x805   : > { %v8683_v26 = vpop.f32.mrf.mxu0  ;;  %v9762_v20 = vrot.slane %v9760_v0, 4  ;;  %v16163_v8 = vpack.c.b16 %v8973_v14, %v8972_v11  ;;  %v8535_v15 = vshll.u32 %v16151_v62, 16  ;;  %v8522_v2 = vor.u32 %v8521_v24, %v8518_v37  ;;  %v10130_v37 = vld [vmem:[#allocation3 + $0xc0] sm:$0xe] }
 0x806   : > { %v9062_v6 = vpop.f32.mrf.mxu1  ;;  %v16154_v49 = vadd.f32 %v8683_v26, %v16772_v7  ;;  %v16172_v35 = vpack.c.b16 %v10322_v51, %v10321_v22  ;;  %v8533_v23 = vrot.slane %v8532_v1, 4  ;;  %v16774_v53 = vshrl.u32 %v16085_v10, 16  ;;  %v16775_v24 = vld [vmem:[#allocation13_spill] sm:$0xff] }
 0x807   : > { %v16157_v41 = vadd.f32 %v9062_v6, %v15800_v16  ;;  %v16773_v16 = vsel %vm12668_vm3, %v16089_v48, %v16029_v25  ;;  %v11918_v6 = vld [vmem:[#allocation3 + $0x84] sm:$0xff]  ;;  %v9752_v11 = vrot.slane %v9750_v55, 5  ;;  %v9763_v25 = vor.u32 %v9762_v20, %v16161_v33 }
 0x808   : > { %11592 = vmatmul.msk.bf16.gmra.mxu0 %vm7070_vm10, %v8588_v57  ;;  %v9348_v4 = vpop.f32.mrf.mxu2  ;;  %v9911_v45 = vunpack.c.l.b16 %v16773_v16  ;;  %v9749_v26 = vrot.slane %v16774_v53, 4  ;;  %v9766_v48 = vshll.u32 %v15888_v42, 16  ;;  %v8537_v14 = vrot.slane %v8535_v15, 5  ;;  %v16192_v42 = vld [vmem:[#allocation3 + $0xc4] sm:$0xf] }
 0x809   : > { %v10006_v30 = vpop.f32.mrf.mxu3  ;;  %v9427_v44 = vadd.f32 %v9348_v4, %v16073_v60  ;;  %v8523_v7 = vrot.slane %v8522_v2, 4  ;;  %v16194_v55 = vld [vmem:[#allocation3 + $0xc8] sm:$0x1]  ;;  %v9764_v4 = vrot.slane %v9763_v25, 4  ;;  %v8936_v16 = vrot.slane %v16091_v40, 5 }
 0x80a   : > { %v9934_v0 = vpack.c.b16 %v16112_v43, %v9911_v45  ;;  %v8780_v43 = vld [vmem:[#allocation3 + $0xc0] sm:$0xe]  ;;  %v8538_v1 = vsel %vm12668_vm3, %v8533_v23, %v8537_v14  ;;  %v9753_v20 = vor.u32 %v9752_v11, %v9749_v26  ;;  %v10280_v2 = vrot.slane %v16192_v42, 5 }
 0x80b   : > { %v16178_v57 = vadd.f32 %v10006_v30, %v9427_v44  ;;  %v9768_v30 = vrot.slane %v9766_v48, 5  ;;  %v8528_v15 = vsel %vm12668_vm3, %v8523_v7, %v16132_v47  ;;  %v8573_v53 = vunpack.c.l.b16 %v8538_v1  ;;  %v9491_v7 = vld [vmem:[#allocation3 + $0x9c] sm:$0xf] }
 0x80c   : > { %v8939_v26 = vrot.slane %v16151_v62, 5  ;;  %v10283_v40 = vrot.slane %v16194_v55, 5  ;;  %v8938_v11 = vrot.slane %v8936_v16, 4  ;;  %v10282_v25 = vrot.slane %v10280_v2, 4 }
 0x80d   : > { %v8685_v51 = vpop.f32.mrf.mxu0  ;;  %11711 = vmatmul.msk.bf16.gmra.mxu2 %vm7070_vm10, %v11918_v6  ;;  %v9754_v48 = vrot.slane %v9753_v20, 4  ;;  %v9769_v14 = vsel %vm12668_vm3, %v9764_v4, %v9768_v30  ;;  %v9784_v62 = vshrl.u32 %v15975_v36, 16 }
 0x80e   : > { %11733 = vmatmul.msk.bf16.gmra.mxu3 %vm7070_vm10, %v9934_v0  ;;  %v9065_v60 = vpop.f32.mrf.mxu1  ;;  %v16185_v10 = vadd.f32 %v8685_v51, %v16775_v24  ;;  %v11754_v0 = vrot.slane %v10130_v37, 9  ;;  %v8572_v51 = vunpack.c.l.b16 %v8528_v15 }
 0x80f   : > { %v16190_v22 = vadd.f32 %v9065_v60, %v15835_v18  ;;  %v11609_v18 = vrot.slane %v8780_v43, 9  ;;  %v8940_v60 = vsel %vm12694_vm8, %v8938_v11, %v8939_v26  ;;  %v10284_v43 = vsel %vm12694_vm8, %v10282_v25, %v10283_v40 }
 0x810   : > { %v9351_v45 = vpop.f32.mrf.mxu2  ;;  %v10281_v47 = vsel %vm12694_vm8, %v11754_v0, %v10280_v2  ;;  %v8589_v30 = vpack.c.b16 %v8573_v53, %v8572_v51  ;;  %v9771_v40 = vshrl.u32 %v9491_v7, 16  ;;  %v11919_v51 = vld [vmem:[#allocation3 + $0x90] sm:$0xff] }
 0x811   : > { %v10009_v44 = vpop.f32.mrf.mxu3  ;;  %11626 = vmatmul.msk.bf16.gmra.mxu1 %vm7070_vm10, %v15735_v13  ;;  %v9428_v23 = vadd.f32 %v9351_v45, %v16123_v5  ;;  %v8937_v6 = vsel %vm12694_vm8, %v11609_v18, %v8936_v16  ;;  %v9780_v5 = vshll.u32 %v15975_v36, 16  ;;  %v8975_v16 = vunpack.c.l.b16 %v8940_v60 }
 0x812   : > { %v8974_v1 = vunpack.c.l.b16 %v8937_v6  ;;  %v10323_v20 = vunpack.c.l.b16 %v10281_v47  ;;  %v10324_v45 = vunpack.c.l.b16 %v10284_v43  ;;  %v9759_v36 = vsel %vm12668_vm3, %v9754_v48, %v16161_v33 }
 0x813   : > { %v16210_v13 = vadd.f32 %v10009_v44, %v9428_v23  ;;  %v16776_v44 = vld [vmem:[#allocation25_spill] sm:$0xff]  ;;  %v9914_v18 = vunpack.c.l.b16 %v9769_v14  ;;  %v9774_v6 = vshll.u32 %v9491_v7, 16  ;;  %v9782_v11 = vrot.slane %v9780_v5, 5 }
 0x814   : > { %v16227_v0 = vpack.c.b16 %v8975_v16, %v8974_v1  ;;  %v16229_v2 = vpack.c.b16 %v10324_v45, %v10323_v20  ;;  %v9786_v47 = vrot.slane %v9784_v62, 4  ;;  %v9773_v48 = vrot.slane %v9771_v40, 4  ;;  %v9494_v40 = vld [vmem:[#allocation3 + $0xa8] sm:$0xf] }
 0x815   : > { %v8688_v37 = vpop.f32.mrf.mxu0  ;;  %v9776_v14 = vrot.slane %v9774_v6, 5  ;;  %v16778_v6 = vld [vmem:[#allocation27_spill] sm:$0xff] }
 0x816   : > { %v9067_v24 = vpop.f32.mrf.mxu1  ;;  %v16221_v4 = vadd.f32 %v8688_v37, %v16776_v44  ;;  %v9787_v60 = vor.u32 %v9786_v47, %v9782_v11 }
 0x817   : > { %v9140_v15 = vadd.f32 %v9067_v24, %v15878_v21  ;;  %v9913_v21 = vunpack.c.l.b16 %v9759_v36  ;;  %v16777_v24 = vld [vmem:[#allocation21_spill] sm:$0xff]  ;;  %v9777_v16 = vor.u32 %v9776_v14, %v9773_v48  ;;  %v9795_v48 = vshrl.u32 %v9494_v40, 16 }
 0x818   : > { %11593 = vmatmul.msk.bf16.gmra.mxu0 %vm7070_vm10, %v8589_v30  ;;  %v9353_v23 = vpop.f32.mrf.mxu2  ;;  %v9788_v20 = vrot.slane %v9787_v60, 4  ;;  %v9798_v14 = vshll.u32 %v9494_v40, 16 }
 0x819   : > { %v10011_v26 = vpop.f32.mrf.mxu3  ;;  %v9429_v53 = vadd.f32 %v9353_v23, %v16157_v41  ;;  %v9935_v33 = vpack.c.b16 %v9914_v18, %v9913_v21  ;;  %v9790_v41 = vshll.u32 %v15997_v34, 16  ;;  %v9778_v36 = vrot.slane %v9777_v16, 4  ;;  %v16779_v21 = vld [vmem:[#allocation5_spill] sm:$0xff] }
 0x81a   : > { %v9808_v34 = vshrl.u32 %v16056_v56, 16 }
 0x81b   : > { %v16233_v25 = vadd.f32 %v10011_v26, %v9429_v53  ;;  %v9792_v44 = vrot.slane %v9790_v41, 5  ;;  %v11920_v41 = vld [vmem:[#allocation3 + $0x9c] sm:$0xff] }
 0x81c   : > { %v9810_v60 = vrot.slane %v9808_v34, 4 }
 0x81d   : > { %v8690_v43 = vpop.f32.mrf.mxu0  ;;  %11712 = vmatmul.msk.bf16.gmra.mxu2 %vm7070_vm10, %v11919_v51  ;;  %v9793_v18 = vsel %vm12668_vm3, %v9788_v20, %v9792_v44 }
 0x81e   : > { %11734 = vmatmul.msk.bf16.gmra.mxu3 %vm7070_vm10, %v9935_v33  ;;  %v9070_v37 = vpop.f32.mrf.mxu1  ;;  %v16238_v7 = vadd.f32 %v8690_v43, %v16777_v24  ;;  %v9916_v53 = vunpack.c.l.b16 %v9793_v18 }
 0x81f   : > { %v9141_v5 = vadd.f32 %v9070_v37, %v15916_v9  ;;  %v9804_v9 = vshll.u32 %v16056_v56, 16 }
 0x820   : > { %v9356_v62 = vpop.f32.mrf.mxu2 }
 0x821   : > { %v10014_v1 = vpop.f32.mrf.mxu3  ;;  %11627 = vmatmul.msk.bf16.gmra.mxu1 %vm7070_vm10, %v15922_v12  ;;  %v9430_v45 = vadd.f32 %v9356_v62, %v16190_v22  ;;  %v9783_v22 = vsel %vm12668_vm3, %v9778_v36, %v9782_v11  ;;  %v9806_v56 = vrot.slane %v9804_v9, 5 }
 0x822   : > { %v9915_v37 = vunpack.c.l.b16 %v9783_v22  ;;  %v9497_v22 = vld [vmem:[#allocation3 + $0xb4] sm:$0xf] }
 0x823   : > { %v16245_v30 = vadd.f32 %v10014_v1, %v9430_v45  ;;  %v9800_v1 = vrot.slane %v9798_v14, 5  ;;  %v9811_v16 = vor.u32 %v9810_v60, %v9806_v56  ;;  %v9814_v45 = vshll.u32 %v16082_v39, 16 }
 0x824   : > { %v9936_v62 = vpack.c.b16 %v9916_v53, %v9915_v37  ;;  %v16780_v53 = vld [vmem:[#allocation17_spill] sm:$0xff]  ;;  %v9819_v14 = vshrl.u32 %v9497_v22, 16  ;;  %v9822_v60 = vshll.u32 %v9497_v22, 16  ;;  %v16783_v22 = vld [vmem:[#allocation20_spill] sm:$0xff] }
 0x825   : > { %v8693_v23 = vpop.f32.mrf.mxu0  ;;  %v9812_v18 = vrot.slane %v9811_v16, 4  ;;  %v9816_v34 = vrot.slane %v9814_v45, 5 }
 0x826   : > { %v9072_v26 = vpop.f32.mrf.mxu1  ;;  %v16252_v12 = vadd.f32 %v8693_v23, %v16778_v6  ;;  %v9832_v6 = vshrl.u32 %v16125_v17, 16  ;;  %v9821_v16 = vrot.slane %v9819_v14, 4  ;;  %v11922_v14 = vld [vmem:[#allocation3 + $0xb4] sm:$0xff] }
 0x827   : > { %v9142_v47 = vadd.f32 %v9072_v26, %v15953_v63  ;;  %v9797_v63 = vrot.slane %v9795_v48, 4  ;;  %v9817_v40 = vsel %vm12668_vm3, %v9812_v18, %v9816_v34  ;;  %v9852_v34 = vshll.u32 %v16192_v42, 16 }
 0x828   : > { %11762 = vmatmul.msk.bf16.vlgmr.msrb.gmra.mxu0 %vm7070_vm10, %v16779_v21  ;;  %v9358_v51 = vpop.f32.mrf.mxu2  ;;  %v9834_v37 = vrot.slane %v9832_v6, 4 }
 0x829   : > { %v10016_v33 = vpop.f32.mrf.mxu3  ;;  %v9431_v43 = vadd.f32 %v9358_v51, %v9140_v15  ;;  %v9801_v36 = vor.u32 %v9800_v1, %v9797_v63  ;;  %v16781_v51 = vld [vmem:[#allocation11_spill] sm:$0xff]  ;;  %v11921_v63 = vld [vmem:[#allocation3 + $0xa8] sm:$0xff] }
 0x82b   : > { %v16259_v24 = vadd.f32 %v10016_v33, %v9431_v43  ;;  %v9802_v26 = vrot.slane %v9801_v36, 4  ;;  %v9838_v36 = vshll.u32 %v16127_v29, 16 }
 0x82d   : > { %v8695_v11 = vpop.f32.mrf.mxu0  ;;  %11713 = vmatmul.msk.bf16.gmra.mxu2 %vm7070_vm10, %v11920_v41 }
 0x82e   : > { %11735 = vmatmul.msk.bf16.gmra.mxu3 %vm7070_vm10, %v9936_v62  ;;  %v16264_v20 = vadd.f32 %v8695_v11, %v15554_v19  ;;  %v9828_v19 = vshll.u32 %v16125_v17, 16  ;;  %v9824_v11 = vrot.slane %v9822_v60, 5 }
 0x830   : > { %v9361_v44 = vpop.f32.mrf.mxu2  ;;  %v9830_v43 = vrot.slane %v9828_v19, 5 }
 0x831   : > { %v10019_v15 = vpop.f32.mrf.mxu3  ;;  %11628 = vmatmul.msk.bf16.gmra.mxu1 %vm7070_vm10, %v16006_v32  ;;  %v9432_v9 = vadd.f32 %v9361_v44, %v9141_v5  ;;  %v9807_v32 = vsel %vm12668_vm3, %v9802_v26, %v9806_v56  ;;  %v9918_v5 = vunpack.c.l.b16 %v9817_v40  ;;  %v16782_v44 = vld [vmem:[#allocation28_spill] sm:$0xff]  ;;  %v9856_v26 = vshrl.u32 %v16192_v42, 16 }
 0x832   : > { %v9917_v17 = vunpack.c.l.b16 %v9807_v32  ;;  %v9835_v45 = vor.u32 %v9834_v37, %v9830_v43  ;;  %v9854_v32 = vrot.slane %v9852_v34, 5 }
 0x833   : > { %v16269_v23 = vadd.f32 %v10019_v15, %v9432_v9  ;;  %v9840_v9 = vrot.slane %v9838_v36, 5 }
 0x834   : > { %v9937_v1 = vpack.c.b16 %v9918_v5, %v9917_v17  ;;  %v9836_v18 = vrot.slane %v9835_v45, 4  ;;  %v9858_v5 = vrot.slane %v9856_v26, 4  ;;  %v9503_v26 = vld [vmem:[#allocation3 + $0xcc] sm:$0xf] }
 0x835   : > { %v8698_v39 = vpop.f32.mrf.mxu0 }
 0x836   : > { %v16276_v21 = vadd.f32 %v8698_v39, %v16780_v53  ;;  %v9841_v19 = vsel %vm12668_vm3, %v9836_v18, %v9840_v9  ;;  %v9500_v39 = vld [vmem:[#allocation3 + $0xc0] sm:$0xf]  ;;  %v9859_v37 = vor.u32 %v9858_v5, %v9854_v32  ;;  %v16786_v18 = vld [vmem:[#allocation32_spill] sm:$0xff] }
 0x837   : > { %v9846_v42 = vshll.u32 %v9500_v39, 16 }
 0x838   : > { %11763 = vmatmul.msk.bf16.gmra.mxu0 %vm7070_vm10, %v16781_v51  ;;  %v9363_v33 = vpop.f32.mrf.mxu2  ;;  %v16784_v51 = vld [vmem:[#allocation9_spill] sm:$0xff] }
 0x839   : > { %v10021_v48 = vpop.f32.mrf.mxu3  ;;  %v9433_v41 = vadd.f32 %v9363_v33, %v9142_v47  ;;  %v9825_v47 = vor.u32 %v9824_v11, %v9821_v16  ;;  %v9843_v33 = vshrl.u32 %v9500_v39, 16  ;;  %v9848_v17 = vrot.slane %v9846_v42, 5 }
 0x83a   : > { %v9860_v11 = vrot.slane %v9859_v37, 4 }
 0x83b   : > { %v16282_v62 = vadd.f32 %v10021_v48, %v9433_v41  ;;  %v9826_v40 = vrot.slane %v9825_v47, 4  ;;  %v9845_v41 = vrot.slane %v9843_v33, 4 }
 0x83d   : > { %v8700_v56 = vpop.f32.mrf.mxu0  ;;  %11714 = vmatmul.msk.bf16.gmra.mxu2 %vm7070_vm10, %v11921_v63  ;;  %v9831_v29 = vsel %vm12668_vm3, %v9826_v40, %v9830_v43  ;;  %v9862_v43 = vshll.u32 %v16194_v55, 16  ;;  %v9849_v45 = vor.u32 %v9848_v17, %v9845_v41  ;;  %v16318_v40 = vld [vmem:[#allocation3 + $0xd0] sm:$0xf]  ;;  %v16788_v17 = vld [vmem:[#allocation34_spill] sm:$0xff] }
 0x83e   : > { %11736 = vmatmul.msk.bf16.gmra.mxu3 %vm7070_vm10, %v9937_v1  ;;  %v16287_v15 = vadd.f32 %v8700_v56, %v16782_v44  ;;  %v9919_v48 = vunpack.c.l.b16 %v9831_v29  ;;  %v16785_v1 = vld [vmem:[#allocation22_spill] sm:$0xff]  ;;  %v9876_v39 = vshll.u32 %v16318_v40, 16  ;;  %v16787_v29 = vld [vmem:[#allocation8_spill] sm:$0xff] }
 0x83f   : > { %v9864_v56 = vrot.slane %v9862_v43, 5  ;;  %v9850_v36 = vrot.slane %v9849_v45, 4 }
 0x840   : > { %v9878_v33 = vrot.slane %v9876_v39, 5 }
 0x841   : > { %11629 = vmatmul.msk.bf16.gmra.mxu1 %vm7070_vm10, %v16087_v61  ;;  %v9920_v61 = vunpack.c.l.b16 %v9841_v19  ;;  %v9865_v44 = vsel %vm12668_vm3, %v9860_v11, %v9864_v56  ;;  %v9855_v55 = vsel %vm12668_vm3, %v9850_v36, %v9854_v32  ;;  %v16320_v19 = vld [vmem:[#allocation3 + $0xd4] sm:$0x1] }
 0x842   : > { %v9922_v34 = vunpack.c.l.b16 %v9865_v44  ;;  %v9886_v42 = vshll.u32 %v16320_v19, 16 }
 0x843   : > { %v9938_v60 = vpack.c.b16 %v9920_v61, %v9919_v48  ;;  %v9921_v61 = vunpack.c.l.b16 %v9855_v55  ;;  %v11923_v48 = vld [vmem:[#allocation3 + $0xc0] sm:$0xff] }
 0x844   : > { %v9888_v11 = vrot.slane %v9886_v42, 5  ;;  %v16794_v42 = vld [vmem:[#allocation10_spill] sm:$0xff] }
 0x845   : > { %v8703_v6 = vpop.f32.mrf.mxu0 }
 0x846   : > { %v16297_v53 = vadd.f32 %v8703_v6, %v16783_v22  ;;  %v9870_v6 = vshll.u32 %v9503_v26, 16  ;;  %v9880_v22 = vshrl.u32 %v16318_v40, 16 }
 0x848   : > { %11764 = vmatmul.msk.bf16.gmra.mxu0 %vm7070_vm10, %v16784_v51  ;;  %v9872_v51 = vrot.slane %v9870_v6, 5  ;;  %v9882_v32 = vrot.slane %v9880_v22, 4  ;;  %v16792_v22 = vld [vmem:[#allocation30_spill] sm:$0xff] }
 0x84a   : > { %v9883_v37 = vor.u32 %v9882_v32, %v9878_v33 }
 0x84d   : > { %v8705_v63 = vpop.f32.mrf.mxu0  ;;  %11715 = vmatmul.msk.bf16.gmra.mxu2 %vm7070_vm10, %v11922_v14  ;;  %v9939_v14 = vpack.c.b16 %v9922_v34, %v9921_v61  ;;  %v16790_v34 = vld [vmem:[#allocation15_spill] sm:$0xff]  ;;  %v16793_v61 = vld [vmem:[#allocation26_spill] sm:$0xff] }
 0x84e   : > { %11737 = vmatmul.msk.bf16.gmra.mxu3 %vm7070_vm10, %v9938_v60  ;;  %v16307_v16 = vadd.f32 %v8705_v63, %v16785_v1  ;;  %v9884_v1 = vrot.slane %v9883_v37, 4 }
 0x850   : > { %v9889_v56 = vsel %vm12668_vm3, %v9884_v1, %v9888_v11  ;;  %v16796_v11 = vld [vmem:[#allocation33_spill] sm:$0xff] }
 0x851   : > { %11630 = vmatmul.msk.bf16.gmra.mxu1 %vm7070_vm10, %v16163_v8  ;;  %v9867_v8 = vshrl.u32 %v9503_v26, 16  ;;  %v11924_v26 = vld [vmem:[#allocation3 + $0xcc] sm:$0xff] }
 0x853   : > { %v9869_v5 = vrot.slane %v9867_v8, 4 }
 0x855   : > { %v8708_v47 = vpop.f32.mrf.mxu0  ;;  %v9873_v60 = vor.u32 %v9872_v51, %v9869_v5 }
 0x856   : > { %v16314_v9 = vadd.f32 %v8708_v47, %v16786_v18  ;;  %v9924_v47 = vunpack.c.l.b16 %v9889_v56  ;;  %v16789_v18 = vld [vmem:[#allocation29_spill] sm:$0xff] }
 0x857   : > { %v9874_v43 = vrot.slane %v9873_v60, 4 }
 0x858   : > { %11765 = vmatmul.msk.bf16.gmra.mxu0 %vm7070_vm10, %v16787_v29 }
 0x859   : > { %v9879_v45 = vsel %vm12668_vm3, %v9874_v43, %v9878_v33 }
 0x85a   : > { %v9923_v36 = vunpack.c.l.b16 %v9879_v45  ;;  %v9075_v45 = vpop.f32.mrf.mxu1 }
 0x85c   : > { %v9940_v8 = vpack.c.b16 %v9924_v47, %v9923_v36  ;;  %v9366_v36 = vpop.f32.mrf.mxu2 }
 0x85d   : > { %v8710_v41 = vpop.f32.mrf.mxu0  ;;  %11716 = vmatmul.msk.bf16.gmra.mxu2 %vm7070_vm10, %v11923_v48 }
 0x85e   : > { %11738 = vmatmul.msk.bf16.gmra.mxu3 %vm7070_vm10, %v9939_v14  ;;  %v16330_v63 = vadd.f32 %v8710_v41, %v16788_v17  ;;  %v16795_v41 = vld [vmem:[#allocation24_spill] sm:$0xff] }
 0x861   : > { %11631 = vmatmul.msk.bf16.gmra.mxu1 %vm7070_vm10, %v16227_v0  ;;  %v16791_v0 = vld [vmem:[#allocation18_spill] sm:$0xff] }
 0x865   : > { %v8713_v44 = vpop.f32.mrf.mxu0 }
 0x866   : > { %v16339_v55 = vadd.f32 %v8713_v44, %v16789_v18 }
 0x868   : > { %11766 = vmatmul.msk.bf16.gmra.mxu0 %vm7070_vm10, %v16790_v34  ;;  %v10024_v34 = vpop.f32.mrf.mxu3 }
 0x86d   : > { %v8715_v6 = vpop.f32.mrf.mxu0  ;;  %11717 = vmatmul.msk.bf16.gmra.mxu2 %vm7070_vm10, %v11924_v26 }
 0x86e   : > { %11739 = vmatmul.msk.bf16.gmra.mxu3 %vm7070_vm10, %v9940_v8  ;;  %v16346_v39 = vadd.f32 %v8715_v6, %v16791_v0  ;;  %v9077_v0 = vpop.f32.mrf.mxu1 }
 0x875   : > { %v8718_v31 = vpop.f32.mrf.mxu0 }
 0x876   : > { %v16349_v29 = vadd.f32 %v8718_v31, %v16792_v22  ;;  %v16797_v22 = vld [vmem:[#allocation23_spill] sm:$0xff] }
 0x878   : > { %11767 = vmatmul.msk.bf16.gmra.mxu0 %vm7070_vm10, %v16793_v61 }
 0x87d   : > { %v8720_v5 = vpop.f32.mrf.mxu0 }
 0x87e   : > { %v16354_v51 = vadd.f32 %v8720_v5, %v15940_v50 }
 0x885   : > { %v8723_v33 = vpop.f32.mrf.mxu0 }
 0x886   : > { %v16357_v32 = vadd.f32 %v8723_v33, %v15972_v46  ;;  %v16375_v46 = vld [vmem:[%s16587_s9] ss:$0 sm:$0xff]  ;;  %v10026_v33 = vpop.f32.mrf.mxu3 }
 0x888   : > { %11768 = vmatmul.msk.bf16.gmra.mxu0 %vm7070_vm10, %v16794_v42 }
 0x88d   : > { %v8725_v48 = vpop.f32.mrf.mxu0 }
 0x88e   : > { %v16362_v14 = vadd.f32 %v8725_v48, %v16015_v3 }
 0x895   : > { %v8728_v60 = vpop.f32.mrf.mxu0 }
 0x896   : > { %v16365_v37 = vadd.f32 %v8728_v60, %v16059_v54  ;;  %v16381_v54 = vld [vmem:[%s16588_s10] ss:$0 sm:$0xff] }
 0x898   : > { %11769 = vmatmul.msk.bf16.gmra.mxu0 %vm7070_vm10, %v16795_v41 }
 0x89d   : > { %v8730_v50 = vpop.f32.mrf.mxu0 }
 0x89e   : > { %v16370_v17 = vadd.f32 %v8730_v50, %v16096_v52 }
 0x8a5   : > { %v10406_v43 = vpop.f32.mrf.mxu0 }
 0x8a6   : > { %v10486_v3 = vadd.f32 %v10406_v43, %v16142_v38 }
 0x8a8   : > { %v10521_v1 = vmul.f32 %v16375_v46, %v10486_v3  ;;  %11770 = vmatmul.msk.bf16.gmra.mxu0 %vm7070_vm10, %v16796_v11  ;;  %v10029_v11 = vpop.f32.mrf.mxu3 }
 0x8aa   : > { %v10556_v52 = vadd.f32 %v16381_v54, %v10521_v1 }
 0x8ac   : > { %v10588_v38 = vmax.f32 %v10556_v52, 0.0 }
 0x8ad   : > { %v10408_v56 = vpop.f32.mrf.mxu0 }
 0x8ae   : > { %10620 = vst.msk [vmem:[%s16391_s24] sm:$0xff] %vm7070_vm10, %v10588_v38  ;;  %v10487_v44 = vadd.f32 %v10408_v56, %v16178_v57  ;;  %v9368_v57 = vpop.f32.mrf.mxu2 }
 0x8b0   : > { %v10522_v47 = vmul.f32 %v16375_v46, %v10487_v44 }
 0x8b2   : > { %v10557_v18 = vadd.f32 %v16381_v54, %v10522_v47 }
 0x8b4   : > { %v10589_v26 = vmax.f32 %v10557_v18, 0.0 }
 0x8b5   : > { %v10411_v8 = vpop.f32.mrf.mxu0 }
 0x8b6   : > { %10621 = vst.msk [vmem:[%s16391_s24 + $0x8] sm:$0xff] %vm7070_vm10, %v10589_v26  ;;  %v10488_v6 = vadd.f32 %v10411_v8, %v16210_v13  ;;  %v9080_v13 = vpop.f32.mrf.mxu1  ;;  %v9371_v50 = vpop.f32.mrf.mxu2 }
 0x8b8   : > { %v10523_v31 = vmul.f32 %v16375_v46, %v10488_v6  ;;  %11771 = vmatmul.msk.bf16.gmra.mxu0 %vm7070_vm10, %v16797_v22 }
 0x8ba   : > { %v10558_v61 = vadd.f32 %v16381_v54, %v10523_v31 }
 0x8bc   : > { %v10590_v5 = vmax.f32 %v10558_v61, 0.0 }
 0x8bd   : > { %v10413_v42 = vpop.f32.mrf.mxu0 }
 0x8be   : > { %10622 = vst.msk [vmem:[%s16391_s24 + $0x10] sm:$0xff] %vm7070_vm10, %v10590_v5  ;;  %v10489_v48 = vadd.f32 %v10413_v42, %v16233_v25  ;;  %v9082_v38 = vpop.f32.mrf.mxu1  ;;  %v9373_v44 = vpop.f32.mrf.mxu2 }
 0x8c0   : > { %v10524_v60 = vmul.f32 %v16375_v46, %v10489_v48 }
 0x8c2   : > { %v10559_v41 = vadd.f32 %v16381_v54, %v10524_v60 }
 0x8c4   : > { %v10591_v43 = vmax.f32 %v10559_v41, 0.0  ;;  %v9143_v41 = vadd.f32 %v9075_v45, %v15992_v59 }
 0x8c5   : > { %v10416_v3 = vpop.f32.mrf.mxu0 }
 0x8c6   : > { %10623 = vst.msk [vmem:[%s16391_s24 + $0x18] sm:$0xff] %vm7070_vm10, %v10591_v43  ;;  %v10490_v1 = vadd.f32 %v10416_v3, %v16245_v30  ;;  %v10031_v30 = vpop.f32.mrf.mxu3  ;;  %v9085_v31 = vpop.f32.mrf.mxu1 }
 0x8c7   : > { %v9376_v61 = vpop.f32.mrf.mxu2 }
 0x8c8   : > { %v10525_v52 = vmul.f32 %v16375_v46, %v10490_v1  ;;  %11772 = vmatmul.msk.bf16.gmra.mxu0 %vm7070_vm10, %v15932_v27 }
 0x8ca   : > { %v10560_v25 = vadd.f32 %v16381_v54, %v10525_v52 }
 0x8cc   : > { %v10592_v56 = vmax.f32 %v10560_v25, 0.0 }
 0x8cd   : > { %v10418_v47 = vpop.f32.mrf.mxu0 }
 0x8ce   : > { %10624 = vst.msk [vmem:[%s16391_s24 + $0x20] sm:$0xff] %vm7070_vm10, %v10592_v56  ;;  %v10491_v18 = vadd.f32 %v10418_v47, %v16259_v24  ;;  %v10034_v42 = vpop.f32.mrf.mxu3  ;;  %v9087_v3 = vpop.f32.mrf.mxu1 }
 0x8cf   : > { %v9378_v52 = vpop.f32.mrf.mxu2 }
 0x8d0   : > { %v10526_v26 = vmul.f32 %v16375_v46, %v10491_v18 }
 0x8d2   : > { %v10561_v8 = vadd.f32 %v16381_v54, %v10526_v26  ;;  %v16798_v26 = vld [vmem:[#allocation31_spill] sm:$0xff] }
 0x8d4   : > { %v10593_v6 = vmax.f32 %v10561_v8, 0.0  ;;  %v9144_v8 = vadd.f32 %v9077_v0, %v16798_v26 }
 0x8d5   : > { %v10421_v22 = vpop.f32.mrf.mxu0 }
 0x8d6   : > { %10625 = vst.msk [vmem:[%s16391_s24 + $0x28] sm:$0xff] %vm7070_vm10, %v10593_v6  ;;  %v10492_v27 = vadd.f32 %v10421_v22, %v16269_v23  ;;  %v9434_v23 = vadd.f32 %v9366_v36, %v9143_v41  ;;  %v16435_v47 = vpop.f32.mrf.mxu3  ;;  %v9435_v45 = vadd.f32 %v9368_v57, %v9144_v8  ;;  %v16799_v36 = vld [vmem:[#allocation6_spill] sm:$0xff]  ;;  %v9090_v6 = vpop.f32.mrf.mxu1 }
 0x8d8   : > { %v10527_v5 = vmul.f32 %v16375_v46, %v10492_v27  ;;  %11773 = vmatmul.msk.bf16.gmra.mxu0 %vm7070_vm10, %v16049_v58  ;;  %v10092_v58 = vadd.f32 %v10024_v34, %v9434_v23  ;;  %v9381_v34 = vpop.f32.mrf.mxu2  ;;  %v10093_v27 = vadd.f32 %v10026_v33, %v9435_v45 }
 0x8da   : > { %v10562_v24 = vadd.f32 %v16381_v54, %v10527_v5 }
 0x8dc   : > { %v10594_v48 = vmax.f32 %v10562_v24, 0.0 }
 0x8dd   : > { %v10423_v60 = vpop.f32.mrf.mxu0 }
 0x8de   : > { %10626 = vst.msk [vmem:[%s16391_s24 + $0x30] sm:$0xff] %vm7070_vm10, %v10594_v48  ;;  %v10493_v43 = vadd.f32 %v10423_v60, %v16282_v62  ;;  %v16800_v48 = vld [vmem:[#allocation7_spill] sm:$0xff]  ;;  %v10039_v41 = vpop.f32.mrf.mxu3 }
 0x8df   : > { %v9145_v60 = vadd.f32 %v9080_v13, %v16800_v48 }
 0x8e0   : > { %v10528_v1 = vmul.f32 %v16375_v46, %v10493_v43 }
 0x8e1   : > { %v9436_v57 = vadd.f32 %v9371_v50, %v9145_v60 }
 0x8e2   : > { %v10563_v25 = vadd.f32 %v16381_v54, %v10528_v1  ;;  %v9092_v1 = vpop.f32.mrf.mxu1 }
 0x8e4   : > { %v10595_v56 = vmax.f32 %v10563_v25, 0.0  ;;  %v10094_v25 = vadd.f32 %v10029_v11, %v9436_v57 }
 0x8e5   : > { %v10426_v18 = vpop.f32.mrf.mxu0 }
 0x8e6   : > { %10627 = vst.msk [vmem:[%s16391_s24 + $0x38] sm:$0xff] %vm7070_vm10, %v10595_v56  ;;  %v10494_v59 = vadd.f32 %v10426_v18, %v10092_v58  ;;  %v16449_v56 = vpop.f32.mrf.mxu2  ;;  %v16801_v18 = vld [vmem:[#allocation16_spill] sm:$0xff]  ;;  %v10041_v50 = vpop.f32.mrf.mxu3 }
 0x8e7   : > { %v9146_v26 = vadd.f32 %v9082_v38, %v16801_v18  ;;  %v10290_v18 = vrot.slane %v16320_v19, 5 }
 0x8e8   : > { %v10529_v62 = vmul.f32 %v16375_v46, %v10494_v59  ;;  %11774 = vmatmul.msk.bf16.gmra.mxu0 %vm7070_vm10, %v16799_v36 }
 0x8e9   : > { %v9437_v8 = vadd.f32 %v9373_v44, %v9146_v26 }
 0x8ea   : > { %v10564_v22 = vadd.f32 %v16381_v54, %v10529_v62  ;;  %v9095_v36 = vpop.f32.mrf.mxu1 }
 0x8eb   : > { %v10095_v11 = vadd.f32 %v10031_v30, %v9437_v8  ;;  %v10287_v30 = vrot.slane %v16318_v40, 5 }
 0x8ec   : > { %v10596_v5 = vmax.f32 %v10564_v22, 0.0 }
 0x8ed   : > { %v10428_v24 = vpop.f32.mrf.mxu0 }
 0x8ee   : > { %10628 = vst.msk [vmem:[%s16391_s24 + $0x40] sm:$0xff] %vm7070_vm10, %v10596_v5  ;;  %v10495_v0 = vadd.f32 %v10428_v24, %v10093_v27  ;;  %v9147_v27 = vadd.f32 %v9085_v31, %v16154_v49  ;;  %v9386_v5 = vpop.f32.mrf.mxu2  ;;  %v10131_v31 = vld [vmem:[#allocation3 + $0xcc] sm:$0xe] }
 0x8f0   : > { %v10530_v43 = vmul.f32 %v16375_v46, %v10495_v0  ;;  %v9438_v44 = vadd.f32 %v9376_v61, %v9147_v27 }
 0x8f2   : > { %v10565_v23 = vadd.f32 %v16381_v54, %v10530_v43  ;;  %v10096_v60 = vadd.f32 %v10034_v42, %v9438_v44  ;;  %v9148_v43 = vadd.f32 %v9087_v3, %v16185_v10  ;;  %v11755_v42 = vrot.slane %v10131_v31, 9 }
 0x8f4   : > { %v10597_v58 = vmax.f32 %v10565_v23, 0.0  ;;  %v9097_v23 = vpop.f32.mrf.mxu1 }
 0x8f5   : > { %v10431_v33 = vpop.f32.mrf.mxu0 }
 0x8f6   : > { %10629 = vst.msk [vmem:[%s16391_s24 + $0x48] sm:$0xff] %vm7070_vm10, %v10597_v58  ;;  %v10496_v13 = vadd.f32 %v10431_v33, %v10094_v25  ;;  %v9439_v25 = vadd.f32 %v9378_v52, %v9148_v43  ;;  %v9388_v58 = vpop.f32.mrf.mxu2  ;;  %v10289_v33 = vrot.slane %v10287_v30, 4  ;;  %v10288_v52 = vsel %vm12694_vm8, %v11755_v42, %v10287_v30 }
 0x8f8   : > { %v10531_v59 = vmul.f32 %v16375_v46, %v10496_v13  ;;  %11775 = vmatmul.msk.bf16.gmra.mxu0 %vm7070_vm10, %v16172_v35  ;;  %v10044_v35 = vpop.f32.mrf.mxu3  ;;  %v10097_v10 = vadd.f32 %v16435_v47, %v9439_v25  ;;  %v10291_v8 = vsel %vm12694_vm8, %v10289_v33, %v10290_v18 }
 0x8f9   : > { %v10326_v47 = vunpack.c.l.b16 %v10291_v8 }
 0x8fa   : > { %v10566_v45 = vadd.f32 %v16381_v54, %v10531_v59 }
 0x8fc   : > { %v10598_v62 = vmax.f32 %v10566_v45, 0.0 }
 0x8fd   : > { %v10433_v22 = vpop.f32.mrf.mxu0 }
 0x8fe   : > { %10630 = vst.msk [vmem:[%s16391_s24 + $0x50] sm:$0xff] %vm7070_vm10, %v10598_v62  ;;  %v10497_v38 = vadd.f32 %v10433_v22, %v10095_v11  ;;  %v10325_v11 = vunpack.c.l.b16 %v10288_v52  ;;  %v9100_v62 = vpop.f32.mrf.mxu1  ;;  %v9391_v27 = vpop.f32.mrf.mxu2 }
 0x900   : > { %v10532_v24 = vmul.f32 %v16375_v46, %v10497_v38  ;;  %v10046_v26 = vpop.f32.mrf.mxu3 }
 0x902   : > { %v10567_v48 = vadd.f32 %v16381_v54, %v10532_v24  ;;  %v10342_v24 = vpack.c.b16 %v10326_v47, %v10325_v11 }
 0x904   : > { %v10599_v0 = vmax.f32 %v10567_v48, 0.0  ;;  %v9150_v48 = vadd.f32 %v9092_v1, %v16238_v7  ;;  %v9151_v7 = vadd.f32 %v9095_v36, %v16252_v12 }
 0x905   : > { %v10436_v57 = vpop.f32.mrf.mxu0 }
 0x906   : > { %10631 = vst.msk [vmem:[%s16391_s24 + $0x58] sm:$0xff] %vm7070_vm10, %v10599_v0  ;;  %v10498_v49 = vadd.f32 %v10436_v57, %v10096_v60  ;;  %v9102_v57 = vpop.f32.mrf.mxu1  ;;  %v9393_v43 = vpop.f32.mrf.mxu2  ;;  %v9442_v31 = vadd.f32 %v9386_v5, %v9151_v7 }
 0x908   : > { %v10533_v61 = vmul.f32 %v16375_v46, %v10498_v49  ;;  %11776 = vmatmul.msk.bf16.gmra.mxu0 %vm7070_vm10, %v16229_v2  ;;  %v9149_v2 = vadd.f32 %v9090_v6, %v16221_v4  ;;  %v10049_v6 = vpop.f32.mrf.mxu3  ;;  %v10100_v42 = vadd.f32 %v10044_v35, %v9442_v31 }
 0x90a   : > { %v10568_v40 = vadd.f32 %v16381_v54, %v10533_v61  ;;  %v9440_v19 = vadd.f32 %v9381_v34, %v9149_v2  ;;  %v9441_v34 = vadd.f32 %v16449_v56, %v9150_v48  ;;  %v9153_v2 = vadd.f32 %v9100_v62, %v16276_v21 }
 0x90c   : > { %v10600_v3 = vmax.f32 %v10568_v40, 0.0  ;;  %v10098_v38 = vadd.f32 %v10039_v41, %v9440_v19  ;;  %v10099_v41 = vadd.f32 %v10041_v50, %v9441_v34  ;;  %v9152_v40 = vadd.f32 %v9097_v23, %v16264_v20 }
 0x90d   : > { %v10438_v13 = vpop.f32.mrf.mxu0  ;;  %v9444_v23 = vadd.f32 %v9391_v27, %v9153_v2 }
 0x90e   : > { %10632 = vst.msk [vmem:[%s16391_s24 + $0x60] sm:$0xff] %vm7070_vm10, %v10600_v3  ;;  %v10499_v59 = vadd.f32 %v10438_v13, %v10097_v10  ;;  %v9105_v18 = vpop.f32.mrf.mxu1  ;;  %v9396_v12 = vpop.f32.mrf.mxu2  ;;  %v9443_v36 = vadd.f32 %v9388_v58, %v9152_v40 }
 0x90f   : > { %v10102_v11 = vadd.f32 %v10049_v6, %v9444_v23  ;;  %v9155_v34 = vadd.f32 %v9105_v18, %v16297_v53 }
 0x910   : > { %v10534_v45 = vmul.f32 %v16375_v46, %v10499_v59  ;;  %v10051_v25 = vpop.f32.mrf.mxu3  ;;  %v10101_v52 = vadd.f32 %v10046_v26, %v9443_v36 }
 0x912   : > { %v10569_v22 = vadd.f32 %v16381_v54, %v10534_v45 }
 0x914   : > { %v10601_v44 = vmax.f32 %v10569_v22, 0.0 }
 0x915   : > { %v10441_v28 = vpop.f32.mrf.mxu0 }
 0x916   : > { %10633 = vst.msk [vmem:[%s16391_s24 + $0x68] sm:$0xff] %vm7070_vm10, %v10601_v44  ;;  %v10500_v4 = vadd.f32 %v10441_v28, %v10098_v38  ;;  %v9107_v20 = vpop.f32.mrf.mxu1  ;;  %v9398_v45 = vpop.f32.mrf.mxu2  ;;  %v9154_v38 = vadd.f32 %v9102_v57, %v16287_v15 }
 0x917   : > { %v9156_v31 = vadd.f32 %v9107_v20, %v16307_v16 }
 0x918   : > { %v10535_v60 = vmul.f32 %v16375_v46, %v10500_v4  ;;  %11777 = vmatmul.msk.bf16.gmra.mxu0 %vm7070_vm10, %v10342_v24  ;;  %v10054_v13 = vpop.f32.mrf.mxu3  ;;  %v9445_v62 = vadd.f32 %v9393_v43, %v9154_v38 }
 0x91a   : > { %v10570_v0 = vadd.f32 %v16381_v54, %v10535_v60  ;;  %v10103_v48 = vadd.f32 %v10051_v25, %v9445_v62 }
 0x91c   : > { %v10602_v30 = vmax.f32 %v10570_v0, 0.0  ;;  %v9446_v0 = vadd.f32 %v9396_v12, %v9155_v34 }
 0x91d   : > { %v10443_v49 = vpop.f32.mrf.mxu0 }
 0x91e   : > { %10634 = vst.msk [vmem:[%s16391_s24 + $0x70] sm:$0xff] %vm7070_vm10, %v10602_v30  ;;  %v10501_v1 = vadd.f32 %v10443_v49, %v10099_v41  ;;  %v9110_v24 = vpop.f32.mrf.mxu1  ;;  %v9401_v28 = vpop.f32.mrf.mxu2  ;;  %v10104_v43 = vadd.f32 %v10054_v13, %v9446_v0 }
 0x920   : > { %v10536_v56 = vmul.f32 %v16375_v46, %v10501_v1  ;;  %v10056_v22 = vpop.f32.mrf.mxu3 }
 0x922   : > { %v10571_v61 = vadd.f32 %v16381_v54, %v10536_v56  ;;  %v9447_v56 = vadd.f32 %v9398_v45, %v9156_v31 }
 0x924   : > { %v10603_v33 = vmax.f32 %v10571_v61, 0.0 }
 0x925   : > { %v10446_v50 = vpop.f32.mrf.mxu0 }
 0x926   : > { %10635 = vst.msk [vmem:[%s16391_s24 + $0x78] sm:$0xff] %vm7070_vm10, %v10603_v33  ;;  %v10502_v10 = vadd.f32 %v10446_v50, %v10100_v42  ;;  %v9112_v30 = vpop.f32.mrf.mxu1  ;;  %v9403_v7 = vpop.f32.mrf.mxu2  ;;  %v10105_v33 = vadd.f32 %v10056_v22, %v9447_v56 }
 0x927   : > { %v9158_v2 = vadd.f32 %v9112_v30, %v16330_v63 }
 0x928   : > { %v10537_v3 = vmul.f32 %v16375_v46, %v10502_v10  ;;  %v10059_v15 = vpop.f32.mrf.mxu3  ;;  %v9157_v10 = vadd.f32 %v9110_v24, %v16314_v9 }
 0x929   : > { %v9449_v20 = vadd.f32 %v9403_v7, %v9158_v2 }
 0x92a   : > { %v10572_v5 = vadd.f32 %v16381_v54, %v10537_v3  ;;  %v9448_v36 = vadd.f32 %v9401_v28, %v9157_v10 }
 0x92c   : > { %v10604_v8 = vmax.f32 %v10572_v5, 0.0 }
 0x92d   : > { %v10448_v35 = vpop.f32.mrf.mxu0 }
 0x92e   : > { %10636 = vst.msk [vmem:[%s16391_s24 + $0x80] sm:$0xff] %vm7070_vm10, %v10604_v8  ;;  %v10503_v59 = vadd.f32 %v10448_v35, %v10101_v52  ;;  %v9115_v50 = vpop.f32.mrf.mxu1  ;;  %v9406_v16 = vpop.f32.mrf.mxu2  ;;  %v10106_v52 = vadd.f32 %v10059_v15, %v9448_v36 }
 0x930   : > { %v10538_v19 = vmul.f32 %v16375_v46, %v10503_v59  ;;  %v10061_v61 = vpop.f32.mrf.mxu3 }
 0x932   : > { %v10573_v58 = vadd.f32 %v16381_v54, %v10538_v19 }
 0x934   : > { %v10605_v47 = vmax.f32 %v10573_v58, 0.0  ;;  %v10107_v58 = vadd.f32 %v10061_v61, %v9449_v20 }
 0x935   : > { %v10451_v26 = vpop.f32.mrf.mxu0 }
 0x936   : > { %10637 = vst.msk [vmem:[%s16391_s24 + $0x88] sm:$0xff] %vm7070_vm10, %v10605_v47  ;;  %v10504_v21 = vadd.f32 %v10451_v26, %v10102_v11  ;;  %v9117_v9 = vpop.f32.mrf.mxu1  ;;  %v9408_v19 = vpop.f32.mrf.mxu2  ;;  %v9159_v26 = vadd.f32 %v9115_v50, %v16339_v55 }
 0x938   : > { %v10539_v44 = vmul.f32 %v16375_v46, %v10504_v21  ;;  %v10064_v13 = vpop.f32.mrf.mxu3  ;;  %v9450_v38 = vadd.f32 %v9406_v16, %v9159_v26 }
 0x93a   : > { %v10574_v27 = vadd.f32 %v16381_v54, %v10539_v44 }
 0x93c   : > { %v10606_v4 = vmax.f32 %v10574_v27, 0.0  ;;  %v10108_v27 = vadd.f32 %v10064_v13, %v9450_v38 }
 0x93d   : > { %v10453_v6 = vpop.f32.mrf.mxu0 }
 0x93e   : > { %10638 = vst.msk [vmem:[%s16391_s24 + $0x90] sm:$0xff] %vm7070_vm10, %v10606_v4  ;;  %v10505_v60 = vadd.f32 %v10453_v6, %v10103_v48  ;;  %v9120_v62 = vpop.f32.mrf.mxu1  ;;  %v9411_v24 = vpop.f32.mrf.mxu2  ;;  %v9160_v4 = vadd.f32 %v9117_v9, %v16346_v39 }
 0x940   : > { %v10540_v57 = vmul.f32 %v16375_v46, %v10505_v60  ;;  %v10066_v47 = vpop.f32.mrf.mxu3  ;;  %v9451_v34 = vadd.f32 %v9408_v19, %v9160_v4 }
 0x942   : > { %v10575_v41 = vadd.f32 %v16381_v54, %v10540_v57  ;;  %v10109_v57 = vadd.f32 %v10066_v47, %v9451_v34 }
 0x944   : > { %v10607_v49 = vmax.f32 %v10575_v41, 0.0 }
 0x945   : > { %v10456_v1 = vpop.f32.mrf.mxu0 }
 0x946   : > { %10639 = vst.msk [vmem:[%s16391_s24 + $0x98] sm:$0xff] %vm7070_vm10, %v10607_v49  ;;  %v10506_v53 = vadd.f32 %v10456_v1, %v10104_v43  ;;  %v9122_v0 = vpop.f32.mrf.mxu1  ;;  %v9413_v30 = vpop.f32.mrf.mxu2  ;;  %v9161_v49 = vadd.f32 %v9120_v62, %v16349_v29 }
 0x948   : > { %v10541_v25 = vmul.f32 %v16375_v46, %v10506_v53  ;;  %v10069_v55 = vpop.f32.mrf.mxu3  ;;  %v9452_v7 = vadd.f32 %v9411_v24, %v9161_v49 }
 0x94a   : > { %v10576_v42 = vadd.f32 %v16381_v54, %v10541_v25  ;;  %v10110_v56 = vadd.f32 %v10069_v55, %v9452_v7 }
 0x94c   : > { %v10608_v18 = vmax.f32 %v10576_v42, 0.0 }
 0x94d   : > { %v10458_v40 = vpop.f32.mrf.mxu0 }
 0x94e   : > { %10640 = vst.msk [vmem:[%s16391_s24 + $0xa0] sm:$0xff] %vm7070_vm10, %v10608_v18  ;;  %v10507_v12 = vadd.f32 %v10458_v40, %v10105_v33  ;;  %v9125_v61 = vpop.f32.mrf.mxu1  ;;  %v9162_v33 = vadd.f32 %v9122_v0, %v16354_v51  ;;  %v9416_v29 = vpop.f32.mrf.mxu2 }
 0x950   : > { %v10542_v3 = vmul.f32 %v16375_v46, %v10507_v12  ;;  %v10071_v31 = vpop.f32.mrf.mxu3  ;;  %v9453_v50 = vadd.f32 %v9413_v30, %v9162_v33 }
 0x952   : > { %v10577_v5 = vadd.f32 %v16381_v54, %v10542_v3  ;;  %v10111_v16 = vadd.f32 %v10071_v31, %v9453_v50 }
 0x954   : > { %v10609_v8 = vmax.f32 %v10577_v5, 0.0  ;;  %v9163_v5 = vadd.f32 %v9125_v61, %v16357_v32 }
 0x955   : > { %v10461_v35 = vpop.f32.mrf.mxu0 }
 0x956   : > { %10641 = vst.msk [vmem:[%s16391_s24 + $0xa8] sm:$0xff] %vm7070_vm10, %v10609_v8  ;;  %v10508_v59 = vadd.f32 %v10461_v35, %v10106_v52  ;;  %v9127_v51 = vpop.f32.mrf.mxu1  ;;  %v9454_v52 = vadd.f32 %v9416_v29, %v9163_v5  ;;  %v9418_v35 = vpop.f32.mrf.mxu2 }
 0x957   : > { %v9164_v19 = vadd.f32 %v9127_v51, %v16362_v14 }
 0x958   : > { %v10543_v23 = vmul.f32 %v16375_v46, %v10508_v59  ;;  %v10074_v12 = vpop.f32.mrf.mxu3 }
 0x959   : > { %v10112_v59 = vadd.f32 %v10074_v12, %v9454_v52 }
 0x95a   : > { %v10578_v45 = vadd.f32 %v16381_v54, %v10543_v23 }
 0x95c   : > { %v10610_v11 = vmax.f32 %v10578_v45, 0.0  ;;  %v9455_v45 = vadd.f32 %v9418_v35, %v9164_v19 }
 0x95d   : > { %v10463_v22 = vpop.f32.mrf.mxu0 }
 0x95e   : > { %10642 = vst.msk [vmem:[%s16391_s24 + $0xb0] sm:$0xff] %vm7070_vm10, %v10610_v11  ;;  %v10509_v63 = vadd.f32 %v10463_v22, %v10107_v58  ;;  %v9130_v11 = vpop.f32.mrf.mxu1  ;;  %v9421_v22 = vpop.f32.mrf.mxu2 }
 0x960   : > { %v10544_v21 = vmul.f32 %v16375_v46, %v10509_v63  ;;  %v10076_v20 = vpop.f32.mrf.mxu3 }
 0x961   : > { %v10113_v26 = vadd.f32 %v10076_v20, %v9455_v45 }
 0x962   : > { %v10579_v44 = vadd.f32 %v16381_v54, %v10544_v21  ;;  %v9165_v21 = vadd.f32 %v9130_v11, %v16365_v37 }
 0x964   : > { %v10611_v28 = vmax.f32 %v10579_v44, 0.0  ;;  %v9456_v44 = vadd.f32 %v9421_v22, %v9165_v21 }
 0x965   : > { %v10466_v48 = vpop.f32.mrf.mxu0 }
 0x966   : > { %10643 = vst.msk [vmem:[%s16391_s24 + $0xb8] sm:$0xff] %vm7070_vm10, %v10611_v28  ;;  %v10510_v6 = vadd.f32 %v10466_v48, %v10108_v27  ;;  %v9132_v28 = vpop.f32.mrf.mxu1 }
 0x967   : > { %v9166_v34 = vadd.f32 %v9132_v28, %v16370_v17 }
 0x968   : > { %v10545_v60 = vmul.f32 %v16375_v46, %v10510_v6  ;;  %v10079_v14 = vpop.f32.mrf.mxu3  ;;  %v9423_v6 = vpop.f32.mrf.mxu2 }
 0x969   : > { %v10114_v48 = vadd.f32 %v10079_v14, %v9456_v44 }
 0x96a   : > { %v10580_v15 = vadd.f32 %v16381_v54, %v10545_v60  ;;  %v9457_v60 = vadd.f32 %v9423_v6, %v9166_v34 }
 0x96c   : > { %v10612_v41 = vmax.f32 %v10580_v15, 0.0 }
 0x96d   : > { %v10468_v43 = vpop.f32.mrf.mxu0 }
 0x96e   : > { %10644 = vst.msk [vmem:[%s16391_s24 + $0xc0] sm:$0xff] %vm7070_vm10, %v10612_v41  ;;  %v10511_v39 = vadd.f32 %v10468_v43, %v10109_v57 }
 0x970   : > { %v10546_v1 = vmul.f32 %v16375_v46, %v10511_v39  ;;  %v10081_v0 = vpop.f32.mrf.mxu3 }
 0x971   : > { %v10115_v41 = vadd.f32 %v10081_v0, %v9457_v60 }
 0x972   : > { %v10581_v53 = vadd.f32 %v16381_v54, %v10546_v1 }
 0x974   : > { %v10613_v25 = vmax.f32 %v10581_v53, 0.0 }
 0x975   : > { %v10471_v42 = vpop.f32.mrf.mxu0 }
 0x976   : > { %10645 = vst.msk [vmem:[%s16391_s24 + $0xc8] sm:$0xff] %vm7070_vm10, %v10613_v25  ;;  %v10512_v18 = vadd.f32 %v10471_v42, %v10110_v56 }
 0x978   : > { %v10547_v40 = vmul.f32 %v16375_v46, %v10512_v18 }
 0x97a   : > { %v10582_v10 = vadd.f32 %v16381_v54, %v10547_v40 }
 0x97c   : > { %v10614_v36 = vmax.f32 %v10582_v10, 0.0 }
 0x97d   : > { %v10473_v3 = vpop.f32.mrf.mxu0 }
 0x97e   : > { %10646 = vst.msk [vmem:[%s16391_s24 + $0xd0] sm:$0xff] %vm7070_vm10, %v10614_v36  ;;  %v10513_v13 = vadd.f32 %v10473_v3, %v10111_v16 }
 0x980   : > { %v10548_v8 = vmul.f32 %v16375_v46, %v10513_v13 }
 0x982   : > { %v10583_v2 = vadd.f32 %v16381_v54, %v10548_v8 }
 0x984   : > { %v10615_v9 = vmax.f32 %v10583_v2, 0.0 }
 0x985   : > { %v10476_v23 = vpop.f32.mrf.mxu0 }
 0x986   : > { %10647 = vst.msk [vmem:[%s16391_s24 + $0xd8] sm:$0xff] %vm7070_vm10, %v10615_v9  ;;  %v10514_v32 = vadd.f32 %v10476_v23, %v10112_v59 }
 0x988   : > { %v10549_v58 = vmul.f32 %v16375_v46, %v10514_v32 }
 0x98a   : > { %v10584_v47 = vadd.f32 %v16381_v54, %v10549_v58 }
 0x98c   : > { %v10616_v63 = vmax.f32 %v10584_v47, 0.0 }
 0x98d   : > { %v10478_v38 = vpop.f32.mrf.mxu0 }
 0x98e   : > { %10648 = vst.msk [vmem:[%s16391_s24 + $0xe0] sm:$0xff] %vm7070_vm10, %v10616_v63  ;;  %v10515_v62 = vadd.f32 %v10478_v38, %v10113_v26 }
 0x990   : > { %v10550_v24 = vmul.f32 %v16375_v46, %v10515_v62 }
 0x992   : > { %v10585_v27 = vadd.f32 %v16381_v54, %v10550_v24 }
 0x994   : > { %v10617_v4 = vmax.f32 %v10585_v27, 0.0 }
 0x995   : > { %v10481_v55 = vpop.f32.mrf.mxu0 }
 0x996   : > { %10649 = vst.msk [vmem:[%s16391_s24 + $0xe8] sm:$0xff] %vm7070_vm10, %v10617_v4  ;;  %v10516_v37 = vadd.f32 %v10481_v55, %v10114_v48 }
 0x998   : > { %v10551_v15 = vmul.f32 %v16375_v46, %v10516_v37 }
 0x99a   : > { %v10586_v57 = vadd.f32 %v16381_v54, %v10551_v15 }
 0x99c   : > { %v10618_v30 = vmax.f32 %v10586_v57, 0.0 }
 0x99d   : > { %v10483_v43 = vpop.f32.mrf.mxu0 }
 0x99e   : > { %10650 = vst.msk [vmem:[%s16391_s24 + $0xf0] sm:$0xff] %vm7070_vm10, %v10618_v30  ;;  %v10517_v49 = vadd.f32 %v10483_v43, %v10115_v41 }
 0x9a0   : > { %v10552_v39 = vmul.f32 %v16375_v46, %v10517_v49 }
 0x9a2   : > { %v10587_v7 = vadd.f32 %v16381_v54, %v10552_v39 }
 0x9a4   : > { %v10619_v17 = vmax.f32 %v10587_v7, 0.0 }
 0x9a6   : > { %10651 = vst.msk [vmem:[%s16391_s24 + $0xf8] sm:$0xff] %vm7070_vm10, %v10619_v17 }
 0x9a7 PF: > { %s21_s17 = sadd.s32 1, %s12025_s17  }
 0x9a8   : > { %p18_p4 = scmp.ge.s32.totalorder %s21_s17, 4  }
 0x9aa   :  { %20 = sbr.rel (!%p18_p4) target bundleno = 1 (0x1), region = 118 }

</bundles_post_ra>
